<compile_context>
chip_gen: v7x
topology: tpu7x:2x2x1
jax: 0.10.0
libtpu: 0.0.40
codegen_flags: <defaults>
</compile_context>

<pallas_src>
import jax
import jax.numpy as jnp
from jax.experimental import pallas as pl
from jax.experimental.pallas import tpu as pltpu

EPS = 1e-5  # BatchNorm eps (PyTorch default)


# ---------------------------------------------------------------------------
# Single fused kernel: conv1 + BN1 + ReLU1 + conv2 + BN2 + ReLU2
# ---------------------------------------------------------------------------
def double_block_kernel(x_ref, w1_ref, g1_ref, b1_ref, w2_ref, g2_ref, b2_ref,
                        o_ref, xp1, xp2):
    N, Hp, Wp, Cin = xp1.shape
    H, W = Hp - 2, Wp - 2
    Cmid = xp2.shape[-1]          # conv1 output channels
    Cout = o_ref.shape[-1]        # conv2 output channels (== Cmid)
    M = N * H * W
    inv_count = 1.0 / float(M)

    def zero_border(xp, c):
        # Only the 1-pixel halo border needs zeros; the interior is overwritten below.
        xp[:, 0:1, :, :] = jnp.zeros((N, 1, Wp, c), jnp.float32)
        xp[:, H + 1:H + 2, :, :] = jnp.zeros((N, 1, Wp, c), jnp.float32)
        xp[:, :, 0:1, :] = jnp.zeros((N, Hp, 1, c), jnp.float32)
        xp[:, :, W + 1:W + 2, :] = jnp.zeros((N, Hp, 1, c), jnp.float32)

    def conv3x3(xp, w_ref, ci, co):
        # 9 accumulating MXU dots over statically shifted halo views (no im2col concat).
        acc = jnp.zeros((M, co), jnp.float32)
        for kh in range(3):
            for kw in range(3):
                tap = xp[:, kh:kh + H, kw:kw + W, :].reshape(M, ci)
                acc = acc + jnp.dot(tap, w_ref[kh * 3 + kw],
                                    preferred_element_type=jnp.float32)
        return acc

    def bn_relu(y, g_ref, b_ref):
        # Single-pass, global (N,H,W) batch statistics, folded into per-channel affine.
        s = jnp.sum(y, axis=0, keepdims=True)          # (1, C)
        ss = jnp.sum(y * y, axis=0, keepdims=True)     # (1, C)
        mean = s * inv_count
        var = jnp.maximum(ss * inv_count - mean * mean, 0.0)
        scale = g_ref[...] * jax.lax.rsqrt(var + EPS)
        shift = b_ref[...] - mean * scale
        return jnp.maximum(y * scale + shift, 0.0)

    # ---- conv1 -> BN1 -> ReLU1 (stays in registers / VMEM) ----
    zero_border(xp1, Cin)
    xp1[:, 1:H + 1, 1:W + 1, :] = x_ref[...]
    y1 = conv3x3(xp1, w1_ref, Cin, Cmid)               # (M, Cmid)
    a1 = bn_relu(y1, g1_ref, b1_ref)

    # ---- conv2 -> BN2 -> ReLU2 ----
    zero_border(xp2, Cmid)
    xp2[:, 1:H + 1, 1:W + 1, :] = a1.reshape(N, H, W, Cmid)
    y2 = conv3x3(xp2, w2_ref, Cmid, Cout)              # (M, Cout)
    o_ref[...] = bn_relu(y2, g2_ref, b2_ref).reshape(N, H, W, Cout)


# ---------------------------------------------------------------------------
# Parameter prep (hoisted out of the per-call path): OIHW -> (9, Ci, Co) taps.
# ---------------------------------------------------------------------------
def prepare_params(params):
    w1, g1, b1, w2, g2, b2 = params

    def prep_w(w):                                     # (Co, Ci, 3, 3) -> (9, Ci, Co)
        co, ci = w.shape[0], w.shape[1]
        return jnp.transpose(w, (2, 3, 1, 0)).reshape(9, ci, co).astype(jnp.float32)

    def prep_v(v):                                     # (C,) -> (1, C)
        return v.astype(jnp.float32).reshape(1, -1)

    return dict(w1=prep_w(w1), g1=prep_v(g1), b1=prep_v(b1),
                w2=prep_w(w2), g2=prep_v(g2), b2=prep_v(b2),
                Cout=w1.shape[0])


def double_forward(x_nchw, prep):
    """Forward pass of `double`. Input/output NCHW (PyTorch convention)."""
    N, Cin, H, W = x_nchw.shape
    Cout = prep["Cout"]

    # One boundary layout conversion: NCHW -> NHWC (no channel padding).
    x = jnp.transpose(x_nchw, (0, 2, 3, 1))

    out = pl.pallas_call(
        double_block_kernel,
        out_shape=jax.ShapeDtypeStruct((N, H, W, Cout), jnp.float32),
        scratch_shapes=[
            pltpu.VMEM((N, H + 2, W + 2, Cin), jnp.float32),    # halo for conv1
            pltpu.VMEM((N, H + 2, W + 2, Cout), jnp.float32),   # halo for conv2
        ],
        compiler_params=pltpu.CompilerParams(
            vmem_limit_bytes=32 * 1024 * 1024),
    )(x, prep["w1"], prep["g1"], prep["b1"], prep["w2"], prep["g2"], prep["b2"])

    # Back to PyTorch NCHW.
    return jnp.transpose(out, (0, 3, 1, 2))


# ---------------------------------------------------------------------------
# Pure-JAX reference (matches PyTorch training-mode forward).
# ---------------------------------------------------------------------------
def _reference(x, params):
    w1, g1, b1, w2, g2, b2 = params

    def block(x, w, g, b):
        y = jax.lax.conv_general_dilated(
            x, w, window_strides=(1, 1), padding=((1, 1), (1, 1)),
            dimension_numbers=("NCHW", "OIHW", "NCHW"))
        mean = jnp.mean(y, axis=(0, 2, 3), keepdims=True)
        var = jnp.mean((y - mean) ** 2, axis=(0, 2, 3), keepdims=True)
        y = (y - mean) * jax.lax.rsqrt(var + EPS) \
            * g.reshape(1, -1, 1, 1) + b.reshape(1, -1, 1, 1)
        return jnp.maximum(y, 0.0)

    return block(block(x, w1, g1, b1), w2, g2, b2)


if __name__ == "__main__":
    N, Cin, Cout, H, W = 2, 4, 8, 16, 16

    key = jax.random.PRNGKey(0)
    kx, kw1, kw2, kg1, kb1, kg2, kb2 = jax.random.split(key, 7)

    x = jax.random.normal(kx, (N, Cin, H, W), jnp.float32)

    w1 = jax.random.normal(kw1, (Cout, Cin, 3, 3), jnp.float32) * 0.2
    w2 = jax.random.normal(kw2, (Cout, Cout, 3, 3), jnp.float32) * 0.2
    g1 = 1.0 + 0.1 * jax.random.normal(kg1, (Cout,), jnp.float32)
    b1 = 0.1 * jax.random.normal(kb1, (Cout,), jnp.float32)
    g2 = 1.0 + 0.1 * jax.random.normal(kg2, (Cout,), jnp.float32)
    b2 = 0.1 * jax.random.normal(kb2, (Cout,), jnp.float32)
    params = (w1, g1, b1, w2, g2, b2)

    prep = prepare_params(params)          # hoisted weight prep (done once)
    fwd = jax.jit(lambda xx: double_forward(xx, prep))

    out = jax.block_until_ready(fwd(x))
    ref = jax.block_until_ready(_reference(x, params))

    assert out.shape == (N, Cout, H, W), out.shape
    assert jnp.allclose(out, ref, atol=1e-3, rtol=1e-3), \
        float(jnp.max(jnp.abs(out - ref)))

    print("KERNEL_OK")
</pallas_src>

<mosaic_0001>
module attributes {stable_mosaic.version = 11 : i64} {
  func.func @double_block_kernel(%arg0: memref<2x16x16x4xf32, #tpu.memory_space<vmem>>, %arg1: memref<9x4x8xf32, #tpu.memory_space<vmem>>, %arg2: memref<1x8xf32, #tpu.memory_space<vmem>>, %arg3: memref<1x8xf32, #tpu.memory_space<vmem>>, %arg4: memref<9x8x8xf32, #tpu.memory_space<vmem>>, %arg5: memref<1x8xf32, #tpu.memory_space<vmem>>, %arg6: memref<1x8xf32, #tpu.memory_space<vmem>>, %arg7: memref<2x16x16x8xf32, #tpu.memory_space<vmem>>, %arg8: memref<2x18x18x4xf32, #tpu.memory_space<vmem>>, %arg9: memref<2x18x18x8xf32, #tpu.memory_space<vmem>>) attributes {dimension_semantics = [], scalar_prefetch = 0 : i64, scratch_operands = 2 : i64, tpu.core_type = #tpu.core_type<tc>} {
    %cst = arith.constant 0.000000e+00 : f32
    %0 = vector.broadcast %cst : f32 to vector<2x1x18x4xf32>
    %c0 = arith.constant 0 : index
    %c0_0 = arith.constant 0 : index
    %c0_1 = arith.constant 0 : index
    %c0_2 = arith.constant 0 : index
    %1 = vector.load %arg8[%c0, %c0_0, %c0_1, %c0_2] : memref<2x18x18x4xf32, #tpu.memory_space<vmem>>, vector<2x1x18x4xf32>
    tpu.vector_store %arg8[%c0, %c0_0, %c0_1, %c0_2], %0 {strides = array<i32>} : memref<2x18x18x4xf32, #tpu.memory_space<vmem>>, vector<2x1x18x4xf32>,
    %cst_3 = arith.constant 0.000000e+00 : f32
    %2 = vector.broadcast %cst_3 : f32 to vector<2x1x18x4xf32>
    %c0_4 = arith.constant 0 : index
    %c17 = arith.constant 17 : index
    %c0_5 = arith.constant 0 : index
    %c0_6 = arith.constant 0 : index
    %3 = vector.load %arg8[%c0_4, %c17, %c0_5, %c0_6] : memref<2x18x18x4xf32, #tpu.memory_space<vmem>>, vector<2x1x18x4xf32>
    tpu.vector_store %arg8[%c0_4, %c17, %c0_5, %c0_6], %2 {strides = array<i32>} : memref<2x18x18x4xf32, #tpu.memory_space<vmem>>, vector<2x1x18x4xf32>,
    %cst_7 = arith.constant 0.000000e+00 : f32
    %4 = vector.broadcast %cst_7 : f32 to vector<2x18x1x4xf32>
    %c0_8 = arith.constant 0 : index
    %c0_9 = arith.constant 0 : index
    %c0_10 = arith.constant 0 : index
    %c0_11 = arith.constant 0 : index
    %5 = vector.load %arg8[%c0_8, %c0_9, %c0_10, %c0_11] : memref<2x18x18x4xf32, #tpu.memory_space<vmem>>, vector<2x18x1x4xf32>
    tpu.vector_store %arg8[%c0_8, %c0_9, %c0_10, %c0_11], %4 {strides = array<i32>} : memref<2x18x18x4xf32, #tpu.memory_space<vmem>>, vector<2x18x1x4xf32>,
    %cst_12 = arith.constant 0.000000e+00 : f32
    %6 = vector.broadcast %cst_12 : f32 to vector<2x18x1x4xf32>
    %c0_13 = arith.constant 0 : index
    %c0_14 = arith.constant 0 : index
    %c17_15 = arith.constant 17 : index
    %c0_16 = arith.constant 0 : index
    %7 = vector.load %arg8[%c0_13, %c0_14, %c17_15, %c0_16] : memref<2x18x18x4xf32, #tpu.memory_space<vmem>>, vector<2x18x1x4xf32>
    tpu.vector_store %arg8[%c0_13, %c0_14, %c17_15, %c0_16], %6 {strides = array<i32>} : memref<2x18x18x4xf32, #tpu.memory_space<vmem>>, vector<2x18x1x4xf32>,
    %c0_17 = arith.constant 0 : index
    %c0_18 = arith.constant 0 : index
    %c0_19 = arith.constant 0 : index
    %c0_20 = arith.constant 0 : index
    %8 = vector.load %arg0[%c0_17, %c0_18, %c0_19, %c0_20] : memref<2x16x16x4xf32, #tpu.memory_space<vmem>>, vector<2x16x16x4xf32>
    %c0_21 = arith.constant 0 : index
    %c1 = arith.constant 1 : index
    %c1_22 = arith.constant 1 : index
    %c0_23 = arith.constant 0 : index
    %9 = vector.load %arg8[%c0_21, %c1, %c1_22, %c0_23] : memref<2x18x18x4xf32, #tpu.memory_space<vmem>>, vector<2x16x16x4xf32>
    tpu.vector_store %arg8[%c0_21, %c1, %c1_22, %c0_23], %8 {strides = array<i32>} : memref<2x18x18x4xf32, #tpu.memory_space<vmem>>, vector<2x16x16x4xf32>,
    %cst_24 = arith.constant 0.000000e+00 : f32
    %10 = vector.broadcast %cst_24 : f32 to vector<512x8xf32>
    %c0_25 = arith.constant 0 : index
    %c0_26 = arith.constant 0 : index
    %c0_27 = arith.constant 0 : index
    %c0_28 = arith.constant 0 : index
    %11 = vector.load %arg8[%c0_25, %c0_26, %c0_27, %c0_28] : memref<2x18x18x4xf32, #tpu.memory_space<vmem>>, vector<2x16x16x4xf32>
    %12 = vector.shape_cast %11 : vector<2x16x16x4xf32> to vector<512x4xf32>
    %c0_29 = arith.constant 0 : index
    %c0_30 = arith.constant 0 : index
    %c0_31 = arith.constant 0 : index
    %13 = vector.load %arg1[%c0_29, %c0_30, %c0_31] : memref<9x4x8xf32, #tpu.memory_space<vmem>>, vector<1x4x8xf32>
    %14 = vector.shape_cast %13 : vector<1x4x8xf32> to vector<4x8xf32>
    %cst_32 = arith.constant dense<0.000000e+00> : vector<512x8xf32>
    %15 = tpu.matmul %12, %14, %cst_32 {dimension_numbers = #tpu.dot_dimension_numbers<[1], [0], [0], [1], [0, 0, 1, 1], [], []>} : vector<512x4xf32>, vector<4x8xf32>, vector<512x8xf32> -> vector<512x8xf32>
    %16 = arith.addf %10, %15 : vector<512x8xf32>
    %c0_33 = arith.constant 0 : index
    %c0_34 = arith.constant 0 : index
    %c1_35 = arith.constant 1 : index
    %c0_36 = arith.constant 0 : index
    %17 = vector.load %arg8[%c0_33, %c0_34, %c1_35, %c0_36] : memref<2x18x18x4xf32, #tpu.memory_space<vmem>>, vector<2x16x16x4xf32>
    %18 = vector.shape_cast %17 : vector<2x16x16x4xf32> to vector<512x4xf32>
    %c1_37 = arith.constant 1 : index
    %c0_38 = arith.constant 0 : index
    %c0_39 = arith.constant 0 : index
    %19 = vector.load %arg1[%c1_37, %c0_38, %c0_39] : memref<9x4x8xf32, #tpu.memory_space<vmem>>, vector<1x4x8xf32>
    %20 = vector.shape_cast %19 : vector<1x4x8xf32> to vector<4x8xf32>
    %cst_40 = arith.constant dense<0.000000e+00> : vector<512x8xf32>
    %21 = tpu.matmul %18, %20, %cst_40 {dimension_numbers = #tpu.dot_dimension_numbers<[1], [0], [0], [1], [0, 0, 1, 1], [], []>} : vector<512x4xf32>, vector<4x8xf32>, vector<512x8xf32> -> vector<512x8xf32>
    %22 = arith.addf %16, %21 : vector<512x8xf32>
    %c0_41 = arith.constant 0 : index
    %c0_42 = arith.constant 0 : index
    %c2 = arith.constant 2 : index
    %c0_43 = arith.constant 0 : index
    %23 = vector.load %arg8[%c0_41, %c0_42, %c2, %c0_43] : memref<2x18x18x4xf32, #tpu.memory_space<vmem>>, vector<2x16x16x4xf32>
    %24 = vector.shape_cast %23 : vector<2x16x16x4xf32> to vector<512x4xf32>
    %c2_44 = arith.constant 2 : index
    %c0_45 = arith.constant 0 : index
    %c0_46 = arith.constant 0 : index
    %25 = vector.load %arg1[%c2_44, %c0_45, %c0_46] : memref<9x4x8xf32, #tpu.memory_space<vmem>>, vector<1x4x8xf32>
    %26 = vector.shape_cast %25 : vector<1x4x8xf32> to vector<4x8xf32>
    %cst_47 = arith.constant dense<0.000000e+00> : vector<512x8xf32>
    %27 = tpu.matmul %24, %26, %cst_47 {dimension_numbers = #tpu.dot_dimension_numbers<[1], [0], [0], [1], [0, 0, 1, 1], [], []>} : vector<512x4xf32>, vector<4x8xf32>, vector<512x8xf32> -> vector<512x8xf32>
    %28 = arith.addf %22, %27 : vector<512x8xf32>
    %c0_48 = arith.constant 0 : index
    %c1_49 = arith.constant 1 : index
    %c0_50 = arith.constant 0 : index
    %c0_51 = arith.constant 0 : index
    %29 = vector.load %arg8[%c0_48, %c1_49, %c0_50, %c0_51] : memref<2x18x18x4xf32, #tpu.memory_space<vmem>>, vector<2x16x16x4xf32>
    %30 = vector.shape_cast %29 : vector<2x16x16x4xf32> to vector<512x4xf32>
    %c3 = arith.constant 3 : index
    %c0_52 = arith.constant 0 : index
    %c0_53 = arith.constant 0 : index
    %31 = vector.load %arg1[%c3, %c0_52, %c0_53] : memref<9x4x8xf32, #tpu.memory_space<vmem>>, vector<1x4x8xf32>
    %32 = vector.shape_cast %31 : vector<1x4x8xf32> to vector<4x8xf32>
    %cst_54 = arith.constant dense<0.000000e+00> : vector<512x8xf32>
    %33 = tpu.matmul %30, %32, %cst_54 {dimension_numbers = #tpu.dot_dimension_numbers<[1], [0], [0], [1], [0, 0, 1, 1], [], []>} : vector<512x4xf32>, vector<4x8xf32>, vector<512x8xf32> -> vector<512x8xf32>
    %34 = arith.addf %28, %33 : vector<512x8xf32>
    %c0_55 = arith.constant 0 : index
    %c1_56 = arith.constant 1 : index
    %c1_57 = arith.constant 1 : index
    %c0_58 = arith.constant 0 : index
    %35 = vector.load %arg8[%c0_55, %c1_56, %c1_57, %c0_58] : memref<2x18x18x4xf32, #tpu.memory_space<vmem>>, vector<2x16x16x4xf32>
    %36 = vector.shape_cast %35 : vector<2x16x16x4xf32> to vector<512x4xf32>
    %c4 = arith.constant 4 : index
    %c0_59 = arith.constant 0 : index
    %c0_60 = arith.constant 0 : index
    %37 = vector.load %arg1[%c4, %c0_59, %c0_60] : memref<9x4x8xf32, #tpu.memory_space<vmem>>, vector<1x4x8xf32>
    %38 = vector.shape_cast %37 : vector<1x4x8xf32> to vector<4x8xf32>
    %cst_61 = arith.constant dense<0.000000e+00> : vector<512x8xf32>
    %39 = tpu.matmul %36, %38, %cst_61 {dimension_numbers = #tpu.dot_dimension_numbers<[1], [0], [0], [1], [0, 0, 1, 1], [], []>} : vector<512x4xf32>, vector<4x8xf32>, vector<512x8xf32> -> vector<512x8xf32>
    %40 = arith.addf %34, %39 : vector<512x8xf32>
    %c0_62 = arith.constant 0 : index
    %c1_63 = arith.constant 1 : index
    %c2_64 = arith.constant 2 : index
    %c0_65 = arith.constant 0 : index
    %41 = vector.load %arg8[%c0_62, %c1_63, %c2_64, %c0_65] : memref<2x18x18x4xf32, #tpu.memory_space<vmem>>, vector<2x16x16x4xf32>
    %42 = vector.shape_cast %41 : vector<2x16x16x4xf32> to vector<512x4xf32>
    %c5 = arith.constant 5 : index
    %c0_66 = arith.constant 0 : index
    %c0_67 = arith.constant 0 : index
    %43 = vector.load %arg1[%c5, %c0_66, %c0_67] : memref<9x4x8xf32, #tpu.memory_space<vmem>>, vector<1x4x8xf32>
    %44 = vector.shape_cast %43 : vector<1x4x8xf32> to vector<4x8xf32>
    %cst_68 = arith.constant dense<0.000000e+00> : vector<512x8xf32>
    %45 = tpu.matmul %42, %44, %cst_68 {dimension_numbers = #tpu.dot_dimension_numbers<[1], [0], [0], [1], [0, 0, 1, 1], [], []>} : vector<512x4xf32>, vector<4x8xf32>, vector<512x8xf32> -> vector<512x8xf32>
    %46 = arith.addf %40, %45 : vector<512x8xf32>
    %c0_69 = arith.constant 0 : index
    %c2_70 = arith.constant 2 : index
    %c0_71 = arith.constant 0 : index
    %c0_72 = arith.constant 0 : index
    %47 = vector.load %arg8[%c0_69, %c2_70, %c0_71, %c0_72] : memref<2x18x18x4xf32, #tpu.memory_space<vmem>>, vector<2x16x16x4xf32>
    %48 = vector.shape_cast %47 : vector<2x16x16x4xf32> to vector<512x4xf32>
    %c6 = arith.constant 6 : index
    %c0_73 = arith.constant 0 : index
    %c0_74 = arith.constant 0 : index
    %49 = vector.load %arg1[%c6, %c0_73, %c0_74] : memref<9x4x8xf32, #tpu.memory_space<vmem>>, vector<1x4x8xf32>
    %50 = vector.shape_cast %49 : vector<1x4x8xf32> to vector<4x8xf32>
    %cst_75 = arith.constant dense<0.000000e+00> : vector<512x8xf32>
    %51 = tpu.matmul %48, %50, %cst_75 {dimension_numbers = #tpu.dot_dimension_numbers<[1], [0], [0], [1], [0, 0, 1, 1], [], []>} : vector<512x4xf32>, vector<4x8xf32>, vector<512x8xf32> -> vector<512x8xf32>
    %52 = arith.addf %46, %51 : vector<512x8xf32>
    %c0_76 = arith.constant 0 : index
    %c2_77 = arith.constant 2 : index
    %c1_78 = arith.constant 1 : index
    %c0_79 = arith.constant 0 : index
    %53 = vector.load %arg8[%c0_76, %c2_77, %c1_78, %c0_79] : memref<2x18x18x4xf32, #tpu.memory_space<vmem>>, vector<2x16x16x4xf32>
    %54 = vector.shape_cast %53 : vector<2x16x16x4xf32> to vector<512x4xf32>
    %c7 = arith.constant 7 : index
    %c0_80 = arith.constant 0 : index
    %c0_81 = arith.constant 0 : index
    %55 = vector.load %arg1[%c7, %c0_80, %c0_81] : memref<9x4x8xf32, #tpu.memory_space<vmem>>, vector<1x4x8xf32>
    %56 = vector.shape_cast %55 : vector<1x4x8xf32> to vector<4x8xf32>
    %cst_82 = arith.constant dense<0.000000e+00> : vector<512x8xf32>
    %57 = tpu.matmul %54, %56, %cst_82 {dimension_numbers = #tpu.dot_dimension_numbers<[1], [0], [0], [1], [0, 0, 1, 1], [], []>} : vector<512x4xf32>, vector<4x8xf32>, vector<512x8xf32> -> vector<512x8xf32>
    %58 = arith.addf %52, %57 : vector<512x8xf32>
    %c0_83 = arith.constant 0 : index
    %c2_84 = arith.constant 2 : index
    %c2_85 = arith.constant 2 : index
    %c0_86 = arith.constant 0 : index
    %59 = vector.load %arg8[%c0_83, %c2_84, %c2_85, %c0_86] : memref<2x18x18x4xf32, #tpu.memory_space<vmem>>, vector<2x16x16x4xf32>
    %60 = vector.shape_cast %59 : vector<2x16x16x4xf32> to vector<512x4xf32>
    %c8 = arith.constant 8 : index
    %c0_87 = arith.constant 0 : index
    %c0_88 = arith.constant 0 : index
    %61 = vector.load %arg1[%c8, %c0_87, %c0_88] : memref<9x4x8xf32, #tpu.memory_space<vmem>>, vector<1x4x8xf32>
    %62 = vector.shape_cast %61 : vector<1x4x8xf32> to vector<4x8xf32>
    %cst_89 = arith.constant dense<0.000000e+00> : vector<512x8xf32>
    %63 = tpu.matmul %60, %62, %cst_89 {dimension_numbers = #tpu.dot_dimension_numbers<[1], [0], [0], [1], [0, 0, 1, 1], [], []>} : vector<512x4xf32>, vector<4x8xf32>, vector<512x8xf32> -> vector<512x8xf32>
    %64 = arith.addf %58, %63 : vector<512x8xf32>
    %cst_90 = arith.constant dense<0.000000e+00> : vector<8xf32>
    %65 = vector.multi_reduction <add>, %64, %cst_90 [0] : vector<512x8xf32> to vector<8xf32>
    %66 = vector.shape_cast %65 : vector<8xf32> to vector<1x8xf32>
    %67 = arith.mulf %64, %64 : vector<512x8xf32>
    %cst_91 = arith.constant dense<0.000000e+00> : vector<8xf32>
    %68 = vector.multi_reduction <add>, %67, %cst_91 [0] : vector<512x8xf32> to vector<8xf32>
    %69 = vector.shape_cast %68 : vector<8xf32> to vector<1x8xf32>
    %cst_92 = arith.constant 0.001953125 : f32
    %70 = vector.broadcast %cst_92 : f32 to vector<1x8xf32>
    %71 = arith.mulf %66, %70 : vector<1x8xf32>
    %cst_93 = arith.constant 0.001953125 : f32
    %72 = vector.broadcast %cst_93 : f32 to vector<1x8xf32>
    %73 = arith.mulf %69, %72 : vector<1x8xf32>
    %74 = arith.mulf %71, %71 : vector<1x8xf32>
    %75 = arith.subf %73, %74 : vector<1x8xf32>
    %cst_94 = arith.constant 0.000000e+00 : f32
    %76 = vector.broadcast %cst_94 : f32 to vector<1x8xf32>
    %77 = arith.maximumf %75, %76 : vector<1x8xf32>
    %c0_95 = arith.constant 0 : index
    %c0_96 = arith.constant 0 : index
    %78 = vector.load %arg2[%c0_95, %c0_96] : memref<1x8xf32, #tpu.memory_space<vmem>>, vector<1x8xf32>
    %cst_97 = arith.constant 9.99999974E-6 : f32
    %79 = vector.broadcast %cst_97 : f32 to vector<1x8xf32>
    %80 = arith.addf %77, %79 : vector<1x8xf32>
    %81 = math.rsqrt %80 : vector<1x8xf32>
    %82 = arith.mulf %78, %81 : vector<1x8xf32>
    %c0_98 = arith.constant 0 : index
    %c0_99 = arith.constant 0 : index
    %83 = vector.load %arg3[%c0_98, %c0_99] : memref<1x8xf32, #tpu.memory_space<vmem>>, vector<1x8xf32>
    %84 = arith.mulf %71, %82 : vector<1x8xf32>
    %85 = arith.subf %83, %84 : vector<1x8xf32>
    %86 = vector.broadcast %82 : vector<1x8xf32> to vector<512x8xf32>
    %87 = arith.mulf %64, %86 : vector<512x8xf32>
    %88 = vector.broadcast %85 : vector<1x8xf32> to vector<512x8xf32>
    %89 = arith.addf %87, %88 : vector<512x8xf32>
    %cst_100 = arith.constant 0.000000e+00 : f32
    %90 = vector.broadcast %cst_100 : f32 to vector<512x8xf32>
    %91 = arith.maximumf %89, %90 : vector<512x8xf32>
    %cst_101 = arith.constant 0.000000e+00 : f32
    %92 = vector.broadcast %cst_101 : f32 to vector<2x1x18x8xf32>
    %c0_102 = arith.constant 0 : index
    %c0_103 = arith.constant 0 : index
    %c0_104 = arith.constant 0 : index
    %c0_105 = arith.constant 0 : index
    %93 = vector.load %arg9[%c0_102, %c0_103, %c0_104, %c0_105] : memref<2x18x18x8xf32, #tpu.memory_space<vmem>>, vector<2x1x18x8xf32>
    tpu.vector_store %arg9[%c0_102, %c0_103, %c0_104, %c0_105], %92 {strides = array<i32>} : memref<2x18x18x8xf32, #tpu.memory_space<vmem>>, vector<2x1x18x8xf32>,
    %cst_106 = arith.constant 0.000000e+00 : f32
    %94 = vector.broadcast %cst_106 : f32 to vector<2x1x18x8xf32>
    %c0_107 = arith.constant 0 : index
    %c17_108 = arith.constant 17 : index
    %c0_109 = arith.constant 0 : index
    %c0_110 = arith.constant 0 : index
    %95 = vector.load %arg9[%c0_107, %c17_108, %c0_109, %c0_110] : memref<2x18x18x8xf32, #tpu.memory_space<vmem>>, vector<2x1x18x8xf32>
    tpu.vector_store %arg9[%c0_107, %c17_108, %c0_109, %c0_110], %94 {strides = array<i32>} : memref<2x18x18x8xf32, #tpu.memory_space<vmem>>, vector<2x1x18x8xf32>,
    %cst_111 = arith.constant 0.000000e+00 : f32
    %96 = vector.broadcast %cst_111 : f32 to vector<2x18x1x8xf32>
    %c0_112 = arith.constant 0 : index
    %c0_113 = arith.constant 0 : index
    %c0_114 = arith.constant 0 : index
    %c0_115 = arith.constant 0 : index
    %97 = vector.load %arg9[%c0_112, %c0_113, %c0_114, %c0_115] : memref<2x18x18x8xf32, #tpu.memory_space<vmem>>, vector<2x18x1x8xf32>
    tpu.vector_store %arg9[%c0_112, %c0_113, %c0_114, %c0_115], %96 {strides = array<i32>} : memref<2x18x18x8xf32, #tpu.memory_space<vmem>>, vector<2x18x1x8xf32>,
    %cst_116 = arith.constant 0.000000e+00 : f32
    %98 = vector.broadcast %cst_116 : f32 to vector<2x18x1x8xf32>
    %c0_117 = arith.constant 0 : index
    %c0_118 = arith.constant 0 : index
    %c17_119 = arith.constant 17 : index
    %c0_120 = arith.constant 0 : index
    %99 = vector.load %arg9[%c0_117, %c0_118, %c17_119, %c0_120] : memref<2x18x18x8xf32, #tpu.memory_space<vmem>>, vector<2x18x1x8xf32>
    tpu.vector_store %arg9[%c0_117, %c0_118, %c17_119, %c0_120], %98 {strides = array<i32>} : memref<2x18x18x8xf32, #tpu.memory_space<vmem>>, vector<2x18x1x8xf32>,
    %100 = vector.shape_cast %91 : vector<512x8xf32> to vector<2x16x16x8xf32>
    %c0_121 = arith.constant 0 : index
    %c1_122 = arith.constant 1 : index
    %c1_123 = arith.constant 1 : index
    %c0_124 = arith.constant 0 : index
    %101 = vector.load %arg9[%c0_121, %c1_122, %c1_123, %c0_124] : memref<2x18x18x8xf32, #tpu.memory_space<vmem>>, vector<2x16x16x8xf32>
    tpu.vector_store %arg9[%c0_121, %c1_122, %c1_123, %c0_124], %100 {strides = array<i32>} : memref<2x18x18x8xf32, #tpu.memory_space<vmem>>, vector<2x16x16x8xf32>,
    %cst_125 = arith.constant 0.000000e+00 : f32
    %102 = vector.broadcast %cst_125 : f32 to vector<512x8xf32>
    %c0_126 = arith.constant 0 : index
    %c0_127 = arith.constant 0 : index
    %c0_128 = arith.constant 0 : index
    %c0_129 = arith.constant 0 : index
    %103 = vector.load %arg9[%c0_126, %c0_127, %c0_128, %c0_129] : memref<2x18x18x8xf32, #tpu.memory_space<vmem>>, vector<2x16x16x8xf32>
    %104 = vector.shape_cast %103 : vector<2x16x16x8xf32> to vector<512x8xf32>
    %c0_130 = arith.constant 0 : index
    %c0_131 = arith.constant 0 : index
    %c0_132 = arith.constant 0 : index
    %105 = vector.load %arg4[%c0_130, %c0_131, %c0_132] : memref<9x8x8xf32, #tpu.memory_space<vmem>>, vector<1x8x8xf32>
    %106 = vector.shape_cast %105 : vector<1x8x8xf32> to vector<8x8xf32>
    %cst_133 = arith.constant dense<0.000000e+00> : vector<512x8xf32>
    %107 = tpu.matmul %104, %106, %cst_133 {dimension_numbers = #tpu.dot_dimension_numbers<[1], [0], [0], [1], [0, 0, 1, 1], [], []>} : vector<512x8xf32>, vector<8x8xf32>, vector<512x8xf32> -> vector<512x8xf32>
    %108 = arith.addf %102, %107 : vector<512x8xf32>
    %c0_134 = arith.constant 0 : index
    %c0_135 = arith.constant 0 : index
    %c1_136 = arith.constant 1 : index
    %c0_137 = arith.constant 0 : index
    %109 = vector.load %arg9[%c0_134, %c0_135, %c1_136, %c0_137] : memref<2x18x18x8xf32, #tpu.memory_space<vmem>>, vector<2x16x16x8xf32>
    %110 = vector.shape_cast %109 : vector<2x16x16x8xf32> to vector<512x8xf32>
    %c1_138 = arith.constant 1 : index
    %c0_139 = arith.constant 0 : index
    %c0_140 = arith.constant 0 : index
    %111 = vector.load %arg4[%c1_138, %c0_139, %c0_140] : memref<9x8x8xf32, #tpu.memory_space<vmem>>, vector<1x8x8xf32>
    %112 = vector.shape_cast %111 : vector<1x8x8xf32> to vector<8x8xf32>
    %cst_141 = arith.constant dense<0.000000e+00> : vector<512x8xf32>
    %113 = tpu.matmul %110, %112, %cst_141 {dimension_numbers = #tpu.dot_dimension_numbers<[1], [0], [0], [1], [0, 0, 1, 1], [], []>} : vector<512x8xf32>, vector<8x8xf32>, vector<512x8xf32> -> vector<512x8xf32>
    %114 = arith.addf %108, %113 : vector<512x8xf32>
    %c0_142 = arith.constant 0 : index
    %c0_143 = arith.constant 0 : index
    %c2_144 = arith.constant 2 : index
    %c0_145 = arith.constant 0 : index
    %115 = vector.load %arg9[%c0_142, %c0_143, %c2_144, %c0_145] : memref<2x18x18x8xf32, #tpu.memory_space<vmem>>, vector<2x16x16x8xf32>
    %116 = vector.shape_cast %115 : vector<2x16x16x8xf32> to vector<512x8xf32>
    %c2_146 = arith.constant 2 : index
    %c0_147 = arith.constant 0 : index
    %c0_148 = arith.constant 0 : index
    %117 = vector.load %arg4[%c2_146, %c0_147, %c0_148] : memref<9x8x8xf32, #tpu.memory_space<vmem>>, vector<1x8x8xf32>
    %118 = vector.shape_cast %117 : vector<1x8x8xf32> to vector<8x8xf32>
    %cst_149 = arith.constant dense<0.000000e+00> : vector<512x8xf32>
    %119 = tpu.matmul %116, %118, %cst_149 {dimension_numbers = #tpu.dot_dimension_numbers<[1], [0], [0], [1], [0, 0, 1, 1], [], []>} : vector<512x8xf32>, vector<8x8xf32>, vector<512x8xf32> -> vector<512x8xf32>
    %120 = arith.addf %114, %119 : vector<512x8xf32>
    %c0_150 = arith.constant 0 : index
    %c1_151 = arith.constant 1 : index
    %c0_152 = arith.constant 0 : index
    %c0_153 = arith.constant 0 : index
    %121 = vector.load %arg9[%c0_150, %c1_151, %c0_152, %c0_153] : memref<2x18x18x8xf32, #tpu.memory_space<vmem>>, vector<2x16x16x8xf32>
    %122 = vector.shape_cast %121 : vector<2x16x16x8xf32> to vector<512x8xf32>
    %c3_154 = arith.constant 3 : index
    %c0_155 = arith.constant 0 : index
    %c0_156 = arith.constant 0 : index
    %123 = vector.load %arg4[%c3_154, %c0_155, %c0_156] : memref<9x8x8xf32, #tpu.memory_space<vmem>>, vector<1x8x8xf32>
    %124 = vector.shape_cast %123 : vector<1x8x8xf32> to vector<8x8xf32>
    %cst_157 = arith.constant dense<0.000000e+00> : vector<512x8xf32>
    %125 = tpu.matmul %122, %124, %cst_157 {dimension_numbers = #tpu.dot_dimension_numbers<[1], [0], [0], [1], [0, 0, 1, 1], [], []>} : vector<512x8xf32>, vector<8x8xf32>, vector<512x8xf32> -> vector<512x8xf32>
    %126 = arith.addf %120, %125 : vector<512x8xf32>
    %c0_158 = arith.constant 0 : index
    %c1_159 = arith.constant 1 : index
    %c1_160 = arith.constant 1 : index
    %c0_161 = arith.constant 0 : index
    %127 = vector.load %arg9[%c0_158, %c1_159, %c1_160, %c0_161] : memref<2x18x18x8xf32, #tpu.memory_space<vmem>>, vector<2x16x16x8xf32>
    %128 = vector.shape_cast %127 : vector<2x16x16x8xf32> to vector<512x8xf32>
    %c4_162 = arith.constant 4 : index
    %c0_163 = arith.constant 0 : index
    %c0_164 = arith.constant 0 : index
    %129 = vector.load %arg4[%c4_162, %c0_163, %c0_164] : memref<9x8x8xf32, #tpu.memory_space<vmem>>, vector<1x8x8xf32>
    %130 = vector.shape_cast %129 : vector<1x8x8xf32> to vector<8x8xf32>
    %cst_165 = arith.constant dense<0.000000e+00> : vector<512x8xf32>
    %131 = tpu.matmul %128, %130, %cst_165 {dimension_numbers = #tpu.dot_dimension_numbers<[1], [0], [0], [1], [0, 0, 1, 1], [], []>} : vector<512x8xf32>, vector<8x8xf32>, vector<512x8xf32> -> vector<512x8xf32>
    %132 = arith.addf %126, %131 : vector<512x8xf32>
    %c0_166 = arith.constant 0 : index
    %c1_167 = arith.constant 1 : index
    %c2_168 = arith.constant 2 : index
    %c0_169 = arith.constant 0 : index
    %133 = vector.load %arg9[%c0_166, %c1_167, %c2_168, %c0_169] : memref<2x18x18x8xf32, #tpu.memory_space<vmem>>, vector<2x16x16x8xf32>
    %134 = vector.shape_cast %133 : vector<2x16x16x8xf32> to vector<512x8xf32>
    %c5_170 = arith.constant 5 : index
    %c0_171 = arith.constant 0 : index
    %c0_172 = arith.constant 0 : index
    %135 = vector.load %arg4[%c5_170, %c0_171, %c0_172] : memref<9x8x8xf32, #tpu.memory_space<vmem>>, vector<1x8x8xf32>
    %136 = vector.shape_cast %135 : vector<1x8x8xf32> to vector<8x8xf32>
    %cst_173 = arith.constant dense<0.000000e+00> : vector<512x8xf32>
    %137 = tpu.matmul %134, %136, %cst_173 {dimension_numbers = #tpu.dot_dimension_numbers<[1], [0], [0], [1], [0, 0, 1, 1], [], []>} : vector<512x8xf32>, vector<8x8xf32>, vector<512x8xf32> -> vector<512x8xf32>
    %138 = arith.addf %132, %137 : vector<512x8xf32>
    %c0_174 = arith.constant 0 : index
    %c2_175 = arith.constant 2 : index
    %c0_176 = arith.constant 0 : index
    %c0_177 = arith.constant 0 : index
    %139 = vector.load %arg9[%c0_174, %c2_175, %c0_176, %c0_177] : memref<2x18x18x8xf32, #tpu.memory_space<vmem>>, vector<2x16x16x8xf32>
    %140 = vector.shape_cast %139 : vector<2x16x16x8xf32> to vector<512x8xf32>
    %c6_178 = arith.constant 6 : index
    %c0_179 = arith.constant 0 : index
    %c0_180 = arith.constant 0 : index
    %141 = vector.load %arg4[%c6_178, %c0_179, %c0_180] : memref<9x8x8xf32, #tpu.memory_space<vmem>>, vector<1x8x8xf32>
    %142 = vector.shape_cast %141 : vector<1x8x8xf32> to vector<8x8xf32>
    %cst_181 = arith.constant dense<0.000000e+00> : vector<512x8xf32>
    %143 = tpu.matmul %140, %142, %cst_181 {dimension_numbers = #tpu.dot_dimension_numbers<[1], [0], [0], [1], [0, 0, 1, 1], [], []>} : vector<512x8xf32>, vector<8x8xf32>, vector<512x8xf32> -> vector<512x8xf32>
    %144 = arith.addf %138, %143 : vector<512x8xf32>
    %c0_182 = arith.constant 0 : index
    %c2_183 = arith.constant 2 : index
    %c1_184 = arith.constant 1 : index
    %c0_185 = arith.constant 0 : index
    %145 = vector.load %arg9[%c0_182, %c2_183, %c1_184, %c0_185] : memref<2x18x18x8xf32, #tpu.memory_space<vmem>>, vector<2x16x16x8xf32>
    %146 = vector.shape_cast %145 : vector<2x16x16x8xf32> to vector<512x8xf32>
    %c7_186 = arith.constant 7 : index
    %c0_187 = arith.constant 0 : index
    %c0_188 = arith.constant 0 : index
    %147 = vector.load %arg4[%c7_186, %c0_187, %c0_188] : memref<9x8x8xf32, #tpu.memory_space<vmem>>, vector<1x8x8xf32>
    %148 = vector.shape_cast %147 : vector<1x8x8xf32> to vector<8x8xf32>
    %cst_189 = arith.constant dense<0.000000e+00> : vector<512x8xf32>
    %149 = tpu.matmul %146, %148, %cst_189 {dimension_numbers = #tpu.dot_dimension_numbers<[1], [0], [0], [1], [0, 0, 1, 1], [], []>} : vector<512x8xf32>, vector<8x8xf32>, vector<512x8xf32> -> vector<512x8xf32>
    %150 = arith.addf %144, %149 : vector<512x8xf32>
    %c0_190 = arith.constant 0 : index
    %c2_191 = arith.constant 2 : index
    %c2_192 = arith.constant 2 : index
    %c0_193 = arith.constant 0 : index
    %151 = vector.load %arg9[%c0_190, %c2_191, %c2_192, %c0_193] : memref<2x18x18x8xf32, #tpu.memory_space<vmem>>, vector<2x16x16x8xf32>
    %152 = vector.shape_cast %151 : vector<2x16x16x8xf32> to vector<512x8xf32>
    %c8_194 = arith.constant 8 : index
    %c0_195 = arith.constant 0 : index
    %c0_196 = arith.constant 0 : index
    %153 = vector.load %arg4[%c8_194, %c0_195, %c0_196] : memref<9x8x8xf32, #tpu.memory_space<vmem>>, vector<1x8x8xf32>
    %154 = vector.shape_cast %153 : vector<1x8x8xf32> to vector<8x8xf32>
    %cst_197 = arith.constant dense<0.000000e+00> : vector<512x8xf32>
    %155 = tpu.matmul %152, %154, %cst_197 {dimension_numbers = #tpu.dot_dimension_numbers<[1], [0], [0], [1], [0, 0, 1, 1], [], []>} : vector<512x8xf32>, vector<8x8xf32>, vector<512x8xf32> -> vector<512x8xf32>
    %156 = arith.addf %150, %155 : vector<512x8xf32>
    %cst_198 = arith.constant dense<0.000000e+00> : vector<8xf32>
    %157 = vector.multi_reduction <add>, %156, %cst_198 [0] : vector<512x8xf32> to vector<8xf32>
    %158 = vector.shape_cast %157 : vector<8xf32> to vector<1x8xf32>
    %159 = arith.mulf %156, %156 : vector<512x8xf32>
    %cst_199 = arith.constant dense<0.000000e+00> : vector<8xf32>
    %160 = vector.multi_reduction <add>, %159, %cst_199 [0] : vector<512x8xf32> to vector<8xf32>
    %161 = vector.shape_cast %160 : vector<8xf32> to vector<1x8xf32>
    %cst_200 = arith.constant 0.001953125 : f32
    %162 = vector.broadcast %cst_200 : f32 to vector<1x8xf32>
    %163 = arith.mulf %158, %162 : vector<1x8xf32>
    %cst_201 = arith.constant 0.001953125 : f32
    %164 = vector.broadcast %cst_201 : f32 to vector<1x8xf32>
    %165 = arith.mulf %161, %164 : vector<1x8xf32>
    %166 = arith.mulf %163, %163 : vector<1x8xf32>
    %167 = arith.subf %165, %166 : vector<1x8xf32>
    %cst_202 = arith.constant 0.000000e+00 : f32
    %168 = vector.broadcast %cst_202 : f32 to vector<1x8xf32>
    %169 = arith.maximumf %167, %168 : vector<1x8xf32>
    %c0_203 = arith.constant 0 : index
    %c0_204 = arith.constant 0 : index
    %170 = vector.load %arg5[%c0_203, %c0_204] : memref<1x8xf32, #tpu.memory_space<vmem>>, vector<1x8xf32>
    %cst_205 = arith.constant 9.99999974E-6 : f32
    %171 = vector.broadcast %cst_205 : f32 to vector<1x8xf32>
    %172 = arith.addf %169, %171 : vector<1x8xf32>
    %173 = math.rsqrt %172 : vector<1x8xf32>
    %174 = arith.mulf %170, %173 : vector<1x8xf32>
    %c0_206 = arith.constant 0 : index
    %c0_207 = arith.constant 0 : index
    %175 = vector.load %arg6[%c0_206, %c0_207] : memref<1x8xf32, #tpu.memory_space<vmem>>, vector<1x8xf32>
    %176 = arith.mulf %163, %174 : vector<1x8xf32>
    %177 = arith.subf %175, %176 : vector<1x8xf32>
    %178 = vector.broadcast %174 : vector<1x8xf32> to vector<512x8xf32>
    %179 = arith.mulf %156, %178 : vector<512x8xf32>
    %180 = vector.broadcast %177 : vector<1x8xf32> to vector<512x8xf32>
    %181 = arith.addf %179, %180 : vector<512x8xf32>
    %cst_208 = arith.constant 0.000000e+00 : f32
    %182 = vector.broadcast %cst_208 : f32 to vector<512x8xf32>
    %183 = arith.maximumf %181, %182 : vector<512x8xf32>
    %184 = vector.shape_cast %183 : vector<512x8xf32> to vector<2x16x16x8xf32>
    %c0_209 = arith.constant 0 : index
    %c0_210 = arith.constant 0 : index
    %c0_211 = arith.constant 0 : index
    %c0_212 = arith.constant 0 : index
    %185 = vector.load %arg7[%c0_209, %c0_210, %c0_211, %c0_212] : memref<2x16x16x8xf32, #tpu.memory_space<vmem>>, vector<2x16x16x8xf32>
    tpu.vector_store %arg7[%c0_209, %c0_210, %c0_211, %c0_212], %184 {strides = array<i32>} : memref<2x16x16x8xf32, #tpu.memory_space<vmem>>, vector<2x16x16x8xf32>,
    return
  }
}

</mosaic_0001>

<bundles_post_ra>
// kernel: _lambda_.1
= control target key start
LH: loop header
LB: loop body
LE: loop exit
PB: predicated region body
PF: predicated region fallthrough
CT: control target
= control target key end

     0   :  { %vm566_vm0 = vcmask 1043456   ;;  %vm26_vm1 = vcmask 31744   ;;  %vm29_vm2 = vcmask 25600   ;;  %v25037_v1 = vmov 0.0   ;;  %s25029_s1 = inlined_call_operand.vmem [shape: f32[9,4,8], index: 1, kind: input, shape index: {}]   ;;  %s25030_s0 = inlined_call_operand.vmem [shape: f32[2,16,16,4], index: 0, kind: input, shape index: {}]   ;;  %s25031_s4 = inlined_call_operand.vmem [shape: f32[9,8,8], index: 4, kind: input, shape index: {}]   ;;  %s25032_s2 = inlined_call_operand.vmem [shape: f32[1,8], index: 2, kind: input, shape index: {}]   ;;  %s25033_s3 = inlined_call_operand.vmem [shape: f32[1,8], index: 3, kind: input, shape index: {}]   ;;  %s25034_s5 = inlined_call_operand.vmem [shape: f32[1,8], index: 5, kind: input, shape index: {}]   ;;  %s25035_s6 = inlined_call_operand.vmem [shape: f32[1,8], index: 6, kind: input, shape index: {}]   ;;  %s25036_s7 = inlined_call_operand.vmem [shape: f32[2,16,16,8], index: 7, kind: output, shape index: {}]  }
   0x1   :  { %v19238_v0 = vld [vmem:[%s25029_s1 + $0x4] sm:$0xf]  ;;  %27 = vst.msk [vmem:[#allocation2] sm:$0xff] %vm26_vm1, %v25037_v1  ;;  %28 = vst.msk [vmem:[#allocation2 + $0x8] sm:$0xff] %vm26_vm1, %v25037_v1  ;;  %v19259_v2 = vld [vmem:[%s25029_s1] sm:$0xf] }
   0x2   :  { %31 = vst.msk [vmem:[#allocation2 + $0x1b0] sm:$0xff] %vm26_vm1, %v25037_v1  ;;  %32 = vst.msk [vmem:[#allocation2 + $0x1b8] sm:$0xff] %vm26_vm1, %v25037_v1  ;;  %vm41_vm3 = vcmask 24576   ;;  %v19272_v3 = vld [vmem:[%s25030_s0] sm:$0xff]  ;;  %16401 = vmatprep.subr.msk.mxu0 %vm566_vm0, %v19238_v0  ;;  %v115_v4 = vld [vmem:[%s25030_s0 + $0x8] sm:$0xff]  ;;  %vm6506_vm4 = vcmask 64512  }
   0x3   :  { %35 = vst.msk [vmem:[#allocation2 + $0x198] sm:$0xff] %vm26_vm1, %v25037_v1  ;;  %36 = vst.msk [vmem:[#allocation2 + $0x1a0] sm:$0xff] %vm26_vm1, %v25037_v1  ;;  %v116_v5 = vld [vmem:[%s25030_s0 + $0x10] sm:$0xff]  ;;  %v117_v6 = vld [vmem:[%s25030_s0 + $0x18] sm:$0xff]  ;;  %16402 = vmatpush3.msk.msra.mxu0 %vm566_vm0, %v19238_v0  ;;  %vm7055_vm5 = vcmask 58368   ;;  %vm7067_vm6 = vcmask 57344  }
   0x4   :  { %38 = vst.msk [vmem:[#allocation2 + $0x348] sm:$0xff] %vm26_vm1, %v25037_v1  ;;  %39 = vst.msk [vmem:[#allocation2 + $0x350] sm:$0xff] %vm26_vm1, %v25037_v1  ;;  %v118_v7 = vld [vmem:[%s25030_s0 + $0x20] sm:$0xff]  ;;  %v119_v8 = vld [vmem:[%s25030_s0 + $0x28] sm:$0xff]  ;;  %16499 = vmatprep.subr.msk.mxu0 %vm566_vm0, %v19259_v2 }
   0x5   :  { %30 = vst.msk [vmem:[#allocation2 + $0x10] sm:$0x3] %vm29_vm2, %v25037_v1  ;;  %33 = vst.msk [vmem:[#allocation2 + $0x1c0] sm:$0x3] %vm29_vm2, %v25037_v1  ;;  %v120_v9 = vld [vmem:[%s25030_s0 + $0x30] sm:$0xff]  ;;  %v121_v10 = vld [vmem:[%s25030_s0 + $0x38] sm:$0xff] }
   0x6   :  { %37 = vst.msk [vmem:[#allocation2 + $0x1a8] sm:$0x3] %vm29_vm2, %v25037_v1  ;;  %40 = vst.msk [vmem:[#allocation2 + $0x358] sm:$0x3] %vm29_vm2, %v25037_v1  ;;  %v122_v11 = vld [vmem:[%s25030_s0 + $0x40] sm:$0xff]  ;;  %v123_v12 = vld [vmem:[%s25030_s0 + $0x48] sm:$0xff] }
   0x7   :  { %78 = vst.msk [vmem:[#allocation2 + $0x11] sm:$0x1] %vm41_vm3, %v25037_v1  ;;  %42 = vst.msk [vmem:[#allocation2] sm:$0x1] %vm41_vm3, %v25037_v1  ;;  %v124_v13 = vld [vmem:[%s25030_s0 + $0x50] sm:$0xff]  ;;  %v125_v14 = vld [vmem:[%s25030_s0 + $0x58] sm:$0xff] }
   0x8   :  { %43 = vst.msk [vmem:[#allocation2 + $0x18] sm:$0x1] %vm41_vm3, %v25037_v1  ;;  %44 = vst.msk [vmem:[#allocation2 + $0x30] sm:$0x1] %vm41_vm3, %v25037_v1  ;;  %v126_v15 = vld [vmem:[%s25030_s0 + $0x60] sm:$0xff]  ;;  %v127_v16 = vld [vmem:[%s25030_s0 + $0x68] sm:$0xff] }
   0x9   :  { %45 = vst.msk [vmem:[#allocation2 + $0x48] sm:$0x1] %vm41_vm3, %v25037_v1  ;;  %46 = vst.msk [vmem:[#allocation2 + $0x60] sm:$0x1] %vm41_vm3, %v25037_v1  ;;  %v128_v17 = vld [vmem:[%s25030_s0 + $0x70] sm:$0xff]  ;;  %v129_v18 = vld [vmem:[%s25030_s0 + $0x78] sm:$0xff] }
   0xa   :  { %47 = vst.msk [vmem:[#allocation2 + $0x78] sm:$0x1] %vm41_vm3, %v25037_v1  ;;  %48 = vst.msk [vmem:[#allocation2 + $0x90] sm:$0x1] %vm41_vm3, %v25037_v1  ;;  %v130_v19 = vld [vmem:[%s25030_s0 + $0x80] sm:$0xff]  ;;  %v131_v20 = vld [vmem:[%s25030_s0 + $0x88] sm:$0xff] }
   0xb   :  { %49 = vst.msk [vmem:[#allocation2 + $0xa8] sm:$0x1] %vm41_vm3, %v25037_v1  ;;  %50 = vst.msk [vmem:[#allocation2 + $0xc0] sm:$0x1] %vm41_vm3, %v25037_v1  ;;  %v132_v21 = vld [vmem:[%s25030_s0 + $0x90] sm:$0xff]  ;;  %v308_v22 = vld [vmem:[#allocation2 + $0x1] sm:$0xff] }
   0xc   :  { %51 = vst.msk [vmem:[#allocation2 + $0xd8] sm:$0x1] %vm41_vm3, %v25037_v1  ;;  %52 = vst.msk [vmem:[#allocation2 + $0xf0] sm:$0x1] %vm41_vm3, %v25037_v1  ;;  %v309_v23 = vld [vmem:[#allocation2 + $0x9] sm:$0xff]  ;;  %v133_v24 = vld [vmem:[%s25030_s0 + $0x98] sm:$0xff]  ;;  %16403 = vmatprep.mubr.msk.f32.mxu0 %vm26_vm1, %v308_v22 }
   0xd   :  { %53 = vst.msk [vmem:[#allocation2 + $0x108] sm:$0x1] %vm41_vm3, %v25037_v1  ;;  %54 = vst.msk [vmem:[#allocation2 + $0x120] sm:$0x1] %vm41_vm3, %v25037_v1  ;;  %v134_v26 = vld [vmem:[%s25030_s0 + $0xa0] sm:$0xff]  ;;  %v135_v27 = vld [vmem:[%s25030_s0 + $0xa8] sm:$0xff]  ;;  %16404 = vmatmul.mubr.msk.f32.vlgmr.msra.gmra.mrb[0].mxu0 %vm26_vm1, %v309_v23 }
   0xe   :  { %55 = vst.msk [vmem:[#allocation2 + $0x138] sm:$0x1] %vm41_vm3, %v25037_v1  ;;  %56 = vst.msk [vmem:[#allocation2 + $0x150] sm:$0x1] %vm41_vm3, %v25037_v1  ;;  %16500 = vmatpush3.msk.msra.mxu0 %vm566_vm0, %v19259_v2  ;;  %v136_v32 = vld [vmem:[%s25030_s0 + $0xb0] sm:$0xff]  ;;  %v137_v33 = vld [vmem:[%s25030_s0 + $0xb8] sm:$0xff] }
   0xf   :  { %57 = vst.msk [vmem:[#allocation2 + $0x168] sm:$0x1] %vm41_vm3, %v25037_v1  ;;  %58 = vst.msk [vmem:[#allocation2 + $0x180] sm:$0x1] %vm41_vm3, %v25037_v1  ;;  %v138_v34 = vld [vmem:[%s25030_s0 + $0xc0] sm:$0xff]  ;;  %v139_v35 = vld [vmem:[%s25030_s0 + $0xc8] sm:$0xff] }
  0x10   :  { %59 = vst.msk [vmem:[#allocation2 + $0x198] sm:$0x1] %vm41_vm3, %v25037_v1  ;;  %60 = vst.msk [vmem:[#allocation2 + $0x1b0] sm:$0x1] %vm41_vm3, %v25037_v1  ;;  %v140_v36 = vld [vmem:[%s25030_s0 + $0xd0] sm:$0xff]  ;;  %v141_v37 = vld [vmem:[%s25030_s0 + $0xd8] sm:$0xff] }
  0x11   :  { %61 = vst.msk [vmem:[#allocation2 + $0x1c8] sm:$0x1] %vm41_vm3, %v25037_v1  ;;  %62 = vst.msk [vmem:[#allocation2 + $0x1e0] sm:$0x1] %vm41_vm3, %v25037_v1  ;;  %v142_v39 = vld [vmem:[%s25030_s0 + $0xe0] sm:$0xff]  ;;  %v143_v40 = vld [vmem:[%s25030_s0 + $0xe8] sm:$0xff] }
  0x12   :  { %63 = vst.msk [vmem:[#allocation2 + $0x1f8] sm:$0x1] %vm41_vm3, %v25037_v1  ;;  %64 = vst.msk [vmem:[#allocation2 + $0x210] sm:$0x1] %vm41_vm3, %v25037_v1  ;;  %v146_v42 = vld [vmem:[%s25030_s0 + $0x100] sm:$0xff]  ;;  %v147_v43 = vld [vmem:[%s25030_s0 + $0x108] sm:$0xff] }
  0x13   :  { %65 = vst.msk [vmem:[#allocation2 + $0x228] sm:$0x1] %vm41_vm3, %v25037_v1  ;;  %66 = vst.msk [vmem:[#allocation2 + $0x240] sm:$0x1] %vm41_vm3, %v25037_v1  ;;  %v148_v45 = vld [vmem:[%s25030_s0 + $0x110] sm:$0xff]  ;;  %v149_v46 = vld [vmem:[%s25030_s0 + $0x118] sm:$0xff] }
  0x14   :  { %67 = vst.msk [vmem:[#allocation2 + $0x258] sm:$0x1] %vm41_vm3, %v25037_v1  ;;  %68 = vst.msk [vmem:[#allocation2 + $0x270] sm:$0x1] %vm41_vm3, %v25037_v1  ;;  %v150_v47 = vld [vmem:[%s25030_s0 + $0x120] sm:$0xff]  ;;  %v151_v48 = vld [vmem:[%s25030_s0 + $0x128] sm:$0xff] }
  0x15   :  { %69 = vst.msk [vmem:[#allocation2 + $0x288] sm:$0x1] %vm41_vm3, %v25037_v1  ;;  %70 = vst.msk [vmem:[#allocation2 + $0x2a0] sm:$0x1] %vm41_vm3, %v25037_v1  ;;  %v152_v49 = vld [vmem:[%s25030_s0 + $0x130] sm:$0xff]  ;;  %v153_v50 = vld [vmem:[%s25030_s0 + $0x138] sm:$0xff] }
  0x16   :  { %71 = vst.msk [vmem:[#allocation2 + $0x2b8] sm:$0x1] %vm41_vm3, %v25037_v1  ;;  %72 = vst.msk [vmem:[#allocation2 + $0x2d0] sm:$0x1] %vm41_vm3, %v25037_v1  ;;  %v154_v51 = vld [vmem:[%s25030_s0 + $0x140] sm:$0xff]  ;;  %v155_v52 = vld [vmem:[%s25030_s0 + $0x148] sm:$0xff] }
  0x17   :  { %73 = vst.msk [vmem:[#allocation2 + $0x2e8] sm:$0x1] %vm41_vm3, %v25037_v1  ;;  %74 = vst.msk [vmem:[#allocation2 + $0x300] sm:$0x1] %vm41_vm3, %v25037_v1  ;;  %v156_v53 = vld [vmem:[%s25030_s0 + $0x150] sm:$0xff]  ;;  %v157_v55 = vld [vmem:[%s25030_s0 + $0x158] sm:$0xff] }
  0x18   :  { %75 = vst.msk [vmem:[#allocation2 + $0x318] sm:$0x1] %vm41_vm3, %v25037_v1  ;;  %76 = vst.msk [vmem:[#allocation2 + $0x330] sm:$0x1] %vm41_vm3, %v25037_v1  ;;  %v158_v56 = vld [vmem:[%s25030_s0 + $0x160] sm:$0xff]  ;;  %v159_v57 = vld [vmem:[%s25030_s0 + $0x168] sm:$0xff] }
  0x19   :  { %77 = vst.msk [vmem:[#allocation2 + $0x348] sm:$0x1] %vm41_vm3, %v25037_v1  ;;  %79 = vst.msk [vmem:[#allocation2 + $0x29] sm:$0x1] %vm41_vm3, %v25037_v1  ;;  %v160_v59 = vld [vmem:[%s25030_s0 + $0x170] sm:$0xff]  ;;  %v161_v61 = vld [vmem:[%s25030_s0 + $0x178] sm:$0xff] }
  0x1a   :  { %80 = vst.msk [vmem:[#allocation2 + $0x41] sm:$0x1] %vm41_vm3, %v25037_v1  ;;  %81 = vst.msk [vmem:[#allocation2 + $0x59] sm:$0x1] %vm41_vm3, %v25037_v1  ;;  %v162_v0 = vld [vmem:[%s25030_s0 + $0x180] sm:$0xff]  ;;  %v163_v2 = vld [vmem:[%s25030_s0 + $0x188] sm:$0xff] }
  0x1b   :  { %82 = vst.msk [vmem:[#allocation2 + $0x71] sm:$0x1] %vm41_vm3, %v25037_v1  ;;  %83 = vst.msk [vmem:[#allocation2 + $0x89] sm:$0x1] %vm41_vm3, %v25037_v1 }
  0x1c   :  { %84 = vst.msk [vmem:[#allocation2 + $0xa1] sm:$0x1] %vm41_vm3, %v25037_v1  ;;  %85 = vst.msk [vmem:[#allocation2 + $0xb9] sm:$0x1] %vm41_vm3, %v25037_v1 }
  0x1d   :  { %86 = vst.msk [vmem:[#allocation2 + $0xd1] sm:$0x1] %vm41_vm3, %v25037_v1  ;;  %87 = vst.msk [vmem:[#allocation2 + $0xe9] sm:$0x1] %vm41_vm3, %v25037_v1 }
  0x1e   :  { %88 = vst.msk [vmem:[#allocation2 + $0x101] sm:$0x1] %vm41_vm3, %v25037_v1  ;;  %89 = vst.msk [vmem:[#allocation2 + $0x119] sm:$0x1] %vm41_vm3, %v25037_v1 }
  0x1f   :  { %90 = vst.msk [vmem:[#allocation2 + $0x131] sm:$0x1] %vm41_vm3, %v25037_v1  ;;  %91 = vst.msk [vmem:[#allocation2 + $0x149] sm:$0x1] %vm41_vm3, %v25037_v1 }
  0x20   :  { %92 = vst.msk [vmem:[#allocation2 + $0x161] sm:$0x1] %vm41_vm3, %v25037_v1  ;;  %93 = vst.msk [vmem:[#allocation2 + $0x179] sm:$0x1] %vm41_vm3, %v25037_v1 }
  0x21   :  { %94 = vst.msk [vmem:[#allocation2 + $0x191] sm:$0x1] %vm41_vm3, %v25037_v1  ;;  %97 = vst.msk [vmem:[#allocation2 + $0x1d9] sm:$0x1] %vm41_vm3, %v25037_v1 }
  0x22   :  { %98 = vst.msk [vmem:[#allocation2 + $0x1f1] sm:$0x1] %vm41_vm3, %v25037_v1  ;;  %99 = vst.msk [vmem:[#allocation2 + $0x209] sm:$0x1] %vm41_vm3, %v25037_v1 }
  0x23   :  { %100 = vst.msk [vmem:[#allocation2 + $0x221] sm:$0x1] %vm41_vm3, %v25037_v1  ;;  %101 = vst.msk [vmem:[#allocation2 + $0x239] sm:$0x1] %vm41_vm3, %v25037_v1 }
  0x24   :  { %102 = vst.msk [vmem:[#allocation2 + $0x251] sm:$0x1] %vm41_vm3, %v25037_v1  ;;  %103 = vst.msk [vmem:[#allocation2 + $0x269] sm:$0x1] %vm41_vm3, %v25037_v1 }
  0x25   :  { %104 = vst.msk [vmem:[#allocation2 + $0x281] sm:$0x1] %vm41_vm3, %v25037_v1  ;;  %105 = vst.msk [vmem:[#allocation2 + $0x299] sm:$0x1] %vm41_vm3, %v25037_v1 }
  0x26   :  { %106 = vst.msk [vmem:[#allocation2 + $0x2b1] sm:$0x1] %vm41_vm3, %v25037_v1  ;;  %107 = vst.msk [vmem:[#allocation2 + $0x2c9] sm:$0x1] %vm41_vm3, %v25037_v1 }
  0x27   :  { %108 = vst.msk [vmem:[#allocation2 + $0x2e1] sm:$0x1] %vm41_vm3, %v25037_v1  ;;  %109 = vst.msk [vmem:[#allocation2 + $0x2f9] sm:$0x1] %vm41_vm3, %v25037_v1 }
  0x28   :  { %110 = vst.msk [vmem:[#allocation2 + $0x311] sm:$0x1] %vm41_vm3, %v25037_v1  ;;  %111 = vst.msk [vmem:[#allocation2 + $0x329] sm:$0x1] %vm41_vm3, %v25037_v1 }
  0x29   :  { %112 = vst.msk [vmem:[#allocation2 + $0x341] sm:$0x1] %vm41_vm3, %v25037_v1  ;;  %95 = vst.msk [vmem:[#allocation2 + $0x1a9] sm:$0x1] %vm41_vm3, %v25037_v1 }
  0x2a   :  { %96 = vst.msk [vmem:[#allocation2 + $0x1c1] sm:$0x1] %vm41_vm3, %v25037_v1  ;;  %113 = vst.msk [vmem:[#allocation2 + $0x359] sm:$0x1] %vm41_vm3, %v25037_v1 }
  0x2b   :  { %179 = vst.msk [vmem:[#allocation2 + $0x19] sm:$0xff] %vm26_vm1, %v19272_v3  ;;  %180 = vst.msk [vmem:[#allocation2 + $0x21] sm:$0xff] %vm26_vm1, %v115_v4  ;;  %v164_v3 = vld [vmem:[%s25030_s0 + $0x190] sm:$0xff]  ;;  %v165_v4 = vld [vmem:[%s25030_s0 + $0x198] sm:$0xff] }
  0x2c   :  { %181 = vst.msk [vmem:[#allocation2 + $0x31] sm:$0xff] %vm26_vm1, %v116_v5  ;;  %182 = vst.msk [vmem:[#allocation2 + $0x39] sm:$0xff] %vm26_vm1, %v117_v6  ;;  %v166_v5 = vld [vmem:[%s25030_s0 + $0x1a0] sm:$0xff]  ;;  %v167_v6 = vld [vmem:[%s25030_s0 + $0x1a8] sm:$0xff] }
  0x2d   :  { %183 = vst.msk [vmem:[#allocation2 + $0x49] sm:$0xff] %vm26_vm1, %v118_v7  ;;  %184 = vst.msk [vmem:[#allocation2 + $0x51] sm:$0xff] %vm26_vm1, %v119_v8  ;;  %v168_v8 = vld [vmem:[%s25030_s0 + $0x1b0] sm:$0xff] }
  0x2e   :  { %185 = vst.msk [vmem:[#allocation2 + $0x61] sm:$0xff] %vm26_vm1, %v120_v9  ;;  %186 = vst.msk [vmem:[#allocation2 + $0x69] sm:$0xff] %vm26_vm1, %v121_v10  ;;  %v169_v9 = vld [vmem:[%s25030_s0 + $0x1b8] sm:$0xff] }
  0x2f   :  { %187 = vst.msk [vmem:[#allocation2 + $0x79] sm:$0xff] %vm26_vm1, %v122_v11  ;;  %188 = vst.msk [vmem:[#allocation2 + $0x81] sm:$0xff] %vm26_vm1, %v123_v12  ;;  %v170_v11 = vld [vmem:[%s25030_s0 + $0x1c0] sm:$0xff]  ;;  %v171_v12 = vld [vmem:[%s25030_s0 + $0x1c8] sm:$0xff] }
  0x30   :  { %189 = vst.msk [vmem:[#allocation2 + $0x91] sm:$0xff] %vm26_vm1, %v124_v13  ;;  %190 = vst.msk [vmem:[#allocation2 + $0x99] sm:$0xff] %vm26_vm1, %v125_v14  ;;  %v172_v13 = vld [vmem:[%s25030_s0 + $0x1d0] sm:$0xff]  ;;  %v173_v14 = vld [vmem:[%s25030_s0 + $0x1d8] sm:$0xff] }
  0x31   :  { %191 = vst.msk [vmem:[#allocation2 + $0xa9] sm:$0xff] %vm26_vm1, %v126_v15  ;;  %192 = vst.msk [vmem:[#allocation2 + $0xb1] sm:$0xff] %vm26_vm1, %v127_v16  ;;  %v174_v15 = vld [vmem:[%s25030_s0 + $0x1e0] sm:$0xff]  ;;  %v175_v16 = vld [vmem:[%s25030_s0 + $0x1e8] sm:$0xff] }
  0x32   :  { %193 = vst.msk [vmem:[#allocation2 + $0xc1] sm:$0xff] %vm26_vm1, %v128_v17  ;;  %194 = vst.msk [vmem:[#allocation2 + $0xc9] sm:$0xff] %vm26_vm1, %v129_v18  ;;  %v310_v25 = vld [vmem:[#allocation2 + $0x19] sm:$0xff]  ;;  %v311_v28 = vld [vmem:[#allocation2 + $0x21] sm:$0xff] }
  0x33   :  { %195 = vst.msk [vmem:[#allocation2 + $0xd9] sm:$0xff] %vm26_vm1, %v130_v19  ;;  %196 = vst.msk [vmem:[#allocation2 + $0xe1] sm:$0xff] %vm26_vm1, %v131_v20  ;;  %16406 = vmatprep.mubr.msk.f32.mxu0 %vm26_vm1, %v310_v25  ;;  %v312_v29 = vld [vmem:[#allocation2 + $0x31] sm:$0xff]  ;;  %v313_v30 = vld [vmem:[#allocation2 + $0x39] sm:$0xff] }
  0x34   :  { %197 = vst.msk [vmem:[#allocation2 + $0xf1] sm:$0xff] %vm26_vm1, %v132_v21  ;;  %198 = vst.msk [vmem:[#allocation2 + $0xf9] sm:$0xff] %vm26_vm1, %v133_v24  ;;  %16407 = vmatmul.mubr.msk.f32.gmra.mrb[2].mxu0 %vm26_vm1, %v311_v28  ;;  %v314_v31 = vld [vmem:[#allocation2 + $0x49] sm:$0xff]  ;;  %v315_v38 = vld [vmem:[#allocation2 + $0x51] sm:$0xff] }
  0x35   :  { %199 = vst.msk [vmem:[#allocation2 + $0x109] sm:$0xff] %vm26_vm1, %v134_v26  ;;  %200 = vst.msk [vmem:[#allocation2 + $0x111] sm:$0xff] %vm26_vm1, %v135_v27  ;;  %16409 = vmatprep.mubr.msk.f32.mxu0 %vm26_vm1, %v312_v29  ;;  %v316_v41 = vld [vmem:[#allocation2 + $0x61] sm:$0xff]  ;;  %v317_v44 = vld [vmem:[#allocation2 + $0x69] sm:$0xff] }
  0x36   :  { %201 = vst.msk [vmem:[#allocation2 + $0x121] sm:$0xff] %vm26_vm1, %v136_v32  ;;  %202 = vst.msk [vmem:[#allocation2 + $0x129] sm:$0xff] %vm26_vm1, %v137_v33  ;;  %v318_v54 = vld [vmem:[#allocation2 + $0x79] sm:$0xff]  ;;  %v319_v58 = vld [vmem:[#allocation2 + $0x81] sm:$0xff] }
  0x37   :  { %203 = vst.msk [vmem:[#allocation2 + $0x139] sm:$0xff] %vm26_vm1, %v138_v34  ;;  %204 = vst.msk [vmem:[#allocation2 + $0x141] sm:$0xff] %vm26_vm1, %v139_v35  ;;  %v320_v60 = vld [vmem:[#allocation2 + $0x91] sm:$0xff]  ;;  %v321_v62 = vld [vmem:[#allocation2 + $0x99] sm:$0xff] }
  0x38   :  { %16410 = vmatmul.mubr.msk.f32.gmra.mrb[4].mxu0 %vm26_vm1, %v313_v30  ;;  %205 = vst.msk [vmem:[#allocation2 + $0x151] sm:$0xff] %vm26_vm1, %v140_v36  ;;  %206 = vst.msk [vmem:[#allocation2 + $0x159] sm:$0xff] %vm26_vm1, %v141_v37  ;;  %v322_v63 = vld [vmem:[#allocation2 + $0xa9] sm:$0xff]  ;;  %v323_v7 = vld [vmem:[#allocation2 + $0xb1] sm:$0xff] }
  0x39   :  { %16412 = vmatprep.mubr.msk.f32.mxu0 %vm26_vm1, %v314_v31  ;;  %207 = vst.msk [vmem:[#allocation2 + $0x169] sm:$0xff] %vm26_vm1, %v142_v39  ;;  %208 = vst.msk [vmem:[#allocation2 + $0x171] sm:$0xff] %vm26_vm1, %v143_v40  ;;  %v324_v10 = vld [vmem:[#allocation2 + $0xc1] sm:$0xff]  ;;  %v325_v18 = vld [vmem:[#allocation2 + $0xc9] sm:$0xff] }
  0x3a   :  { %211 = vst.msk [vmem:[#allocation2 + $0x1c9] sm:$0xff] %vm26_vm1, %v146_v42  ;;  %212 = vst.msk [vmem:[#allocation2 + $0x1d1] sm:$0xff] %vm26_vm1, %v147_v43  ;;  %v19682_v17 = vld [vmem:[%s25029_s1 + $0x8] sm:$0xf]  ;;  %v326_v19 = vld [vmem:[#allocation2 + $0xd9] sm:$0xff] }
  0x3b   :  { %213 = vst.msk [vmem:[#allocation2 + $0x1e1] sm:$0xff] %vm26_vm1, %v148_v45  ;;  %214 = vst.msk [vmem:[#allocation2 + $0x1e9] sm:$0xff] %vm26_vm1, %v149_v46  ;;  %16597 = vmatprep.subr.msk.mxu0 %vm566_vm0, %v19682_v17  ;;  %v327_v20 = vld [vmem:[#allocation2 + $0xe1] sm:$0xff]  ;;  %v328_v21 = vld [vmem:[#allocation2 + $0xf1] sm:$0xff] }
  0x3c   :  { %16413 = vmatmul.mubr.msk.f32.gmra.mrb[6].mxu0 %vm26_vm1, %v315_v38  ;;  %215 = vst.msk [vmem:[#allocation2 + $0x1f9] sm:$0xff] %vm26_vm1, %v150_v47  ;;  %216 = vst.msk [vmem:[#allocation2 + $0x201] sm:$0xff] %vm26_vm1, %v151_v48  ;;  %v329_v22 = vld [vmem:[#allocation2 + $0xf9] sm:$0xff]  ;;  %v330_v23 = vld [vmem:[#allocation2 + $0x109] sm:$0xff] }
  0x3d   :  { %16415 = vmatprep.mubr.msk.f32.mxu0 %vm26_vm1, %v316_v41  ;;  %217 = vst.msk [vmem:[#allocation2 + $0x211] sm:$0xff] %vm26_vm1, %v152_v49  ;;  %218 = vst.msk [vmem:[#allocation2 + $0x219] sm:$0xff] %vm26_vm1, %v153_v50  ;;  %v331_v24 = vld [vmem:[#allocation2 + $0x111] sm:$0xff]  ;;  %v332_v25 = vld [vmem:[#allocation2 + $0x121] sm:$0xff] }
  0x3e   :  { %219 = vst.msk [vmem:[#allocation2 + $0x229] sm:$0xff] %vm26_vm1, %v154_v51  ;;  %220 = vst.msk [vmem:[#allocation2 + $0x231] sm:$0xff] %vm26_vm1, %v155_v52  ;;  %v333_v26 = vld [vmem:[#allocation2 + $0x129] sm:$0xff]  ;;  %v334_v27 = vld [vmem:[#allocation2 + $0x139] sm:$0xff] }
  0x3f   :  { %221 = vst.msk [vmem:[#allocation2 + $0x241] sm:$0xff] %vm26_vm1, %v156_v53  ;;  %222 = vst.msk [vmem:[#allocation2 + $0x249] sm:$0xff] %vm26_vm1, %v157_v55  ;;  %v335_v28 = vld [vmem:[#allocation2 + $0x141] sm:$0xff]  ;;  %v336_v29 = vld [vmem:[#allocation2 + $0x151] sm:$0xff] }
  0x40   :  { %16416 = vmatmul.mubr.msk.f32.gmra.mrb[8].mxu0 %vm26_vm1, %v317_v44  ;;  %223 = vst.msk [vmem:[#allocation2 + $0x259] sm:$0xff] %vm26_vm1, %v158_v56  ;;  %224 = vst.msk [vmem:[#allocation2 + $0x261] sm:$0xff] %vm26_vm1, %v159_v57  ;;  %v337_v30 = vld [vmem:[#allocation2 + $0x159] sm:$0xff]  ;;  %v338_v31 = vld [vmem:[#allocation2 + $0x169] sm:$0xff] }
  0x41   :  { %16418 = vmatprep.mubr.msk.f32.mxu0 %vm26_vm1, %v318_v54  ;;  %225 = vst.msk [vmem:[#allocation2 + $0x271] sm:$0xff] %vm26_vm1, %v160_v59  ;;  %226 = vst.msk [vmem:[#allocation2 + $0x279] sm:$0xff] %vm26_vm1, %v161_v61  ;;  %v339_v32 = vld [vmem:[#allocation2 + $0x171] sm:$0xff]  ;;  %v341_v34 = vld [vmem:[#allocation2 + $0x1b9] sm:$0xff] }
  0x42   :  { %227 = vst.msk [vmem:[#allocation2 + $0x289] sm:$0xff] %vm26_vm1, %v162_v0  ;;  %228 = vst.msk [vmem:[#allocation2 + $0x291] sm:$0xff] %vm26_vm1, %v163_v2  ;;  %v340_v33 = vld [vmem:[#allocation2 + $0x1b1] sm:$0xff]  ;;  %v342_v35 = vld [vmem:[#allocation2 + $0x1c9] sm:$0xff] }
  0x43   :  { %229 = vst.msk [vmem:[#allocation2 + $0x2a1] sm:$0xff] %vm26_vm1, %v164_v3  ;;  %230 = vst.msk [vmem:[#allocation2 + $0x2a9] sm:$0xff] %vm26_vm1, %v165_v4  ;;  %v343_v36 = vld [vmem:[#allocation2 + $0x1d1] sm:$0xff]  ;;  %v344_v37 = vld [vmem:[#allocation2 + $0x1e1] sm:$0xff] }
  0x44   :  { %16419 = vmatmul.mubr.msk.f32.gmra.mrb[10].mxu0 %vm26_vm1, %v319_v58  ;;  %231 = vst.msk [vmem:[#allocation2 + $0x2b9] sm:$0xff] %vm26_vm1, %v166_v5  ;;  %232 = vst.msk [vmem:[#allocation2 + $0x2c1] sm:$0xff] %vm26_vm1, %v167_v6  ;;  %v345_v38 = vld [vmem:[#allocation2 + $0x1e9] sm:$0xff]  ;;  %v346_v39 = vld [vmem:[#allocation2 + $0x1f9] sm:$0xff] }
  0x45   :  { %16421 = vmatprep.mubr.msk.f32.mxu0 %vm26_vm1, %v320_v60  ;;  %233 = vst.msk [vmem:[#allocation2 + $0x2d1] sm:$0xff] %vm26_vm1, %v168_v8  ;;  %234 = vst.msk [vmem:[#allocation2 + $0x2d9] sm:$0xff] %vm26_vm1, %v169_v9  ;;  %v347_v40 = vld [vmem:[#allocation2 + $0x201] sm:$0xff]  ;;  %v348_v41 = vld [vmem:[#allocation2 + $0x211] sm:$0xff] }
  0x46   :  { %235 = vst.msk [vmem:[#allocation2 + $0x2e9] sm:$0xff] %vm26_vm1, %v170_v11  ;;  %236 = vst.msk [vmem:[#allocation2 + $0x2f1] sm:$0xff] %vm26_vm1, %v171_v12  ;;  %v349_v42 = vld [vmem:[#allocation2 + $0x219] sm:$0xff]  ;;  %v350_v43 = vld [vmem:[#allocation2 + $0x229] sm:$0xff] }
  0x47   :  { %237 = vst.msk [vmem:[#allocation2 + $0x301] sm:$0xff] %vm26_vm1, %v172_v13  ;;  %238 = vst.msk [vmem:[#allocation2 + $0x309] sm:$0xff] %vm26_vm1, %v173_v14  ;;  %v351_v44 = vld [vmem:[#allocation2 + $0x231] sm:$0xff]  ;;  %v352_v45 = vld [vmem:[#allocation2 + $0x241] sm:$0xff] }
  0x48   :  { %16422 = vmatmul.mubr.msk.f32.gmra.mrb[12].mxu0 %vm26_vm1, %v321_v62  ;;  %239 = vst.msk [vmem:[#allocation2 + $0x319] sm:$0xff] %vm26_vm1, %v174_v15  ;;  %240 = vst.msk [vmem:[#allocation2 + $0x321] sm:$0xff] %vm26_vm1, %v175_v16  ;;  %v353_v46 = vld [vmem:[#allocation2 + $0x249] sm:$0xff]  ;;  %v354_v47 = vld [vmem:[#allocation2 + $0x259] sm:$0xff] }
  0x49   :  { %16424 = vmatprep.mubr.msk.f32.mxu0 %vm26_vm1, %v322_v63  ;;  %v355_v48 = vld [vmem:[#allocation2 + $0x261] sm:$0xff]  ;;  %v356_v49 = vld [vmem:[#allocation2 + $0x271] sm:$0xff]  ;;  %v357_v50 = vld [vmem:[#allocation2 + $0x279] sm:$0xff] }
  0x4a   :  { %v358_v51 = vld [vmem:[#allocation2 + $0x289] sm:$0xff]  ;;  %v359_v52 = vld [vmem:[#allocation2 + $0x291] sm:$0xff]  ;;  %v360_v53 = vld [vmem:[#allocation2 + $0x2a1] sm:$0xff] }
  0x4b   :  { %v361_v54 = vld [vmem:[#allocation2 + $0x2a9] sm:$0xff]  ;;  %v362_v55 = vld [vmem:[#allocation2 + $0x2b9] sm:$0xff]  ;;  %v363_v56 = vld [vmem:[#allocation2 + $0x2c1] sm:$0xff] }
  0x4c   :  { %16425 = vmatmul.mubr.msk.f32.gmra.mrb[14].mxu0 %vm26_vm1, %v323_v7  ;;  %v364_v57 = vld [vmem:[#allocation2 + $0x2d1] sm:$0xff]  ;;  %v365_v58 = vld [vmem:[#allocation2 + $0x2d9] sm:$0xff]  ;;  %v244_v3 = vld [vmem:[#allocation2 + $0x8] sm:$0xff] }
  0x4d   :  { %16427 = vmatprep.mubr.msk.f32.mxu0 %vm26_vm1, %v324_v10  ;;  %v366_v59 = vld [vmem:[#allocation2 + $0x2e9] sm:$0xff]  ;;  %v367_v60 = vld [vmem:[#allocation2 + $0x2f1] sm:$0xff]  ;;  %v243_v2 = vld [vmem:[#allocation2] sm:$0xff] }
  0x4e   :  { %v368_v61 = vld [vmem:[#allocation2 + $0x301] sm:$0xff]  ;;  %v369_v62 = vld [vmem:[#allocation2 + $0x309] sm:$0xff]  ;;  %v19736_v4 = vld [vmem:[#allocation2 + $0x18] sm:$0xff] }
  0x4f   :  { %v370_v63 = vld [vmem:[#allocation2 + $0x319] sm:$0xff]  ;;  %v371_v0 = vld [vmem:[#allocation2 + $0x321] sm:$0xff]  ;;  %v19741_v5 = vld [vmem:[%s25029_s1 + $0xc] sm:$0xf] }
  0x50   :  { %16428 = vmatmul.mubr.msk.f32.gmra.mrb[16].mxu0 %vm26_vm1, %v325_v18  ;;  %v19748_v6 = vld [vmem:[#allocation2 + $0x20] sm:$0xff]  ;;  %v19750_v7 = vld [vmem:[#allocation2 + $0x30] sm:$0xff]  ;;  %v19758_v8 = vld [vmem:[#allocation2 + $0x38] sm:$0xff] }
  0x51   :  { %16430 = vmatprep.mubr.msk.f32.mxu0 %vm26_vm1, %v326_v19  ;;  %v19760_v9 = vld [vmem:[#allocation2 + $0x48] sm:$0xff]  ;;  %v19766_v10 = vld [vmem:[#allocation2 + $0x50] sm:$0xff]  ;;  %v19768_v11 = vld [vmem:[#allocation2 + $0x60] sm:$0xff] }
  0x52   :  { %v19774_v12 = vld [vmem:[#allocation2 + $0x68] sm:$0xff]  ;;  %v19776_v13 = vld [vmem:[#allocation2 + $0x78] sm:$0xff]  ;;  %v19782_v14 = vld [vmem:[#allocation2 + $0x80] sm:$0xff] }
  0x53   :  { %v19784_v15 = vld [vmem:[#allocation2 + $0x90] sm:$0xff]  ;;  %v19790_v16 = vld [vmem:[#allocation2 + $0x98] sm:$0xff]  ;;  %v19800_v19 = vld [vmem:[#allocation2 + $0xc0] sm:$0xff] }
  0x54   :  { %16431 = vmatmul.mubr.msk.f32.gmra.mrb[18].mxu0 %vm26_vm1, %v327_v20  ;;  %v19798_v18 = vld [vmem:[#allocation2 + $0xb0] sm:$0xff]  ;;  %v19806_v20 = vld [vmem:[#allocation2 + $0xc8] sm:$0xff]  ;;  %v19989_v1 = vld [vmem:[#allocation2 + $0x1a] sm:$0xff] }
  0x55   :  { %16433 = vmatprep.mubr.msk.f32.mxu0 %vm26_vm1, %v328_v21  ;;  %v19808_v21 = vld [vmem:[#allocation2 + $0xd8] sm:$0xff]  ;;  %25240 = vst [vmem:[#allocation8_spill] sm:$0xff] %v19989_v1 }
  0x58   :  { %16434 = vmatmul.mubr.msk.f32.gmra.mrb[20].mxu0 %vm26_vm1, %v329_v22  ;;  %v19814_v22 = vld [vmem:[#allocation2 + $0xe0] sm:$0xff] }
  0x59   :  { %16436 = vmatprep.mubr.msk.f32.mxu0 %vm26_vm1, %v330_v23  ;;  %v19816_v23 = vld [vmem:[#allocation2 + $0xf0] sm:$0xff] }
  0x5c   :  { %16437 = vmatmul.mubr.msk.f32.gmra.mrb[22].mxu0 %vm26_vm1, %v331_v24  ;;  %v19822_v24 = vld [vmem:[#allocation2 + $0xf8] sm:$0xff] }
  0x5d   :  { %16439 = vmatprep.mubr.msk.f32.mxu0 %vm26_vm1, %v332_v25  ;;  %v19824_v25 = vld [vmem:[#allocation2 + $0x108] sm:$0xff] }
  0x60   :  { %16440 = vmatmul.mubr.msk.f32.gmra.mrb[24].mxu0 %vm26_vm1, %v333_v26  ;;  %v19830_v26 = vld [vmem:[#allocation2 + $0x110] sm:$0xff] }
  0x61   :  { %16442 = vmatprep.mubr.msk.f32.mxu0 %vm26_vm1, %v334_v27  ;;  %v19832_v27 = vld [vmem:[#allocation2 + $0x120] sm:$0xff] }
  0x64   :  { %16443 = vmatmul.mubr.msk.f32.gmra.mrb[26].mxu0 %vm26_vm1, %v335_v28  ;;  %v19838_v28 = vld [vmem:[#allocation2 + $0x128] sm:$0xff] }
  0x65   :  { %16445 = vmatprep.mubr.msk.f32.mxu0 %vm26_vm1, %v336_v29  ;;  %v19840_v29 = vld [vmem:[#allocation2 + $0x138] sm:$0xff] }
  0x68   :  { %16446 = vmatmul.mubr.msk.f32.gmra.mrb[28].mxu0 %vm26_vm1, %v337_v30  ;;  %v19846_v30 = vld [vmem:[#allocation2 + $0x140] sm:$0xff] }
  0x69   :  { %16448 = vmatprep.mubr.msk.f32.mxu0 %vm26_vm1, %v338_v31  ;;  %v19848_v31 = vld [vmem:[#allocation2 + $0x150] sm:$0xff] }
  0x6c   :  { %16449 = vmatmul.mubr.msk.f32.gmra.mrb[30].mxu0 %vm26_vm1, %v339_v32  ;;  %v19854_v32 = vld [vmem:[#allocation2 + $0x158] sm:$0xff] }
  0x6d   :  { %16451 = vmatprep.mubr.msk.f32.mxu0 %vm26_vm1, %v340_v33  ;;  %v19856_v33 = vld [vmem:[#allocation2 + $0x168] sm:$0xff] }
  0x70   :  { %16452 = vmatmul.mubr.msk.f32.gmra.mrb[32].mxu0 %vm26_vm1, %v341_v34  ;;  %v19862_v34 = vld [vmem:[#allocation2 + $0x170] sm:$0xff] }
  0x71   :  { %16454 = vmatprep.mubr.msk.f32.mxu0 %vm26_vm1, %v342_v35  ;;  %v275_v35 = vld [vmem:[#allocation2 + $0x1b0] sm:$0xff] }
  0x74   :  { %16455 = vmatmul.mubr.msk.f32.gmra.mrb[34].mxu0 %vm26_vm1, %v343_v36  ;;  %v276_v36 = vld [vmem:[#allocation2 + $0x1b8] sm:$0xff] }
  0x75   :  { %16457 = vmatprep.mubr.msk.f32.mxu0 %vm26_vm1, %v344_v37  ;;  %v19867_v37 = vld [vmem:[#allocation2 + $0x1c8] sm:$0xff] }
  0x78   :  { %16458 = vmatmul.mubr.msk.f32.gmra.mrb[36].mxu0 %vm26_vm1, %v345_v38  ;;  %v19872_v38 = vld [vmem:[#allocation2 + $0x1d0] sm:$0xff] }
  0x79   :  { %16460 = vmatprep.mubr.msk.f32.mxu0 %vm26_vm1, %v346_v39  ;;  %v19874_v39 = vld [vmem:[#allocation2 + $0x1e0] sm:$0xff] }
  0x7c   :  { %16461 = vmatmul.mubr.msk.f32.gmra.mrb[38].mxu0 %vm26_vm1, %v347_v40  ;;  %v19880_v40 = vld [vmem:[#allocation2 + $0x1e8] sm:$0xff] }
  0x7d   :  { %16463 = vmatprep.mubr.msk.f32.mxu0 %vm26_vm1, %v348_v41  ;;  %v19882_v41 = vld [vmem:[#allocation2 + $0x1f8] sm:$0xff] }
  0x80   :  { %16464 = vmatmul.mubr.msk.f32.gmra.mrb[40].mxu0 %vm26_vm1, %v349_v42  ;;  %v19888_v42 = vld [vmem:[#allocation2 + $0x200] sm:$0xff] }
  0x81   :  { %16466 = vmatprep.mubr.msk.f32.mxu0 %vm26_vm1, %v350_v43  ;;  %v19890_v43 = vld [vmem:[#allocation2 + $0x210] sm:$0xff] }
  0x84   :  { %16467 = vmatmul.mubr.msk.f32.gmra.mrb[42].mxu0 %vm26_vm1, %v351_v44  ;;  %v19896_v44 = vld [vmem:[#allocation2 + $0x218] sm:$0xff] }
  0x85   :  { %16469 = vmatprep.mubr.msk.f32.mxu0 %vm26_vm1, %v352_v45  ;;  %v19898_v45 = vld [vmem:[#allocation2 + $0x228] sm:$0xff] }
  0x88   :  { %16470 = vmatmul.mubr.msk.f32.gmra.mrb[44].mxu0 %vm26_vm1, %v353_v46  ;;  %v19904_v46 = vld [vmem:[#allocation2 + $0x230] sm:$0xff] }
  0x89   :  { %16472 = vmatprep.mubr.msk.f32.mxu0 %vm26_vm1, %v354_v47  ;;  %v19906_v47 = vld [vmem:[#allocation2 + $0x240] sm:$0xff] }
  0x8c   :  { %16473 = vmatmul.mubr.msk.f32.gmra.mrb[46].mxu0 %vm26_vm1, %v355_v48  ;;  %v19912_v48 = vld [vmem:[#allocation2 + $0x248] sm:$0xff] }
  0x8d   :  { %16475 = vmatprep.mubr.msk.f32.mxu0 %vm26_vm1, %v356_v49  ;;  %v19914_v49 = vld [vmem:[#allocation2 + $0x258] sm:$0xff] }
  0x90   :  { %16476 = vmatmul.mubr.msk.f32.gmra.mrb[48].mxu0 %vm26_vm1, %v357_v50  ;;  %v19920_v50 = vld [vmem:[#allocation2 + $0x260] sm:$0xff] }
  0x91   :  { %16478 = vmatprep.mubr.msk.f32.mxu0 %vm26_vm1, %v358_v51  ;;  %v19922_v51 = vld [vmem:[#allocation2 + $0x270] sm:$0xff] }
  0x94   :  { %16479 = vmatmul.mubr.msk.f32.gmra.mrb[50].mxu0 %vm26_vm1, %v359_v52  ;;  %v19928_v52 = vld [vmem:[#allocation2 + $0x278] sm:$0xff] }
  0x95   :  { %16481 = vmatprep.mubr.msk.f32.mxu0 %vm26_vm1, %v360_v53  ;;  %v19930_v53 = vld [vmem:[#allocation2 + $0x288] sm:$0xff] }
  0x98   :  { %16482 = vmatmul.mubr.msk.f32.gmra.mrb[52].mxu0 %vm26_vm1, %v361_v54  ;;  %v19936_v54 = vld [vmem:[#allocation2 + $0x290] sm:$0xff] }
  0x99   :  { %16484 = vmatprep.mubr.msk.f32.mxu0 %vm26_vm1, %v362_v55  ;;  %v19938_v55 = vld [vmem:[#allocation2 + $0x2a0] sm:$0xff] }
  0x9c   :  { %16485 = vmatmul.mubr.msk.f32.gmra.mrb[54].mxu0 %vm26_vm1, %v363_v56  ;;  %v19944_v56 = vld [vmem:[#allocation2 + $0x2a8] sm:$0xff] }
  0x9d   :  { %16487 = vmatprep.mubr.msk.f32.mxu0 %vm26_vm1, %v364_v57  ;;  %v19946_v57 = vld [vmem:[#allocation2 + $0x2b8] sm:$0xff] }
  0xa0   :  { %16488 = vmatmul.mubr.msk.f32.gmra.mrb[56].mxu0 %vm26_vm1, %v365_v58  ;;  %v19952_v58 = vld [vmem:[#allocation2 + $0x2c0] sm:$0xff] }
  0xa1   :  { %16490 = vmatprep.mubr.msk.f32.mxu0 %vm26_vm1, %v366_v59  ;;  %v19954_v59 = vld [vmem:[#allocation2 + $0x2d0] sm:$0xff] }
  0xa4   :  { %16491 = vmatmul.mubr.msk.f32.gmra.mrb[58].mxu0 %vm26_vm1, %v367_v60  ;;  %v19960_v60 = vld [vmem:[#allocation2 + $0x2d8] sm:$0xff] }
  0xa5   :  { %16493 = vmatprep.mubr.msk.f32.mxu0 %vm26_vm1, %v368_v61  ;;  %v19962_v61 = vld [vmem:[#allocation2 + $0x2e8] sm:$0xff] }
  0xa8   :  { %16494 = vmatmul.mubr.msk.f32.gmra.mrb[60].mxu0 %vm26_vm1, %v369_v62  ;;  %v19968_v62 = vld [vmem:[#allocation2 + $0x2f0] sm:$0xff] }
  0xa9   :  { %16496 = vmatprep.mubr.msk.f32.mxu0 %vm26_vm1, %v370_v63  ;;  %v19970_v63 = vld [vmem:[#allocation2 + $0x300] sm:$0xff] }
  0xaa   :  { %25236 = vst [vmem:[#allocation4_spill] sm:$0xff] %v19970_v63 }
  0xac   :  { %16497 = vmatmul.mubr.msk.f32.gmra.mrb[62].mxu0 %vm26_vm1, %v371_v0  ;;  %v19976_v0 = vld [vmem:[#allocation2 + $0x308] sm:$0xff] }
  0xad   :  { %16501 = vmatprep.mubr.msk.f32.mxu0 %vm26_vm1, %v243_v2  ;;  %25237 = vst [vmem:[#allocation5_spill] sm:$0xff] %v19976_v0  ;;  %v19978_v2 = vld [vmem:[#allocation2 + $0x318] sm:$0xff] }
  0xae   :  { %25238 = vst [vmem:[#allocation6_spill] sm:$0xff] %v19978_v2 }
  0xb0   :  { %16502 = vmatmul.mubr.msk.f32.vlgmr.msra.gmra.mrb[0].mxu0 %vm26_vm1, %v244_v3  ;;  %v19984_v3 = vld [vmem:[#allocation2 + $0x320] sm:$0xff] }
  0xb1   :  { %16598 = vmatpush3.msk.msra.mxu0 %vm566_vm0, %v19682_v17  ;;  %16504 = vmatprep.mubr.msk.f32.mxu0 %vm26_vm1, %v19736_v4  ;;  %v19792_v17 = vld [vmem:[#allocation2 + $0xa8] sm:$0xff]  ;;  %25239 = vst [vmem:[#allocation7_spill] sm:$0xff] %v19984_v3 }
  0xb2   :  { %16695 = vmatprep.subr.msk.mxu0 %vm566_vm0, %v19741_v5 }
  0xb4   :  { %16505 = vmatmul.mubr.msk.f32.gmra.mrb[2].mxu0 %vm26_vm1, %v19748_v6 }
  0xb5   :  { %16507 = vmatprep.mubr.msk.f32.mxu0 %vm26_vm1, %v19750_v7 }
  0xb8   :  { %16508 = vmatmul.mubr.msk.f32.gmra.mrb[4].mxu0 %vm26_vm1, %v19758_v8 }
  0xb9   :  { %16510 = vmatprep.mubr.msk.f32.mxu0 %vm26_vm1, %v19760_v9 }
  0xbc   :  { %16511 = vmatmul.mubr.msk.f32.gmra.mrb[6].mxu0 %vm26_vm1, %v19766_v10 }
  0xbd   :  { %16513 = vmatprep.mubr.msk.f32.mxu0 %vm26_vm1, %v19768_v11 }
  0xc0   :  { %16514 = vmatmul.mubr.msk.f32.gmra.mrb[8].mxu0 %vm26_vm1, %v19774_v12 }
  0xc1   :  { %16516 = vmatprep.mubr.msk.f32.mxu0 %vm26_vm1, %v19776_v13 }
  0xc4   :  { %16517 = vmatmul.mubr.msk.f32.gmra.mrb[10].mxu0 %vm26_vm1, %v19782_v14 }
  0xc5   :  { %16519 = vmatprep.mubr.msk.f32.mxu0 %vm26_vm1, %v19784_v15 }
  0xc8   :  { %16520 = vmatmul.mubr.msk.f32.gmra.mrb[12].mxu0 %vm26_vm1, %v19790_v16 }
  0xc9   :  { %16522 = vmatprep.mubr.msk.f32.mxu0 %vm26_vm1, %v19792_v17 }
  0xcc   :  { %16523 = vmatmul.mubr.msk.f32.gmra.mrb[14].mxu0 %vm26_vm1, %v19798_v18 }
  0xcd   :  { %16525 = vmatprep.mubr.msk.f32.mxu0 %vm26_vm1, %v19800_v19 }
  0xd0   :  { %16526 = vmatmul.mubr.msk.f32.gmra.mrb[16].mxu0 %vm26_vm1, %v19806_v20 }
  0xd1   :  { %16528 = vmatprep.mubr.msk.f32.mxu0 %vm26_vm1, %v19808_v21 }
  0xd4   :  { %16529 = vmatmul.mubr.msk.f32.gmra.mrb[18].mxu0 %vm26_vm1, %v19814_v22 }
  0xd5   :  { %16531 = vmatprep.mubr.msk.f32.mxu0 %vm26_vm1, %v19816_v23 }
  0xd8   :  { %16532 = vmatmul.mubr.msk.f32.gmra.mrb[20].mxu0 %vm26_vm1, %v19822_v24 }
  0xd9   :  { %16534 = vmatprep.mubr.msk.f32.mxu0 %vm26_vm1, %v19824_v25 }
  0xdc   :  { %16535 = vmatmul.mubr.msk.f32.gmra.mrb[22].mxu0 %vm26_vm1, %v19830_v26 }
  0xdd   :  { %16537 = vmatprep.mubr.msk.f32.mxu0 %vm26_vm1, %v19832_v27 }
  0xe0   :  { %16538 = vmatmul.mubr.msk.f32.gmra.mrb[24].mxu0 %vm26_vm1, %v19838_v28 }
  0xe1   :  { %16540 = vmatprep.mubr.msk.f32.mxu0 %vm26_vm1, %v19840_v29 }
  0xe4   :  { %16541 = vmatmul.mubr.msk.f32.gmra.mrb[26].mxu0 %vm26_vm1, %v19846_v30 }
  0xe5   :  { %16543 = vmatprep.mubr.msk.f32.mxu0 %vm26_vm1, %v19848_v31 }
  0xe8   :  { %16544 = vmatmul.mubr.msk.f32.gmra.mrb[28].mxu0 %vm26_vm1, %v19854_v32 }
  0xe9   :  { %16546 = vmatprep.mubr.msk.f32.mxu0 %vm26_vm1, %v19856_v33 }
  0xec   :  { %16547 = vmatmul.mubr.msk.f32.gmra.mrb[30].mxu0 %vm26_vm1, %v19862_v34 }
  0xed   :  { %16549 = vmatprep.mubr.msk.f32.mxu0 %vm26_vm1, %v275_v35  ;;  %v1535_v35 = vld [vmem:[#allocation2 + $0x2] sm:$0xff] }
  0xf0   :  { %16550 = vmatmul.mubr.msk.f32.gmra.mrb[32].mxu0 %vm26_vm1, %v276_v36  ;;  %v1536_v36 = vld [vmem:[#allocation2 + $0xa] sm:$0xff] }
  0xf1   :  { %16552 = vmatprep.mubr.msk.f32.mxu0 %vm26_vm1, %v19867_v37 }
  0xf4   :  { %16553 = vmatmul.mubr.msk.f32.gmra.mrb[34].mxu0 %vm26_vm1, %v19872_v38 }
  0xf5   :  { %16555 = vmatprep.mubr.msk.f32.mxu0 %vm26_vm1, %v19874_v39 }
  0xf8   :  { %16556 = vmatmul.mubr.msk.f32.gmra.mrb[36].mxu0 %vm26_vm1, %v19880_v40 }
  0xf9   :  { %16558 = vmatprep.mubr.msk.f32.mxu0 %vm26_vm1, %v19882_v41 }
  0xfc   :  { %16559 = vmatmul.mubr.msk.f32.gmra.mrb[38].mxu0 %vm26_vm1, %v19888_v42 }
  0xfd   :  { %16561 = vmatprep.mubr.msk.f32.mxu0 %vm26_vm1, %v19890_v43 }
 0x100   :  { %16562 = vmatmul.mubr.msk.f32.gmra.mrb[40].mxu0 %vm26_vm1, %v19896_v44 }
 0x101   :  { %16564 = vmatprep.mubr.msk.f32.mxu0 %vm26_vm1, %v19898_v45 }
 0x104   :  { %16565 = vmatmul.mubr.msk.f32.gmra.mrb[42].mxu0 %vm26_vm1, %v19904_v46 }
 0x105   :  { %16567 = vmatprep.mubr.msk.f32.mxu0 %vm26_vm1, %v19906_v47 }
 0x108   :  { %16568 = vmatmul.mubr.msk.f32.gmra.mrb[44].mxu0 %vm26_vm1, %v19912_v48 }
 0x109   :  { %16570 = vmatprep.mubr.msk.f32.mxu0 %vm26_vm1, %v19914_v49 }
 0x10c   :  { %16571 = vmatmul.mubr.msk.f32.gmra.mrb[46].mxu0 %vm26_vm1, %v19920_v50 }
 0x10d   :  { %16573 = vmatprep.mubr.msk.f32.mxu0 %vm26_vm1, %v19922_v51 }
 0x110   :  { %16574 = vmatmul.mubr.msk.f32.gmra.mrb[48].mxu0 %vm26_vm1, %v19928_v52 }
 0x111   :  { %16576 = vmatprep.mubr.msk.f32.mxu0 %vm26_vm1, %v19930_v53 }
 0x114   :  { %16577 = vmatmul.mubr.msk.f32.gmra.mrb[50].mxu0 %vm26_vm1, %v19936_v54 }
 0x115   :  { %16579 = vmatprep.mubr.msk.f32.mxu0 %vm26_vm1, %v19938_v55 }
 0x118   :  { %16580 = vmatmul.mubr.msk.f32.gmra.mrb[52].mxu0 %vm26_vm1, %v19944_v56 }
 0x119   :  { %16582 = vmatprep.mubr.msk.f32.mxu0 %vm26_vm1, %v19946_v57 }
 0x11c   :  { %16583 = vmatmul.mubr.msk.f32.gmra.mrb[54].mxu0 %vm26_vm1, %v19952_v58 }
 0x11d   :  { %16585 = vmatprep.mubr.msk.f32.mxu0 %vm26_vm1, %v19954_v59 }
 0x120   :  { %16586 = vmatmul.mubr.msk.f32.gmra.mrb[56].mxu0 %vm26_vm1, %v19960_v60 }
 0x121   :  { %16588 = vmatprep.mubr.msk.f32.mxu0 %vm26_vm1, %v19962_v61 }
 0x124   :  { %16589 = vmatmul.mubr.msk.f32.gmra.mrb[58].mxu0 %vm26_vm1, %v19968_v62 }
 0x125   :  { %16591 = vmatprep.mubr.msk.f32.mxu0 %vm26_vm1, %v19970_v63  ;;  %v19994_v63 = vld [vmem:[%s25029_s1 + $0x10] sm:$0xf] }
 0x128   :  { %16592 = vmatmul.mubr.msk.f32.gmra.mrb[60].mxu0 %vm26_vm1, %v19976_v0  ;;  %v1567_v0 = vld [vmem:[#allocation2 + $0x1b2] sm:$0xff] }
 0x129   :  { %16594 = vmatprep.mubr.msk.f32.mxu0 %vm26_vm1, %v19978_v2  ;;  %v20001_v2 = vld [vmem:[#allocation2 + $0x22] sm:$0xff] }
 0x12a   :  { %25241 = vst [vmem:[#allocation9_spill] sm:$0xff] %v20001_v2 }
 0x12c   :  { %16595 = vmatmul.mubr.msk.f32.gmra.mrb[62].mxu0 %vm26_vm1, %v19984_v3  ;;  %v20003_v3 = vld [vmem:[#allocation2 + $0x32] sm:$0xff] }
 0x12d   :  { %16599 = vmatprep.mubr.msk.f32.mxu0 %vm26_vm1, %v1535_v35  ;;  %25242 = vst [vmem:[#allocation10_spill] sm:$0xff] %v20003_v3  ;;  %v20011_v35 = vld [vmem:[#allocation2 + $0x3a] sm:$0xff] }
 0x12e   :  { %25243 = vst [vmem:[#allocation11_spill] sm:$0xff] %v20011_v35 }
 0x130   :  { %16600 = vmatmul.mubr.msk.f32.vlgmr.msra.gmra.mrb[0].mxu0 %vm26_vm1, %v1536_v36  ;;  %v20013_v36 = vld [vmem:[#allocation2 + $0x4a] sm:$0xff] }
 0x131   :  { %16696 = vmatpush3.msk.msra.mxu0 %vm566_vm0, %v19741_v5  ;;  %16602 = vmatprep.mubr.msk.f32.mxu0 %vm26_vm1, %v19989_v1  ;;  %25244 = vst [vmem:[#allocation12_spill] sm:$0xff] %v20013_v36  ;;  %v20019_v5 = vld [vmem:[#allocation2 + $0x52] sm:$0xff]  ;;  %v20021_v1 = vld [vmem:[#allocation2 + $0x62] sm:$0xff] }
 0x132   :  { %16793 = vmatprep.subr.msk.mxu0 %vm566_vm0, %v19994_v63  ;;  %25245 = vst [vmem:[#allocation13_spill] sm:$0xff] %v20019_v5  ;;  %25246 = vst [vmem:[#allocation14_spill] sm:$0xff] %v20021_v1 }
 0x134   :  { %16603 = vmatmul.mubr.msk.f32.gmra.mrb[2].mxu0 %vm26_vm1, %v20001_v2  ;;  %v20029_v2 = vld [vmem:[#allocation2 + $0x7a] sm:$0xff] }
 0x135   :  { %16605 = vmatprep.mubr.msk.f32.mxu0 %vm26_vm1, %v20003_v3  ;;  %v20027_v3 = vld [vmem:[#allocation2 + $0x6a] sm:$0xff]  ;;  %25248 = vst [vmem:[#allocation16_spill] sm:$0xff] %v20029_v2 }
 0x136   :  { %25247 = vst [vmem:[#allocation15_spill] sm:$0xff] %v20027_v3 }
 0x138   :  { %16606 = vmatmul.mubr.msk.f32.gmra.mrb[4].mxu0 %vm26_vm1, %v20011_v35  ;;  %v20037_v35 = vld [vmem:[#allocation2 + $0x92] sm:$0xff] }
 0x139   :  { %16608 = vmatprep.mubr.msk.f32.mxu0 %vm26_vm1, %v20013_v36  ;;  %v20035_v36 = vld [vmem:[#allocation2 + $0x82] sm:$0xff]  ;;  %25250 = vst [vmem:[#allocation18_spill] sm:$0xff] %v20037_v35 }
 0x13a   :  { %25249 = vst [vmem:[#allocation17_spill] sm:$0xff] %v20035_v36 }
 0x13c   :  { %16609 = vmatmul.mubr.msk.f32.gmra.mrb[6].mxu0 %vm26_vm1, %v20019_v5  ;;  %v20045_v5 = vld [vmem:[#allocation2 + $0xaa] sm:$0xff] }
 0x13d   :  { %16611 = vmatprep.mubr.msk.f32.mxu0 %vm26_vm1, %v20021_v1  ;;  %v20043_v1 = vld [vmem:[#allocation2 + $0x9a] sm:$0xff]  ;;  %25252 = vst [vmem:[#allocation20_spill] sm:$0xff] %v20045_v5 }
 0x13e   :  { %25251 = vst [vmem:[#allocation19_spill] sm:$0xff] %v20043_v1 }
 0x140   :  { %16612 = vmatmul.mubr.msk.f32.gmra.mrb[8].mxu0 %vm26_vm1, %v20027_v3  ;;  %v20053_v3 = vld [vmem:[#allocation2 + $0xc2] sm:$0xff] }
 0x141   :  { %16614 = vmatprep.mubr.msk.f32.mxu0 %vm26_vm1, %v20029_v2  ;;  %v20051_v2 = vld [vmem:[#allocation2 + $0xb2] sm:$0xff]  ;;  %25254 = vst [vmem:[#allocation22_spill] sm:$0xff] %v20053_v3 }
 0x142   :  { %25253 = vst [vmem:[#allocation21_spill] sm:$0xff] %v20051_v2 }
 0x144   :  { %16615 = vmatmul.mubr.msk.f32.gmra.mrb[10].mxu0 %vm26_vm1, %v20035_v36  ;;  %v20061_v36 = vld [vmem:[#allocation2 + $0xda] sm:$0xff] }
 0x145   :  { %16617 = vmatprep.mubr.msk.f32.mxu0 %vm26_vm1, %v20037_v35  ;;  %v20059_v35 = vld [vmem:[#allocation2 + $0xca] sm:$0xff]  ;;  %25256 = vst [vmem:[#allocation24_spill] sm:$0xff] %v20061_v36 }
 0x146   :  { %25255 = vst [vmem:[#allocation23_spill] sm:$0xff] %v20059_v35 }
 0x148   :  { %16618 = vmatmul.mubr.msk.f32.gmra.mrb[12].mxu0 %vm26_vm1, %v20043_v1  ;;  %v20069_v1 = vld [vmem:[#allocation2 + $0xf2] sm:$0xff] }
 0x149   :  { %16620 = vmatprep.mubr.msk.f32.mxu0 %vm26_vm1, %v20045_v5  ;;  %v20067_v5 = vld [vmem:[#allocation2 + $0xe2] sm:$0xff]  ;;  %25258 = vst [vmem:[#allocation26_spill] sm:$0xff] %v20069_v1 }
 0x14a   :  { %25257 = vst [vmem:[#allocation25_spill] sm:$0xff] %v20067_v5 }
 0x14c   :  { %16621 = vmatmul.mubr.msk.f32.gmra.mrb[14].mxu0 %vm26_vm1, %v20051_v2  ;;  %v20077_v2 = vld [vmem:[#allocation2 + $0x10a] sm:$0xff] }
 0x14d   :  { %16623 = vmatprep.mubr.msk.f32.mxu0 %vm26_vm1, %v20053_v3  ;;  %v20075_v3 = vld [vmem:[#allocation2 + $0xfa] sm:$0xff]  ;;  %25260 = vst [vmem:[#allocation28_spill] sm:$0xff] %v20077_v2 }
 0x14e   :  { %25259 = vst [vmem:[#allocation27_spill] sm:$0xff] %v20075_v3 }
 0x150   :  { %16624 = vmatmul.mubr.msk.f32.gmra.mrb[16].mxu0 %vm26_vm1, %v20059_v35  ;;  %v20085_v35 = vld [vmem:[#allocation2 + $0x122] sm:$0xff] }
 0x151   :  { %16626 = vmatprep.mubr.msk.f32.mxu0 %vm26_vm1, %v20061_v36  ;;  %v20083_v36 = vld [vmem:[#allocation2 + $0x112] sm:$0xff]  ;;  %25262 = vst [vmem:[#allocation30_spill] sm:$0xff] %v20085_v35 }
 0x152   :  { %25261 = vst [vmem:[#allocation29_spill] sm:$0xff] %v20083_v36 }
 0x154   :  { %16627 = vmatmul.mubr.msk.f32.gmra.mrb[18].mxu0 %vm26_vm1, %v20067_v5  ;;  %v20093_v5 = vld [vmem:[#allocation2 + $0x13a] sm:$0xff] }
 0x155   :  { %16629 = vmatprep.mubr.msk.f32.mxu0 %vm26_vm1, %v20069_v1  ;;  %v20091_v1 = vld [vmem:[#allocation2 + $0x12a] sm:$0xff]  ;;  %25264 = vst [vmem:[#allocation32_spill] sm:$0xff] %v20093_v5 }
 0x156   :  { %25263 = vst [vmem:[#allocation31_spill] sm:$0xff] %v20091_v1 }
 0x158   :  { %16630 = vmatmul.mubr.msk.f32.gmra.mrb[20].mxu0 %vm26_vm1, %v20075_v3  ;;  %v20101_v3 = vld [vmem:[#allocation2 + $0x152] sm:$0xff] }
 0x159   :  { %16632 = vmatprep.mubr.msk.f32.mxu0 %vm26_vm1, %v20077_v2  ;;  %v20099_v2 = vld [vmem:[#allocation2 + $0x142] sm:$0xff]  ;;  %25266 = vst [vmem:[#allocation34_spill] sm:$0xff] %v20101_v3 }
 0x15a   :  { %25265 = vst [vmem:[#allocation33_spill] sm:$0xff] %v20099_v2 }
 0x15c   :  { %16633 = vmatmul.mubr.msk.f32.gmra.mrb[22].mxu0 %vm26_vm1, %v20083_v36  ;;  %v144_v36 = vld [vmem:[%s25030_s0 + $0xf0] sm:$0xff] }
 0x15d   :  { %16635 = vmatprep.mubr.msk.f32.mxu0 %vm26_vm1, %v20085_v35  ;;  %209 = vst.msk [vmem:[#allocation2 + $0x181] sm:$0xff] %vm26_vm1, %v144_v36  ;;  %v145_v35 = vld [vmem:[%s25030_s0 + $0xf8] sm:$0xff] }
 0x15e   :  { %210 = vst.msk [vmem:[#allocation2 + $0x189] sm:$0xff] %vm26_vm1, %v145_v35  ;;  %v20123_v36 = vld [vmem:[#allocation2 + $0x172] sm:$0xff]  ;;  %v1568_v35 = vld [vmem:[#allocation2 + $0x1ba] sm:$0xff] }
 0x15f   :  { %25268 = vst [vmem:[#allocation36_spill] sm:$0xff] %v20123_v36 }
 0x160   :  { %16636 = vmatmul.mubr.msk.f32.gmra.mrb[24].mxu0 %vm26_vm1, %v20091_v1  ;;  %v20117_v1 = vld [vmem:[#allocation2 + $0x16a] sm:$0xff] }
 0x161   :  { %16638 = vmatprep.mubr.msk.f32.mxu0 %vm26_vm1, %v20093_v5  ;;  %v20115_v5 = vld [vmem:[#allocation2 + $0x15a] sm:$0xff] }
 0x162   :  { %25267 = vst [vmem:[#allocation35_spill] sm:$0xff] %v20115_v5 }
 0x164   :  { %16639 = vmatmul.mubr.msk.f32.gmra.mrb[26].mxu0 %vm26_vm1, %v20099_v2  ;;  %v20135_v2 = vld [vmem:[#allocation2 + $0x1e2] sm:$0xff] }
 0x165   :  { %16641 = vmatprep.mubr.msk.f32.mxu0 %vm26_vm1, %v20101_v3  ;;  %v20128_v3 = vld [vmem:[#allocation2 + $0x1ca] sm:$0xff]  ;;  %25271 = vst [vmem:[#allocation39_spill] sm:$0xff] %v20135_v2 }
 0x166   :  { %25269 = vst [vmem:[#allocation37_spill] sm:$0xff] %v20128_v3 }
 0x168   :  { %16642 = vmatmul.mubr.msk.f32.gmra.mrb[28].mxu0 %vm26_vm1, %v20115_v5  ;;  %v20133_v5 = vld [vmem:[#allocation2 + $0x1d2] sm:$0xff] }
 0x169   :  { %16644 = vmatprep.mubr.msk.f32.mxu0 %vm26_vm1, %v20117_v1  ;;  %25270 = vst [vmem:[#allocation38_spill] sm:$0xff] %v20133_v5 }
 0x16c   :  { %16645 = vmatmul.mubr.msk.f32.gmra.mrb[30].mxu0 %vm26_vm1, %v20123_v36  ;;  %v20141_v36 = vld [vmem:[#allocation2 + $0x1ea] sm:$0xff] }
 0x16d   :  { %16647 = vmatprep.mubr.msk.f32.mxu0 %vm26_vm1, %v1567_v0  ;;  %25272 = vst [vmem:[#allocation40_spill] sm:$0xff] %v20141_v36  ;;  %v20143_v0 = vld [vmem:[#allocation2 + $0x1fa] sm:$0xff] }
 0x16e   :  { %25273 = vst [vmem:[#allocation41_spill] sm:$0xff] %v20143_v0 }
 0x170   :  { %16648 = vmatmul.mubr.msk.f32.gmra.mrb[32].mxu0 %vm26_vm1, %v1568_v35  ;;  %v20149_v35 = vld [vmem:[#allocation2 + $0x202] sm:$0xff] }
 0x171   :  { %16650 = vmatprep.mubr.msk.f32.mxu0 %vm26_vm1, %v20128_v3  ;;  %25274 = vst [vmem:[#allocation42_spill] sm:$0xff] %v20149_v35  ;;  %v20151_v3 = vld [vmem:[#allocation2 + $0x212] sm:$0xff] }
 0x172   :  { %25275 = vst [vmem:[#allocation43_spill] sm:$0xff] %v20151_v3 }
 0x174   :  { %16651 = vmatmul.mubr.msk.f32.gmra.mrb[34].mxu0 %vm26_vm1, %v20133_v5  ;;  %v20159_v5 = vld [vmem:[#allocation2 + $0x22a] sm:$0xff] }
 0x175   :  { %16653 = vmatprep.mubr.msk.f32.mxu0 %vm26_vm1, %v20135_v2  ;;  %v20157_v2 = vld [vmem:[#allocation2 + $0x21a] sm:$0xff]  ;;  %25277 = vst [vmem:[#allocation45_spill] sm:$0xff] %v20159_v5 }
 0x176   :  { %25276 = vst [vmem:[#allocation44_spill] sm:$0xff] %v20157_v2 }
 0x178   :  { %16654 = vmatmul.mubr.msk.f32.gmra.mrb[36].mxu0 %vm26_vm1, %v20141_v36  ;;  %v20167_v36 = vld [vmem:[#allocation2 + $0x242] sm:$0xff] }
 0x179   :  { %16656 = vmatprep.mubr.msk.f32.mxu0 %vm26_vm1, %v20143_v0  ;;  %v20165_v0 = vld [vmem:[#allocation2 + $0x232] sm:$0xff]  ;;  %25279 = vst [vmem:[#allocation47_spill] sm:$0xff] %v20167_v36 }
 0x17a   :  { %25278 = vst [vmem:[#allocation46_spill] sm:$0xff] %v20165_v0 }
 0x17c   :  { %16657 = vmatmul.mubr.msk.f32.gmra.mrb[38].mxu0 %vm26_vm1, %v20149_v35  ;;  %v20175_v35 = vld [vmem:[#allocation2 + $0x25a] sm:$0xff] }
 0x17d   :  { %16659 = vmatprep.mubr.msk.f32.mxu0 %vm26_vm1, %v20151_v3  ;;  %v20173_v3 = vld [vmem:[#allocation2 + $0x24a] sm:$0xff]  ;;  %25281 = vst [vmem:[#allocation49_spill] sm:$0xff] %v20175_v35 }
 0x17e   :  { %25280 = vst [vmem:[#allocation48_spill] sm:$0xff] %v20173_v3 }
 0x180   :  { %16660 = vmatmul.mubr.msk.f32.gmra.mrb[40].mxu0 %vm26_vm1, %v20157_v2  ;;  %v20183_v2 = vld [vmem:[#allocation2 + $0x272] sm:$0xff] }
 0x181   :  { %16662 = vmatprep.mubr.msk.f32.mxu0 %vm26_vm1, %v20159_v5  ;;  %v20181_v5 = vld [vmem:[#allocation2 + $0x262] sm:$0xff]  ;;  %25283 = vst [vmem:[#allocation51_spill] sm:$0xff] %v20183_v2 }
 0x182   :  { %25282 = vst [vmem:[#allocation50_spill] sm:$0xff] %v20181_v5 }
 0x184   :  { %16663 = vmatmul.mubr.msk.f32.gmra.mrb[42].mxu0 %vm26_vm1, %v20165_v0  ;;  %v20191_v0 = vld [vmem:[#allocation2 + $0x28a] sm:$0xff] }
 0x185   :  { %16665 = vmatprep.mubr.msk.f32.mxu0 %vm26_vm1, %v20167_v36  ;;  %v20189_v36 = vld [vmem:[#allocation2 + $0x27a] sm:$0xff]  ;;  %25285 = vst [vmem:[#allocation53_spill] sm:$0xff] %v20191_v0 }
 0x186   :  { %25284 = vst [vmem:[#allocation52_spill] sm:$0xff] %v20189_v36 }
 0x188   :  { %16666 = vmatmul.mubr.msk.f32.gmra.mrb[44].mxu0 %vm26_vm1, %v20173_v3  ;;  %v20199_v3 = vld [vmem:[#allocation2 + $0x2a2] sm:$0xff] }
 0x189   :  { %16668 = vmatprep.mubr.msk.f32.mxu0 %vm26_vm1, %v20175_v35  ;;  %v20197_v35 = vld [vmem:[#allocation2 + $0x292] sm:$0xff]  ;;  %25287 = vst [vmem:[#allocation55_spill] sm:$0xff] %v20199_v3 }
 0x18a   :  { %25286 = vst [vmem:[#allocation54_spill] sm:$0xff] %v20197_v35 }
 0x18c   :  { %16669 = vmatmul.mubr.msk.f32.gmra.mrb[46].mxu0 %vm26_vm1, %v20181_v5  ;;  %v20207_v5 = vld [vmem:[#allocation2 + $0x2ba] sm:$0xff] }
 0x18d   :  { %16671 = vmatprep.mubr.msk.f32.mxu0 %vm26_vm1, %v20183_v2  ;;  %v20205_v2 = vld [vmem:[#allocation2 + $0x2aa] sm:$0xff]  ;;  %25289 = vst [vmem:[#allocation57_spill] sm:$0xff] %v20207_v5 }
 0x18e   :  { %25288 = vst [vmem:[#allocation56_spill] sm:$0xff] %v20205_v2 }
 0x190   :  { %16672 = vmatmul.mubr.msk.f32.gmra.mrb[48].mxu0 %vm26_vm1, %v20189_v36  ;;  %v20215_v36 = vld [vmem:[#allocation2 + $0x2d2] sm:$0xff] }
 0x191   :  { %16674 = vmatprep.mubr.msk.f32.mxu0 %vm26_vm1, %v20191_v0  ;;  %v20213_v0 = vld [vmem:[#allocation2 + $0x2c2] sm:$0xff]  ;;  %25291 = vst [vmem:[#allocation59_spill] sm:$0xff] %v20215_v36 }
 0x192   :  { %25290 = vst [vmem:[#allocation58_spill] sm:$0xff] %v20213_v0 }
 0x194   :  { %16675 = vmatmul.mubr.msk.f32.gmra.mrb[50].mxu0 %vm26_vm1, %v20197_v35  ;;  %v20223_v35 = vld [vmem:[#allocation2 + $0x2ea] sm:$0xff] }
 0x195   :  { %16677 = vmatprep.mubr.msk.f32.mxu0 %vm26_vm1, %v20199_v3  ;;  %v20221_v3 = vld [vmem:[#allocation2 + $0x2da] sm:$0xff]  ;;  %25293 = vst [vmem:[#allocation61_spill] sm:$0xff] %v20223_v35 }
 0x196   :  { %25292 = vst [vmem:[#allocation60_spill] sm:$0xff] %v20221_v3 }
 0x198   :  { %16678 = vmatmul.mubr.msk.f32.gmra.mrb[52].mxu0 %vm26_vm1, %v20205_v2  ;;  %v20231_v2 = vld [vmem:[#allocation2 + $0x302] sm:$0xff] }
 0x199   :  { %16680 = vmatprep.mubr.msk.f32.mxu0 %vm26_vm1, %v20207_v5  ;;  %v20229_v5 = vld [vmem:[#allocation2 + $0x2f2] sm:$0xff] }
 0x19c   :  { %16681 = vmatmul.mubr.msk.f32.gmra.mrb[54].mxu0 %vm26_vm1, %v20213_v0  ;;  %v176_v0 = vld [vmem:[%s25030_s0 + $0x1f0] sm:$0xff] }
 0x19d   :  { %16683 = vmatprep.mubr.msk.f32.mxu0 %vm26_vm1, %v20215_v36  ;;  %241 = vst.msk [vmem:[#allocation2 + $0x331] sm:$0xff] %vm26_vm1, %v176_v0  ;;  %v177_v36 = vld [vmem:[%s25030_s0 + $0x1f8] sm:$0xff]  ;;  %v20253_v0 = vld [vmem:[#allocation2 + $0x322] sm:$0xff] }
 0x19e   :  { %242 = vst.msk [vmem:[#allocation2 + $0x339] sm:$0xff] %vm26_vm1, %v177_v36  ;;  %v20262_v36 = vld [vmem:[%s25029_s1 + $0x14] sm:$0xf] }
 0x1a0   :  { %16684 = vmatmul.mubr.msk.f32.gmra.mrb[56].mxu0 %vm26_vm1, %v20221_v3  ;;  %v20247_v3 = vld [vmem:[#allocation2 + $0x31a] sm:$0xff] }
 0x1a1   :  { %16686 = vmatprep.mubr.msk.f32.mxu0 %vm26_vm1, %v20223_v35  ;;  %v20245_v35 = vld [vmem:[#allocation2 + $0x30a] sm:$0xff] }
 0x1a4   :  { %16687 = vmatmul.mubr.msk.f32.gmra.mrb[58].mxu0 %vm26_vm1, %v20229_v5 }
 0x1a5   :  { %16689 = vmatprep.mubr.msk.f32.mxu0 %vm26_vm1, %v20231_v2 }
 0x1a8   :  { %16690 = vmatmul.mubr.msk.f32.gmra.mrb[60].mxu0 %vm26_vm1, %v20245_v35 }
 0x1a9   :  { %16692 = vmatprep.mubr.msk.f32.mxu0 %vm26_vm1, %v20247_v3 }
 0x1ac   :  { %16693 = vmatmul.mubr.msk.f32.gmra.mrb[62].mxu0 %vm26_vm1, %v20253_v0 }
 0x1ad   :  { %16697 = vmatprep.mubr.msk.f32.mxu0 %vm26_vm1, %v19736_v4  ;;  %v20324_v4 = vld [vmem:[#allocation2 + $0x180] sm:$0xff] }
 0x1b0   :  { %16698 = vmatmul.mubr.msk.f32.vlgmr.msra.gmra.mrb[0].mxu0 %vm26_vm1, %v19748_v6  ;;  %v20330_v6 = vld [vmem:[#allocation2 + $0x188] sm:$0xff] }
 0x1b1   :  { %16794 = vmatpush3.msk.msra.mxu0 %vm566_vm0, %v19994_v63  ;;  %16700 = vmatprep.mubr.msk.f32.mxu0 %vm26_vm1, %v19750_v7  ;;  %v25294_v7 = vld [vmem:[#allocation4_spill] sm:$0xff] }
 0x1b2   :  { %16891 = vmatprep.subr.msk.mxu0 %vm566_vm0, %v20262_v36  ;;  %v20587_v63 = vld [vmem:[#allocation2 + $0x279] sm:$0xff] }
 0x1b4   :  { %16701 = vmatmul.mubr.msk.f32.gmra.mrb[2].mxu0 %vm26_vm1, %v19758_v8  ;;  %v25295_v8 = vld [vmem:[#allocation5_spill] sm:$0xff] }
 0x1b5   :  { %16703 = vmatprep.mubr.msk.f32.mxu0 %vm26_vm1, %v19760_v9  ;;  %v25296_v9 = vld [vmem:[#allocation6_spill] sm:$0xff] }
 0x1b8   :  { %16704 = vmatmul.mubr.msk.f32.gmra.mrb[4].mxu0 %vm26_vm1, %v19766_v10  ;;  %v20392_v10 = vld [vmem:[#allocation2 + $0x330] sm:$0xff] }
 0x1b9   :  { %16706 = vmatprep.mubr.msk.f32.mxu0 %vm26_vm1, %v19768_v11  ;;  %v25297_v11 = vld [vmem:[#allocation7_spill] sm:$0xff] }
 0x1bc   :  { %16707 = vmatmul.mubr.msk.f32.gmra.mrb[6].mxu0 %vm26_vm1, %v19774_v12  ;;  %v20398_v12 = vld [vmem:[#allocation2 + $0x338] sm:$0xff] }
 0x1bd   :  { %16709 = vmatprep.mubr.msk.f32.mxu0 %vm26_vm1, %v19776_v13  ;;  %v2955_v13 = vld [vmem:[#allocation2 + $0x19] sm:$0xff] }
 0x1c0   :  { %16710 = vmatmul.mubr.msk.f32.gmra.mrb[8].mxu0 %vm26_vm1, %v19782_v14  ;;  %v2956_v14 = vld [vmem:[#allocation2 + $0x21] sm:$0xff] }
 0x1c1   :  { %16712 = vmatprep.mubr.msk.f32.mxu0 %vm26_vm1, %v19784_v15  ;;  %v20403_v15 = vld [vmem:[#allocation2 + $0x31] sm:$0xff] }
 0x1c4   :  { %16713 = vmatmul.mubr.msk.f32.gmra.mrb[10].mxu0 %vm26_vm1, %v19790_v16  ;;  %v20408_v16 = vld [vmem:[%s25029_s1 + $0x18] sm:$0xf] }
 0x1c5   :  { %16715 = vmatprep.mubr.msk.f32.mxu0 %vm26_vm1, %v19792_v17  ;;  %v20415_v17 = vld [vmem:[#allocation2 + $0x39] sm:$0xff] }
 0x1c8   :  { %16716 = vmatmul.mubr.msk.f32.gmra.mrb[12].mxu0 %vm26_vm1, %v19798_v18  ;;  %v20417_v18 = vld [vmem:[#allocation2 + $0x49] sm:$0xff] }
 0x1c9   :  { %16718 = vmatprep.mubr.msk.f32.mxu0 %vm26_vm1, %v19800_v19  ;;  %v20425_v19 = vld [vmem:[#allocation2 + $0x51] sm:$0xff] }
 0x1cc   :  { %16719 = vmatmul.mubr.msk.f32.gmra.mrb[14].mxu0 %vm26_vm1, %v19806_v20  ;;  %v20427_v20 = vld [vmem:[#allocation2 + $0x61] sm:$0xff] }
 0x1cd   :  { %16721 = vmatprep.mubr.msk.f32.mxu0 %vm26_vm1, %v19808_v21  ;;  %v20433_v21 = vld [vmem:[#allocation2 + $0x69] sm:$0xff] }
 0x1d0   :  { %16722 = vmatmul.mubr.msk.f32.gmra.mrb[16].mxu0 %vm26_vm1, %v19814_v22  ;;  %v20435_v22 = vld [vmem:[#allocation2 + $0x79] sm:$0xff] }
 0x1d1   :  { %16724 = vmatprep.mubr.msk.f32.mxu0 %vm26_vm1, %v19816_v23  ;;  %v20441_v23 = vld [vmem:[#allocation2 + $0x81] sm:$0xff] }
 0x1d4   :  { %16725 = vmatmul.mubr.msk.f32.gmra.mrb[18].mxu0 %vm26_vm1, %v19822_v24  ;;  %v20443_v24 = vld [vmem:[#allocation2 + $0x91] sm:$0xff] }
 0x1d5   :  { %16727 = vmatprep.mubr.msk.f32.mxu0 %vm26_vm1, %v19824_v25  ;;  %v20449_v25 = vld [vmem:[#allocation2 + $0x99] sm:$0xff] }
 0x1d8   :  { %16728 = vmatmul.mubr.msk.f32.gmra.mrb[20].mxu0 %vm26_vm1, %v19830_v26  ;;  %v20451_v26 = vld [vmem:[#allocation2 + $0xa9] sm:$0xff] }
 0x1d9   :  { %16730 = vmatprep.mubr.msk.f32.mxu0 %vm26_vm1, %v19832_v27  ;;  %v20457_v27 = vld [vmem:[#allocation2 + $0xb1] sm:$0xff] }
 0x1dc   :  { %16731 = vmatmul.mubr.msk.f32.gmra.mrb[22].mxu0 %vm26_vm1, %v19838_v28  ;;  %v20459_v28 = vld [vmem:[#allocation2 + $0xc1] sm:$0xff] }
 0x1dd   :  { %16733 = vmatprep.mubr.msk.f32.mxu0 %vm26_vm1, %v19840_v29  ;;  %v20465_v29 = vld [vmem:[#allocation2 + $0xc9] sm:$0xff] }
 0x1e0   :  { %16734 = vmatmul.mubr.msk.f32.gmra.mrb[24].mxu0 %vm26_vm1, %v19846_v30  ;;  %v20467_v30 = vld [vmem:[#allocation2 + $0xd9] sm:$0xff] }
 0x1e1   :  { %16736 = vmatprep.mubr.msk.f32.mxu0 %vm26_vm1, %v19848_v31  ;;  %v20473_v31 = vld [vmem:[#allocation2 + $0xe1] sm:$0xff] }
 0x1e4   :  { %16737 = vmatmul.mubr.msk.f32.gmra.mrb[26].mxu0 %vm26_vm1, %v19854_v32  ;;  %v20475_v32 = vld [vmem:[#allocation2 + $0xf1] sm:$0xff] }
 0x1e5   :  { %16739 = vmatprep.mubr.msk.f32.mxu0 %vm26_vm1, %v19856_v33  ;;  %v20481_v33 = vld [vmem:[#allocation2 + $0xf9] sm:$0xff] }
 0x1e8   :  { %16740 = vmatmul.mubr.msk.f32.gmra.mrb[28].mxu0 %vm26_vm1, %v19862_v34  ;;  %v20483_v34 = vld [vmem:[#allocation2 + $0x109] sm:$0xff] }
 0x1e9   :  { %16742 = vmatprep.mubr.msk.f32.mxu0 %vm26_vm1, %v20324_v4 }
 0x1ec   :  { %16743 = vmatmul.mubr.msk.f32.gmra.mrb[30].mxu0 %vm26_vm1, %v20330_v6 }
 0x1ed   :  { %16745 = vmatprep.mubr.msk.f32.mxu0 %vm26_vm1, %v19867_v37  ;;  %v20489_v37 = vld [vmem:[#allocation2 + $0x111] sm:$0xff] }
 0x1f0   :  { %16746 = vmatmul.mubr.msk.f32.gmra.mrb[32].mxu0 %vm26_vm1, %v19872_v38  ;;  %v20491_v38 = vld [vmem:[#allocation2 + $0x121] sm:$0xff] }
 0x1f1   :  { %16748 = vmatprep.mubr.msk.f32.mxu0 %vm26_vm1, %v19874_v39  ;;  %v20497_v39 = vld [vmem:[#allocation2 + $0x129] sm:$0xff] }
 0x1f4   :  { %16749 = vmatmul.mubr.msk.f32.gmra.mrb[34].mxu0 %vm26_vm1, %v19880_v40  ;;  %v20499_v40 = vld [vmem:[#allocation2 + $0x139] sm:$0xff] }
 0x1f5   :  { %16751 = vmatprep.mubr.msk.f32.mxu0 %vm26_vm1, %v19882_v41  ;;  %v20505_v41 = vld [vmem:[#allocation2 + $0x141] sm:$0xff] }
 0x1f8   :  { %16752 = vmatmul.mubr.msk.f32.gmra.mrb[36].mxu0 %vm26_vm1, %v19888_v42  ;;  %v20507_v42 = vld [vmem:[#allocation2 + $0x151] sm:$0xff] }
 0x1f9   :  { %16754 = vmatprep.mubr.msk.f32.mxu0 %vm26_vm1, %v19890_v43  ;;  %v20513_v43 = vld [vmem:[#allocation2 + $0x159] sm:$0xff] }
 0x1fc   :  { %16755 = vmatmul.mubr.msk.f32.gmra.mrb[38].mxu0 %vm26_vm1, %v19896_v44  ;;  %v20515_v44 = vld [vmem:[#allocation2 + $0x169] sm:$0xff] }
 0x1fd   :  { %16757 = vmatprep.mubr.msk.f32.mxu0 %vm26_vm1, %v19898_v45  ;;  %v20521_v45 = vld [vmem:[#allocation2 + $0x171] sm:$0xff] }
 0x200   :  { %16758 = vmatmul.mubr.msk.f32.gmra.mrb[40].mxu0 %vm26_vm1, %v19904_v46  ;;  %v20523_v46 = vld [vmem:[#allocation2 + $0x181] sm:$0xff] }
 0x201   :  { %16760 = vmatprep.mubr.msk.f32.mxu0 %vm26_vm1, %v19906_v47  ;;  %v20529_v47 = vld [vmem:[#allocation2 + $0x189] sm:$0xff] }
 0x204   :  { %16761 = vmatmul.mubr.msk.f32.gmra.mrb[42].mxu0 %vm26_vm1, %v19912_v48  ;;  %v2987_v48 = vld [vmem:[#allocation2 + $0x1c9] sm:$0xff] }
 0x205   :  { %16763 = vmatprep.mubr.msk.f32.mxu0 %vm26_vm1, %v19914_v49  ;;  %v2988_v49 = vld [vmem:[#allocation2 + $0x1d1] sm:$0xff] }
 0x208   :  { %16764 = vmatmul.mubr.msk.f32.gmra.mrb[44].mxu0 %vm26_vm1, %v19920_v50  ;;  %v20534_v50 = vld [vmem:[#allocation2 + $0x1e1] sm:$0xff] }
 0x209   :  { %16766 = vmatprep.mubr.msk.f32.mxu0 %vm26_vm1, %v19922_v51  ;;  %v20539_v51 = vld [vmem:[#allocation2 + $0x1e9] sm:$0xff] }
 0x20c   :  { %16767 = vmatmul.mubr.msk.f32.gmra.mrb[46].mxu0 %vm26_vm1, %v19928_v52  ;;  %v20541_v52 = vld [vmem:[#allocation2 + $0x1f9] sm:$0xff] }
 0x20d   :  { %16769 = vmatprep.mubr.msk.f32.mxu0 %vm26_vm1, %v19930_v53  ;;  %v20547_v53 = vld [vmem:[#allocation2 + $0x201] sm:$0xff] }
 0x210   :  { %16770 = vmatmul.mubr.msk.f32.gmra.mrb[48].mxu0 %vm26_vm1, %v19936_v54  ;;  %v20549_v54 = vld [vmem:[#allocation2 + $0x211] sm:$0xff] }
 0x211   :  { %16772 = vmatprep.mubr.msk.f32.mxu0 %vm26_vm1, %v19938_v55  ;;  %v20555_v55 = vld [vmem:[#allocation2 + $0x219] sm:$0xff] }
 0x214   :  { %16773 = vmatmul.mubr.msk.f32.gmra.mrb[50].mxu0 %vm26_vm1, %v19944_v56  ;;  %v20557_v56 = vld [vmem:[#allocation2 + $0x229] sm:$0xff] }
 0x215   :  { %16775 = vmatprep.mubr.msk.f32.mxu0 %vm26_vm1, %v19946_v57  ;;  %v20563_v57 = vld [vmem:[#allocation2 + $0x231] sm:$0xff] }
 0x218   :  { %16776 = vmatmul.mubr.msk.f32.gmra.mrb[52].mxu0 %vm26_vm1, %v19952_v58  ;;  %v20565_v58 = vld [vmem:[#allocation2 + $0x241] sm:$0xff] }
 0x219   :  { %16778 = vmatprep.mubr.msk.f32.mxu0 %vm26_vm1, %v19954_v59  ;;  %v20571_v59 = vld [vmem:[#allocation2 + $0x249] sm:$0xff] }
 0x21c   :  { %16779 = vmatmul.mubr.msk.f32.gmra.mrb[54].mxu0 %vm26_vm1, %v19960_v60  ;;  %v20573_v60 = vld [vmem:[#allocation2 + $0x259] sm:$0xff] }
 0x21d   :  { %16781 = vmatprep.mubr.msk.f32.mxu0 %vm26_vm1, %v19962_v61  ;;  %v20579_v61 = vld [vmem:[#allocation2 + $0x261] sm:$0xff] }
 0x220   :  { %16782 = vmatmul.mubr.msk.f32.gmra.mrb[56].mxu0 %vm26_vm1, %v19968_v62  ;;  %v20581_v62 = vld [vmem:[#allocation2 + $0x271] sm:$0xff] }
 0x221   :  { %16784 = vmatprep.mubr.msk.f32.mxu0 %vm26_vm1, %v25294_v7  ;;  %v20595_v7 = vld [vmem:[#allocation2 + $0x291] sm:$0xff] }
 0x222   :  { %25298 = vst [vmem:[#allocation4_spill] sm:$0xff] %v20595_v7 }
 0x224   :  { %16785 = vmatmul.mubr.msk.f32.gmra.mrb[58].mxu0 %vm26_vm1, %v25295_v8  ;;  %v20597_v8 = vld [vmem:[#allocation2 + $0x2a1] sm:$0xff] }
 0x225   :  { %16787 = vmatprep.mubr.msk.f32.mxu0 %vm26_vm1, %v25296_v9  ;;  %25299 = vst [vmem:[#allocation5_spill] sm:$0xff] %v20597_v8  ;;  %v20603_v9 = vld [vmem:[#allocation2 + $0x2a9] sm:$0xff] }
 0x226   :  { %25300 = vst [vmem:[#allocation6_spill] sm:$0xff] %v20603_v9 }
 0x228   :  { %16788 = vmatmul.mubr.msk.f32.gmra.mrb[60].mxu0 %vm26_vm1, %v25297_v11  ;;  %v20605_v11 = vld [vmem:[#allocation2 + $0x2b9] sm:$0xff] }
 0x229   :  { %16790 = vmatprep.mubr.msk.f32.mxu0 %vm26_vm1, %v20392_v10  ;;  %25301 = vst [vmem:[#allocation7_spill] sm:$0xff] %v20605_v11 }
 0x22c   :  { %16791 = vmatmul.mubr.msk.f32.gmra.mrb[62].mxu0 %vm26_vm1, %v20398_v12 }
 0x22d   :  { %16795 = vmatprep.mubr.msk.f32.mxu0 %vm26_vm1, %v2955_v13  ;;  %v20611_v13 = vld [vmem:[#allocation2 + $0x2c1] sm:$0xff] }
 0x22e   :  { %25302 = vst [vmem:[#allocation62_spill] sm:$0xff] %v20611_v13 }
 0x230   :  { %16796 = vmatmul.mubr.msk.f32.vlgmr.msra.gmra.mrb[0].mxu0 %vm26_vm1, %v2956_v14  ;;  %v20613_v14 = vld [vmem:[#allocation2 + $0x2d1] sm:$0xff] }
 0x231   :  { %16892 = vmatpush3.msk.msra.mxu0 %vm566_vm0, %v20262_v36  ;;  %16798 = vmatprep.mubr.msk.f32.mxu0 %vm26_vm1, %v20403_v15  ;;  %v20589_v36 = vld [vmem:[#allocation2 + $0x289] sm:$0xff]  ;;  %25303 = vst [vmem:[#allocation63_spill] sm:$0xff] %v20613_v14 }
 0x232   :  { %16989 = vmatprep.subr.msk.mxu0 %vm566_vm0, %v20408_v16 }
 0x234   :  { %16799 = vmatmul.mubr.msk.f32.gmra.mrb[2].mxu0 %vm26_vm1, %v20415_v17 }
 0x235   :  { %16801 = vmatprep.mubr.msk.f32.mxu0 %vm26_vm1, %v20417_v18 }
 0x238   :  { %16802 = vmatmul.mubr.msk.f32.gmra.mrb[4].mxu0 %vm26_vm1, %v20425_v19 }
 0x239   :  { %16804 = vmatprep.mubr.msk.f32.mxu0 %vm26_vm1, %v20427_v20 }
 0x23c   :  { %16805 = vmatmul.mubr.msk.f32.gmra.mrb[6].mxu0 %vm26_vm1, %v20433_v21 }
 0x23d   :  { %16807 = vmatprep.mubr.msk.f32.mxu0 %vm26_vm1, %v20435_v22 }
 0x240   :  { %16808 = vmatmul.mubr.msk.f32.gmra.mrb[8].mxu0 %vm26_vm1, %v20441_v23 }
 0x241   :  { %16810 = vmatprep.mubr.msk.f32.mxu0 %vm26_vm1, %v20443_v24 }
 0x244   :  { %16811 = vmatmul.mubr.msk.f32.gmra.mrb[10].mxu0 %vm26_vm1, %v20449_v25 }
 0x245   :  { %16813 = vmatprep.mubr.msk.f32.mxu0 %vm26_vm1, %v20451_v26 }
 0x248   :  { %16814 = vmatmul.mubr.msk.f32.gmra.mrb[12].mxu0 %vm26_vm1, %v20457_v27 }
 0x249   :  { %16816 = vmatprep.mubr.msk.f32.mxu0 %vm26_vm1, %v20459_v28 }
 0x24c   :  { %16817 = vmatmul.mubr.msk.f32.gmra.mrb[14].mxu0 %vm26_vm1, %v20465_v29 }
 0x24d   :  { %16819 = vmatprep.mubr.msk.f32.mxu0 %vm26_vm1, %v20467_v30 }
 0x250   :  { %16820 = vmatmul.mubr.msk.f32.gmra.mrb[16].mxu0 %vm26_vm1, %v20473_v31 }
 0x251   :  { %16822 = vmatprep.mubr.msk.f32.mxu0 %vm26_vm1, %v20475_v32 }
 0x254   :  { %16823 = vmatmul.mubr.msk.f32.gmra.mrb[18].mxu0 %vm26_vm1, %v20481_v33 }
 0x255   :  { %16825 = vmatprep.mubr.msk.f32.mxu0 %vm26_vm1, %v20483_v34 }
 0x258   :  { %16826 = vmatmul.mubr.msk.f32.gmra.mrb[20].mxu0 %vm26_vm1, %v20489_v37 }
 0x259   :  { %16828 = vmatprep.mubr.msk.f32.mxu0 %vm26_vm1, %v20491_v38 }
 0x25c   :  { %16829 = vmatmul.mubr.msk.f32.gmra.mrb[22].mxu0 %vm26_vm1, %v20497_v39 }
 0x25d   :  { %16831 = vmatprep.mubr.msk.f32.mxu0 %vm26_vm1, %v20499_v40 }
 0x260   :  { %16832 = vmatmul.mubr.msk.f32.gmra.mrb[24].mxu0 %vm26_vm1, %v20505_v41 }
 0x261   :  { %16834 = vmatprep.mubr.msk.f32.mxu0 %vm26_vm1, %v20507_v42 }
 0x264   :  { %16835 = vmatmul.mubr.msk.f32.gmra.mrb[26].mxu0 %vm26_vm1, %v20513_v43 }
 0x265   :  { %16837 = vmatprep.mubr.msk.f32.mxu0 %vm26_vm1, %v20515_v44 }
 0x268   :  { %16838 = vmatmul.mubr.msk.f32.gmra.mrb[28].mxu0 %vm26_vm1, %v20521_v45 }
 0x269   :  { %16840 = vmatprep.mubr.msk.f32.mxu0 %vm26_vm1, %v20523_v46 }
 0x26c   :  { %16841 = vmatmul.mubr.msk.f32.gmra.mrb[30].mxu0 %vm26_vm1, %v20529_v47 }
 0x26d   :  { %16843 = vmatprep.mubr.msk.f32.mxu0 %vm26_vm1, %v2987_v48  ;;  %v20619_v48 = vld [vmem:[#allocation2 + $0x2d9] sm:$0xff] }
 0x26e   :  { %25304 = vst [vmem:[#allocation64_spill] sm:$0xff] %v20619_v48 }
 0x270   :  { %16844 = vmatmul.mubr.msk.f32.gmra.mrb[32].mxu0 %vm26_vm1, %v2988_v49  ;;  %v20621_v49 = vld [vmem:[#allocation2 + $0x2e9] sm:$0xff] }
 0x271   :  { %16846 = vmatprep.mubr.msk.f32.mxu0 %vm26_vm1, %v20534_v50  ;;  %25305 = vst [vmem:[#allocation65_spill] sm:$0xff] %v20621_v49 }
 0x274   :  { %16847 = vmatmul.mubr.msk.f32.gmra.mrb[34].mxu0 %vm26_vm1, %v20539_v51 }
 0x275   :  { %16849 = vmatprep.mubr.msk.f32.mxu0 %vm26_vm1, %v20541_v52 }
 0x278   :  { %16850 = vmatmul.mubr.msk.f32.gmra.mrb[36].mxu0 %vm26_vm1, %v20547_v53 }
 0x279   :  { %16852 = vmatprep.mubr.msk.f32.mxu0 %vm26_vm1, %v20549_v54 }
 0x27c   :  { %16853 = vmatmul.mubr.msk.f32.gmra.mrb[38].mxu0 %vm26_vm1, %v20555_v55 }
 0x27d   :  { %16855 = vmatprep.mubr.msk.f32.mxu0 %vm26_vm1, %v20557_v56 }
 0x280   :  { %16856 = vmatmul.mubr.msk.f32.gmra.mrb[40].mxu0 %vm26_vm1, %v20563_v57 }
 0x281   :  { %16858 = vmatprep.mubr.msk.f32.mxu0 %vm26_vm1, %v20565_v58 }
 0x284   :  { %16859 = vmatmul.mubr.msk.f32.gmra.mrb[42].mxu0 %vm26_vm1, %v20571_v59 }
 0x285   :  { %16861 = vmatprep.mubr.msk.f32.mxu0 %vm26_vm1, %v20573_v60 }
 0x288   :  { %16862 = vmatmul.mubr.msk.f32.gmra.mrb[44].mxu0 %vm26_vm1, %v20579_v61 }
 0x289   :  { %16864 = vmatprep.mubr.msk.f32.mxu0 %vm26_vm1, %v20581_v62 }
 0x28c   :  { %16865 = vmatmul.mubr.msk.f32.gmra.mrb[46].mxu0 %vm26_vm1, %v20587_v63 }
 0x28d   :  { %16867 = vmatprep.mubr.msk.f32.mxu0 %vm26_vm1, %v20589_v36 }
 0x290   :  { %16868 = vmatmul.mubr.msk.f32.gmra.mrb[48].mxu0 %vm26_vm1, %v20595_v7  ;;  %v25323_v7 = vld [vmem:[#allocation18_spill] sm:$0xff] }
 0x291   :  { %16870 = vmatprep.mubr.msk.f32.mxu0 %vm26_vm1, %v20597_v8  ;;  %v25319_v8 = vld [vmem:[#allocation14_spill] sm:$0xff] }
 0x294   :  { %16871 = vmatmul.mubr.msk.f32.gmra.mrb[50].mxu0 %vm26_vm1, %v20603_v9  ;;  %v20629_v9 = vld [vmem:[#allocation2 + $0x301] sm:$0xff] }
 0x295   :  { %16873 = vmatprep.mubr.msk.f32.mxu0 %vm26_vm1, %v20605_v11  ;;  %v20627_v11 = vld [vmem:[#allocation2 + $0x2f1] sm:$0xff]  ;;  %25307 = vst [vmem:[#allocation67_spill] sm:$0xff] %v20629_v9 }
 0x296   :  { %25306 = vst [vmem:[#allocation66_spill] sm:$0xff] %v20627_v11 }
 0x298   :  { %16874 = vmatmul.mubr.msk.f32.gmra.mrb[52].mxu0 %vm26_vm1, %v20611_v13  ;;  %v20637_v13 = vld [vmem:[#allocation2 + $0x319] sm:$0xff] }
 0x299   :  { %16876 = vmatprep.mubr.msk.f32.mxu0 %vm26_vm1, %v20613_v14  ;;  %v20635_v14 = vld [vmem:[#allocation2 + $0x309] sm:$0xff]  ;;  %25309 = vst [vmem:[#allocation69_spill] sm:$0xff] %v20637_v13 }
 0x29a   :  { %25308 = vst [vmem:[#allocation68_spill] sm:$0xff] %v20635_v14 }
 0x29c   :  { %16877 = vmatmul.mubr.msk.f32.gmra.mrb[54].mxu0 %vm26_vm1, %v20619_v48  ;;  %v20645_v48 = vld [vmem:[#allocation2 + $0x331] sm:$0xff] }
 0x29d   :  { %16879 = vmatprep.mubr.msk.f32.mxu0 %vm26_vm1, %v20621_v49  ;;  %v20643_v49 = vld [vmem:[#allocation2 + $0x321] sm:$0xff]  ;;  %25311 = vst [vmem:[#allocation71_spill] sm:$0xff] %v20645_v48 }
 0x29e   :  { %25310 = vst [vmem:[#allocation70_spill] sm:$0xff] %v20643_v49 }
 0x2a0   :  { %16880 = vmatmul.mubr.msk.f32.gmra.mrb[56].mxu0 %vm26_vm1, %v20627_v11  ;;  %v25313_v11 = vld [vmem:[#allocation8_spill] sm:$0xff] }
 0x2a1   :  { %16882 = vmatprep.mubr.msk.f32.mxu0 %vm26_vm1, %v20629_v9  ;;  %v20651_v9 = vld [vmem:[#allocation2 + $0x339] sm:$0xff] }
 0x2a2   :  { %25312 = vst [vmem:[#allocation72_spill] sm:$0xff] %v20651_v9 }
 0x2a4   :  { %16883 = vmatmul.mubr.msk.f32.gmra.mrb[58].mxu0 %vm26_vm1, %v20635_v14  ;;  %v25314_v14 = vld [vmem:[#allocation9_spill] sm:$0xff] }
 0x2a5   :  { %16885 = vmatprep.mubr.msk.f32.mxu0 %vm26_vm1, %v20637_v13  ;;  %v20660_v13 = vld [vmem:[%s25029_s1 + $0x1c] sm:$0xf] }
 0x2a8   :  { %16886 = vmatmul.mubr.msk.f32.gmra.mrb[60].mxu0 %vm26_vm1, %v20643_v49  ;;  %v25318_v49 = vld [vmem:[#allocation13_spill] sm:$0xff] }
 0x2a9   :  { %16888 = vmatprep.mubr.msk.f32.mxu0 %vm26_vm1, %v20645_v48  ;;  %v25315_v48 = vld [vmem:[#allocation10_spill] sm:$0xff] }
 0x2ac   :  { %16889 = vmatmul.mubr.msk.f32.gmra.mrb[62].mxu0 %vm26_vm1, %v20651_v9  ;;  %v25316_v9 = vld [vmem:[#allocation11_spill] sm:$0xff] }
 0x2ad   :  { %16893 = vmatprep.mubr.msk.f32.mxu0 %vm26_vm1, %v25313_v11  ;;  %v25317_v11 = vld [vmem:[#allocation12_spill] sm:$0xff] }
 0x2b0   :  { %16894 = vmatmul.mubr.msk.f32.vlgmr.msra.gmra.mrb[0].mxu0 %vm26_vm1, %v25314_v14  ;;  %v25320_v14 = vld [vmem:[#allocation15_spill] sm:$0xff] }
 0x2b1   :  { %16990 = vmatpush3.msk.msra.mxu0 %vm566_vm0, %v20408_v16  ;;  %16896 = vmatprep.mubr.msk.f32.mxu0 %vm26_vm1, %v25315_v48  ;;  %v25321_v16 = vld [vmem:[#allocation16_spill] sm:$0xff]  ;;  %v25322_v48 = vld [vmem:[#allocation17_spill] sm:$0xff] }
 0x2b2   :  { %17087 = vmatprep.subr.msk.mxu0 %vm566_vm0, %v20660_v13 }
 0x2b4   :  { %16897 = vmatmul.mubr.msk.f32.gmra.mrb[2].mxu0 %vm26_vm1, %v25316_v9  ;;  %v25324_v9 = vld [vmem:[#allocation19_spill] sm:$0xff] }
 0x2b5   :  { %16899 = vmatprep.mubr.msk.f32.mxu0 %vm26_vm1, %v25317_v11  ;;  %v25325_v11 = vld [vmem:[#allocation20_spill] sm:$0xff] }
 0x2b8   :  { %16900 = vmatmul.mubr.msk.f32.gmra.mrb[4].mxu0 %vm26_vm1, %v25318_v49  ;;  %v25326_v49 = vld [vmem:[#allocation21_spill] sm:$0xff] }
 0x2b9   :  { %16902 = vmatprep.mubr.msk.f32.mxu0 %vm26_vm1, %v25319_v8  ;;  %v25327_v8 = vld [vmem:[#allocation22_spill] sm:$0xff] }
 0x2bc   :  { %16903 = vmatmul.mubr.msk.f32.gmra.mrb[6].mxu0 %vm26_vm1, %v25320_v14  ;;  %v25328_v14 = vld [vmem:[#allocation23_spill] sm:$0xff] }
 0x2bd   :  { %16905 = vmatprep.mubr.msk.f32.mxu0 %vm26_vm1, %v25321_v16  ;;  %v25329_v16 = vld [vmem:[#allocation24_spill] sm:$0xff] }
 0x2c0   :  { %16906 = vmatmul.mubr.msk.f32.gmra.mrb[8].mxu0 %vm26_vm1, %v25322_v48  ;;  %v25330_v48 = vld [vmem:[#allocation25_spill] sm:$0xff] }
 0x2c1   :  { %16908 = vmatprep.mubr.msk.f32.mxu0 %vm26_vm1, %v25323_v7  ;;  %v25331_v7 = vld [vmem:[#allocation26_spill] sm:$0xff] }
 0x2c4   :  { %16909 = vmatmul.mubr.msk.f32.gmra.mrb[10].mxu0 %vm26_vm1, %v25324_v9  ;;  %v25332_v9 = vld [vmem:[#allocation27_spill] sm:$0xff] }
 0x2c5   :  { %16911 = vmatprep.mubr.msk.f32.mxu0 %vm26_vm1, %v25325_v11  ;;  %v25333_v11 = vld [vmem:[#allocation28_spill] sm:$0xff] }
 0x2c8   :  { %16912 = vmatmul.mubr.msk.f32.gmra.mrb[12].mxu0 %vm26_vm1, %v25326_v49  ;;  %v25334_v49 = vld [vmem:[#allocation29_spill] sm:$0xff] }
 0x2c9   :  { %16914 = vmatprep.mubr.msk.f32.mxu0 %vm26_vm1, %v25327_v8  ;;  %v25335_v8 = vld [vmem:[#allocation30_spill] sm:$0xff] }
 0x2cc   :  { %16915 = vmatmul.mubr.msk.f32.gmra.mrb[14].mxu0 %vm26_vm1, %v25328_v14  ;;  %v25336_v14 = vld [vmem:[#allocation31_spill] sm:$0xff] }
 0x2cd   :  { %16917 = vmatprep.mubr.msk.f32.mxu0 %vm26_vm1, %v25329_v16  ;;  %v25337_v16 = vld [vmem:[#allocation32_spill] sm:$0xff] }
 0x2d0   :  { %16918 = vmatmul.mubr.msk.f32.gmra.mrb[16].mxu0 %vm26_vm1, %v25330_v48  ;;  %v25338_v48 = vld [vmem:[#allocation33_spill] sm:$0xff] }
 0x2d1   :  { %16920 = vmatprep.mubr.msk.f32.mxu0 %vm26_vm1, %v25331_v7  ;;  %v25339_v7 = vld [vmem:[#allocation34_spill] sm:$0xff] }
 0x2d4   :  { %16921 = vmatmul.mubr.msk.f32.gmra.mrb[18].mxu0 %vm26_vm1, %v25332_v9  ;;  %v25340_v9 = vld [vmem:[#allocation35_spill] sm:$0xff] }
 0x2d5   :  { %16923 = vmatprep.mubr.msk.f32.mxu0 %vm26_vm1, %v25333_v11  ;;  %v20722_v11 = vld [vmem:[#allocation2 + $0x182] sm:$0xff] }
 0x2d8   :  { %16924 = vmatmul.mubr.msk.f32.gmra.mrb[20].mxu0 %vm26_vm1, %v25334_v49  ;;  %v25341_v49 = vld [vmem:[#allocation36_spill] sm:$0xff] }
 0x2d9   :  { %16926 = vmatprep.mubr.msk.f32.mxu0 %vm26_vm1, %v25335_v8  ;;  %v20728_v8 = vld [vmem:[#allocation2 + $0x18a] sm:$0xff] }
 0x2da   :  { %25342 = vst [vmem:[#allocation8_spill] sm:$0xff] %v20728_v8 }
 0x2dc   :  { %16927 = vmatmul.mubr.msk.f32.gmra.mrb[22].mxu0 %vm26_vm1, %v25336_v14  ;;  %v25343_v14 = vld [vmem:[#allocation37_spill] sm:$0xff] }
 0x2dd   :  { %16929 = vmatprep.mubr.msk.f32.mxu0 %vm26_vm1, %v25337_v16  ;;  %v25344_v16 = vld [vmem:[#allocation38_spill] sm:$0xff] }
 0x2e0   :  { %16930 = vmatmul.mubr.msk.f32.gmra.mrb[24].mxu0 %vm26_vm1, %v25338_v48  ;;  %v25346_v48 = vld [vmem:[#allocation40_spill] sm:$0xff] }
 0x2e1   :  { %16932 = vmatprep.mubr.msk.f32.mxu0 %vm26_vm1, %v25339_v7  ;;  %v25347_v7 = vld [vmem:[#allocation41_spill] sm:$0xff] }
 0x2e4   :  { %16933 = vmatmul.mubr.msk.f32.gmra.mrb[26].mxu0 %vm26_vm1, %v25340_v9  ;;  %v25348_v9 = vld [vmem:[#allocation42_spill] sm:$0xff] }
 0x2e5   :  { %16935 = vmatprep.mubr.msk.f32.mxu0 %vm26_vm1, %v20117_v1  ;;  %v25345_v1 = vld [vmem:[#allocation39_spill] sm:$0xff] }
 0x2e8   :  { %16936 = vmatmul.mubr.msk.f32.gmra.mrb[28].mxu0 %vm26_vm1, %v25341_v49  ;;  %v25349_v49 = vld [vmem:[#allocation43_spill] sm:$0xff] }
 0x2e9   :  { %16938 = vmatprep.mubr.msk.f32.mxu0 %vm26_vm1, %v20722_v11 }
 0x2ec   :  { %16939 = vmatmul.mubr.msk.f32.gmra.mrb[30].mxu0 %vm26_vm1, %v20728_v8  ;;  %v25350_v8 = vld [vmem:[#allocation44_spill] sm:$0xff] }
 0x2ed   :  { %16941 = vmatprep.mubr.msk.f32.mxu0 %vm26_vm1, %v25343_v14  ;;  %v25351_v14 = vld [vmem:[#allocation45_spill] sm:$0xff] }
 0x2f0   :  { %16942 = vmatmul.mubr.msk.f32.gmra.mrb[32].mxu0 %vm26_vm1, %v25344_v16  ;;  %v25352_v16 = vld [vmem:[#allocation46_spill] sm:$0xff] }
 0x2f1   :  { %16944 = vmatprep.mubr.msk.f32.mxu0 %vm26_vm1, %v25345_v1  ;;  %v25353_v1 = vld [vmem:[#allocation47_spill] sm:$0xff] }
 0x2f4   :  { %16945 = vmatmul.mubr.msk.f32.gmra.mrb[34].mxu0 %vm26_vm1, %v25346_v48  ;;  %v25354_v48 = vld [vmem:[#allocation48_spill] sm:$0xff] }
 0x2f5   :  { %16947 = vmatprep.mubr.msk.f32.mxu0 %vm26_vm1, %v25347_v7  ;;  %v25355_v7 = vld [vmem:[#allocation49_spill] sm:$0xff] }
 0x2f8   :  { %16948 = vmatmul.mubr.msk.f32.gmra.mrb[36].mxu0 %vm26_vm1, %v25348_v9  ;;  %v25356_v9 = vld [vmem:[#allocation50_spill] sm:$0xff] }
 0x2f9   :  { %16950 = vmatprep.mubr.msk.f32.mxu0 %vm26_vm1, %v25349_v49  ;;  %v25357_v49 = vld [vmem:[#allocation51_spill] sm:$0xff] }
 0x2fc   :  { %16951 = vmatmul.mubr.msk.f32.gmra.mrb[38].mxu0 %vm26_vm1, %v25350_v8  ;;  %v25358_v8 = vld [vmem:[#allocation52_spill] sm:$0xff] }
 0x2fd   :  { %16953 = vmatprep.mubr.msk.f32.mxu0 %vm26_vm1, %v25351_v14  ;;  %v25359_v14 = vld [vmem:[#allocation53_spill] sm:$0xff] }
 0x300   :  { %16954 = vmatmul.mubr.msk.f32.gmra.mrb[40].mxu0 %vm26_vm1, %v25352_v16  ;;  %v25360_v16 = vld [vmem:[#allocation54_spill] sm:$0xff] }
 0x301   :  { %16956 = vmatprep.mubr.msk.f32.mxu0 %vm26_vm1, %v25353_v1  ;;  %v25361_v1 = vld [vmem:[#allocation55_spill] sm:$0xff] }
 0x304   :  { %16957 = vmatmul.mubr.msk.f32.gmra.mrb[42].mxu0 %vm26_vm1, %v25354_v48  ;;  %v25362_v48 = vld [vmem:[#allocation56_spill] sm:$0xff] }
 0x305   :  { %16959 = vmatprep.mubr.msk.f32.mxu0 %vm26_vm1, %v25355_v7  ;;  %v25363_v7 = vld [vmem:[#allocation57_spill] sm:$0xff] }
 0x308   :  { %16960 = vmatmul.mubr.msk.f32.gmra.mrb[44].mxu0 %vm26_vm1, %v25356_v9  ;;  %v25364_v9 = vld [vmem:[#allocation58_spill] sm:$0xff] }
 0x309   :  { %16962 = vmatprep.mubr.msk.f32.mxu0 %vm26_vm1, %v25357_v49  ;;  %v25365_v49 = vld [vmem:[#allocation59_spill] sm:$0xff] }
 0x30c   :  { %16963 = vmatmul.mubr.msk.f32.gmra.mrb[46].mxu0 %vm26_vm1, %v25358_v8  ;;  %v25366_v8 = vld [vmem:[#allocation60_spill] sm:$0xff] }
 0x30d   :  { %16965 = vmatprep.mubr.msk.f32.mxu0 %vm26_vm1, %v25359_v14  ;;  %v25367_v14 = vld [vmem:[#allocation61_spill] sm:$0xff] }
 0x310   :  { %16966 = vmatmul.mubr.msk.f32.gmra.mrb[48].mxu0 %vm26_vm1, %v25360_v16  ;;  %v20790_v16 = vld [vmem:[#allocation2 + $0x332] sm:$0xff] }
 0x311   :  { %16968 = vmatprep.mubr.msk.f32.mxu0 %vm26_vm1, %v25361_v1  ;;  %v20796_v1 = vld [vmem:[#allocation2 + $0x33a] sm:$0xff] }
 0x314   :  { %16969 = vmatmul.mubr.msk.f32.gmra.mrb[50].mxu0 %vm26_vm1, %v25362_v48  ;;  %v4380_v48 = vld [vmem:[#allocation2 + $0x60] sm:$0xff] }
 0x315   :  { %16971 = vmatprep.mubr.msk.f32.mxu0 %vm26_vm1, %v25363_v7  ;;  %v4381_v7 = vld [vmem:[#allocation2 + $0x68] sm:$0xff] }
 0x318   :  { %16972 = vmatmul.mubr.msk.f32.gmra.mrb[52].mxu0 %vm26_vm1, %v25364_v9  ;;  %v4382_v9 = vld [vmem:[#allocation2 + $0x78] sm:$0xff] }
 0x319   :  { %16974 = vmatprep.mubr.msk.f32.mxu0 %vm26_vm1, %v25365_v49  ;;  %v4383_v49 = vld [vmem:[#allocation2 + $0x80] sm:$0xff] }
 0x31c   :  { %16975 = vmatmul.mubr.msk.f32.gmra.mrb[54].mxu0 %vm26_vm1, %v25366_v8  ;;  %v4384_v8 = vld [vmem:[#allocation2 + $0x90] sm:$0xff] }
 0x31d   :  { %16977 = vmatprep.mubr.msk.f32.mxu0 %vm26_vm1, %v25367_v14  ;;  %v4386_v14 = vld [vmem:[#allocation2 + $0xa8] sm:$0xff] }
 0x320   :  { %16978 = vmatmul.mubr.msk.f32.gmra.mrb[56].mxu0 %vm26_vm1, %v20229_v5  ;;  %v4376_v5 = vld [vmem:[#allocation2 + $0x30] sm:$0xff] }
 0x321   :  { %16980 = vmatprep.mubr.msk.f32.mxu0 %vm26_vm1, %v20231_v2  ;;  %v4377_v2 = vld [vmem:[#allocation2 + $0x38] sm:$0xff] }
 0x324   :  { %16981 = vmatmul.mubr.msk.f32.gmra.mrb[58].mxu0 %vm26_vm1, %v20245_v35  ;;  %v4378_v35 = vld [vmem:[#allocation2 + $0x48] sm:$0xff] }
 0x325   :  { %16983 = vmatprep.mubr.msk.f32.mxu0 %vm26_vm1, %v20247_v3  ;;  %v20804_v3 = vld [vmem:[%s25029_s1 + $0x20] sm:$0xf] }
 0x328   :  { %16984 = vmatmul.mubr.msk.f32.gmra.mrb[60].mxu0 %vm26_vm1, %v20253_v0  ;;  %v4379_v0 = vld [vmem:[#allocation2 + $0x50] sm:$0xff] }
 0x329   :  { %16986 = vmatprep.mubr.msk.f32.mxu0 %vm26_vm1, %v20790_v16 }
 0x32c   :  { %16987 = vmatmul.mubr.msk.f32.gmra.mrb[62].mxu0 %vm26_vm1, %v20796_v1 }
 0x32d   :  { %16991 = vmatprep.mubr.msk.f32.mxu0 %vm26_vm1, %v4376_v5  ;;  %v4387_v5 = vld [vmem:[#allocation2 + $0xb0] sm:$0xff] }
 0x330   :  { %16992 = vmatmul.mubr.msk.f32.vlgmr.msra.gmra.mrb[0].mxu0 %vm26_vm1, %v4377_v2  ;;  %v4388_v2 = vld [vmem:[#allocation2 + $0xc0] sm:$0xff] }
 0x331   :  { %17088 = vmatpush3.msk.msra.mxu0 %vm566_vm0, %v20660_v13  ;;  %16994 = vmatprep.mubr.msk.f32.mxu0 %vm26_vm1, %v4378_v35  ;;  %v4385_v13 = vld [vmem:[#allocation2 + $0x98] sm:$0xff]  ;;  %v4389_v35 = vld [vmem:[#allocation2 + $0xc8] sm:$0xff] }
 0x332   :  { %17185 = vmatprep.subr.msk.mxu0 %vm566_vm0, %v20804_v3 }
 0x334   :  { %16995 = vmatmul.mubr.msk.f32.gmra.mrb[2].mxu0 %vm26_vm1, %v4379_v0  ;;  %v4390_v0 = vld [vmem:[#allocation2 + $0xd8] sm:$0xff] }
 0x335   :  { %16997 = vmatprep.mubr.msk.f32.mxu0 %vm26_vm1, %v4380_v48  ;;  %v4391_v48 = vld [vmem:[#allocation2 + $0xe0] sm:$0xff] }
 0x338   :  { %16998 = vmatmul.mubr.msk.f32.gmra.mrb[4].mxu0 %vm26_vm1, %v4381_v7  ;;  %v4392_v7 = vld [vmem:[#allocation2 + $0xf0] sm:$0xff] }
 0x339   :  { %17000 = vmatprep.mubr.msk.f32.mxu0 %vm26_vm1, %v4382_v9  ;;  %v4393_v9 = vld [vmem:[#allocation2 + $0xf8] sm:$0xff] }
 0x33c   :  { %17001 = vmatmul.mubr.msk.f32.gmra.mrb[6].mxu0 %vm26_vm1, %v4383_v49  ;;  %v4394_v49 = vld [vmem:[#allocation2 + $0x108] sm:$0xff] }
 0x33d   :  { %17003 = vmatprep.mubr.msk.f32.mxu0 %vm26_vm1, %v4384_v8  ;;  %v4395_v8 = vld [vmem:[#allocation2 + $0x110] sm:$0xff] }
 0x340   :  { %17004 = vmatmul.mubr.msk.f32.gmra.mrb[8].mxu0 %vm26_vm1, %v4385_v13  ;;  %v4396_v13 = vld [vmem:[#allocation2 + $0x120] sm:$0xff] }
 0x341   :  { %17006 = vmatprep.mubr.msk.f32.mxu0 %vm26_vm1, %v4386_v14  ;;  %v4397_v14 = vld [vmem:[#allocation2 + $0x128] sm:$0xff] }
 0x344   :  { %17007 = vmatmul.mubr.msk.f32.gmra.mrb[10].mxu0 %vm26_vm1, %v4387_v5  ;;  %v4398_v5 = vld [vmem:[#allocation2 + $0x138] sm:$0xff] }
 0x345   :  { %17009 = vmatprep.mubr.msk.f32.mxu0 %vm26_vm1, %v4388_v2  ;;  %v4399_v2 = vld [vmem:[#allocation2 + $0x140] sm:$0xff] }
 0x348   :  { %17010 = vmatmul.mubr.msk.f32.gmra.mrb[12].mxu0 %vm26_vm1, %v4389_v35  ;;  %v4400_v35 = vld [vmem:[#allocation2 + $0x150] sm:$0xff] }
 0x349   :  { %17012 = vmatprep.mubr.msk.f32.mxu0 %vm26_vm1, %v4390_v0  ;;  %v4401_v0 = vld [vmem:[#allocation2 + $0x158] sm:$0xff] }
 0x34c   :  { %17013 = vmatmul.mubr.msk.f32.gmra.mrb[14].mxu0 %vm26_vm1, %v4391_v48  ;;  %v4402_v48 = vld [vmem:[#allocation2 + $0x168] sm:$0xff] }
 0x34d   :  { %17015 = vmatprep.mubr.msk.f32.mxu0 %vm26_vm1, %v4392_v7  ;;  %v4403_v7 = vld [vmem:[#allocation2 + $0x170] sm:$0xff] }
 0x350   :  { %17016 = vmatmul.mubr.msk.f32.gmra.mrb[16].mxu0 %vm26_vm1, %v4393_v9  ;;  %v4406_v9 = vld [vmem:[#allocation2 + $0x198] sm:$0xff] }
 0x351   :  { %17018 = vmatprep.mubr.msk.f32.mxu0 %vm26_vm1, %v4394_v49  ;;  %v4407_v49 = vld [vmem:[#allocation2 + $0x1a0] sm:$0xff] }
 0x354   :  { %17019 = vmatmul.mubr.msk.f32.gmra.mrb[18].mxu0 %vm26_vm1, %v4395_v8  ;;  %v4408_v8 = vld [vmem:[#allocation2 + $0x1e0] sm:$0xff] }
 0x355   :  { %17021 = vmatprep.mubr.msk.f32.mxu0 %vm26_vm1, %v4396_v13  ;;  %v4409_v13 = vld [vmem:[#allocation2 + $0x1e8] sm:$0xff] }
 0x358   :  { %17022 = vmatmul.mubr.msk.f32.gmra.mrb[20].mxu0 %vm26_vm1, %v4397_v14  ;;  %v4410_v14 = vld [vmem:[#allocation2 + $0x1f8] sm:$0xff] }
 0x359   :  { %17024 = vmatprep.mubr.msk.f32.mxu0 %vm26_vm1, %v4398_v5  ;;  %v4411_v5 = vld [vmem:[#allocation2 + $0x200] sm:$0xff] }
 0x35c   :  { %17025 = vmatmul.mubr.msk.f32.gmra.mrb[22].mxu0 %vm26_vm1, %v4399_v2  ;;  %v4414_v2 = vld [vmem:[#allocation2 + $0x228] sm:$0xff] }
 0x35d   :  { %17027 = vmatprep.mubr.msk.f32.mxu0 %vm26_vm1, %v4400_v35  ;;  %v4415_v35 = vld [vmem:[#allocation2 + $0x230] sm:$0xff] }
 0x360   :  { %17028 = vmatmul.mubr.msk.f32.gmra.mrb[24].mxu0 %vm26_vm1, %v4401_v0  ;;  %v4416_v0 = vld [vmem:[#allocation2 + $0x240] sm:$0xff] }
 0x361   :  { %17030 = vmatprep.mubr.msk.f32.mxu0 %vm26_vm1, %v4402_v48  ;;  %v4417_v48 = vld [vmem:[#allocation2 + $0x248] sm:$0xff] }
 0x364   :  { %17031 = vmatmul.mubr.msk.f32.gmra.mrb[26].mxu0 %vm26_vm1, %v4403_v7  ;;  %v4418_v7 = vld [vmem:[#allocation2 + $0x258] sm:$0xff] }
 0x365   :  { %17033 = vmatprep.mubr.msk.f32.mxu0 %vm26_vm1, %v20324_v4  ;;  %v4412_v4 = vld [vmem:[#allocation2 + $0x210] sm:$0xff] }
 0x368   :  { %17034 = vmatmul.mubr.msk.f32.gmra.mrb[28].mxu0 %vm26_vm1, %v20330_v6  ;;  %v4413_v6 = vld [vmem:[#allocation2 + $0x218] sm:$0xff] }
 0x369   :  { %17036 = vmatprep.mubr.msk.f32.mxu0 %vm26_vm1, %v4406_v9  ;;  %v4419_v9 = vld [vmem:[#allocation2 + $0x260] sm:$0xff] }
 0x36c   :  { %17037 = vmatmul.mubr.msk.f32.gmra.mrb[30].mxu0 %vm26_vm1, %v4407_v49  ;;  %v4420_v49 = vld [vmem:[#allocation2 + $0x270] sm:$0xff] }
 0x36d   :  { %17039 = vmatprep.mubr.msk.f32.mxu0 %vm26_vm1, %v4408_v8  ;;  %v4421_v8 = vld [vmem:[#allocation2 + $0x278] sm:$0xff] }
 0x370   :  { %17040 = vmatmul.mubr.msk.f32.gmra.mrb[32].mxu0 %vm26_vm1, %v4409_v13  ;;  %v4422_v13 = vld [vmem:[#allocation2 + $0x288] sm:$0xff] }
 0x371   :  { %17042 = vmatprep.mubr.msk.f32.mxu0 %vm26_vm1, %v4410_v14  ;;  %v4423_v14 = vld [vmem:[#allocation2 + $0x290] sm:$0xff] }
 0x374   :  { %17043 = vmatmul.mubr.msk.f32.gmra.mrb[34].mxu0 %vm26_vm1, %v4411_v5  ;;  %v4424_v5 = vld [vmem:[#allocation2 + $0x2a0] sm:$0xff] }
 0x375   :  { %17045 = vmatprep.mubr.msk.f32.mxu0 %vm26_vm1, %v4412_v4  ;;  %v4425_v4 = vld [vmem:[#allocation2 + $0x2a8] sm:$0xff] }
 0x378   :  { %17046 = vmatmul.mubr.msk.f32.gmra.mrb[36].mxu0 %vm26_vm1, %v4413_v6  ;;  %v4426_v6 = vld [vmem:[#allocation2 + $0x2b8] sm:$0xff] }
 0x379   :  { %17048 = vmatprep.mubr.msk.f32.mxu0 %vm26_vm1, %v4414_v2  ;;  %v4427_v2 = vld [vmem:[#allocation2 + $0x2c0] sm:$0xff] }
 0x37c   :  { %17049 = vmatmul.mubr.msk.f32.gmra.mrb[38].mxu0 %vm26_vm1, %v4415_v35  ;;  %v4428_v35 = vld [vmem:[#allocation2 + $0x2d0] sm:$0xff] }
 0x37d   :  { %17051 = vmatprep.mubr.msk.f32.mxu0 %vm26_vm1, %v4416_v0  ;;  %v4429_v0 = vld [vmem:[#allocation2 + $0x2d8] sm:$0xff] }
 0x380   :  { %17052 = vmatmul.mubr.msk.f32.gmra.mrb[40].mxu0 %vm26_vm1, %v4417_v48  ;;  %v4430_v48 = vld [vmem:[#allocation2 + $0x2e8] sm:$0xff] }
 0x381   :  { %17054 = vmatprep.mubr.msk.f32.mxu0 %vm26_vm1, %v4418_v7  ;;  %v4431_v7 = vld [vmem:[#allocation2 + $0x2f0] sm:$0xff] }
 0x384   :  { %17055 = vmatmul.mubr.msk.f32.gmra.mrb[42].mxu0 %vm26_vm1, %v4419_v9  ;;  %v4432_v9 = vld [vmem:[#allocation2 + $0x300] sm:$0xff] }
 0x385   :  { %17057 = vmatprep.mubr.msk.f32.mxu0 %vm26_vm1, %v4420_v49  ;;  %v4433_v49 = vld [vmem:[#allocation2 + $0x308] sm:$0xff] }
 0x388   :  { %17058 = vmatmul.mubr.msk.f32.gmra.mrb[44].mxu0 %vm26_vm1, %v4421_v8  ;;  %v4434_v8 = vld [vmem:[#allocation2 + $0x318] sm:$0xff] }
 0x389   :  { %17060 = vmatprep.mubr.msk.f32.mxu0 %vm26_vm1, %v4422_v13  ;;  %v4435_v13 = vld [vmem:[#allocation2 + $0x320] sm:$0xff] }
 0x38c   :  { %17061 = vmatmul.mubr.msk.f32.gmra.mrb[46].mxu0 %vm26_vm1, %v4423_v14  ;;  %v4438_v14 = vld [vmem:[#allocation2 + $0x348] sm:$0xff] }
 0x38d   :  { %17063 = vmatprep.mubr.msk.f32.mxu0 %vm26_vm1, %v4424_v5  ;;  %v4439_v5 = vld [vmem:[#allocation2 + $0x350] sm:$0xff] }
 0x390   :  { %17064 = vmatmul.mubr.msk.f32.gmra.mrb[48].mxu0 %vm26_vm1, %v4425_v4  ;;  %v25383_v4 = vld [vmem:[#allocation8_spill] sm:$0xff] }
 0x391   :  { %17066 = vmatprep.mubr.msk.f32.mxu0 %vm26_vm1, %v4426_v6  ;;  %v5827_v6 = vld [vmem:[#allocation2 + $0x1a2] sm:$0xff] }
 0x394   :  { %17067 = vmatmul.mubr.msk.f32.gmra.mrb[50].mxu0 %vm26_vm1, %v4427_v2  ;;  %v5828_v2 = vld [vmem:[#allocation2 + $0x1e2] sm:$0xff] }
 0x395   :  { %17069 = vmatprep.mubr.msk.f32.mxu0 %vm26_vm1, %v4428_v35  ;;  %v5829_v35 = vld [vmem:[#allocation2 + $0x1ea] sm:$0xff] }
 0x398   :  { %17070 = vmatmul.mubr.msk.f32.gmra.mrb[52].mxu0 %vm26_vm1, %v4429_v0  ;;  %v5830_v0 = vld [vmem:[#allocation2 + $0x1fa] sm:$0xff] }
 0x399   :  { %17072 = vmatprep.mubr.msk.f32.mxu0 %vm26_vm1, %v4430_v48  ;;  %v5831_v48 = vld [vmem:[#allocation2 + $0x202] sm:$0xff] }
 0x39c   :  { %17073 = vmatmul.mubr.msk.f32.gmra.mrb[54].mxu0 %vm26_vm1, %v4431_v7  ;;  %v5833_v7 = vld [vmem:[#allocation2 + $0x21a] sm:$0xff] }
 0x39d   :  { %17075 = vmatprep.mubr.msk.f32.mxu0 %vm26_vm1, %v4432_v9  ;;  %v5834_v9 = vld [vmem:[#allocation2 + $0x22a] sm:$0xff] }
 0x3a0   :  { %17076 = vmatmul.mubr.msk.f32.gmra.mrb[56].mxu0 %vm26_vm1, %v4433_v49  ;;  %v5835_v49 = vld [vmem:[#allocation2 + $0x232] sm:$0xff] }
 0x3a1   :  { %17078 = vmatprep.mubr.msk.f32.mxu0 %vm26_vm1, %v4434_v8  ;;  %v5836_v8 = vld [vmem:[#allocation2 + $0x242] sm:$0xff] }
 0x3a4   :  { %17079 = vmatmul.mubr.msk.f32.gmra.mrb[58].mxu0 %vm26_vm1, %v4435_v13  ;;  %v5837_v13 = vld [vmem:[#allocation2 + $0x24a] sm:$0xff] }
 0x3a5   :  { %17081 = vmatprep.mubr.msk.f32.mxu0 %vm26_vm1, %v20392_v10  ;;  %v5116_v10 = vld [vmem:[#allocation2 + $0x199] sm:$0xff] }
 0x3a8   :  { %17082 = vmatmul.mubr.msk.f32.gmra.mrb[60].mxu0 %vm26_vm1, %v20398_v12  ;;  %v5117_v12 = vld [vmem:[#allocation2 + $0x1a1] sm:$0xff] }
 0x3a9   :  { %17084 = vmatprep.mubr.msk.f32.mxu0 %vm26_vm1, %v4438_v14  ;;  %v5838_v14 = vld [vmem:[#allocation2 + $0x25a] sm:$0xff] }
 0x3ac   :  { %17085 = vmatmul.mubr.msk.f32.gmra.mrb[62].mxu0 %vm26_vm1, %v4439_v5  ;;  %v5839_v5 = vld [vmem:[#allocation2 + $0x262] sm:$0xff] }
 0x3ad   :  { %17089 = vmatprep.mubr.msk.f32.mxu0 %vm26_vm1, %v20403_v15  ;;  %v25368_v15 = vld [vmem:[#allocation4_spill] sm:$0xff] }
 0x3b0   :  { %17090 = vmatmul.mubr.msk.f32.vlgmr.msra.gmra.mrb[0].mxu0 %vm26_vm1, %v20415_v17  ;;  %v25369_v17 = vld [vmem:[#allocation5_spill] sm:$0xff] }
 0x3b1   :  { %17186 = vmatpush3.msk.msra.mxu0 %vm566_vm0, %v20804_v3  ;;  %17092 = vmatprep.mubr.msk.f32.mxu0 %vm26_vm1, %v20417_v18  ;;  %v25370_v18 = vld [vmem:[#allocation6_spill] sm:$0xff]  ;;  %v5826_v3 = vld [vmem:[#allocation2 + $0x19a] sm:$0xff] }
 0x3b4   :  { %17093 = vmatmul.mubr.msk.f32.gmra.mrb[2].mxu0 %vm26_vm1, %v20425_v19  ;;  %v25371_v19 = vld [vmem:[#allocation7_spill] sm:$0xff] }
 0x3b5   :  { %17095 = vmatprep.mubr.msk.f32.mxu0 %vm26_vm1, %v20427_v20  ;;  %v25372_v20 = vld [vmem:[#allocation62_spill] sm:$0xff] }
 0x3b8   :  { %17096 = vmatmul.mubr.msk.f32.gmra.mrb[4].mxu0 %vm26_vm1, %v20433_v21  ;;  %v25373_v21 = vld [vmem:[#allocation63_spill] sm:$0xff] }
 0x3b9   :  { %17098 = vmatprep.mubr.msk.f32.mxu0 %vm26_vm1, %v20435_v22  ;;  %v25374_v22 = vld [vmem:[#allocation64_spill] sm:$0xff] }
 0x3bc   :  { %17099 = vmatmul.mubr.msk.f32.gmra.mrb[6].mxu0 %vm26_vm1, %v20441_v23  ;;  %v25375_v23 = vld [vmem:[#allocation65_spill] sm:$0xff] }
 0x3bd   :  { %17101 = vmatprep.mubr.msk.f32.mxu0 %vm26_vm1, %v20443_v24  ;;  %v25376_v24 = vld [vmem:[#allocation66_spill] sm:$0xff] }
 0x3c0   :  { %17102 = vmatmul.mubr.msk.f32.gmra.mrb[8].mxu0 %vm26_vm1, %v20449_v25  ;;  %v25377_v25 = vld [vmem:[#allocation67_spill] sm:$0xff] }
 0x3c1   :  { %17104 = vmatprep.mubr.msk.f32.mxu0 %vm26_vm1, %v20451_v26  ;;  %v25378_v26 = vld [vmem:[#allocation68_spill] sm:$0xff] }
 0x3c4   :  { %17105 = vmatmul.mubr.msk.f32.gmra.mrb[10].mxu0 %vm26_vm1, %v20457_v27  ;;  %v25379_v27 = vld [vmem:[#allocation69_spill] sm:$0xff] }
 0x3c5   :  { %17107 = vmatprep.mubr.msk.f32.mxu0 %vm26_vm1, %v20459_v28  ;;  %v25380_v28 = vld [vmem:[#allocation70_spill] sm:$0xff] }
 0x3c8   :  { %17108 = vmatmul.mubr.msk.f32.gmra.mrb[12].mxu0 %vm26_vm1, %v20465_v29  ;;  %v25381_v29 = vld [vmem:[#allocation71_spill] sm:$0xff] }
 0x3c9   :  { %17110 = vmatprep.mubr.msk.f32.mxu0 %vm26_vm1, %v20467_v30  ;;  %v5148_v30 = vld [vmem:[#allocation2 + $0x349] sm:$0xff] }
 0x3cc   :  { %17111 = vmatmul.mubr.msk.f32.gmra.mrb[14].mxu0 %vm26_vm1, %v20473_v31  ;;  %v25382_v31 = vld [vmem:[#allocation72_spill] sm:$0xff] }
 0x3cd   :  { %17113 = vmatprep.mubr.msk.f32.mxu0 %vm26_vm1, %v20475_v32  ;;  %v5149_v32 = vld [vmem:[#allocation2 + $0x351] sm:$0xff] }
 0x3d0   :  { %17114 = vmatmul.mubr.msk.f32.gmra.mrb[16].mxu0 %vm26_vm1, %v20481_v33  ;;  %v5796_v33 = vld [vmem:[#allocation2 + $0x32] sm:$0xff] }
 0x3d1   :  { %17116 = vmatprep.mubr.msk.f32.mxu0 %vm26_vm1, %v20483_v34  ;;  %v5797_v34 = vld [vmem:[#allocation2 + $0x3a] sm:$0xff] }
 0x3d4   :  { %17117 = vmatmul.mubr.msk.f32.gmra.mrb[18].mxu0 %vm26_vm1, %v20489_v37  ;;  %v5798_v37 = vld [vmem:[#allocation2 + $0x4a] sm:$0xff] }
 0x3d5   :  { %17119 = vmatprep.mubr.msk.f32.mxu0 %vm26_vm1, %v20491_v38  ;;  %v5799_v38 = vld [vmem:[#allocation2 + $0x52] sm:$0xff] }
 0x3d8   :  { %17120 = vmatmul.mubr.msk.f32.gmra.mrb[20].mxu0 %vm26_vm1, %v20497_v39  ;;  %v5800_v39 = vld [vmem:[#allocation2 + $0x62] sm:$0xff] }
 0x3d9   :  { %17122 = vmatprep.mubr.msk.f32.mxu0 %vm26_vm1, %v20499_v40  ;;  %v5801_v40 = vld [vmem:[#allocation2 + $0x6a] sm:$0xff] }
 0x3dc   :  { %17123 = vmatmul.mubr.msk.f32.gmra.mrb[22].mxu0 %vm26_vm1, %v20505_v41  ;;  %v5802_v41 = vld [vmem:[#allocation2 + $0x7a] sm:$0xff] }
 0x3dd   :  { %17125 = vmatprep.mubr.msk.f32.mxu0 %vm26_vm1, %v20507_v42  ;;  %v5803_v42 = vld [vmem:[#allocation2 + $0x82] sm:$0xff] }
 0x3e0   :  { %17126 = vmatmul.mubr.msk.f32.gmra.mrb[24].mxu0 %vm26_vm1, %v20513_v43  ;;  %v5804_v43 = vld [vmem:[#allocation2 + $0x92] sm:$0xff] }
 0x3e1   :  { %17128 = vmatprep.mubr.msk.f32.mxu0 %vm26_vm1, %v20515_v44  ;;  %v5805_v44 = vld [vmem:[#allocation2 + $0x9a] sm:$0xff] }
 0x3e4   :  { %17129 = vmatmul.mubr.msk.f32.gmra.mrb[26].mxu0 %vm26_vm1, %v20521_v45  ;;  %v5806_v45 = vld [vmem:[#allocation2 + $0xaa] sm:$0xff] }
 0x3e5   :  { %17131 = vmatprep.mubr.msk.f32.mxu0 %vm26_vm1, %v20523_v46  ;;  %v5807_v46 = vld [vmem:[#allocation2 + $0xb2] sm:$0xff] }
 0x3e8   :  { %17132 = vmatmul.mubr.msk.f32.gmra.mrb[28].mxu0 %vm26_vm1, %v20529_v47  ;;  %v5808_v47 = vld [vmem:[#allocation2 + $0xc2] sm:$0xff] }
 0x3e9   :  { %17134 = vmatprep.mubr.msk.f32.mxu0 %vm26_vm1, %v5116_v10  ;;  %v5840_v10 = vld [vmem:[#allocation2 + $0x272] sm:$0xff] }
 0x3ec   :  { %17135 = vmatmul.mubr.msk.f32.gmra.mrb[30].mxu0 %vm26_vm1, %v5117_v12  ;;  %v25384_v12 = vmov 0.0  }
 0x3ed   :  { %17137 = vmatprep.mubr.msk.f32.mxu0 %vm26_vm1, %v20534_v50  ;;  %v5809_v50 = vld [vmem:[#allocation2 + $0xca] sm:$0xff]  ;;  %7053 = vst.msk [vmem:[#allocation3] sm:$0xff] %vm6506_vm4, %v25384_v12  ;;  %7054 = vst.msk [vmem:[#allocation3 + $0x8] sm:$0xff] %vm6506_vm4, %v25384_v12 }
 0x3ee   :  { %7057 = vst.msk [vmem:[#allocation3 + $0x1b0] sm:$0xff] %vm6506_vm4, %v25384_v12  ;;  %7058 = vst.msk [vmem:[#allocation3 + $0x1b8] sm:$0xff] %vm6506_vm4, %v25384_v12 }
 0x3ef   :  { %7061 = vst.msk [vmem:[#allocation3 + $0x198] sm:$0xff] %vm6506_vm4, %v25384_v12  ;;  %7062 = vst.msk [vmem:[#allocation3 + $0x1a0] sm:$0xff] %vm6506_vm4, %v25384_v12 }
 0x3f0   :  { %17138 = vmatmul.mubr.msk.f32.gmra.mrb[32].mxu0 %vm26_vm1, %v20539_v51  ;;  %v5810_v51 = vld [vmem:[#allocation2 + $0xda] sm:$0xff]  ;;  %7064 = vst.msk [vmem:[#allocation3 + $0x348] sm:$0xff] %vm6506_vm4, %v25384_v12  ;;  %7065 = vst.msk [vmem:[#allocation3 + $0x350] sm:$0xff] %vm6506_vm4, %v25384_v12 }
 0x3f1   :  { %17140 = vmatprep.mubr.msk.f32.mxu0 %vm26_vm1, %v20541_v52  ;;  %v5811_v52 = vld [vmem:[#allocation2 + $0xe2] sm:$0xff]  ;;  %7056 = vst.msk [vmem:[#allocation3 + $0x10] sm:$0x3] %vm7055_vm5, %v25384_v12  ;;  %7059 = vst.msk [vmem:[#allocation3 + $0x1c0] sm:$0x3] %vm7055_vm5, %v25384_v12 }
 0x3f2   :  { %7063 = vst.msk [vmem:[#allocation3 + $0x1a8] sm:$0x3] %vm7055_vm5, %v25384_v12  ;;  %7066 = vst.msk [vmem:[#allocation3 + $0x358] sm:$0x3] %vm7055_vm5, %v25384_v12 }
 0x3f3   :  { %7104 = vst.msk [vmem:[#allocation3 + $0x11] sm:$0x1] %vm7067_vm6, %v25384_v12  ;;  %7068 = vst.msk [vmem:[#allocation3] sm:$0x1] %vm7067_vm6, %v25384_v12 }
 0x3f4   :  { %17141 = vmatmul.mubr.msk.f32.gmra.mrb[34].mxu0 %vm26_vm1, %v20547_v53  ;;  %v5812_v53 = vld [vmem:[#allocation2 + $0xf2] sm:$0xff]  ;;  %7069 = vst.msk [vmem:[#allocation3 + $0x18] sm:$0x1] %vm7067_vm6, %v25384_v12  ;;  %7070 = vst.msk [vmem:[#allocation3 + $0x30] sm:$0x1] %vm7067_vm6, %v25384_v12 }
 0x3f5   :  { %17143 = vmatprep.mubr.msk.f32.mxu0 %vm26_vm1, %v20549_v54  ;;  %v5813_v54 = vld [vmem:[#allocation2 + $0xfa] sm:$0xff]  ;;  %7071 = vst.msk [vmem:[#allocation3 + $0x48] sm:$0x1] %vm7067_vm6, %v25384_v12  ;;  %7072 = vst.msk [vmem:[#allocation3 + $0x60] sm:$0x1] %vm7067_vm6, %v25384_v12 }
 0x3f6   :  { %7073 = vst.msk [vmem:[#allocation3 + $0x78] sm:$0x1] %vm7067_vm6, %v25384_v12  ;;  %7074 = vst.msk [vmem:[#allocation3 + $0x90] sm:$0x1] %vm7067_vm6, %v25384_v12 }
 0x3f7   :  { %7075 = vst.msk [vmem:[#allocation3 + $0xa8] sm:$0x1] %vm7067_vm6, %v25384_v12  ;;  %7076 = vst.msk [vmem:[#allocation3 + $0xc0] sm:$0x1] %vm7067_vm6, %v25384_v12 }
 0x3f8   :  { %17144 = vmatmul.mubr.msk.f32.gmra.mrb[36].mxu0 %vm26_vm1, %v20555_v55  ;;  %v5814_v55 = vld [vmem:[#allocation2 + $0x10a] sm:$0xff]  ;;  %7077 = vst.msk [vmem:[#allocation3 + $0xd8] sm:$0x1] %vm7067_vm6, %v25384_v12  ;;  %7078 = vst.msk [vmem:[#allocation3 + $0xf0] sm:$0x1] %vm7067_vm6, %v25384_v12 }
 0x3f9   :  { %17146 = vmatprep.mubr.msk.f32.mxu0 %vm26_vm1, %v20557_v56  ;;  %v5815_v56 = vld [vmem:[#allocation2 + $0x112] sm:$0xff]  ;;  %7079 = vst.msk [vmem:[#allocation3 + $0x108] sm:$0x1] %vm7067_vm6, %v25384_v12  ;;  %7080 = vst.msk [vmem:[#allocation3 + $0x120] sm:$0x1] %vm7067_vm6, %v25384_v12 }
 0x3fa   :  { %7081 = vst.msk [vmem:[#allocation3 + $0x138] sm:$0x1] %vm7067_vm6, %v25384_v12  ;;  %7082 = vst.msk [vmem:[#allocation3 + $0x150] sm:$0x1] %vm7067_vm6, %v25384_v12 }
 0x3fb   :  { %7083 = vst.msk [vmem:[#allocation3 + $0x168] sm:$0x1] %vm7067_vm6, %v25384_v12  ;;  %7084 = vst.msk [vmem:[#allocation3 + $0x180] sm:$0x1] %vm7067_vm6, %v25384_v12 }
 0x3fc   :  { %17147 = vmatmul.mubr.msk.f32.gmra.mrb[38].mxu0 %vm26_vm1, %v20563_v57  ;;  %v5816_v57 = vld [vmem:[#allocation2 + $0x122] sm:$0xff]  ;;  %7085 = vst.msk [vmem:[#allocation3 + $0x198] sm:$0x1] %vm7067_vm6, %v25384_v12  ;;  %7086 = vst.msk [vmem:[#allocation3 + $0x1b0] sm:$0x1] %vm7067_vm6, %v25384_v12 }
 0x3fd   :  { %17149 = vmatprep.mubr.msk.f32.mxu0 %vm26_vm1, %v20565_v58  ;;  %v5817_v58 = vld [vmem:[#allocation2 + $0x12a] sm:$0xff]  ;;  %7087 = vst.msk [vmem:[#allocation3 + $0x1c8] sm:$0x1] %vm7067_vm6, %v25384_v12  ;;  %7088 = vst.msk [vmem:[#allocation3 + $0x1e0] sm:$0x1] %vm7067_vm6, %v25384_v12 }
 0x3fe   :  { %7089 = vst.msk [vmem:[#allocation3 + $0x1f8] sm:$0x1] %vm7067_vm6, %v25384_v12  ;;  %7090 = vst.msk [vmem:[#allocation3 + $0x210] sm:$0x1] %vm7067_vm6, %v25384_v12 }
 0x3ff   :  { %7091 = vst.msk [vmem:[#allocation3 + $0x228] sm:$0x1] %vm7067_vm6, %v25384_v12  ;;  %7092 = vst.msk [vmem:[#allocation3 + $0x240] sm:$0x1] %vm7067_vm6, %v25384_v12 }
 0x400   :  { %17150 = vmatmul.mubr.msk.f32.gmra.mrb[40].mxu0 %vm26_vm1, %v20571_v59  ;;  %v5818_v59 = vld [vmem:[#allocation2 + $0x13a] sm:$0xff]  ;;  %7093 = vst.msk [vmem:[#allocation3 + $0x258] sm:$0x1] %vm7067_vm6, %v25384_v12  ;;  %7094 = vst.msk [vmem:[#allocation3 + $0x270] sm:$0x1] %vm7067_vm6, %v25384_v12 }
 0x401   :  { %17152 = vmatprep.mubr.msk.f32.mxu0 %vm26_vm1, %v20573_v60  ;;  %v5819_v60 = vld [vmem:[#allocation2 + $0x142] sm:$0xff]  ;;  %7095 = vst.msk [vmem:[#allocation3 + $0x288] sm:$0x1] %vm7067_vm6, %v25384_v12  ;;  %7096 = vst.msk [vmem:[#allocation3 + $0x2a0] sm:$0x1] %vm7067_vm6, %v25384_v12 }
 0x402   :  { %7097 = vst.msk [vmem:[#allocation3 + $0x2b8] sm:$0x1] %vm7067_vm6, %v25384_v12  ;;  %7098 = vst.msk [vmem:[#allocation3 + $0x2d0] sm:$0x1] %vm7067_vm6, %v25384_v12 }
 0x403   :  { %7099 = vst.msk [vmem:[#allocation3 + $0x2e8] sm:$0x1] %vm7067_vm6, %v25384_v12  ;;  %7100 = vst.msk [vmem:[#allocation3 + $0x300] sm:$0x1] %vm7067_vm6, %v25384_v12 }
 0x404   :  { %17153 = vmatmul.mubr.msk.f32.gmra.mrb[42].mxu0 %vm26_vm1, %v20579_v61  ;;  %v5820_v61 = vld [vmem:[#allocation2 + $0x152] sm:$0xff]  ;;  %7101 = vst.msk [vmem:[#allocation3 + $0x318] sm:$0x1] %vm7067_vm6, %v25384_v12  ;;  %7102 = vst.msk [vmem:[#allocation3 + $0x330] sm:$0x1] %vm7067_vm6, %v25384_v12 }
 0x405   :  { %17155 = vmatprep.mubr.msk.f32.mxu0 %vm26_vm1, %v20581_v62  ;;  %v5821_v62 = vld [vmem:[#allocation2 + $0x15a] sm:$0xff]  ;;  %7103 = vst.msk [vmem:[#allocation3 + $0x348] sm:$0x1] %vm7067_vm6, %v25384_v12  ;;  %7105 = vst.msk [vmem:[#allocation3 + $0x29] sm:$0x1] %vm7067_vm6, %v25384_v12 }
 0x406   :  { %7106 = vst.msk [vmem:[#allocation3 + $0x41] sm:$0x1] %vm7067_vm6, %v25384_v12  ;;  %7107 = vst.msk [vmem:[#allocation3 + $0x59] sm:$0x1] %vm7067_vm6, %v25384_v12 }
 0x407   :  { %7108 = vst.msk [vmem:[#allocation3 + $0x71] sm:$0x1] %vm7067_vm6, %v25384_v12  ;;  %7109 = vst.msk [vmem:[#allocation3 + $0x89] sm:$0x1] %vm7067_vm6, %v25384_v12 }
 0x408   :  { %17156 = vmatmul.mubr.msk.f32.gmra.mrb[44].mxu0 %vm26_vm1, %v20587_v63  ;;  %v5822_v63 = vld [vmem:[#allocation2 + $0x16a] sm:$0xff]  ;;  %7110 = vst.msk [vmem:[#allocation3 + $0xa1] sm:$0x1] %vm7067_vm6, %v25384_v12  ;;  %7111 = vst.msk [vmem:[#allocation3 + $0xb9] sm:$0x1] %vm7067_vm6, %v25384_v12 }
 0x409   :  { %17158 = vmatprep.mubr.msk.f32.mxu0 %vm26_vm1, %v20589_v36  ;;  %v5823_v36 = vld [vmem:[#allocation2 + $0x172] sm:$0xff]  ;;  %7112 = vst.msk [vmem:[#allocation3 + $0xd1] sm:$0x1] %vm7067_vm6, %v25384_v12  ;;  %7113 = vst.msk [vmem:[#allocation3 + $0xe9] sm:$0x1] %vm7067_vm6, %v25384_v12 }
 0x40a   :  { %7114 = vst.msk [vmem:[#allocation3 + $0x101] sm:$0x1] %vm7067_vm6, %v25384_v12  ;;  %7115 = vst.msk [vmem:[#allocation3 + $0x119] sm:$0x1] %vm7067_vm6, %v25384_v12 }
 0x40b   :  { %7116 = vst.msk [vmem:[#allocation3 + $0x131] sm:$0x1] %vm7067_vm6, %v25384_v12  ;;  %7117 = vst.msk [vmem:[#allocation3 + $0x149] sm:$0x1] %vm7067_vm6, %v25384_v12 }
 0x40c   :  { %17159 = vmatmul.mubr.msk.f32.gmra.mrb[46].mxu0 %vm26_vm1, %v25368_v15  ;;  %v5841_v15 = vld [vmem:[#allocation2 + $0x27a] sm:$0xff]  ;;  %7118 = vst.msk [vmem:[#allocation3 + $0x161] sm:$0x1] %vm7067_vm6, %v25384_v12  ;;  %7119 = vst.msk [vmem:[#allocation3 + $0x179] sm:$0x1] %vm7067_vm6, %v25384_v12 }
 0x40d   :  { %17161 = vmatprep.mubr.msk.f32.mxu0 %vm26_vm1, %v25369_v17  ;;  %v5842_v17 = vld [vmem:[#allocation2 + $0x28a] sm:$0xff]  ;;  %7120 = vst.msk [vmem:[#allocation3 + $0x191] sm:$0x1] %vm7067_vm6, %v25384_v12  ;;  %7123 = vst.msk [vmem:[#allocation3 + $0x1d9] sm:$0x1] %vm7067_vm6, %v25384_v12 }
 0x40e   :  { %7124 = vst.msk [vmem:[#allocation3 + $0x1f1] sm:$0x1] %vm7067_vm6, %v25384_v12  ;;  %7125 = vst.msk [vmem:[#allocation3 + $0x209] sm:$0x1] %vm7067_vm6, %v25384_v12 }
 0x40f   :  { %7126 = vst.msk [vmem:[#allocation3 + $0x221] sm:$0x1] %vm7067_vm6, %v25384_v12  ;;  %7127 = vst.msk [vmem:[#allocation3 + $0x239] sm:$0x1] %vm7067_vm6, %v25384_v12 }
 0x410   :  { %17162 = vmatmul.mubr.msk.f32.gmra.mrb[48].mxu0 %vm26_vm1, %v25370_v18  ;;  %v5843_v18 = vld [vmem:[#allocation2 + $0x292] sm:$0xff]  ;;  %7128 = vst.msk [vmem:[#allocation3 + $0x251] sm:$0x1] %vm7067_vm6, %v25384_v12  ;;  %7129 = vst.msk [vmem:[#allocation3 + $0x269] sm:$0x1] %vm7067_vm6, %v25384_v12 }
 0x411   :  { %17164 = vmatprep.mubr.msk.f32.mxu0 %vm26_vm1, %v25371_v19  ;;  %v5844_v19 = vld [vmem:[#allocation2 + $0x2a2] sm:$0xff]  ;;  %7130 = vst.msk [vmem:[#allocation3 + $0x281] sm:$0x1] %vm7067_vm6, %v25384_v12  ;;  %7131 = vst.msk [vmem:[#allocation3 + $0x299] sm:$0x1] %vm7067_vm6, %v25384_v12 }
 0x412   :  { %7132 = vst.msk [vmem:[#allocation3 + $0x2b1] sm:$0x1] %vm7067_vm6, %v25384_v12  ;;  %7133 = vst.msk [vmem:[#allocation3 + $0x2c9] sm:$0x1] %vm7067_vm6, %v25384_v12 }
 0x413   :  { %7134 = vst.msk [vmem:[#allocation3 + $0x2e1] sm:$0x1] %vm7067_vm6, %v25384_v12  ;;  %7135 = vst.msk [vmem:[#allocation3 + $0x2f9] sm:$0x1] %vm7067_vm6, %v25384_v12 }
 0x414   :  { %17165 = vmatmul.mubr.msk.f32.gmra.mrb[50].mxu0 %vm26_vm1, %v25372_v20  ;;  %v5845_v20 = vld [vmem:[#allocation2 + $0x2aa] sm:$0xff]  ;;  %7136 = vst.msk [vmem:[#allocation3 + $0x311] sm:$0x1] %vm7067_vm6, %v25384_v12  ;;  %7137 = vst.msk [vmem:[#allocation3 + $0x329] sm:$0x1] %vm7067_vm6, %v25384_v12 }
 0x415   :  { %17167 = vmatprep.mubr.msk.f32.mxu0 %vm26_vm1, %v25373_v21  ;;  %v5846_v21 = vld [vmem:[#allocation2 + $0x2ba] sm:$0xff]  ;;  %7138 = vst.msk [vmem:[#allocation3 + $0x341] sm:$0x1] %vm7067_vm6, %v25384_v12  ;;  %7121 = vst.msk [vmem:[#allocation3 + $0x1a9] sm:$0x1] %vm7067_vm6, %v25384_v12 }
 0x416   :  { %7122 = vst.msk [vmem:[#allocation3 + $0x1c1] sm:$0x1] %vm7067_vm6, %v25384_v12  ;;  %7139 = vst.msk [vmem:[#allocation3 + $0x359] sm:$0x1] %vm7067_vm6, %v25384_v12 }
 0x418   :  { %17168 = vmatmul.mubr.msk.f32.gmra.mrb[52].mxu0 %vm26_vm1, %v25374_v22  ;;  %v5847_v22 = vld [vmem:[#allocation2 + $0x2c2] sm:$0xff] }
 0x419   :  { %17170 = vmatprep.mubr.msk.f32.mxu0 %vm26_vm1, %v25375_v23  ;;  %v5848_v23 = vld [vmem:[#allocation2 + $0x2d2] sm:$0xff] }
 0x41c   :  { %17171 = vmatmul.mubr.msk.f32.gmra.mrb[54].mxu0 %vm26_vm1, %v25376_v24  ;;  %v5849_v24 = vld [vmem:[#allocation2 + $0x2da] sm:$0xff] }
 0x41d   :  { %17173 = vmatprep.mubr.msk.f32.mxu0 %vm26_vm1, %v25377_v25  ;;  %v5850_v25 = vld [vmem:[#allocation2 + $0x2ea] sm:$0xff] }
 0x420   :  { %17174 = vmatmul.mubr.msk.f32.gmra.mrb[56].mxu0 %vm26_vm1, %v25378_v26  ;;  %v5851_v26 = vld [vmem:[#allocation2 + $0x2f2] sm:$0xff] }
 0x421   :  { %17176 = vmatprep.mubr.msk.f32.mxu0 %vm26_vm1, %v25379_v27  ;;  %v5852_v27 = vld [vmem:[#allocation2 + $0x302] sm:$0xff] }
 0x424   :  { %17177 = vmatmul.mubr.msk.f32.gmra.mrb[58].mxu0 %vm26_vm1, %v25380_v28  ;;  %v5853_v28 = vld [vmem:[#allocation2 + $0x30a] sm:$0xff] }
 0x425   :  { %17179 = vmatprep.mubr.msk.f32.mxu0 %vm26_vm1, %v25381_v29  ;;  %v5854_v29 = vld [vmem:[#allocation2 + $0x31a] sm:$0xff] }
 0x428   :  { %17180 = vmatmul.mubr.msk.f32.gmra.mrb[60].mxu0 %vm26_vm1, %v25382_v31  ;;  %v5858_v31 = vld [vmem:[#allocation2 + $0x34a] sm:$0xff] }
 0x429   :  { %17182 = vmatprep.mubr.msk.f32.mxu0 %vm26_vm1, %v5148_v30  ;;  %v5855_v30 = vld [vmem:[#allocation2 + $0x322] sm:$0xff] }
 0x42c   :  { %17183 = vmatmul.mubr.msk.f32.gmra.mrb[62].mxu0 %vm26_vm1, %v5149_v32  ;;  %v5859_v32 = vld [vmem:[#allocation2 + $0x352] sm:$0xff] }
 0x42d   :  { %17187 = vmatprep.mubr.msk.f32.mxu0 %vm26_vm1, %v5796_v33 }
 0x430   :  { %17188 = vmatmul.mubr.msk.f32.vlgmr.msra.gmra.mrb[0].mxu0 %vm26_vm1, %v5797_v34 }
 0x431   :  { %17190 = vmatprep.mubr.msk.f32.mxu0 %vm26_vm1, %v5798_v37 }
 0x434   :  { %17191 = vmatmul.mubr.msk.f32.gmra.mrb[2].mxu0 %vm26_vm1, %v5799_v38 }
 0x435   :  { %17193 = vmatprep.mubr.msk.f32.mxu0 %vm26_vm1, %v5800_v39 }
 0x438   :  { %17194 = vmatmul.mubr.msk.f32.gmra.mrb[4].mxu0 %vm26_vm1, %v5801_v40 }
 0x439   :  { %17196 = vmatprep.mubr.msk.f32.mxu0 %vm26_vm1, %v5802_v41 }
 0x43c   :  { %17197 = vmatmul.mubr.msk.f32.gmra.mrb[6].mxu0 %vm26_vm1, %v5803_v42 }
 0x43d   :  { %17199 = vmatprep.mubr.msk.f32.mxu0 %vm26_vm1, %v5804_v43 }
 0x440   :  { %17200 = vmatmul.mubr.msk.f32.gmra.mrb[8].mxu0 %vm26_vm1, %v5805_v44 }
 0x441   :  { %17202 = vmatprep.mubr.msk.f32.mxu0 %vm26_vm1, %v5806_v45 }
 0x444   :  { %17203 = vmatmul.mubr.msk.f32.gmra.mrb[10].mxu0 %vm26_vm1, %v5807_v46 }
 0x445   :  { %17205 = vmatprep.mubr.msk.f32.mxu0 %vm26_vm1, %v5808_v47 }
 0x448   :  { %17206 = vmatmul.mubr.msk.f32.gmra.mrb[12].mxu0 %vm26_vm1, %v5809_v50 }
 0x449   :  { %17208 = vmatprep.mubr.msk.f32.mxu0 %vm26_vm1, %v5810_v51 }
 0x44c   :  { %17209 = vmatmul.mubr.msk.f32.gmra.mrb[14].mxu0 %vm26_vm1, %v5811_v52 }
 0x44d   :  { %17211 = vmatprep.mubr.msk.f32.mxu0 %vm26_vm1, %v5812_v53 }
 0x450   :  { %17212 = vmatmul.mubr.msk.f32.gmra.mrb[16].mxu0 %vm26_vm1, %v5813_v54 }
 0x451   :  { %17214 = vmatprep.mubr.msk.f32.mxu0 %vm26_vm1, %v5814_v55 }
 0x454   :  { %17215 = vmatmul.mubr.msk.f32.gmra.mrb[18].mxu0 %vm26_vm1, %v5815_v56 }
 0x455   :  { %17217 = vmatprep.mubr.msk.f32.mxu0 %vm26_vm1, %v5816_v57 }
 0x458   :  { %17218 = vmatmul.mubr.msk.f32.gmra.mrb[20].mxu0 %vm26_vm1, %v5817_v58 }
 0x459   :  { %17220 = vmatprep.mubr.msk.f32.mxu0 %vm26_vm1, %v5818_v59 }
 0x45c   :  { %17221 = vmatmul.mubr.msk.f32.gmra.mrb[22].mxu0 %vm26_vm1, %v5819_v60 }
 0x45d   :  { %17223 = vmatprep.mubr.msk.f32.mxu0 %vm26_vm1, %v5820_v61 }
 0x460   :  { %17224 = vmatmul.mubr.msk.f32.gmra.mrb[24].mxu0 %vm26_vm1, %v5821_v62 }
 0x461   :  { %17226 = vmatprep.mubr.msk.f32.mxu0 %vm26_vm1, %v5822_v63 }
 0x464   :  { %17227 = vmatmul.mubr.msk.f32.gmra.mrb[26].mxu0 %vm26_vm1, %v5823_v36 }
 0x465   :  { %17229 = vmatprep.mubr.msk.f32.mxu0 %vm26_vm1, %v20722_v11  ;;  %v5832_v11 = vld [vmem:[#allocation2 + $0x212] sm:$0xff] }
 0x468   :  { %17230 = vmatmul.mubr.msk.f32.gmra.mrb[28].mxu0 %vm26_vm1, %v25383_v4 }
 0x469   :  { %17232 = vmatprep.mubr.msk.f32.mxu0 %vm26_vm1, %v5826_v3 }
 0x46c   :  { %17233 = vmatmul.mubr.msk.f32.gmra.mrb[30].mxu0 %vm26_vm1, %v5827_v6 }
 0x46d   :  { %17235 = vmatprep.mubr.msk.f32.mxu0 %vm26_vm1, %v5828_v2 }
 0x470   :  { %17236 = vmatmul.mubr.msk.f32.gmra.mrb[32].mxu0 %vm26_vm1, %v5829_v35 }
 0x471   :  { %17238 = vmatprep.mubr.msk.f32.mxu0 %vm26_vm1, %v5830_v0 }
 0x474   :  { %17239 = vmatmul.mubr.msk.f32.gmra.mrb[34].mxu0 %vm26_vm1, %v5831_v48 }
 0x475   :  { %17241 = vmatprep.mubr.msk.f32.mxu0 %vm26_vm1, %v5832_v11 }
 0x478   :  { %17242 = vmatmul.mubr.msk.f32.gmra.mrb[36].mxu0 %vm26_vm1, %v5833_v7 }
 0x479   :  { %17244 = vmatprep.mubr.msk.f32.mxu0 %vm26_vm1, %v5834_v9 }
 0x47c   :  { %17245 = vmatmul.mubr.msk.f32.gmra.mrb[38].mxu0 %vm26_vm1, %v5835_v49 }
 0x47d   :  { %17247 = vmatprep.mubr.msk.f32.mxu0 %vm26_vm1, %v5836_v8 }
 0x480   :  { %17248 = vmatmul.mubr.msk.f32.gmra.mrb[40].mxu0 %vm26_vm1, %v5837_v13 }
 0x481   :  { %17250 = vmatprep.mubr.msk.f32.mxu0 %vm26_vm1, %v5838_v14 }
 0x484   :  { %17251 = vmatmul.mubr.msk.f32.gmra.mrb[42].mxu0 %vm26_vm1, %v5839_v5 }
 0x485   :  { %17253 = vmatprep.mubr.msk.f32.mxu0 %vm26_vm1, %v5840_v10 }
 0x488   :  { %17254 = vmatmul.mubr.msk.f32.gmra.mrb[44].mxu0 %vm26_vm1, %v5841_v15 }
 0x489   :  { %17256 = vmatprep.mubr.msk.f32.mxu0 %vm26_vm1, %v5842_v17 }
 0x48c   :  { %17257 = vmatmul.mubr.msk.f32.gmra.mrb[46].mxu0 %vm26_vm1, %v5843_v18 }
 0x48d   :  { %17259 = vmatprep.mubr.msk.f32.mxu0 %vm26_vm1, %v5844_v19 }
 0x490   :  { %17260 = vmatmul.mubr.msk.f32.gmra.mrb[48].mxu0 %vm26_vm1, %v5845_v20 }
 0x491   :  { %17262 = vmatprep.mubr.msk.f32.mxu0 %vm26_vm1, %v5846_v21 }
 0x494   :  { %17263 = vmatmul.mubr.msk.f32.gmra.mrb[50].mxu0 %vm26_vm1, %v5847_v22 }
 0x495   :  { %17265 = vmatprep.mubr.msk.f32.mxu0 %vm26_vm1, %v5848_v23 }
 0x498   :  { %17266 = vmatmul.mubr.msk.f32.gmra.mrb[52].mxu0 %vm26_vm1, %v5849_v24 }
 0x499   :  { %17268 = vmatprep.mubr.msk.f32.mxu0 %vm26_vm1, %v5850_v25 }
 0x49c   :  { %17269 = vmatmul.mubr.msk.f32.gmra.mrb[54].mxu0 %vm26_vm1, %v5851_v26 }
 0x49d   :  { %17271 = vmatprep.mubr.msk.f32.mxu0 %vm26_vm1, %v5852_v27 }
 0x4a0   :  { %17272 = vmatmul.mubr.msk.f32.gmra.mrb[56].mxu0 %vm26_vm1, %v5853_v28 }
 0x4a1   :  { %17274 = vmatprep.mubr.msk.f32.mxu0 %vm26_vm1, %v5854_v29 }
 0x4a4   :  { %17275 = vmatmul.mubr.msk.f32.gmra.mrb[58].mxu0 %vm26_vm1, %v5855_v30 }
 0x4a5   :  { %17277 = vmatprep.mubr.msk.f32.mxu0 %vm26_vm1, %v20790_v16 }
 0x4a8   :  { %17278 = vmatmul.mubr.msk.f32.gmra.mrb[60].mxu0 %vm26_vm1, %v20796_v1 }
 0x4a9   :  { %17280 = vmatprep.mubr.msk.f32.mxu0 %vm26_vm1, %v5858_v31 }
 0x4ac   :  { %17281 = vmatmul.mubr.msk.f32.gmra.mrb[62].mxu0 %vm26_vm1, %v5859_v32 }
 0x503   :  { %v21087_v33 = vpop.f32.mrb[0].mxu0 }
 0x504   :  { %v6508_v34 = vsel %vm6506_vm4, %v21087_v33, 0.0  ;;  %v6641_v37 = vmul.f32 %v21087_v33, %v21087_v33  ;;  %v21093_v38 = vpop.f32.mrb[1].mxu0 }
 0x505   :  { %v6507_v16 = vsel %vm6506_vm4, %v21093_v38, 0.0  ;;  %v6640_v1 = vmul.f32 %v21093_v38, %v21093_v38 }
 0x506   :  { %v6705_v39 = vsel %vm6506_vm4, %v6641_v37, 0.0  ;;  %v6509_v40 = vadd.f32 %v6508_v34, %v6507_v16 }
 0x507   :  { %v6704_v41 = vsel %vm6506_vm4, %v6640_v1, 0.0  ;;  %v21101_v42 = vpop.f32.mrb[2].mxu0 }
 0x508   :  { %v6706_v43 = vadd.f32 %v6705_v39, %v6704_v41  ;;  %v21103_v44 = vpop.f32.mrb[3].mxu0  ;;  %v6643_v45 = vmul.f32 %v21101_v42, %v21101_v42  ;;  %v6512_v51 = vsel %vm6506_vm4, %v21101_v42, 0.0 }
 0x509   :  { %v6510_v46 = vsel %vm6506_vm4, %v21103_v44, 0.0  ;;  %v6642_v47 = vmul.f32 %v21103_v44, %v21103_v44 }
 0x50a   :  { %v6511_v50 = vadd.f32 %v6510_v46, %v6509_v40  ;;  %v6709_v57 = vsel %vm6506_vm4, %v6643_v45, 0.0 }
 0x50b   :  { %v6707_v52 = vsel %vm6506_vm4, %v6642_v47, 0.0  ;;  %v21114_v53 = vpop.f32.mrb[4].mxu0 }
 0x50c   :  { %v6513_v54 = vadd.f32 %v6512_v51, %v6511_v50  ;;  %v6708_v55 = vadd.f32 %v6707_v52, %v6706_v43  ;;  %v21116_v56 = vpop.f32.mrb[5].mxu0  ;;  %v6645_v58 = vmul.f32 %v21114_v53, %v21114_v53  ;;  %v6516_v63 = vsel %vm6506_vm4, %v21114_v53, 0.0 }
 0x50d   :  { %v6514_v59 = vsel %vm6506_vm4, %v21116_v56, 0.0  ;;  %v6644_v60 = vmul.f32 %v21116_v56, %v21116_v56 }
 0x50e   :  { %v6710_v61 = vadd.f32 %v6709_v57, %v6708_v55  ;;  %v6515_v62 = vadd.f32 %v6514_v59, %v6513_v54  ;;  %v6713_v35 = vsel %vm6506_vm4, %v6645_v58, 0.0 }
 0x50f   :  { %v6711_v36 = vsel %vm6506_vm4, %v6644_v60, 0.0  ;;  %v21128_v3 = vpop.f32.mrb[6].mxu0 }
 0x510   :  { %v6712_v4 = vadd.f32 %v6711_v36, %v6710_v61  ;;  %v21130_v6 = vpop.f32.mrb[7].mxu0  ;;  %v6517_v2 = vadd.f32 %v6516_v63, %v6515_v62  ;;  %v6647_v0 = vmul.f32 %v21128_v3, %v21128_v3  ;;  %v6520_v49 = vsel %vm6506_vm4, %v21128_v3, 0.0 }
 0x511   :  { %v6518_v48 = vsel %vm6506_vm4, %v21130_v6, 0.0  ;;  %v6646_v11 = vmul.f32 %v21130_v6, %v21130_v6 }
 0x512   :  { %v6519_v7 = vadd.f32 %v6518_v48, %v6517_v2  ;;  %v6714_v9 = vadd.f32 %v6713_v35, %v6712_v4  ;;  %v6717_v15 = vsel %vm6506_vm4, %v6647_v0, 0.0 }
 0x513   :  { %v6715_v8 = vsel %vm6506_vm4, %v6646_v11, 0.0  ;;  %v21142_v13 = vpop.f32.mrb[8].mxu0 }
 0x514   :  { %v6716_v14 = vadd.f32 %v6715_v8, %v6714_v9  ;;  %v21144_v5 = vpop.f32.mrb[9].mxu0  ;;  %v6521_v10 = vadd.f32 %v6520_v49, %v6519_v7  ;;  %v6649_v17 = vmul.f32 %v21142_v13, %v21142_v13  ;;  %v6524_v22 = vsel %vm6506_vm4, %v21142_v13, 0.0 }
 0x515   :  { %v6522_v18 = vsel %vm6506_vm4, %v21144_v5, 0.0  ;;  %v6648_v19 = vmul.f32 %v21144_v5, %v21144_v5 }
 0x516   :  { %v6523_v20 = vadd.f32 %v6522_v18, %v6521_v10  ;;  %v6718_v21 = vadd.f32 %v6717_v15, %v6716_v14  ;;  %v6721_v28 = vsel %vm6506_vm4, %v6649_v17, 0.0 }
 0x517   :  { %v6719_v23 = vsel %vm6506_vm4, %v6648_v19, 0.0  ;;  %v21156_v24 = vpop.f32.mrb[10].mxu0 }
 0x518   :  { %v6720_v25 = vadd.f32 %v6719_v23, %v6718_v21  ;;  %v21158_v26 = vpop.f32.mrb[11].mxu0  ;;  %v6525_v27 = vadd.f32 %v6524_v22, %v6523_v20  ;;  %v6651_v29 = vmul.f32 %v21156_v24, %v21156_v24  ;;  %v6528_v37 = vsel %vm6506_vm4, %v21156_v24, 0.0 }
 0x519   :  { %v6526_v30 = vsel %vm6506_vm4, %v21158_v26, 0.0  ;;  %v6650_v31 = vmul.f32 %v21158_v26, %v21158_v26 }
 0x51a   :  { %v6527_v32 = vadd.f32 %v6526_v30, %v6525_v27  ;;  %v6722_v34 = vadd.f32 %v6721_v28, %v6720_v25  ;;  %v6725_v43 = vsel %vm6506_vm4, %v6651_v29, 0.0 }
 0x51b   :  { %v6723_v16 = vsel %vm6506_vm4, %v6650_v31, 0.0  ;;  %v21170_v1 = vpop.f32.mrb[12].mxu0 }
 0x51c   :  { %v6724_v39 = vadd.f32 %v6723_v16, %v6722_v34  ;;  %v21172_v40 = vpop.f32.mrb[13].mxu0  ;;  %v6529_v41 = vadd.f32 %v6528_v37, %v6527_v32  ;;  %v6653_v45 = vmul.f32 %v21170_v1, %v21170_v1  ;;  %v6532_v52 = vsel %vm6506_vm4, %v21170_v1, 0.0 }
 0x51d   :  { %v6530_v46 = vsel %vm6506_vm4, %v21172_v40, 0.0  ;;  %v6652_v47 = vmul.f32 %v21172_v40, %v21172_v40 }
 0x51e   :  { %v6531_v50 = vadd.f32 %v6530_v46, %v6529_v41  ;;  %v6726_v51 = vadd.f32 %v6725_v43, %v6724_v39  ;;  %v6729_v60 = vsel %vm6506_vm4, %v6653_v45, 0.0 }
 0x51f   :  { %v6727_v54 = vsel %vm6506_vm4, %v6652_v47, 0.0  ;;  %v21184_v55 = vpop.f32.mrb[14].mxu0 }
 0x520   :  { %v6728_v57 = vadd.f32 %v6727_v54, %v6726_v51  ;;  %v21186_v58 = vpop.f32.mrb[15].mxu0  ;;  %v6533_v59 = vadd.f32 %v6532_v52, %v6531_v50  ;;  %v6655_v61 = vmul.f32 %v21184_v55, %v21184_v55  ;;  %v6536_v2 = vsel %vm6506_vm4, %v21184_v55, 0.0 }
 0x521   :  { %v6534_v62 = vsel %vm6506_vm4, %v21186_v58, 0.0  ;;  %v6654_v63 = vmul.f32 %v21186_v58, %v21186_v58 }
 0x522   :  { %v6535_v36 = vadd.f32 %v6534_v62, %v6533_v59  ;;  %v6730_v4 = vadd.f32 %v6729_v60, %v6728_v57  ;;  %v6733_v9 = vsel %vm6506_vm4, %v6655_v61, 0.0 }
 0x523   :  { %v6731_v35 = vsel %vm6506_vm4, %v6654_v63, 0.0  ;;  %v21198_v0 = vpop.f32.mrb[16].mxu0 }
 0x524   :  { %v6732_v48 = vadd.f32 %v6731_v35, %v6730_v4  ;;  %v21200_v11 = vpop.f32.mrb[17].mxu0  ;;  %v6537_v7 = vadd.f32 %v6536_v2, %v6535_v36  ;;  %v6657_v49 = vmul.f32 %v21198_v0, %v21198_v0  ;;  %v6540_v17 = vsel %vm6506_vm4, %v21198_v0, 0.0 }
 0x525   :  { %v6538_v8 = vsel %vm6506_vm4, %v21200_v11, 0.0  ;;  %v6656_v14 = vmul.f32 %v21200_v11, %v21200_v11 }
 0x526   :  { %v6539_v10 = vadd.f32 %v6538_v8, %v6537_v7  ;;  %v6734_v15 = vadd.f32 %v6733_v9, %v6732_v48  ;;  %v6737_v23 = vsel %vm6506_vm4, %v6657_v49, 0.0 }
 0x527   :  { %v6735_v18 = vsel %vm6506_vm4, %v6656_v14, 0.0  ;;  %v21212_v19 = vpop.f32.mrb[18].mxu0 }
 0x528   :  { %v6736_v20 = vadd.f32 %v6735_v18, %v6734_v15  ;;  %v21214_v21 = vpop.f32.mrb[19].mxu0  ;;  %v6541_v22 = vadd.f32 %v6540_v17, %v6539_v10  ;;  %v6659_v25 = vmul.f32 %v21212_v19, %v21212_v19  ;;  %v6544_v31 = vsel %vm6506_vm4, %v21212_v19, 0.0 }
 0x529   :  { %v6542_v27 = vsel %vm6506_vm4, %v21214_v21, 0.0  ;;  %v6658_v28 = vmul.f32 %v21214_v21, %v21214_v21 }
 0x52a   :  { %v6543_v29 = vadd.f32 %v6542_v27, %v6541_v22  ;;  %v6738_v30 = vadd.f32 %v6737_v23, %v6736_v20  ;;  %v6741_v41 = vsel %vm6506_vm4, %v6659_v25, 0.0 }
 0x52b   :  { %v6739_v32 = vsel %vm6506_vm4, %v6658_v28, 0.0  ;;  %v21226_v34 = vpop.f32.mrb[20].mxu0 }
 0x52c   :  { %v6740_v37 = vadd.f32 %v6739_v32, %v6738_v30  ;;  %v21228_v16 = vpop.f32.mrb[21].mxu0  ;;  %v6545_v39 = vadd.f32 %v6544_v31, %v6543_v29  ;;  %v6661_v43 = vmul.f32 %v21226_v34, %v21226_v34  ;;  %v6548_v51 = vsel %vm6506_vm4, %v21226_v34, 0.0 }
 0x52d   :  { %v6546_v45 = vsel %vm6506_vm4, %v21228_v16, 0.0  ;;  %v6660_v46 = vmul.f32 %v21228_v16, %v21228_v16 }
 0x52e   :  { %v6547_v47 = vadd.f32 %v6546_v45, %v6545_v39  ;;  %v6742_v50 = vadd.f32 %v6741_v41, %v6740_v37  ;;  %v6745_v61 = vsel %vm6506_vm4, %v6661_v43, 0.0 }
 0x52f   :  { %v6743_v52 = vsel %vm6506_vm4, %v6660_v46, 0.0  ;;  %v21240_v54 = vpop.f32.mrb[22].mxu0 }
 0x530   :  { %v6744_v57 = vadd.f32 %v6743_v52, %v6742_v50  ;;  %v21242_v59 = vpop.f32.mrb[23].mxu0  ;;  %v6549_v60 = vadd.f32 %v6548_v51, %v6547_v47  ;;  %v6663_v62 = vmul.f32 %v21240_v54, %v21240_v54  ;;  %v6552_v35 = vsel %vm6506_vm4, %v21240_v54, 0.0 }
 0x531   :  { %v6550_v63 = vsel %vm6506_vm4, %v21242_v59, 0.0  ;;  %v6662_v36 = vmul.f32 %v21242_v59, %v21242_v59 }
 0x532   :  { %v6551_v4 = vadd.f32 %v6550_v63, %v6549_v60  ;;  %v6746_v2 = vadd.f32 %v6745_v61, %v6744_v57  ;;  %v6749_v14 = vsel %vm6506_vm4, %v6663_v62, 0.0 }
 0x533   :  { %v6747_v48 = vsel %vm6506_vm4, %v6662_v36, 0.0  ;;  %v21254_v7 = vpop.f32.mrb[24].mxu0 }
 0x534   :  { %v6748_v9 = vadd.f32 %v6747_v48, %v6746_v2  ;;  %v21256_v49 = vpop.f32.mrb[25].mxu0  ;;  %v6553_v8 = vadd.f32 %v6552_v35, %v6551_v4  ;;  %v6665_v10 = vmul.f32 %v21254_v7, %v21254_v7  ;;  %v6556_v22 = vsel %vm6506_vm4, %v21254_v7, 0.0 }
 0x535   :  { %v6554_v15 = vsel %vm6506_vm4, %v21256_v49, 0.0  ;;  %v6664_v17 = vmul.f32 %v21256_v49, %v21256_v49 }
 0x536   :  { %v6555_v18 = vadd.f32 %v6554_v15, %v6553_v8  ;;  %v6750_v20 = vadd.f32 %v6749_v14, %v6748_v9  ;;  %v6753_v30 = vsel %vm6506_vm4, %v6665_v10, 0.0 }
 0x537   :  { %v6751_v23 = vsel %vm6506_vm4, %v6664_v17, 0.0  ;;  %v21268_v25 = vpop.f32.mrb[26].mxu0 }
 0x538   :  { %v6752_v27 = vadd.f32 %v6751_v23, %v6750_v20  ;;  %v21270_v28 = vpop.f32.mrb[27].mxu0  ;;  %v6557_v29 = vadd.f32 %v6556_v22, %v6555_v18  ;;  %v6667_v31 = vmul.f32 %v21268_v25, %v21268_v25  ;;  %v6560_v43 = vsel %vm6506_vm4, %v21268_v25, 0.0 }
 0x539   :  { %v6558_v32 = vsel %vm6506_vm4, %v21270_v28, 0.0  ;;  %v6666_v37 = vmul.f32 %v21270_v28, %v21270_v28 }
 0x53a   :  { %v6559_v39 = vadd.f32 %v6558_v32, %v6557_v29  ;;  %v6754_v41 = vadd.f32 %v6753_v30, %v6752_v27  ;;  %v6757_v52 = vsel %vm6506_vm4, %v6667_v31, 0.0 }
 0x53b   :  { %v6755_v45 = vsel %vm6506_vm4, %v6666_v37, 0.0  ;;  %v21282_v46 = vpop.f32.mrb[28].mxu0 }
 0x53c   :  { %v6756_v47 = vadd.f32 %v6755_v45, %v6754_v41  ;;  %v21284_v50 = vpop.f32.mrb[29].mxu0  ;;  %v6561_v51 = vadd.f32 %v6560_v43, %v6559_v39  ;;  %v6669_v57 = vmul.f32 %v21282_v46, %v21282_v46  ;;  %v6564_v36 = vsel %vm6506_vm4, %v21282_v46, 0.0 }
 0x53d   :  { %v6562_v60 = vsel %vm6506_vm4, %v21284_v50, 0.0  ;;  %v6668_v61 = vmul.f32 %v21284_v50, %v21284_v50 }
 0x53e   :  { %v6563_v62 = vadd.f32 %v6562_v60, %v6561_v51  ;;  %v6758_v63 = vadd.f32 %v6757_v52, %v6756_v47  ;;  %v6761_v8 = vsel %vm6506_vm4, %v6669_v57, 0.0 }
 0x53f   :  { %v6759_v4 = vsel %vm6506_vm4, %v6668_v61, 0.0  ;;  %v21296_v2 = vpop.f32.mrb[30].mxu0 }
 0x540   :  { %v6760_v35 = vadd.f32 %v6759_v4, %v6758_v63  ;;  %v21298_v48 = vpop.f32.mrb[31].mxu0  ;;  %v6565_v9 = vadd.f32 %v6564_v36, %v6563_v62  ;;  %v6671_v14 = vmul.f32 %v21296_v2, %v21296_v2  ;;  %v6568_v20 = vsel %vm6506_vm4, %v21296_v2, 0.0 }
 0x541   :  { %v6566_v10 = vsel %vm6506_vm4, %v21298_v48, 0.0  ;;  %v6670_v15 = vmul.f32 %v21298_v48, %v21298_v48 }
 0x542   :  { %v6567_v17 = vadd.f32 %v6566_v10, %v6565_v9  ;;  %v6762_v18 = vadd.f32 %v6761_v8, %v6760_v35  ;;  %v6765_v31 = vsel %vm6506_vm4, %v6671_v14, 0.0 }
 0x543   :  { %v6763_v22 = vsel %vm6506_vm4, %v6670_v15, 0.0  ;;  %v21310_v23 = vpop.f32.mrb[32].mxu0 }
 0x544   :  { %v6764_v27 = vadd.f32 %v6763_v22, %v6762_v18  ;;  %v21312_v29 = vpop.f32.mrb[33].mxu0  ;;  %v6569_v30 = vadd.f32 %v6568_v20, %v6567_v17  ;;  %v6673_v32 = vmul.f32 %v21310_v23, %v21310_v23  ;;  %v6572_v45 = vsel %vm6506_vm4, %v21310_v23, 0.0 }
 0x545   :  { %v6570_v37 = vsel %vm6506_vm4, %v21312_v29, 0.0  ;;  %v6672_v39 = vmul.f32 %v21312_v29, %v21312_v29 }
 0x546   :  { %v6571_v41 = vadd.f32 %v6570_v37, %v6569_v30  ;;  %v6766_v43 = vadd.f32 %v6765_v31, %v6764_v27  ;;  %v6769_v61 = vsel %vm6506_vm4, %v6673_v32, 0.0 }
 0x547   :  { %v6767_v47 = vsel %vm6506_vm4, %v6672_v39, 0.0  ;;  %v21324_v51 = vpop.f32.mrb[34].mxu0 }
 0x548   :  { %v6768_v52 = vadd.f32 %v6767_v47, %v6766_v43  ;;  %v21326_v57 = vpop.f32.mrb[35].mxu0  ;;  %v6573_v60 = vadd.f32 %v6572_v45, %v6571_v41  ;;  %v6675_v62 = vmul.f32 %v21324_v51, %v21324_v51  ;;  %v6576_v9 = vsel %vm6506_vm4, %v21324_v51, 0.0 }
 0x549   :  { %v6574_v63 = vsel %vm6506_vm4, %v21326_v57, 0.0  ;;  %v6674_v36 = vmul.f32 %v21326_v57, %v21326_v57 }
 0x54a   :  { %v6575_v4 = vadd.f32 %v6574_v63, %v6573_v60  ;;  %v6770_v35 = vadd.f32 %v6769_v61, %v6768_v52  ;;  %v6773_v18 = vsel %vm6506_vm4, %v6675_v62, 0.0 }
 0x54b   :  { %v6771_v8 = vsel %vm6506_vm4, %v6674_v36, 0.0  ;;  %v21338_v14 = vpop.f32.mrb[36].mxu0 }
 0x54c   :  { %v6772_v10 = vadd.f32 %v6771_v8, %v6770_v35  ;;  %v21340_v15 = vpop.f32.mrb[37].mxu0  ;;  %v6577_v17 = vadd.f32 %v6576_v9, %v6575_v4  ;;  %v6677_v20 = vmul.f32 %v21338_v14, %v21338_v14  ;;  %v6580_v32 = vsel %vm6506_vm4, %v21338_v14, 0.0 }
 0x54d   :  { %v6578_v22 = vsel %vm6506_vm4, %v21340_v15, 0.0  ;;  %v6676_v27 = vmul.f32 %v21340_v15, %v21340_v15 }
 0x54e   :  { %v6579_v30 = vadd.f32 %v6578_v22, %v6577_v17  ;;  %v6774_v31 = vadd.f32 %v6773_v18, %v6772_v10  ;;  %v6777_v47 = vsel %vm6506_vm4, %v6677_v20, 0.0 }
 0x54f   :  { %v6775_v37 = vsel %vm6506_vm4, %v6676_v27, 0.0  ;;  %v21352_v39 = vpop.f32.mrb[38].mxu0 }
 0x550   :  { %25385 = vst [vmem:[#allocation9_spill] sm:$0xff] %v21352_v39  ;;  %v6776_v41 = vadd.f32 %v6775_v37, %v6774_v31  ;;  %v21354_v43 = vpop.f32.mrb[39].mxu0  ;;  %v6581_v45 = vadd.f32 %v6580_v32, %v6579_v30  ;;  %v6679_v52 = vmul.f32 %v21352_v39, %v21352_v39  ;;  %v6584_v36 = vsel %vm6506_vm4, %v21352_v39, 0.0 }
 0x551   :  { %v6582_v60 = vsel %vm6506_vm4, %v21354_v43, 0.0  ;;  %v6678_v61 = vmul.f32 %v21354_v43, %v21354_v43 }
 0x552   :  { %v6583_v62 = vadd.f32 %v6582_v60, %v6581_v45  ;;  %v6778_v63 = vadd.f32 %v6777_v47, %v6776_v41  ;;  %v6781_v17 = vsel %vm6506_vm4, %v6679_v52, 0.0 }
 0x553   :  { %v6779_v4 = vsel %vm6506_vm4, %v6678_v61, 0.0  ;;  %v21366_v35 = vpop.f32.mrb[40].mxu0 }
 0x554   :  { %25386 = vst [vmem:[#allocation10_spill] sm:$0xff] %v21366_v35  ;;  %v6780_v9 = vadd.f32 %v6779_v4, %v6778_v63  ;;  %v21368_v8 = vpop.f32.mrb[41].mxu0  ;;  %v6585_v10 = vadd.f32 %v6584_v36, %v6583_v62  ;;  %v6681_v18 = vmul.f32 %v21366_v35, %v21366_v35  ;;  %v6588_v31 = vsel %vm6506_vm4, %v21366_v35, 0.0 }
 0x555   :  { %25387 = vst [vmem:[#allocation11_spill] sm:$0xff] %v21368_v8  ;;  %v6586_v20 = vsel %vm6506_vm4, %v21368_v8, 0.0  ;;  %v6680_v22 = vmul.f32 %v21368_v8, %v21368_v8 }
 0x556   :  { %v6587_v27 = vadd.f32 %v6586_v20, %v6585_v10  ;;  %v6782_v30 = vadd.f32 %v6781_v17, %v6780_v9  ;;  %v6785_v60 = vsel %vm6506_vm4, %v6681_v18, 0.0 }
 0x557   :  { %v6783_v32 = vsel %vm6506_vm4, %v6680_v22, 0.0  ;;  %v21380_v37 = vpop.f32.mrb[42].mxu0 }
 0x558   :  { %25388 = vst [vmem:[#allocation12_spill] sm:$0xff] %v21380_v37  ;;  %v6784_v41 = vadd.f32 %v6783_v32, %v6782_v30  ;;  %v6683_v45 = vmul.f32 %v21380_v37, %v21380_v37  ;;  %v21384_v47 = vpop.f32.mrb[43].mxu0  ;;  %v6589_v52 = vadd.f32 %v6588_v31, %v6587_v27  ;;  %v6592_v4 = vsel %vm6506_vm4, %v21380_v37, 0.0  ;;  %v21416_v32 = vld [vmem:[%s25031_s4 + $0x8] sm:$0xff] }
 0x559   :  { %25389 = vst [vmem:[#allocation13_spill] sm:$0xff] %v21384_v47  ;;  %v6590_v61 = vsel %vm6506_vm4, %v21384_v47, 0.0  ;;  %v6682_v62 = vmul.f32 %v21384_v47, %v21384_v47  ;;  %17283 = vmatprep.subr.mxu1 %v21416_v32 }
 0x55a   :  { %v6591_v63 = vadd.f32 %v6590_v61, %v6589_v52  ;;  %v6786_v36 = vadd.f32 %v6785_v60, %v6784_v41  ;;  %v6789_v17 = vsel %vm6506_vm4, %v6683_v45, 0.0  ;;  %v7270_v41 = vld [vmem:[#allocation3 + $0x1] sm:$0xff]  ;;  %17284 = vmatpush3.msra.mxu1 %v21416_v32 }
 0x55b   :  { %v6787_v9 = vsel %vm6506_vm4, %v6682_v62, 0.0  ;;  %v21398_v10 = vpop.f32.mrb[44].mxu0  ;;  %v21421_v45 = vld [vmem:[%s25031_s4] sm:$0xff]  ;;  %17285 = vmatprep.mubr.msk.f32.mxu1 %vm6506_vm4, %v7270_v41 }
 0x55c   :  { %25390 = vst [vmem:[#allocation14_spill] sm:$0xff] %v21398_v10  ;;  %v6788_v18 = vadd.f32 %v6787_v9, %v6786_v36  ;;  %v21401_v20 = vpop.f32.mrb[45].mxu0  ;;  %v6593_v22 = vadd.f32 %v6592_v4, %v6591_v63  ;;  %v21405_v27 = vmul.f32 %v21398_v10, %v21398_v10  ;;  %v6596_v61 = vsel %vm6506_vm4, %v21398_v10, 0.0  ;;  %17381 = vmatprep.subr.mxu1 %v21421_v45 }
 0x55d   :  { %25391 = vst [vmem:[#allocation15_spill] sm:$0xff] %v21401_v20  ;;  %v6594_v30 = vsel %vm6506_vm4, %v21401_v20, 0.0  ;;  %v21411_v31 = vmul.f32 %v21401_v20, %v21401_v20 }
 0x55e   :  { %v21423_v52 = vadd.f32 %v6594_v30, %v6593_v22  ;;  %v21425_v60 = vadd.f32 %v6789_v17, %v6788_v18  ;;  %v6793_v12 = vsel %vm6506_vm4, %v21405_v27, 0.0  ;;  %v7271_v30 = vld [vmem:[#allocation3 + $0x9] sm:$0xff] }
 0x55f   :  { %v6791_v62 = vsel %vm6506_vm4, %v21411_v31, 0.0  ;;  %v21577_v63 = vpop.f32.mrb[46].mxu0  ;;  %17286 = vmatmul.mubr.msk.f32.vlgmr.msra.gmra.mrb[0].mxu1 %vm6506_vm4, %v7271_v30 }
 0x560   :  { %25392 = vst [vmem:[#allocation16_spill] sm:$0xff] %v21577_v63  ;;  %v6792_v36 = vadd.f32 %v6791_v62, %v21425_v60  ;;  %v21581_v4 = vpop.f32.mrb[47].mxu0  ;;  %v6597_v9 = vadd.f32 %v6596_v61, %v21423_v52  ;;  %v6687_v17 = vmul.f32 %v21577_v63, %v21577_v63  ;;  %v6600_v41 = vsel %vm6506_vm4, %v21577_v63, 0.0  ;;  %17382 = vmatpush3.msra.mxu1 %v21421_v45 }
 0x561   :  { %25393 = vst [vmem:[#allocation17_spill] sm:$0xff] %v21581_v4  ;;  %v6598_v18 = vsel %vm6506_vm4, %v21581_v4, 0.0  ;;  %v6686_v22 = vmul.f32 %v21581_v4, %v21581_v4 }
 0x562   :  { %v6599_v31 = vadd.f32 %v6598_v18, %v6597_v9  ;;  %v6794_v32 = vadd.f32 %v6793_v12, %v6792_v36  ;;  %v6797_v4 = vsel %vm6506_vm4, %v6687_v17, 0.0 }
 0x563   :  { %v6795_v52 = vsel %vm6506_vm4, %v6686_v22, 0.0  ;;  %v21597_v27 = vpop.f32.mrb[48].mxu0 }
 0x564   :  { %25394 = vst [vmem:[#allocation18_spill] sm:$0xff] %v21597_v27  ;;  %v6796_v60 = vadd.f32 %v6795_v52, %v6794_v32  ;;  %v21600_v61 = vpop.f32.mrb[49].mxu0  ;;  %v6601_v62 = vadd.f32 %v6600_v41, %v6599_v31  ;;  %v6689_v36 = vmul.f32 %v21597_v27, %v21597_v27  ;;  %v6604_v45 = vsel %vm6506_vm4, %v21597_v27, 0.0 }
 0x565   :  { %25395 = vst [vmem:[#allocation19_spill] sm:$0xff] %v21600_v61  ;;  %v6602_v9 = vsel %vm6506_vm4, %v21600_v61, 0.0  ;;  %v6688_v12 = vmul.f32 %v21600_v61, %v21600_v61 }
 0x566   :  { %v6603_v18 = vadd.f32 %v6602_v9, %v6601_v62  ;;  %v6798_v22 = vadd.f32 %v6797_v4, %v6796_v60  ;;  %v6801_v52 = vsel %vm6506_vm4, %v6689_v36, 0.0 }
 0x567   :  { %v6799_v30 = vsel %vm6506_vm4, %v6688_v12, 0.0  ;;  %v21612_v32 = vpop.f32.mrb[50].mxu0 }
 0x568   :  { %25396 = vst [vmem:[#allocation20_spill] sm:$0xff] %v21612_v32  ;;  %v6800_v31 = vadd.f32 %v6799_v30, %v6798_v22  ;;  %v21614_v17 = vpop.f32.mrb[51].mxu0  ;;  %v6605_v41 = vadd.f32 %v6604_v45, %v6603_v18  ;;  %v6691_v63 = vmul.f32 %v21612_v32, %v21612_v32  ;;  %v6608_v12 = vsel %vm6506_vm4, %v21612_v32, 0.0 }
 0x569   :  { %25397 = vst [vmem:[#allocation21_spill] sm:$0xff] %v21614_v17  ;;  %v6606_v62 = vsel %vm6506_vm4, %v21614_v17, 0.0  ;;  %v6690_v4 = vmul.f32 %v21614_v17, %v21614_v17 }
 0x56a   :  { %v6607_v60 = vadd.f32 %v6606_v62, %v6605_v41  ;;  %v6802_v9 = vadd.f32 %v6801_v52, %v6800_v31  ;;  %v6805_v27 = vsel %vm6506_vm4, %v6691_v63, 0.0 }
 0x56b   :  { %v6803_v22 = vsel %vm6506_vm4, %v6690_v4, 0.0  ;;  %v21626_v30 = vpop.f32.mrb[52].mxu0 }
 0x56c   :  { %25398 = vst [vmem:[#allocation22_spill] sm:$0xff] %v21626_v30  ;;  %v6804_v18 = vadd.f32 %v6803_v22, %v6802_v9  ;;  %v21628_v36 = vpop.f32.mrb[53].mxu0  ;;  %v6609_v45 = vadd.f32 %v6608_v12, %v6607_v60  ;;  %v6693_v61 = vmul.f32 %v21626_v30, %v21626_v30  ;;  %v6612_v4 = vsel %vm6506_vm4, %v21626_v30, 0.0 }
 0x56d   :  { %25399 = vst [vmem:[#allocation23_spill] sm:$0xff] %v21628_v36  ;;  %v6610_v41 = vsel %vm6506_vm4, %v21628_v36, 0.0  ;;  %v6692_v31 = vmul.f32 %v21628_v36, %v21628_v36 }
 0x56e   :  { %v6611_v52 = vadd.f32 %v6610_v41, %v6609_v45  ;;  %v6806_v62 = vadd.f32 %v6805_v27, %v6804_v18  ;;  %v6809_v32 = vsel %vm6506_vm4, %v6693_v61, 0.0 }
 0x56f   :  { %v6807_v9 = vsel %vm6506_vm4, %v6692_v31, 0.0  ;;  %v21640_v22 = vpop.f32.mrb[54].mxu0 }
 0x570   :  { %25400 = vst [vmem:[#allocation24_spill] sm:$0xff] %v21640_v22  ;;  %v6808_v60 = vadd.f32 %v6807_v9, %v6806_v62  ;;  %v21642_v63 = vpop.f32.mrb[55].mxu0  ;;  %v6613_v12 = vadd.f32 %v6612_v4, %v6611_v52  ;;  %v6695_v17 = vmul.f32 %v21640_v22, %v21640_v22  ;;  %v6616_v31 = vsel %vm6506_vm4, %v21640_v22, 0.0 }
 0x571   :  { %25401 = vst [vmem:[#allocation25_spill] sm:$0xff] %v21642_v63  ;;  %v6614_v45 = vsel %vm6506_vm4, %v21642_v63, 0.0  ;;  %v6694_v27 = vmul.f32 %v21642_v63, %v21642_v63 }
 0x572   :  { %v6615_v18 = vadd.f32 %v6614_v45, %v6613_v12  ;;  %v6810_v41 = vadd.f32 %v6809_v32, %v6808_v60  ;;  %v6813_v30 = vsel %vm6506_vm4, %v6695_v17, 0.0 }
 0x573   :  { %v6811_v62 = vsel %vm6506_vm4, %v6694_v27, 0.0  ;;  %v21654_v9 = vpop.f32.mrb[56].mxu0 }
 0x574   :  { %25402 = vst [vmem:[#allocation26_spill] sm:$0xff] %v21654_v9  ;;  %v6812_v52 = vadd.f32 %v6811_v62, %v6810_v41  ;;  %v21656_v61 = vpop.f32.mrb[57].mxu0  ;;  %v6617_v4 = vadd.f32 %v6616_v31, %v6615_v18  ;;  %v6697_v36 = vmul.f32 %v21654_v9, %v21654_v9  ;;  %v6620_v27 = vsel %vm6506_vm4, %v21654_v9, 0.0 }
 0x575   :  { %25403 = vst [vmem:[#allocation27_spill] sm:$0xff] %v21656_v61  ;;  %v6618_v12 = vsel %vm6506_vm4, %v21656_v61, 0.0  ;;  %v6696_v32 = vmul.f32 %v21656_v61, %v21656_v61 }
 0x576   :  { %v6619_v60 = vadd.f32 %v6618_v12, %v6617_v4  ;;  %v6814_v45 = vadd.f32 %v6813_v30, %v6812_v52  ;;  %v6817_v22 = vsel %vm6506_vm4, %v6697_v36, 0.0 }
 0x577   :  { %v6815_v41 = vsel %vm6506_vm4, %v6696_v32, 0.0  ;;  %v21668_v62 = vpop.f32.mrb[58].mxu0 }
 0x578   :  { %25404 = vst [vmem:[#allocation28_spill] sm:$0xff] %v21668_v62  ;;  %v6816_v18 = vadd.f32 %v6815_v41, %v6814_v45  ;;  %v21670_v17 = vpop.f32.mrb[59].mxu0  ;;  %v6621_v31 = vadd.f32 %v6620_v27, %v6619_v60  ;;  %v6699_v63 = vmul.f32 %v21668_v62, %v21668_v62  ;;  %v6624_v32 = vsel %vm6506_vm4, %v21668_v62, 0.0 }
 0x579   :  { %25405 = vst [vmem:[#allocation29_spill] sm:$0xff] %v21670_v17  ;;  %v6622_v4 = vsel %vm6506_vm4, %v21670_v17, 0.0  ;;  %v6698_v30 = vmul.f32 %v21670_v17, %v21670_v17 }
 0x57a   :  { %v6623_v52 = vadd.f32 %v6622_v4, %v6621_v31  ;;  %v6818_v12 = vadd.f32 %v6817_v22, %v6816_v18  ;;  %v6821_v9 = vsel %vm6506_vm4, %v6699_v63, 0.0 }
 0x57b   :  { %v6819_v45 = vsel %vm6506_vm4, %v6698_v30, 0.0  ;;  %v21682_v41 = vpop.f32.mrb[60].mxu0 }
 0x57c   :  { %25406 = vst [vmem:[#allocation30_spill] sm:$0xff] %v21682_v41  ;;  %v6820_v60 = vadd.f32 %v6819_v45, %v6818_v12  ;;  %v21684_v36 = vpop.f32.mrb[61].mxu0  ;;  %v6625_v27 = vadd.f32 %v6624_v32, %v6623_v52  ;;  %v6701_v61 = vmul.f32 %v21682_v41, %v21682_v41  ;;  %v6628_v30 = vsel %vm6506_vm4, %v21682_v41, 0.0 }
 0x57d   :  { %25407 = vst [vmem:[#allocation31_spill] sm:$0xff] %v21684_v36  ;;  %v6626_v31 = vsel %vm6506_vm4, %v21684_v36, 0.0  ;;  %v6700_v22 = vmul.f32 %v21684_v36, %v21684_v36 }
 0x57e   :  { %v6627_v18 = vadd.f32 %v6626_v31, %v6625_v27  ;;  %v6822_v4 = vadd.f32 %v6821_v9, %v6820_v60  ;;  %v6825_v62 = vsel %vm6506_vm4, %v6701_v61, 0.0 }
 0x57f   :  { %v6823_v12 = vsel %vm6506_vm4, %v6700_v22, 0.0  ;;  %v21696_v45 = vpop.f32.mrb[62].mxu0 }
 0x580   :  { %25408 = vst [vmem:[#allocation32_spill] sm:$0xff] %v21696_v45  ;;  %v6824_v52 = vadd.f32 %v6823_v12, %v6822_v4  ;;  %v6433_v63 = vpop.f32.mrb[63].mxu0  ;;  %v6629_v32 = vadd.f32 %v6628_v30, %v6627_v18  ;;  %v6703_v17 = vmul.f32 %v21696_v45, %v21696_v45  ;;  %v6632_v60 = vsel %vm6506_vm4, %v21696_v45, 0.0 }
 0x581   :  { %v6630_v10 = vsel %vm6506_vm4, %v6433_v63, 0.0  ;;  %v6702_v36 = vmul.f32 %v6433_v63, %v6433_v63 }
 0x582   :  { %v6631_v27 = vadd.f32 %v6630_v10, %v6629_v32  ;;  %v6826_v9 = vadd.f32 %v6825_v62, %v6824_v52  ;;  %v6829_v4 = vsel %vm6506_vm4, %v6703_v17, 0.0  ;;  %v6850_v17 = vlaneseq }
 0x583   :  { %v6827_v31 = vsel %vm6506_vm4, %v6702_v36, 0.0 }
 0x584   :  { %v6633_v22 = vadd.f32 %v6632_v60, %v6631_v27  ;;  %v6828_v41 = vadd.f32 %v6827_v31, %v6826_v9  ;;  %v6842_v31 = vld [vmem:[%s25032_s2] sm:$0x1] }
 0x586   :  { %v6634_v18 = vrot.slane %v6633_v22, 4  ;;  %v6830_v30 = vadd.f32 %v6829_v4, %v6828_v41  ;;  %v6851_v41 = vshrl.u32 %v6850_v17, 7 }
 0x588   :  { %v6635_v61 = vadd.f32 %v6634_v18, %v6633_v22  ;;  %v6831_v12 = vrot.slane %v6830_v30, 4 }
 0x58a   :  { %v6636_v20 = vrot.slane %v6635_v61, 2  ;;  %v6832_v37 = vadd.f32 %v6831_v12, %v6830_v30 }
 0x58c   :  { %v6637_v47 = vadd.f32 %v6636_v20, %v6635_v61  ;;  %v6833_v35 = vrot.slane %v6832_v37, 2  ;;  %v21709_v20 = vsub.s32 0, %v6851_v41  ;;  %v25416_v41 = vld [vmem:[#allocation14_spill] sm:$0xff] }
 0x58e   :  { %v6638_v8 = vrot.slane %v6637_v47, 1  ;;  %v6834_v10 = vadd.f32 %v6833_v35, %v6832_v37  ;;  %25409 = vst [vmem:[#allocation33_spill] sm:$0xff] %v21709_v20 }
 0x590   :  { %v6639_v62 = vadd.f32 %v6638_v8, %v6637_v47  ;;  %v6835_v52 = vrot.slane %v6834_v10, 1  ;;  %v6846_v8 = vld [vmem:[%s25033_s3] sm:$0x1] }
 0x592   :  { %v6836_v32 = vadd.f32 %v6835_v52, %v6834_v10  ;;  %v6837_v45 = vmul.f32 0.001953125, %v6639_v62  ;;  %v25410_v52 = vld [vmem:[#allocation9_spill] sm:$0xff] }
 0x594   :  { %v6838_v39 = vmul.f32 0.001953125, %v6836_v32  ;;  %v6839_v36 = vmul.f32 %v6837_v45, %v6837_v45  ;;  %v25411_v32 = vld [vmem:[#allocation11_spill] sm:$0xff] }
 0x596   :  { %v6840_v27 = vsub.f32 %v6838_v39, %v6839_v36  ;;  %v25412_v36 = vld [vmem:[#allocation10_spill] sm:$0xff] }
 0x598   :  { %v6841_v9 = vmax.f32 %v6840_v27, 0.0  ;;  %v25413_v27 = vld [vmem:[#allocation13_spill] sm:$0xff] }
 0x59a   :  { %v6843_v60 = vadd.f32 1e-05, %v6841_v9  ;;  %v25414_v9 = vld [vmem:[#allocation12_spill] sm:$0xff] }
 0x59c   :  { %19190 = vrsqrt.f32 %v6843_v60  ;;  %v25415_v60 = vld [vmem:[#allocation15_spill] sm:$0xff] }
 0x5a6   :  { %v19191_v22 = vpop.eup %19190 }
 0x5a7   :  { %v6845_v35 = vmul.f32 %v19191_v22, %v6842_v31  ;;  %v25417_v22 = vld [vmem:[#allocation17_spill] sm:$0xff] }
 0x5a9   :  { %v6847_v37 = vmul.f32 %v6845_v35, %v6837_v45  ;;  %v21715_v39 = vrot.slane %v6845_v35, %v21709_v20 }
 0x5ab   :  { %v6848_v47 = vsub.f32 %v6846_v8, %v6847_v37  ;;  %v6917_v4 = vmul.f32 %v21715_v39, %v6433_v63  ;;  %v21720_v18 = vmul.f32 %v21715_v39, %v21093_v38  ;;  %v21724_v30 = vmul.f32 %v21087_v33, %v21715_v39  ;;  %v25418_v8 = vld [vmem:[#allocation16_spill] sm:$0xff] }
 0x5ac   :  { %v21728_v61 = vmul.f32 %v21715_v39, %v21103_v44  ;;  %v21732_v45 = vmul.f32 %v21101_v42, %v21715_v39  ;;  %v21736_v12 = vmul.f32 %v21715_v39, %v21116_v56  ;;  %v21740_v38 = vmul.f32 %v21114_v53, %v21715_v39 }
 0x5ad   :  { %v21743_v63 = vrot.slane %v6848_v47, %v21709_v20  ;;  %v21747_v33 = vmul.f32 %v21715_v39, %v21130_v6  ;;  %v21751_v44 = vmul.f32 %v21128_v3, %v21715_v39  ;;  %v21755_v42 = vmul.f32 %v21715_v39, %v21144_v5  ;;  %v25419_v47 = vld [vmem:[#allocation19_spill] sm:$0xff] }
 0x5ae   :  { %v21759_v56 = vmul.f32 %v21142_v13, %v21715_v39  ;;  %v21763_v53 = vmul.f32 %v21715_v39, %v21158_v26  ;;  %v21767_v6 = vmul.f32 %v21156_v24, %v21715_v39  ;;  %v21771_v3 = vmul.f32 %v21715_v39, %v21172_v40  ;;  %v25432_v20 = vld [vmem:[#allocation27_spill] sm:$0xff] }
 0x5af   :  { %v6987_v10 = vadd.f32 %v21743_v63, %v6917_v4  ;;  %v21776_v5 = vmul.f32 %v21170_v1, %v21715_v39  ;;  %v21780_v13 = vmul.f32 %v21715_v39, %v21186_v58  ;;  %v21784_v26 = vmul.f32 %v21184_v55, %v21715_v39 }
 0x5b0   :  { %v21788_v24 = vmul.f32 %v21715_v39, %v21200_v11  ;;  %v21792_v40 = vmul.f32 %v21198_v0, %v21715_v39  ;;  %v21796_v1 = vmul.f32 %v21715_v39, %v21214_v21  ;;  %v21800_v58 = vmul.f32 %v21212_v19, %v21715_v39 }
 0x5b1   :  { %v7051_v62 = vmax.f32 %v6987_v10, 0.0  ;;  %v21804_v55 = vmul.f32 %v21715_v39, %v21228_v16  ;;  %v21808_v11 = vmul.f32 %v21226_v34, %v21715_v39  ;;  %v21812_v0 = vmul.f32 %v21715_v39, %v21242_v59  ;;  %v25420_v10 = vld [vmem:[#allocation18_spill] sm:$0xff] }
 0x5b2   :  { %v21816_v21 = vmul.f32 %v21240_v54, %v21715_v39  ;;  %v21820_v19 = vmul.f32 %v21715_v39, %v21256_v49  ;;  %v21824_v16 = vmul.f32 %v21254_v7, %v21715_v39  ;;  %v21828_v34 = vmul.f32 %v21715_v39, %v21270_v28 }
 0x5b3   :  { %7203 = vst.msk [vmem:[#allocation3 + $0x331] sm:$0xff] %vm6506_vm4, %v7051_v62  ;;  %v21833_v59 = vmul.f32 %v21268_v25, %v21715_v39  ;;  %v21837_v54 = vmul.f32 %v21715_v39, %v21284_v50  ;;  %v21841_v49 = vmul.f32 %v21282_v46, %v21715_v39  ;;  %v21845_v7 = vmul.f32 %v21715_v39, %v21298_v48 }
 0x5b4   :  { %v21849_v28 = vmul.f32 %v21296_v2, %v21715_v39  ;;  %v21853_v25 = vmul.f32 %v21715_v39, %v21312_v29  ;;  %v21857_v50 = vmul.f32 %v21310_v23, %v21715_v39  ;;  %v21861_v46 = vmul.f32 %v21715_v39, %v21326_v57 }
 0x5b5   :  { %v21865_v48 = vmul.f32 %v21324_v51, %v21715_v39  ;;  %v21869_v2 = vmul.f32 %v21715_v39, %v21340_v15  ;;  %v21873_v29 = vmul.f32 %v21338_v14, %v21715_v39  ;;  %v21877_v23 = vmul.f32 %v21715_v39, %v21354_v43 }
 0x5b6   :  { %v21881_v57 = vmul.f32 %v25410_v52, %v21715_v39  ;;  %v21885_v51 = vmul.f32 %v21715_v39, %v25411_v32  ;;  %v21889_v15 = vmul.f32 %v25412_v36, %v21715_v39  ;;  %v21893_v14 = vmul.f32 %v21715_v39, %v25413_v27  ;;  %v25421_v52 = vld [vmem:[#allocation21_spill] sm:$0xff]  ;;  %v25422_v36 = vld [vmem:[#allocation20_spill] sm:$0xff] }
 0x5b7   :  { %v21897_v43 = vmul.f32 %v25414_v9, %v21715_v39  ;;  %v21901_v17 = vmul.f32 %v21715_v39, %v25415_v60  ;;  %v21905_v31 = vmul.f32 %v25416_v41, %v21715_v39  ;;  %v21909_v35 = vmul.f32 %v21715_v39, %v25417_v22  ;;  %v25424_v9 = vld [vmem:[#allocation23_spill] sm:$0xff]  ;;  %v25426_v41 = vld [vmem:[#allocation22_spill] sm:$0xff] }
 0x5b8   :  { %v21913_v37 = vmul.f32 %v25418_v8, %v21715_v39  ;;  %v21917_v4 = vmul.f32 %v21715_v39, %v25419_v47  ;;  %v21921_v62 = vmul.f32 %v25420_v10, %v21715_v39  ;;  %v21925_v32 = vmul.f32 %v21715_v39, %v25421_v52  ;;  %v25428_v8 = vld [vmem:[#allocation25_spill] sm:$0xff]  ;;  %v25430_v10 = vld [vmem:[#allocation24_spill] sm:$0xff] }
 0x5b9   :  { %v21929_v27 = vmul.f32 %v25422_v36, %v21715_v39  ;;  %v21933_v60 = vmul.f32 %v21715_v39, %v25424_v9  ;;  %v21937_v22 = vmul.f32 %v25426_v41, %v21715_v39  ;;  %v21941_v47 = vmul.f32 %v21715_v39, %v25428_v8 }
 0x5ba   :  { %v21945_v52 = vmul.f32 %v25430_v10, %v21715_v39  ;;  %v21949_v36 = vmul.f32 %v21715_v39, %v25432_v20 }
 0x5bb   :  { %25423 = vst [vmem:[#allocation34_spill] sm:$0xff] %v21929_v27  ;;  %25425 = vst [vmem:[#allocation35_spill] sm:$0xff] %v21933_v60  ;;  %v25434_v27 = vld [vmem:[#allocation26_spill] sm:$0xff]  ;;  %v25435_v60 = vld [vmem:[#allocation29_spill] sm:$0xff] }
 0x5bc   :  { %25427 = vst [vmem:[#allocation36_spill] sm:$0xff] %v21937_v22  ;;  %25429 = vst [vmem:[#allocation37_spill] sm:$0xff] %v21941_v47  ;;  %v21953_v9 = vmul.f32 %v25434_v27, %v21715_v39  ;;  %v21957_v41 = vmul.f32 %v21715_v39, %v25435_v60  ;;  %v25436_v22 = vld [vmem:[#allocation28_spill] sm:$0xff]  ;;  %v25437_v47 = vld [vmem:[#allocation31_spill] sm:$0xff]  ;;  %v21977_v60 = vadd.f32 %v21743_v63, %v21720_v18 }
 0x5bd   :  { %25431 = vst [vmem:[#allocation38_spill] sm:$0xff] %v21945_v52  ;;  %25433 = vst [vmem:[#allocation39_spill] sm:$0xff] %v21949_v36  ;;  %v21961_v8 = vmul.f32 %v25436_v22, %v21715_v39  ;;  %v21965_v10 = vmul.f32 %v21715_v39, %v25437_v47  ;;  %v25438_v52 = vld [vmem:[#allocation30_spill] sm:$0xff]  ;;  %v25439_v36 = vld [vmem:[#allocation32_spill] sm:$0xff]  ;;  %v21981_v22 = vadd.f32 %v21743_v63, %v21724_v30 }
 0x5be   :  { %v21969_v20 = vmul.f32 %v25438_v52, %v21715_v39  ;;  %v21973_v27 = vmul.f32 %v25439_v36, %v21715_v39  ;;  %v21985_v47 = vadd.f32 %v21743_v63, %v21728_v61  ;;  %v21989_v52 = vadd.f32 %v21743_v63, %v21732_v45 }
 0x5bf   :  { %v21993_v39 = vadd.f32 %v21743_v63, %v21736_v12  ;;  %v21997_v18 = vadd.f32 %v21743_v63, %v21740_v38  ;;  %v22001_v30 = vadd.f32 %v21743_v63, %v21747_v33  ;;  %v22005_v61 = vadd.f32 %v21743_v63, %v21751_v44 }
 0x5c0   :  { %v22009_v45 = vadd.f32 %v21743_v63, %v21755_v42  ;;  %v22013_v12 = vadd.f32 %v21743_v63, %v21759_v56  ;;  %v22017_v38 = vadd.f32 %v21743_v63, %v21763_v53  ;;  %v22021_v33 = vadd.f32 %v21743_v63, %v21767_v6 }
 0x5c1   :  { %v22025_v44 = vadd.f32 %v21743_v63, %v21771_v3  ;;  %v22029_v42 = vadd.f32 %v21743_v63, %v21776_v5  ;;  %v22033_v56 = vadd.f32 %v21743_v63, %v21780_v13  ;;  %v22037_v53 = vadd.f32 %v21743_v63, %v21784_v26 }
 0x5c2   :  { %v22041_v6 = vadd.f32 %v21743_v63, %v21788_v24  ;;  %v22045_v3 = vadd.f32 %v21743_v63, %v21792_v40  ;;  %v22049_v5 = vadd.f32 %v21743_v63, %v21796_v1  ;;  %v22053_v13 = vadd.f32 %v21743_v63, %v21800_v58  ;;  %v25445_v36 = vld [vmem:[#allocation34_spill] sm:$0xff] }
 0x5c3   :  { %v22057_v26 = vadd.f32 %v21743_v63, %v21804_v55  ;;  %v22061_v24 = vadd.f32 %v21743_v63, %v21808_v11  ;;  %v22065_v40 = vadd.f32 %v21743_v63, %v21812_v0  ;;  %v22069_v1 = vadd.f32 %v21743_v63, %v21816_v21 }
 0x5c4   :  { %v22073_v58 = vadd.f32 %v21743_v63, %v21820_v19  ;;  %v22077_v55 = vadd.f32 %v21743_v63, %v21824_v16  ;;  %v22081_v11 = vadd.f32 %v21743_v63, %v21828_v34  ;;  %v22085_v0 = vadd.f32 %v21743_v63, %v21833_v59 }
 0x5c5   :  { %v22089_v21 = vadd.f32 %v21743_v63, %v21837_v54  ;;  %v22093_v19 = vadd.f32 %v21743_v63, %v21841_v49  ;;  %v22097_v16 = vadd.f32 %v21743_v63, %v21845_v7  ;;  %v22101_v34 = vadd.f32 %v21743_v63, %v21849_v28 }
 0x5c6   :  { %v22105_v59 = vadd.f32 %v21743_v63, %v21853_v25  ;;  %v22109_v54 = vadd.f32 %v21743_v63, %v21857_v50  ;;  %v22113_v49 = vadd.f32 %v21743_v63, %v21861_v46  ;;  %v22117_v7 = vadd.f32 %v21743_v63, %v21865_v48 }
 0x5c7   :  { %v22121_v28 = vadd.f32 %v21743_v63, %v21869_v2  ;;  %v22125_v25 = vadd.f32 %v21743_v63, %v21873_v29  ;;  %v22129_v50 = vadd.f32 %v21743_v63, %v21877_v23  ;;  %v22133_v46 = vadd.f32 %v21743_v63, %v21881_v57 }
 0x5c8   :  { %v22137_v48 = vadd.f32 %v21743_v63, %v21885_v51  ;;  %v22141_v2 = vadd.f32 %v21743_v63, %v21889_v15  ;;  %v22145_v29 = vadd.f32 %v21743_v63, %v21893_v14  ;;  %v22149_v23 = vadd.f32 %v21743_v63, %v21897_v43 }
 0x5c9   :  { %v22153_v57 = vadd.f32 %v21743_v63, %v21901_v17  ;;  %v22157_v51 = vadd.f32 %v21743_v63, %v21905_v31  ;;  %v22161_v15 = vadd.f32 %v21743_v63, %v21909_v35  ;;  %v22165_v14 = vadd.f32 %v21743_v63, %v21913_v37 }
 0x5ca   :  { %v22169_v43 = vadd.f32 %v21743_v63, %v21917_v4  ;;  %v22173_v17 = vadd.f32 %v21743_v63, %v21921_v62  ;;  %v22177_v31 = vadd.f32 %v21743_v63, %v21925_v32  ;;  %v22181_v35 = vadd.f32 %v21743_v63, %v25445_v36 }
 0x5cb   :  { %25440 = vst [vmem:[#allocation40_spill] sm:$0xff] %v22161_v15  ;;  %25441 = vst [vmem:[#allocation41_spill] sm:$0xff] %v22165_v14  ;;  %v25446_v15 = vld [vmem:[#allocation35_spill] sm:$0xff]  ;;  %v25447_v14 = vld [vmem:[#allocation36_spill] sm:$0xff] }
 0x5cc   :  { %25442 = vst [vmem:[#allocation42_spill] sm:$0xff] %v22169_v43  ;;  %25443 = vst [vmem:[#allocation43_spill] sm:$0xff] %v22173_v17  ;;  %v22185_v37 = vadd.f32 %v21743_v63, %v25446_v15  ;;  %v22189_v4 = vadd.f32 %v21743_v63, %v25447_v14  ;;  %v25448_v43 = vld [vmem:[#allocation37_spill] sm:$0xff]  ;;  %v25449_v17 = vld [vmem:[#allocation38_spill] sm:$0xff]  ;;  %v22205_v15 = vadd.f32 %v21743_v63, %v21953_v9 }
 0x5cd   :  { %25444 = vst [vmem:[#allocation44_spill] sm:$0xff] %v22177_v31  ;;  %v22193_v62 = vadd.f32 %v21743_v63, %v25448_v43  ;;  %v22197_v32 = vadd.f32 %v21743_v63, %v25449_v17  ;;  %v25450_v31 = vld [vmem:[#allocation39_spill] sm:$0xff]  ;;  %v22209_v14 = vadd.f32 %v21743_v63, %v21957_v41  ;;  %v22213_v43 = vadd.f32 %v21743_v63, %v21961_v8 }
 0x5ce   :  { %v22201_v36 = vadd.f32 %v21743_v63, %v25450_v31  ;;  %25451 = vst [vmem:[#allocation45_spill] sm:$0xff] %v22205_v15  ;;  %v22217_v17 = vadd.f32 %v21743_v63, %v21965_v10  ;;  %v22221_v31 = vadd.f32 %v21743_v63, %v21969_v20  ;;  %v22225_v9 = vadd.f32 %v21743_v63, %v21973_v27 }
 0x5cf   :  { %25452 = vst [vmem:[#allocation46_spill] sm:$0xff] %v22209_v14  ;;  %25453 = vst [vmem:[#allocation47_spill] sm:$0xff] %v22213_v43  ;;  %v6989_v15 = vmax.f32 %v21977_v60, 0.0  ;;  %v6990_v41 = vmax.f32 %v21981_v22, 0.0  ;;  %v6991_v14 = vmax.f32 %v21985_v47, 0.0  ;;  %v6992_v8 = vmax.f32 %v21989_v52, 0.0 }
 0x5d0   :  { %25454 = vst [vmem:[#allocation48_spill] sm:$0xff] %v22217_v17  ;;  %25455 = vst [vmem:[#allocation49_spill] sm:$0xff] %v22221_v31  ;;  %v6993_v43 = vmax.f32 %v21993_v39, 0.0  ;;  %v6994_v10 = vmax.f32 %v21997_v18, 0.0  ;;  %v6995_v17 = vmax.f32 %v22001_v30, 0.0  ;;  %v6996_v20 = vmax.f32 %v22005_v61, 0.0 }
 0x5d1   :  { %v6997_v31 = vmax.f32 %v22009_v45, 0.0  ;;  %7141 = vst.msk [vmem:[#allocation3 + $0x19] sm:$0xff] %vm6506_vm4, %v6989_v15  ;;  %v6998_v63 = vmax.f32 %v22013_v12, 0.0  ;;  %v6999_v27 = vmax.f32 %v22017_v38, 0.0  ;;  %v7000_v60 = vmax.f32 %v22021_v33, 0.0  ;;  %7142 = vst.msk [vmem:[#allocation3 + $0x21] sm:$0xff] %vm6506_vm4, %v6990_v41 }
 0x5d2   :  { %v7001_v22 = vmax.f32 %v22025_v44, 0.0  ;;  %7143 = vst.msk [vmem:[#allocation3 + $0x31] sm:$0xff] %vm6506_vm4, %v6991_v14  ;;  %7144 = vst.msk [vmem:[#allocation3 + $0x39] sm:$0xff] %vm6506_vm4, %v6992_v8  ;;  %v7002_v47 = vmax.f32 %v22029_v42, 0.0  ;;  %v7003_v52 = vmax.f32 %v22033_v56, 0.0  ;;  %v7004_v39 = vmax.f32 %v22037_v53, 0.0 }
 0x5d3   :  { %7145 = vst.msk [vmem:[#allocation3 + $0x49] sm:$0xff] %vm6506_vm4, %v6993_v43  ;;  %v7005_v18 = vmax.f32 %v22041_v6, 0.0  ;;  %7146 = vst.msk [vmem:[#allocation3 + $0x51] sm:$0xff] %vm6506_vm4, %v6994_v10  ;;  %v22256_v30 = vld [vmem:[%s25031_s4 + $0x10] sm:$0xff]  ;;  %v7006_v61 = vmax.f32 %v22045_v3, 0.0  ;;  %v7007_v45 = vmax.f32 %v22049_v5, 0.0 }
 0x5d4   :  { %7147 = vst.msk [vmem:[#allocation3 + $0x61] sm:$0xff] %vm6506_vm4, %v6995_v17  ;;  %7148 = vst.msk [vmem:[#allocation3 + $0x69] sm:$0xff] %vm6506_vm4, %v6996_v20  ;;  %v7008_v12 = vmax.f32 %v22053_v13, 0.0  ;;  %v7009_v38 = vmax.f32 %v22057_v26, 0.0  ;;  %17479 = vmatprep.subr.mxu1 %v22256_v30  ;;  %v7010_v33 = vmax.f32 %v22061_v24, 0.0  ;;  %v7011_v44 = vmax.f32 %v22065_v40, 0.0 }
 0x5d5   :  { %7149 = vst.msk [vmem:[#allocation3 + $0x79] sm:$0xff] %vm6506_vm4, %v6997_v31  ;;  %7150 = vst.msk [vmem:[#allocation3 + $0x81] sm:$0xff] %vm6506_vm4, %v6998_v63  ;;  %v7012_v42 = vmax.f32 %v22069_v1, 0.0  ;;  %v7013_v56 = vmax.f32 %v22073_v58, 0.0  ;;  %v7014_v53 = vmax.f32 %v22077_v55, 0.0  ;;  %v7015_v6 = vmax.f32 %v22081_v11, 0.0 }
 0x5d6   :  { %7151 = vst.msk [vmem:[#allocation3 + $0x91] sm:$0xff] %vm6506_vm4, %v6999_v27  ;;  %7152 = vst.msk [vmem:[#allocation3 + $0x99] sm:$0xff] %vm6506_vm4, %v7000_v60  ;;  %v7016_v3 = vmax.f32 %v22085_v0, 0.0  ;;  %v7017_v5 = vmax.f32 %v22089_v21, 0.0  ;;  %v7018_v13 = vmax.f32 %v22093_v19, 0.0  ;;  %v7019_v26 = vmax.f32 %v22097_v16, 0.0 }
 0x5d7   :  { %7153 = vst.msk [vmem:[#allocation3 + $0xa9] sm:$0xff] %vm6506_vm4, %v7001_v22  ;;  %7154 = vst.msk [vmem:[#allocation3 + $0xb1] sm:$0xff] %vm6506_vm4, %v7002_v47  ;;  %v7020_v24 = vmax.f32 %v22101_v34, 0.0  ;;  %v7021_v40 = vmax.f32 %v22105_v59, 0.0  ;;  %v7022_v1 = vmax.f32 %v22109_v54, 0.0  ;;  %v7023_v58 = vmax.f32 %v22113_v49, 0.0 }
 0x5d8   :  { %7155 = vst.msk [vmem:[#allocation3 + $0xc1] sm:$0xff] %vm6506_vm4, %v7003_v52  ;;  %7156 = vst.msk [vmem:[#allocation3 + $0xc9] sm:$0xff] %vm6506_vm4, %v7004_v39  ;;  %v7024_v55 = vmax.f32 %v22117_v7, 0.0  ;;  %v7025_v11 = vmax.f32 %v22121_v28, 0.0  ;;  %v7272_v0 = vld [vmem:[#allocation3 + $0x19] sm:$0xff]  ;;  %v7026_v21 = vmax.f32 %v22125_v25, 0.0 }
 0x5d9   :  { %7157 = vst.msk [vmem:[#allocation3 + $0xd9] sm:$0xff] %vm6506_vm4, %v7005_v18  ;;  %7158 = vst.msk [vmem:[#allocation3 + $0xe1] sm:$0xff] %vm6506_vm4, %v7006_v61  ;;  %v7027_v19 = vmax.f32 %v22129_v50, 0.0  ;;  %v7028_v16 = vmax.f32 %v22133_v46, 0.0  ;;  %v7029_v34 = vmax.f32 %v22137_v48, 0.0  ;;  %17288 = vmatprep.mubr.msk.f32.mxu1 %vm6506_vm4, %v7272_v0  ;;  %v7273_v59 = vld [vmem:[#allocation3 + $0x21] sm:$0xff] }
 0x5da   :  { %7159 = vst.msk [vmem:[#allocation3 + $0xf1] sm:$0xff] %vm6506_vm4, %v7007_v45  ;;  %7160 = vst.msk [vmem:[#allocation3 + $0xf9] sm:$0xff] %vm6506_vm4, %v7008_v12  ;;  %v7030_v54 = vmax.f32 %v22141_v2, 0.0  ;;  %v7031_v49 = vmax.f32 %v22145_v29, 0.0  ;;  %v7032_v7 = vmax.f32 %v22149_v23, 0.0  ;;  %v7033_v28 = vmax.f32 %v22153_v57, 0.0  ;;  %17289 = vmatmul.mubr.msk.f32.gmra.mrb[2].mxu1 %vm6506_vm4, %v7273_v59 }
 0x5db   :  { %7161 = vst.msk [vmem:[#allocation3 + $0x109] sm:$0xff] %vm6506_vm4, %v7009_v38  ;;  %7162 = vst.msk [vmem:[#allocation3 + $0x111] sm:$0xff] %vm6506_vm4, %v7010_v33  ;;  %v7274_v25 = vld [vmem:[#allocation3 + $0x31] sm:$0xff]  ;;  %v7034_v50 = vmax.f32 %v22157_v51, 0.0  ;;  %v25456_v46 = vld [vmem:[#allocation40_spill] sm:$0xff]  ;;  %v7040_v17 = vmax.f32 %v22181_v35, 0.0 }
 0x5dc   :  { %7163 = vst.msk [vmem:[#allocation3 + $0x121] sm:$0xff] %vm6506_vm4, %v7011_v44  ;;  %7164 = vst.msk [vmem:[#allocation3 + $0x129] sm:$0xff] %vm6506_vm4, %v7012_v42  ;;  %v7035_v48 = vmax.f32 %v25456_v46, 0.0  ;;  %v25457_v2 = vld [vmem:[#allocation41_spill] sm:$0xff]  ;;  %v25458_v23 = vld [vmem:[#allocation42_spill] sm:$0xff]  ;;  %17291 = vmatprep.mubr.msk.f32.mxu1 %vm6506_vm4, %v7274_v25  ;;  %v7041_v31 = vmax.f32 %v22185_v37, 0.0 }
 0x5dd   :  { %7165 = vst.msk [vmem:[#allocation3 + $0x139] sm:$0xff] %vm6506_vm4, %v7013_v56  ;;  %7166 = vst.msk [vmem:[#allocation3 + $0x141] sm:$0xff] %vm6506_vm4, %v7014_v53  ;;  %v7036_v29 = vmax.f32 %v25457_v2, 0.0  ;;  %v7037_v15 = vmax.f32 %v25458_v23, 0.0  ;;  %v25459_v57 = vld [vmem:[#allocation43_spill] sm:$0xff]  ;;  %v25460_v43 = vld [vmem:[#allocation44_spill] sm:$0xff] }
 0x5de   :  { %7167 = vst.msk [vmem:[#allocation3 + $0x151] sm:$0xff] %vm6506_vm4, %v7015_v6  ;;  %7168 = vst.msk [vmem:[#allocation3 + $0x159] sm:$0xff] %vm6506_vm4, %v7016_v3  ;;  %v7038_v14 = vmax.f32 %v25459_v57, 0.0  ;;  %v7039_v51 = vmax.f32 %v25460_v43, 0.0  ;;  %v7042_v41 = vmax.f32 %v22189_v4, 0.0  ;;  %v7043_v8 = vmax.f32 %v22193_v62, 0.0 }
 0x5df   :  { %7169 = vst.msk [vmem:[#allocation3 + $0x169] sm:$0xff] %vm6506_vm4, %v7017_v5  ;;  %7170 = vst.msk [vmem:[#allocation3 + $0x171] sm:$0xff] %vm6506_vm4, %v7018_v13  ;;  %v7044_v10 = vmax.f32 %v22197_v32, 0.0  ;;  %v7045_v20 = vmax.f32 %v22201_v36, 0.0  ;;  %v7275_v35 = vld [vmem:[#allocation3 + $0x39] sm:$0xff]  ;;  %v25461_v37 = vld [vmem:[#allocation45_spill] sm:$0xff] }
 0x5e0   :  { %7171 = vst.msk [vmem:[#allocation3 + $0x181] sm:$0xff] %vm6506_vm4, %v7019_v26  ;;  %7172 = vst.msk [vmem:[#allocation3 + $0x189] sm:$0xff] %vm6506_vm4, %v7020_v24  ;;  %v7046_v63 = vmax.f32 %v25461_v37, 0.0  ;;  %v25462_v27 = vld [vmem:[#allocation46_spill] sm:$0xff]  ;;  %v25463_v4 = vld [vmem:[#allocation47_spill] sm:$0xff]  ;;  %17292 = vmatmul.mubr.msk.f32.gmra.mrb[4].mxu1 %vm6506_vm4, %v7275_v35  ;;  %v7052_v39 = vmax.f32 %v22225_v9, 0.0 }
 0x5e1   :  { %7173 = vst.msk [vmem:[#allocation3 + $0x1c9] sm:$0xff] %vm6506_vm4, %v7021_v40  ;;  %7174 = vst.msk [vmem:[#allocation3 + $0x1d1] sm:$0xff] %vm6506_vm4, %v7022_v1  ;;  %v7047_v60 = vmax.f32 %v25462_v27, 0.0  ;;  %v7048_v22 = vmax.f32 %v25463_v4, 0.0  ;;  %v25464_v62 = vld [vmem:[#allocation48_spill] sm:$0xff]  ;;  %v7276_v32 = vld [vmem:[#allocation3 + $0x49] sm:$0xff] }
 0x5e2   :  { %7175 = vst.msk [vmem:[#allocation3 + $0x1e1] sm:$0xff] %vm6506_vm4, %v7023_v58  ;;  %7176 = vst.msk [vmem:[#allocation3 + $0x1e9] sm:$0xff] %vm6506_vm4, %v7024_v55  ;;  %v7049_v47 = vmax.f32 %v25464_v62, 0.0  ;;  %v25465_v36 = vld [vmem:[#allocation49_spill] sm:$0xff]  ;;  %17294 = vmatprep.mubr.msk.f32.mxu1 %vm6506_vm4, %v7276_v32  ;;  %v7277_v9 = vld [vmem:[#allocation3 + $0x51] sm:$0xff] }
 0x5e3   :  { %7177 = vst.msk [vmem:[#allocation3 + $0x1f9] sm:$0xff] %vm6506_vm4, %v7025_v11  ;;  %7178 = vst.msk [vmem:[#allocation3 + $0x201] sm:$0xff] %vm6506_vm4, %v7026_v21  ;;  %v7050_v52 = vmax.f32 %v25465_v36, 0.0  ;;  %v7278_v18 = vld [vmem:[#allocation3 + $0x61] sm:$0xff]  ;;  %v7279_v61 = vld [vmem:[#allocation3 + $0x69] sm:$0xff] }
 0x5e4   :  { %7179 = vst.msk [vmem:[#allocation3 + $0x211] sm:$0xff] %vm6506_vm4, %v7027_v19  ;;  %7180 = vst.msk [vmem:[#allocation3 + $0x219] sm:$0xff] %vm6506_vm4, %v7028_v16  ;;  %17295 = vmatmul.mubr.msk.f32.gmra.mrb[6].mxu1 %vm6506_vm4, %v7277_v9  ;;  %v7280_v45 = vld [vmem:[#allocation3 + $0x79] sm:$0xff]  ;;  %v7281_v12 = vld [vmem:[#allocation3 + $0x81] sm:$0xff] }
 0x5e5   :  { %7181 = vst.msk [vmem:[#allocation3 + $0x229] sm:$0xff] %vm6506_vm4, %v7029_v34  ;;  %7182 = vst.msk [vmem:[#allocation3 + $0x231] sm:$0xff] %vm6506_vm4, %v7030_v54  ;;  %17297 = vmatprep.mubr.msk.f32.mxu1 %vm6506_vm4, %v7278_v18  ;;  %v7282_v38 = vld [vmem:[#allocation3 + $0x91] sm:$0xff]  ;;  %v7283_v33 = vld [vmem:[#allocation3 + $0x99] sm:$0xff] }
 0x5e6   :  { %7183 = vst.msk [vmem:[#allocation3 + $0x241] sm:$0xff] %vm6506_vm4, %v7031_v49  ;;  %7184 = vst.msk [vmem:[#allocation3 + $0x249] sm:$0xff] %vm6506_vm4, %v7032_v7  ;;  %v7284_v44 = vld [vmem:[#allocation3 + $0xa9] sm:$0xff]  ;;  %v7285_v42 = vld [vmem:[#allocation3 + $0xb1] sm:$0xff] }
 0x5e7   :  { %7185 = vst.msk [vmem:[#allocation3 + $0x259] sm:$0xff] %vm6506_vm4, %v7033_v28  ;;  %7186 = vst.msk [vmem:[#allocation3 + $0x261] sm:$0xff] %vm6506_vm4, %v7034_v50  ;;  %v7286_v56 = vld [vmem:[#allocation3 + $0xc1] sm:$0xff]  ;;  %v7287_v53 = vld [vmem:[#allocation3 + $0xc9] sm:$0xff] }
 0x5e8   :  { %7187 = vst.msk [vmem:[#allocation3 + $0x271] sm:$0xff] %vm6506_vm4, %v7035_v48  ;;  %7188 = vst.msk [vmem:[#allocation3 + $0x279] sm:$0xff] %vm6506_vm4, %v7036_v29  ;;  %17298 = vmatmul.mubr.msk.f32.gmra.mrb[8].mxu1 %vm6506_vm4, %v7279_v61  ;;  %v7288_v6 = vld [vmem:[#allocation3 + $0xd9] sm:$0xff]  ;;  %v7289_v3 = vld [vmem:[#allocation3 + $0xe1] sm:$0xff] }
 0x5e9   :  { %7189 = vst.msk [vmem:[#allocation3 + $0x289] sm:$0xff] %vm6506_vm4, %v7037_v15  ;;  %7190 = vst.msk [vmem:[#allocation3 + $0x291] sm:$0xff] %vm6506_vm4, %v7038_v14  ;;  %17300 = vmatprep.mubr.msk.f32.mxu1 %vm6506_vm4, %v7280_v45  ;;  %v7290_v5 = vld [vmem:[#allocation3 + $0xf1] sm:$0xff]  ;;  %v7291_v13 = vld [vmem:[#allocation3 + $0xf9] sm:$0xff] }
 0x5ea   :  { %7191 = vst.msk [vmem:[#allocation3 + $0x2a1] sm:$0xff] %vm6506_vm4, %v7039_v51  ;;  %7192 = vst.msk [vmem:[#allocation3 + $0x2a9] sm:$0xff] %vm6506_vm4, %v7040_v17  ;;  %v7292_v26 = vld [vmem:[#allocation3 + $0x109] sm:$0xff]  ;;  %v7293_v24 = vld [vmem:[#allocation3 + $0x111] sm:$0xff] }
 0x5eb   :  { %7193 = vst.msk [vmem:[#allocation3 + $0x2b9] sm:$0xff] %vm6506_vm4, %v7041_v31  ;;  %7194 = vst.msk [vmem:[#allocation3 + $0x2c1] sm:$0xff] %vm6506_vm4, %v7042_v41  ;;  %v7294_v40 = vld [vmem:[#allocation3 + $0x121] sm:$0xff]  ;;  %v7295_v1 = vld [vmem:[#allocation3 + $0x129] sm:$0xff] }
 0x5ec   :  { %7195 = vst.msk [vmem:[#allocation3 + $0x2d1] sm:$0xff] %vm6506_vm4, %v7043_v8  ;;  %7196 = vst.msk [vmem:[#allocation3 + $0x2d9] sm:$0xff] %vm6506_vm4, %v7044_v10  ;;  %17301 = vmatmul.mubr.msk.f32.gmra.mrb[10].mxu1 %vm6506_vm4, %v7281_v12  ;;  %v7296_v58 = vld [vmem:[#allocation3 + $0x139] sm:$0xff]  ;;  %v7297_v55 = vld [vmem:[#allocation3 + $0x141] sm:$0xff] }
 0x5ed   :  { %7197 = vst.msk [vmem:[#allocation3 + $0x2e9] sm:$0xff] %vm6506_vm4, %v7045_v20  ;;  %7198 = vst.msk [vmem:[#allocation3 + $0x2f1] sm:$0xff] %vm6506_vm4, %v7046_v63  ;;  %17303 = vmatprep.mubr.msk.f32.mxu1 %vm6506_vm4, %v7282_v38  ;;  %v7298_v11 = vld [vmem:[#allocation3 + $0x151] sm:$0xff]  ;;  %v7299_v0 = vld [vmem:[#allocation3 + $0x159] sm:$0xff] }
 0x5ee   :  { %7199 = vst.msk [vmem:[#allocation3 + $0x301] sm:$0xff] %vm6506_vm4, %v7047_v60  ;;  %7200 = vst.msk [vmem:[#allocation3 + $0x309] sm:$0xff] %vm6506_vm4, %v7048_v22  ;;  %v7300_v21 = vld [vmem:[#allocation3 + $0x169] sm:$0xff]  ;;  %v7302_v19 = vld [vmem:[#allocation3 + $0x1b1] sm:$0xff] }
 0x5ef   :  { %7201 = vst.msk [vmem:[#allocation3 + $0x319] sm:$0xff] %vm6506_vm4, %v7049_v47  ;;  %7202 = vst.msk [vmem:[#allocation3 + $0x321] sm:$0xff] %vm6506_vm4, %v7050_v52  ;;  %v7301_v16 = vld [vmem:[#allocation3 + $0x171] sm:$0xff]  ;;  %v7303_v34 = vld [vmem:[#allocation3 + $0x1b9] sm:$0xff] }
 0x5f0   :  { %7204 = vst.msk [vmem:[#allocation3 + $0x339] sm:$0xff] %vm6506_vm4, %v7052_v39  ;;  %17304 = vmatmul.mubr.msk.f32.gmra.mrb[12].mxu1 %vm6506_vm4, %v7283_v33  ;;  %v7304_v59 = vld [vmem:[#allocation3 + $0x1c9] sm:$0xff]  ;;  %v7305_v54 = vld [vmem:[#allocation3 + $0x1d1] sm:$0xff]  ;;  %v7306_v49 = vld [vmem:[#allocation3 + $0x1e1] sm:$0xff] }
 0x5f1   :  { %17306 = vmatprep.mubr.msk.f32.mxu1 %vm6506_vm4, %v7284_v44  ;;  %v7307_v7 = vld [vmem:[#allocation3 + $0x1e9] sm:$0xff]  ;;  %v7308_v28 = vld [vmem:[#allocation3 + $0x1f9] sm:$0xff]  ;;  %v7309_v25 = vld [vmem:[#allocation3 + $0x201] sm:$0xff] }
 0x5f2   :  { %v7310_v50 = vld [vmem:[#allocation3 + $0x211] sm:$0xff]  ;;  %v7311_v46 = vld [vmem:[#allocation3 + $0x219] sm:$0xff]  ;;  %v7312_v48 = vld [vmem:[#allocation3 + $0x229] sm:$0xff] }
 0x5f3   :  { %v7313_v2 = vld [vmem:[#allocation3 + $0x231] sm:$0xff]  ;;  %v7314_v29 = vld [vmem:[#allocation3 + $0x241] sm:$0xff]  ;;  %v7315_v23 = vld [vmem:[#allocation3 + $0x249] sm:$0xff] }
 0x5f4   :  { %17307 = vmatmul.mubr.msk.f32.gmra.mrb[14].mxu1 %vm6506_vm4, %v7285_v42  ;;  %v7316_v15 = vld [vmem:[#allocation3 + $0x259] sm:$0xff]  ;;  %v7317_v57 = vld [vmem:[#allocation3 + $0x261] sm:$0xff]  ;;  %v7318_v14 = vld [vmem:[#allocation3 + $0x271] sm:$0xff] }
 0x5f5   :  { %17309 = vmatprep.mubr.msk.f32.mxu1 %vm6506_vm4, %v7286_v56  ;;  %v7319_v43 = vld [vmem:[#allocation3 + $0x279] sm:$0xff]  ;;  %v7320_v51 = vld [vmem:[#allocation3 + $0x289] sm:$0xff]  ;;  %v7321_v17 = vld [vmem:[#allocation3 + $0x291] sm:$0xff] }
 0x5f6   :  { %v7322_v31 = vld [vmem:[#allocation3 + $0x2a1] sm:$0xff]  ;;  %v7323_v41 = vld [vmem:[#allocation3 + $0x2a9] sm:$0xff]  ;;  %v7324_v8 = vld [vmem:[#allocation3 + $0x2b9] sm:$0xff] }
 0x5f7   :  { %v7325_v10 = vld [vmem:[#allocation3 + $0x2c1] sm:$0xff]  ;;  %v7326_v20 = vld [vmem:[#allocation3 + $0x2d1] sm:$0xff]  ;;  %v7327_v35 = vld [vmem:[#allocation3 + $0x2d9] sm:$0xff] }
 0x5f8   :  { %17310 = vmatmul.mubr.msk.f32.gmra.mrb[16].mxu1 %vm6506_vm4, %v7287_v53  ;;  %v7328_v37 = vld [vmem:[#allocation3 + $0x2e9] sm:$0xff]  ;;  %v7329_v63 = vld [vmem:[#allocation3 + $0x2f1] sm:$0xff]  ;;  %v7330_v27 = vld [vmem:[#allocation3 + $0x301] sm:$0xff] }
 0x5f9   :  { %17312 = vmatprep.mubr.msk.f32.mxu1 %vm6506_vm4, %v7288_v6  ;;  %v7331_v60 = vld [vmem:[#allocation3 + $0x309] sm:$0xff]  ;;  %v7332_v4 = vld [vmem:[#allocation3 + $0x319] sm:$0xff]  ;;  %v7333_v62 = vld [vmem:[#allocation3 + $0x321] sm:$0xff] }
 0x5fa   :  { %v7205_v22 = vld [vmem:[#allocation3] sm:$0xff]  ;;  %v7206_v47 = vld [vmem:[#allocation3 + $0x8] sm:$0xff]  ;;  %v22425_v32 = vld [vmem:[%s25031_s4 + $0x18] sm:$0xff] }
 0x5fb   :  { %v22428_v36 = vld [vmem:[#allocation3 + $0x18] sm:$0xff]  ;;  %v22434_v52 = vld [vmem:[#allocation3 + $0x20] sm:$0xff]  ;;  %v22438_v39 = vld [vmem:[#allocation3 + $0x30] sm:$0xff] }
 0x5fc   :  { %17313 = vmatmul.mubr.msk.f32.gmra.mrb[18].mxu1 %vm6506_vm4, %v7289_v3  ;;  %v22442_v9 = vld [vmem:[#allocation3 + $0x38] sm:$0xff]  ;;  %v22450_v18 = vld [vmem:[#allocation3 + $0x50] sm:$0xff]  ;;  %v22454_v61 = vld [vmem:[#allocation3 + $0x60] sm:$0xff] }
 0x5fd   :  { %17315 = vmatprep.mubr.msk.f32.mxu1 %vm6506_vm4, %v7290_v5  ;;  %v22458_v45 = vld [vmem:[#allocation3 + $0x68] sm:$0xff]  ;;  %v22462_v12 = vld [vmem:[#allocation3 + $0x78] sm:$0xff]  ;;  %v22466_v38 = vld [vmem:[#allocation3 + $0x80] sm:$0xff] }
 0x5fe   :  { %v22470_v33 = vld [vmem:[#allocation3 + $0x90] sm:$0xff]  ;;  %v22474_v44 = vld [vmem:[#allocation3 + $0x98] sm:$0xff]  ;;  %v22478_v42 = vld [vmem:[#allocation3 + $0xa8] sm:$0xff] }
 0x5ff   :  { %v22482_v56 = vld [vmem:[#allocation3 + $0xb0] sm:$0xff]  ;;  %v22486_v53 = vld [vmem:[#allocation3 + $0xc0] sm:$0xff]  ;;  %v22490_v6 = vld [vmem:[#allocation3 + $0xc8] sm:$0xff] }
 0x600   :  { %17316 = vmatmul.mubr.msk.f32.gmra.mrb[20].mxu1 %vm6506_vm4, %v7291_v13  ;;  %v22494_v3 = vld [vmem:[#allocation3 + $0xd8] sm:$0xff]  ;;  %v22498_v5 = vld [vmem:[#allocation3 + $0xe0] sm:$0xff]  ;;  %v22502_v13 = vld [vmem:[#allocation3 + $0xf0] sm:$0xff] }
 0x601   :  { %17318 = vmatprep.mubr.msk.f32.mxu1 %vm6506_vm4, %v7292_v26  ;;  %v22506_v26 = vld [vmem:[#allocation3 + $0xf8] sm:$0xff] }
 0x604   :  { %17319 = vmatmul.mubr.msk.f32.gmra.mrb[22].mxu1 %vm6506_vm4, %v7293_v24  ;;  %v22510_v24 = vld [vmem:[#allocation3 + $0x108] sm:$0xff] }
 0x605   :  { %17321 = vmatprep.mubr.msk.f32.mxu1 %vm6506_vm4, %v7294_v40  ;;  %v22514_v40 = vld [vmem:[#allocation3 + $0x110] sm:$0xff] }
 0x608   :  { %17322 = vmatmul.mubr.msk.f32.gmra.mrb[24].mxu1 %vm6506_vm4, %v7295_v1  ;;  %v22518_v1 = vld [vmem:[#allocation3 + $0x120] sm:$0xff] }
 0x609   :  { %17324 = vmatprep.mubr.msk.f32.mxu1 %vm6506_vm4, %v7296_v58  ;;  %v22522_v58 = vld [vmem:[#allocation3 + $0x128] sm:$0xff] }
 0x60c   :  { %17325 = vmatmul.mubr.msk.f32.gmra.mrb[26].mxu1 %vm6506_vm4, %v7297_v55  ;;  %v22526_v55 = vld [vmem:[#allocation3 + $0x138] sm:$0xff] }
 0x60d   :  { %17327 = vmatprep.mubr.msk.f32.mxu1 %vm6506_vm4, %v7298_v11  ;;  %v22530_v11 = vld [vmem:[#allocation3 + $0x140] sm:$0xff] }
 0x610   :  { %17328 = vmatmul.mubr.msk.f32.gmra.mrb[28].mxu1 %vm6506_vm4, %v7299_v0  ;;  %v22534_v0 = vld [vmem:[#allocation3 + $0x150] sm:$0xff] }
 0x611   :  { %17330 = vmatprep.mubr.msk.f32.mxu1 %vm6506_vm4, %v7300_v21  ;;  %v22538_v21 = vld [vmem:[#allocation3 + $0x158] sm:$0xff] }
 0x614   :  { %17331 = vmatmul.mubr.msk.f32.gmra.mrb[30].mxu1 %vm6506_vm4, %v7301_v16  ;;  %v7237_v16 = vld [vmem:[#allocation3 + $0x1b0] sm:$0xff] }
 0x615   :  { %17333 = vmatprep.mubr.msk.f32.mxu1 %vm6506_vm4, %v7302_v19  ;;  %v22542_v19 = vld [vmem:[#allocation3 + $0x168] sm:$0xff] }
 0x618   :  { %17334 = vmatmul.mubr.msk.f32.gmra.mrb[32].mxu1 %vm6506_vm4, %v7303_v34  ;;  %v22546_v34 = vld [vmem:[#allocation3 + $0x170] sm:$0xff] }
 0x619   :  { %17336 = vmatprep.mubr.msk.f32.mxu1 %vm6506_vm4, %v7304_v59  ;;  %v7238_v59 = vld [vmem:[#allocation3 + $0x1b8] sm:$0xff] }
 0x61c   :  { %17337 = vmatmul.mubr.msk.f32.gmra.mrb[34].mxu1 %vm6506_vm4, %v7305_v54  ;;  %v22552_v54 = vld [vmem:[#allocation3 + $0x1c8] sm:$0xff] }
 0x61d   :  { %17339 = vmatprep.mubr.msk.f32.mxu1 %vm6506_vm4, %v7306_v49  ;;  %v22556_v49 = vld [vmem:[#allocation3 + $0x1d0] sm:$0xff] }
 0x620   :  { %17340 = vmatmul.mubr.msk.f32.gmra.mrb[36].mxu1 %vm6506_vm4, %v7307_v7  ;;  %v22560_v7 = vld [vmem:[#allocation3 + $0x1e0] sm:$0xff] }
 0x621   :  { %17342 = vmatprep.mubr.msk.f32.mxu1 %vm6506_vm4, %v7308_v28  ;;  %v22564_v28 = vld [vmem:[#allocation3 + $0x1e8] sm:$0xff] }
 0x624   :  { %17343 = vmatmul.mubr.msk.f32.gmra.mrb[38].mxu1 %vm6506_vm4, %v7309_v25  ;;  %v22568_v25 = vld [vmem:[#allocation3 + $0x1f8] sm:$0xff] }
 0x625   :  { %17345 = vmatprep.mubr.msk.f32.mxu1 %vm6506_vm4, %v7310_v50  ;;  %v22572_v50 = vld [vmem:[#allocation3 + $0x200] sm:$0xff] }
 0x628   :  { %17346 = vmatmul.mubr.msk.f32.gmra.mrb[40].mxu1 %vm6506_vm4, %v7311_v46  ;;  %v22576_v46 = vld [vmem:[#allocation3 + $0x210] sm:$0xff] }
 0x629   :  { %17348 = vmatprep.mubr.msk.f32.mxu1 %vm6506_vm4, %v7312_v48  ;;  %v22580_v48 = vld [vmem:[#allocation3 + $0x218] sm:$0xff] }
 0x62c   :  { %17349 = vmatmul.mubr.msk.f32.gmra.mrb[42].mxu1 %vm6506_vm4, %v7313_v2  ;;  %v22584_v2 = vld [vmem:[#allocation3 + $0x228] sm:$0xff] }
 0x62d   :  { %17351 = vmatprep.mubr.msk.f32.mxu1 %vm6506_vm4, %v7314_v29  ;;  %v22588_v29 = vld [vmem:[#allocation3 + $0x230] sm:$0xff] }
 0x630   :  { %17352 = vmatmul.mubr.msk.f32.gmra.mrb[44].mxu1 %vm6506_vm4, %v7315_v23  ;;  %v22592_v23 = vld [vmem:[#allocation3 + $0x240] sm:$0xff] }
 0x631   :  { %17354 = vmatprep.mubr.msk.f32.mxu1 %vm6506_vm4, %v7316_v15  ;;  %v22596_v15 = vld [vmem:[#allocation3 + $0x248] sm:$0xff] }
 0x634   :  { %17355 = vmatmul.mubr.msk.f32.gmra.mrb[46].mxu1 %vm6506_vm4, %v7317_v57  ;;  %v22600_v57 = vld [vmem:[#allocation3 + $0x258] sm:$0xff] }
 0x635   :  { %17357 = vmatprep.mubr.msk.f32.mxu1 %vm6506_vm4, %v7318_v14  ;;  %v22604_v14 = vld [vmem:[#allocation3 + $0x260] sm:$0xff] }
 0x638   :  { %17358 = vmatmul.mubr.msk.f32.gmra.mrb[48].mxu1 %vm6506_vm4, %v7319_v43  ;;  %v22608_v43 = vld [vmem:[#allocation3 + $0x270] sm:$0xff] }
 0x639   :  { %17360 = vmatprep.mubr.msk.f32.mxu1 %vm6506_vm4, %v7320_v51  ;;  %v22612_v51 = vld [vmem:[#allocation3 + $0x278] sm:$0xff] }
 0x63c   :  { %17361 = vmatmul.mubr.msk.f32.gmra.mrb[50].mxu1 %vm6506_vm4, %v7321_v17  ;;  %v22616_v17 = vld [vmem:[#allocation3 + $0x288] sm:$0xff] }
 0x63d   :  { %17363 = vmatprep.mubr.msk.f32.mxu1 %vm6506_vm4, %v7322_v31  ;;  %v22620_v31 = vld [vmem:[#allocation3 + $0x290] sm:$0xff] }
 0x640   :  { %17364 = vmatmul.mubr.msk.f32.gmra.mrb[52].mxu1 %vm6506_vm4, %v7323_v41  ;;  %v22624_v41 = vld [vmem:[#allocation3 + $0x2a0] sm:$0xff] }
 0x641   :  { %17366 = vmatprep.mubr.msk.f32.mxu1 %vm6506_vm4, %v7324_v8  ;;  %v22628_v8 = vld [vmem:[#allocation3 + $0x2a8] sm:$0xff] }
 0x644   :  { %17367 = vmatmul.mubr.msk.f32.gmra.mrb[54].mxu1 %vm6506_vm4, %v7325_v10  ;;  %v22632_v10 = vld [vmem:[#allocation3 + $0x2b8] sm:$0xff] }
 0x645   :  { %17369 = vmatprep.mubr.msk.f32.mxu1 %vm6506_vm4, %v7326_v20  ;;  %v22636_v20 = vld [vmem:[#allocation3 + $0x2c0] sm:$0xff] }
 0x648   :  { %17370 = vmatmul.mubr.msk.f32.gmra.mrb[56].mxu1 %vm6506_vm4, %v7327_v35  ;;  %v22640_v35 = vld [vmem:[#allocation3 + $0x2d0] sm:$0xff] }
 0x649   :  { %17372 = vmatprep.mubr.msk.f32.mxu1 %vm6506_vm4, %v7328_v37  ;;  %v22644_v37 = vld [vmem:[#allocation3 + $0x2d8] sm:$0xff] }
 0x64c   :  { %17373 = vmatmul.mubr.msk.f32.gmra.mrb[58].mxu1 %vm6506_vm4, %v7329_v63  ;;  %v22648_v63 = vld [vmem:[#allocation3 + $0x2e8] sm:$0xff] }
 0x64d   :  { %17375 = vmatprep.mubr.msk.f32.mxu1 %vm6506_vm4, %v7330_v27  ;;  %v22652_v27 = vld [vmem:[#allocation3 + $0x2f0] sm:$0xff] }
 0x650   :  { %17376 = vmatmul.mubr.msk.f32.gmra.mrb[60].mxu1 %vm6506_vm4, %v7331_v60  ;;  %v22656_v60 = vld [vmem:[#allocation3 + $0x300] sm:$0xff] }
 0x651   :  { %17378 = vmatprep.mubr.msk.f32.mxu1 %vm6506_vm4, %v7332_v4  ;;  %v22660_v4 = vld [vmem:[#allocation3 + $0x308] sm:$0xff] }
 0x652   :  { %25466 = vst [vmem:[#allocation50_spill] sm:$0xff] %v22660_v4 }
 0x654   :  { %17379 = vmatmul.mubr.msk.f32.gmra.mrb[62].mxu1 %vm6506_vm4, %v7333_v62  ;;  %v8490_v62 = vld [vmem:[#allocation3 + $0x2] sm:$0xff] }
 0x655   :  { %17383 = vmatprep.mubr.msk.f32.mxu1 %vm6506_vm4, %v7205_v22  ;;  %v22664_v22 = vld [vmem:[#allocation3 + $0x318] sm:$0xff] }
 0x656   :  { %25467 = vst [vmem:[#allocation51_spill] sm:$0xff] %v22664_v22 }
 0x658   :  { %17384 = vmatmul.mubr.msk.f32.vlgmr.msra.gmra.mrb[0].mxu1 %vm6506_vm4, %v7206_v47  ;;  %v22668_v47 = vld [vmem:[#allocation3 + $0x320] sm:$0xff] }
 0x659   :  { %17480 = vmatpush3.msra.mxu1 %v22256_v30  ;;  %17386 = vmatprep.mubr.msk.f32.mxu1 %vm6506_vm4, %v22428_v36  ;;  %v22446_v30 = vld [vmem:[#allocation3 + $0x48] sm:$0xff]  ;;  %25468 = vst [vmem:[#allocation52_spill] sm:$0xff] %v22668_v47 }
 0x65a   :  { %17577 = vmatprep.subr.mxu1 %v22425_v32 }
 0x65c   :  { %17387 = vmatmul.mubr.msk.f32.gmra.mrb[2].mxu1 %vm6506_vm4, %v22434_v52 }
 0x65d   :  { %17389 = vmatprep.mubr.msk.f32.mxu1 %vm6506_vm4, %v22438_v39 }
 0x660   :  { %17390 = vmatmul.mubr.msk.f32.gmra.mrb[4].mxu1 %vm6506_vm4, %v22442_v9 }
 0x661   :  { %17392 = vmatprep.mubr.msk.f32.mxu1 %vm6506_vm4, %v22446_v30 }
 0x664   :  { %17393 = vmatmul.mubr.msk.f32.gmra.mrb[6].mxu1 %vm6506_vm4, %v22450_v18 }
 0x665   :  { %17395 = vmatprep.mubr.msk.f32.mxu1 %vm6506_vm4, %v22454_v61 }
 0x668   :  { %17396 = vmatmul.mubr.msk.f32.gmra.mrb[8].mxu1 %vm6506_vm4, %v22458_v45 }
 0x669   :  { %17398 = vmatprep.mubr.msk.f32.mxu1 %vm6506_vm4, %v22462_v12 }
 0x66c   :  { %17399 = vmatmul.mubr.msk.f32.gmra.mrb[10].mxu1 %vm6506_vm4, %v22466_v38 }
 0x66d   :  { %17401 = vmatprep.mubr.msk.f32.mxu1 %vm6506_vm4, %v22470_v33 }
 0x670   :  { %17402 = vmatmul.mubr.msk.f32.gmra.mrb[12].mxu1 %vm6506_vm4, %v22474_v44 }
 0x671   :  { %17404 = vmatprep.mubr.msk.f32.mxu1 %vm6506_vm4, %v22478_v42 }
 0x674   :  { %17405 = vmatmul.mubr.msk.f32.gmra.mrb[14].mxu1 %vm6506_vm4, %v22482_v56 }
 0x675   :  { %17407 = vmatprep.mubr.msk.f32.mxu1 %vm6506_vm4, %v22486_v53 }
 0x678   :  { %17408 = vmatmul.mubr.msk.f32.gmra.mrb[16].mxu1 %vm6506_vm4, %v22490_v6 }
 0x679   :  { %17410 = vmatprep.mubr.msk.f32.mxu1 %vm6506_vm4, %v22494_v3 }
 0x67c   :  { %17411 = vmatmul.mubr.msk.f32.gmra.mrb[18].mxu1 %vm6506_vm4, %v22498_v5 }
 0x67d   :  { %17413 = vmatprep.mubr.msk.f32.mxu1 %vm6506_vm4, %v22502_v13 }
 0x680   :  { %17414 = vmatmul.mubr.msk.f32.gmra.mrb[20].mxu1 %vm6506_vm4, %v22506_v26 }
 0x681   :  { %17416 = vmatprep.mubr.msk.f32.mxu1 %vm6506_vm4, %v22510_v24 }
 0x684   :  { %17417 = vmatmul.mubr.msk.f32.gmra.mrb[22].mxu1 %vm6506_vm4, %v22514_v40 }
 0x685   :  { %17419 = vmatprep.mubr.msk.f32.mxu1 %vm6506_vm4, %v22518_v1 }
 0x688   :  { %17420 = vmatmul.mubr.msk.f32.gmra.mrb[24].mxu1 %vm6506_vm4, %v22522_v58 }
 0x689   :  { %17422 = vmatprep.mubr.msk.f32.mxu1 %vm6506_vm4, %v22526_v55 }
 0x68c   :  { %17423 = vmatmul.mubr.msk.f32.gmra.mrb[26].mxu1 %vm6506_vm4, %v22530_v11 }
 0x68d   :  { %17425 = vmatprep.mubr.msk.f32.mxu1 %vm6506_vm4, %v22534_v0 }
 0x690   :  { %17426 = vmatmul.mubr.msk.f32.gmra.mrb[28].mxu1 %vm6506_vm4, %v22538_v21 }
 0x691   :  { %17428 = vmatprep.mubr.msk.f32.mxu1 %vm6506_vm4, %v22542_v19 }
 0x694   :  { %17429 = vmatmul.mubr.msk.f32.gmra.mrb[30].mxu1 %vm6506_vm4, %v22546_v34 }
 0x695   :  { %17431 = vmatprep.mubr.msk.f32.mxu1 %vm6506_vm4, %v7237_v16  ;;  %v8491_v16 = vld [vmem:[#allocation3 + $0xa] sm:$0xff] }
 0x698   :  { %17432 = vmatmul.mubr.msk.f32.gmra.mrb[32].mxu1 %vm6506_vm4, %v7238_v59  ;;  %v22676_v59 = vld [vmem:[%s25031_s4 + $0x20] sm:$0xff] }
 0x699   :  { %17434 = vmatprep.mubr.msk.f32.mxu1 %vm6506_vm4, %v22552_v54 }
 0x69c   :  { %17435 = vmatmul.mubr.msk.f32.gmra.mrb[34].mxu1 %vm6506_vm4, %v22556_v49 }
 0x69d   :  { %17437 = vmatprep.mubr.msk.f32.mxu1 %vm6506_vm4, %v22560_v7 }
 0x6a0   :  { %17438 = vmatmul.mubr.msk.f32.gmra.mrb[36].mxu1 %vm6506_vm4, %v22564_v28 }
 0x6a1   :  { %17440 = vmatprep.mubr.msk.f32.mxu1 %vm6506_vm4, %v22568_v25 }
 0x6a4   :  { %17441 = vmatmul.mubr.msk.f32.gmra.mrb[38].mxu1 %vm6506_vm4, %v22572_v50 }
 0x6a5   :  { %17443 = vmatprep.mubr.msk.f32.mxu1 %vm6506_vm4, %v22576_v46 }
 0x6a8   :  { %17444 = vmatmul.mubr.msk.f32.gmra.mrb[40].mxu1 %vm6506_vm4, %v22580_v48 }
 0x6a9   :  { %17446 = vmatprep.mubr.msk.f32.mxu1 %vm6506_vm4, %v22584_v2 }
 0x6ac   :  { %17447 = vmatmul.mubr.msk.f32.gmra.mrb[42].mxu1 %vm6506_vm4, %v22588_v29 }
 0x6ad   :  { %17449 = vmatprep.mubr.msk.f32.mxu1 %vm6506_vm4, %v22592_v23 }
 0x6b0   :  { %17450 = vmatmul.mubr.msk.f32.gmra.mrb[44].mxu1 %vm6506_vm4, %v22596_v15 }
 0x6b1   :  { %17452 = vmatprep.mubr.msk.f32.mxu1 %vm6506_vm4, %v22600_v57 }
 0x6b4   :  { %17453 = vmatmul.mubr.msk.f32.gmra.mrb[46].mxu1 %vm6506_vm4, %v22604_v14 }
 0x6b5   :  { %17455 = vmatprep.mubr.msk.f32.mxu1 %vm6506_vm4, %v22608_v43 }
 0x6b8   :  { %17456 = vmatmul.mubr.msk.f32.gmra.mrb[48].mxu1 %vm6506_vm4, %v22612_v51 }
 0x6b9   :  { %17458 = vmatprep.mubr.msk.f32.mxu1 %vm6506_vm4, %v22616_v17 }
 0x6bc   :  { %17459 = vmatmul.mubr.msk.f32.gmra.mrb[50].mxu1 %vm6506_vm4, %v22620_v31 }
 0x6bd   :  { %17461 = vmatprep.mubr.msk.f32.mxu1 %vm6506_vm4, %v22624_v41 }
 0x6c0   :  { %17462 = vmatmul.mubr.msk.f32.gmra.mrb[52].mxu1 %vm6506_vm4, %v22628_v8 }
 0x6c1   :  { %17464 = vmatprep.mubr.msk.f32.mxu1 %vm6506_vm4, %v22632_v10 }
 0x6c4   :  { %17465 = vmatmul.mubr.msk.f32.gmra.mrb[54].mxu1 %vm6506_vm4, %v22636_v20 }
 0x6c5   :  { %17467 = vmatprep.mubr.msk.f32.mxu1 %vm6506_vm4, %v22640_v35 }
 0x6c8   :  { %17468 = vmatmul.mubr.msk.f32.gmra.mrb[56].mxu1 %vm6506_vm4, %v22644_v37 }
 0x6c9   :  { %17470 = vmatprep.mubr.msk.f32.mxu1 %vm6506_vm4, %v22648_v63 }
 0x6cc   :  { %17471 = vmatmul.mubr.msk.f32.gmra.mrb[58].mxu1 %vm6506_vm4, %v22652_v27 }
 0x6cd   :  { %17473 = vmatprep.mubr.msk.f32.mxu1 %vm6506_vm4, %v22656_v60 }
 0x6d0   :  { %17474 = vmatmul.mubr.msk.f32.gmra.mrb[60].mxu1 %vm6506_vm4, %v22660_v4  ;;  %v22679_v4 = vld [vmem:[#allocation3 + $0x1a] sm:$0xff] }
 0x6d1   :  { %17476 = vmatprep.mubr.msk.f32.mxu1 %vm6506_vm4, %v22664_v22  ;;  %25469 = vst [vmem:[#allocation53_spill] sm:$0xff] %v22679_v4  ;;  %v22797_v22 = vld [vmem:[#allocation3 + $0x172] sm:$0xff] }
 0x6d2   :  { %25498 = vst [vmem:[#allocation12_spill] sm:$0xff] %v22797_v22 }
 0x6d4   :  { %17477 = vmatmul.mubr.msk.f32.gmra.mrb[62].mxu1 %vm6506_vm4, %v22668_v47  ;;  %v22685_v47 = vld [vmem:[#allocation3 + $0x22] sm:$0xff] }
 0x6d5   :  { %17481 = vmatprep.mubr.msk.f32.mxu1 %vm6506_vm4, %v8490_v62  ;;  %25470 = vst [vmem:[#allocation54_spill] sm:$0xff] %v22685_v47  ;;  %v22689_v62 = vld [vmem:[#allocation3 + $0x32] sm:$0xff] }
 0x6d6   :  { %25471 = vst [vmem:[#allocation55_spill] sm:$0xff] %v22689_v62 }
 0x6d8   :  { %17482 = vmatmul.mubr.msk.f32.vlgmr.msra.gmra.mrb[0].mxu1 %vm6506_vm4, %v8491_v16  ;;  %v22693_v16 = vld [vmem:[#allocation3 + $0x3a] sm:$0xff] }
 0x6d9   :  { %17578 = vmatpush3.msra.mxu1 %v22425_v32  ;;  %17484 = vmatprep.mubr.msk.f32.mxu1 %vm6506_vm4, %v22679_v4  ;;  %25472 = vst [vmem:[#allocation56_spill] sm:$0xff] %v22693_v16  ;;  %v22697_v32 = vld [vmem:[#allocation3 + $0x4a] sm:$0xff]  ;;  %v22701_v4 = vld [vmem:[#allocation3 + $0x52] sm:$0xff] }
 0x6da   :  { %17675 = vmatprep.subr.mxu1 %v22676_v59  ;;  %25473 = vst [vmem:[#allocation57_spill] sm:$0xff] %v22697_v32  ;;  %25474 = vst [vmem:[#allocation58_spill] sm:$0xff] %v22701_v4 }
 0x6dc   :  { %17485 = vmatmul.mubr.msk.f32.gmra.mrb[2].mxu1 %vm6506_vm4, %v22685_v47  ;;  %v22705_v47 = vld [vmem:[#allocation3 + $0x62] sm:$0xff] }
 0x6dd   :  { %17487 = vmatprep.mubr.msk.f32.mxu1 %vm6506_vm4, %v22689_v62  ;;  %25475 = vst [vmem:[#allocation59_spill] sm:$0xff] %v22705_v47  ;;  %v22709_v62 = vld [vmem:[#allocation3 + $0x6a] sm:$0xff] }
 0x6de   :  { %25476 = vst [vmem:[#allocation60_spill] sm:$0xff] %v22709_v62 }
 0x6e0   :  { %17488 = vmatmul.mubr.msk.f32.gmra.mrb[4].mxu1 %vm6506_vm4, %v22693_v16  ;;  %v22713_v16 = vld [vmem:[#allocation3 + $0x7a] sm:$0xff] }
 0x6e1   :  { %17490 = vmatprep.mubr.msk.f32.mxu1 %vm6506_vm4, %v22697_v32  ;;  %25477 = vst [vmem:[#allocation61_spill] sm:$0xff] %v22713_v16  ;;  %v22717_v32 = vld [vmem:[#allocation3 + $0x82] sm:$0xff] }
 0x6e2   :  { %25478 = vst [vmem:[#allocation4_spill] sm:$0xff] %v22717_v32 }
 0x6e4   :  { %17491 = vmatmul.mubr.msk.f32.gmra.mrb[6].mxu1 %vm6506_vm4, %v22701_v4  ;;  %v22721_v4 = vld [vmem:[#allocation3 + $0x92] sm:$0xff] }
 0x6e5   :  { %17493 = vmatprep.mubr.msk.f32.mxu1 %vm6506_vm4, %v22705_v47  ;;  %25479 = vst [vmem:[#allocation5_spill] sm:$0xff] %v22721_v4  ;;  %v22725_v47 = vld [vmem:[#allocation3 + $0x9a] sm:$0xff] }
 0x6e6   :  { %25480 = vst [vmem:[#allocation6_spill] sm:$0xff] %v22725_v47 }
 0x6e8   :  { %17494 = vmatmul.mubr.msk.f32.gmra.mrb[8].mxu1 %vm6506_vm4, %v22709_v62  ;;  %v22729_v62 = vld [vmem:[#allocation3 + $0xaa] sm:$0xff] }
 0x6e9   :  { %17496 = vmatprep.mubr.msk.f32.mxu1 %vm6506_vm4, %v22713_v16  ;;  %25481 = vst [vmem:[#allocation7_spill] sm:$0xff] %v22729_v62  ;;  %v22733_v16 = vld [vmem:[#allocation3 + $0xb2] sm:$0xff] }
 0x6ea   :  { %25482 = vst [vmem:[#allocation62_spill] sm:$0xff] %v22733_v16 }
 0x6ec   :  { %17497 = vmatmul.mubr.msk.f32.gmra.mrb[10].mxu1 %vm6506_vm4, %v22717_v32  ;;  %v22737_v32 = vld [vmem:[#allocation3 + $0xc2] sm:$0xff] }
 0x6ed   :  { %17499 = vmatprep.mubr.msk.f32.mxu1 %vm6506_vm4, %v22721_v4  ;;  %25483 = vst [vmem:[#allocation63_spill] sm:$0xff] %v22737_v32  ;;  %v22741_v4 = vld [vmem:[#allocation3 + $0xca] sm:$0xff] }
 0x6ee   :  { %25484 = vst [vmem:[#allocation64_spill] sm:$0xff] %v22741_v4 }
 0x6f0   :  { %17500 = vmatmul.mubr.msk.f32.gmra.mrb[12].mxu1 %vm6506_vm4, %v22725_v47  ;;  %v22745_v47 = vld [vmem:[#allocation3 + $0xda] sm:$0xff] }
 0x6f1   :  { %17502 = vmatprep.mubr.msk.f32.mxu1 %vm6506_vm4, %v22729_v62  ;;  %25485 = vst [vmem:[#allocation65_spill] sm:$0xff] %v22745_v47  ;;  %v22749_v62 = vld [vmem:[#allocation3 + $0xe2] sm:$0xff] }
 0x6f2   :  { %25486 = vst [vmem:[#allocation66_spill] sm:$0xff] %v22749_v62 }
 0x6f4   :  { %17503 = vmatmul.mubr.msk.f32.gmra.mrb[14].mxu1 %vm6506_vm4, %v22733_v16  ;;  %v22753_v16 = vld [vmem:[#allocation3 + $0xf2] sm:$0xff] }
 0x6f5   :  { %17505 = vmatprep.mubr.msk.f32.mxu1 %vm6506_vm4, %v22737_v32  ;;  %25487 = vst [vmem:[#allocation67_spill] sm:$0xff] %v22753_v16  ;;  %v22757_v32 = vld [vmem:[#allocation3 + $0xfa] sm:$0xff] }
 0x6f6   :  { %25488 = vst [vmem:[#allocation68_spill] sm:$0xff] %v22757_v32 }
 0x6f8   :  { %17506 = vmatmul.mubr.msk.f32.gmra.mrb[16].mxu1 %vm6506_vm4, %v22741_v4  ;;  %v22761_v4 = vld [vmem:[#allocation3 + $0x10a] sm:$0xff] }
 0x6f9   :  { %17508 = vmatprep.mubr.msk.f32.mxu1 %vm6506_vm4, %v22745_v47  ;;  %25489 = vst [vmem:[#allocation69_spill] sm:$0xff] %v22761_v4  ;;  %v22765_v47 = vld [vmem:[#allocation3 + $0x112] sm:$0xff] }
 0x6fa   :  { %25490 = vst [vmem:[#allocation70_spill] sm:$0xff] %v22765_v47 }
 0x6fc   :  { %17509 = vmatmul.mubr.msk.f32.gmra.mrb[18].mxu1 %vm6506_vm4, %v22749_v62  ;;  %v22769_v62 = vld [vmem:[#allocation3 + $0x122] sm:$0xff] }
 0x6fd   :  { %17511 = vmatprep.mubr.msk.f32.mxu1 %vm6506_vm4, %v22753_v16  ;;  %25491 = vst [vmem:[#allocation71_spill] sm:$0xff] %v22769_v62  ;;  %v22773_v16 = vld [vmem:[#allocation3 + $0x12a] sm:$0xff] }
 0x6fe   :  { %25492 = vst [vmem:[#allocation72_spill] sm:$0xff] %v22773_v16 }
 0x700   :  { %17512 = vmatmul.mubr.msk.f32.gmra.mrb[20].mxu1 %vm6506_vm4, %v22757_v32  ;;  %v22777_v32 = vld [vmem:[#allocation3 + $0x13a] sm:$0xff] }
 0x701   :  { %17514 = vmatprep.mubr.msk.f32.mxu1 %vm6506_vm4, %v22761_v4  ;;  %25493 = vst [vmem:[#allocation8_spill] sm:$0xff] %v22777_v32  ;;  %v22781_v4 = vld [vmem:[#allocation3 + $0x142] sm:$0xff] }
 0x702   :  { %25494 = vst [vmem:[#allocation9_spill] sm:$0xff] %v22781_v4 }
 0x704   :  { %17515 = vmatmul.mubr.msk.f32.gmra.mrb[22].mxu1 %vm6506_vm4, %v22765_v47  ;;  %v22785_v47 = vld [vmem:[#allocation3 + $0x152] sm:$0xff] }
 0x705   :  { %17517 = vmatprep.mubr.msk.f32.mxu1 %vm6506_vm4, %v22769_v62  ;;  %25495 = vst [vmem:[#allocation11_spill] sm:$0xff] %v22785_v47  ;;  %v22789_v62 = vld [vmem:[#allocation3 + $0x15a] sm:$0xff] }
 0x706   :  { %25496 = vst [vmem:[#allocation10_spill] sm:$0xff] %v22789_v62 }
 0x708   :  { %17518 = vmatmul.mubr.msk.f32.gmra.mrb[24].mxu1 %vm6506_vm4, %v22773_v16  ;;  %v22793_v16 = vld [vmem:[#allocation3 + $0x16a] sm:$0xff] }
 0x709   :  { %17520 = vmatprep.mubr.msk.f32.mxu1 %vm6506_vm4, %v22777_v32  ;;  %25497 = vst [vmem:[#allocation13_spill] sm:$0xff] %v22793_v16  ;;  %v8522_v32 = vld [vmem:[#allocation3 + $0x1b2] sm:$0xff] }
 0x70c   :  { %17521 = vmatmul.mubr.msk.f32.gmra.mrb[26].mxu1 %vm6506_vm4, %v22781_v4  ;;  %v8523_v4 = vld [vmem:[#allocation3 + $0x1ba] sm:$0xff] }
 0x70d   :  { %17523 = vmatprep.mubr.msk.f32.mxu1 %vm6506_vm4, %v22785_v47  ;;  %v22803_v47 = vld [vmem:[#allocation3 + $0x1ca] sm:$0xff] }
 0x710   :  { %17524 = vmatmul.mubr.msk.f32.gmra.mrb[28].mxu1 %vm6506_vm4, %v22789_v62  ;;  %v22807_v62 = vld [vmem:[#allocation3 + $0x1d2] sm:$0xff] }
 0x711   :  { %17526 = vmatprep.mubr.msk.f32.mxu1 %vm6506_vm4, %v22793_v16  ;;  %25499 = vst [vmem:[#allocation15_spill] sm:$0xff] %v22807_v62  ;;  %v22811_v16 = vld [vmem:[#allocation3 + $0x1e2] sm:$0xff] }
 0x712   :  { %25500 = vst [vmem:[#allocation14_spill] sm:$0xff] %v22811_v16 }
 0x714   :  { %17527 = vmatmul.mubr.msk.f32.gmra.mrb[30].mxu1 %vm6506_vm4, %v22797_v22  ;;  %v22815_v22 = vld [vmem:[#allocation3 + $0x1ea] sm:$0xff] }
 0x715   :  { %17529 = vmatprep.mubr.msk.f32.mxu1 %vm6506_vm4, %v8522_v32  ;;  %25501 = vst [vmem:[#allocation17_spill] sm:$0xff] %v22815_v22  ;;  %v22823_v32 = vld [vmem:[#allocation3 + $0x202] sm:$0xff] }
 0x716   :  { %25503 = vst [vmem:[#allocation19_spill] sm:$0xff] %v22823_v32 }
 0x718   :  { %17530 = vmatmul.mubr.msk.f32.gmra.mrb[32].mxu1 %vm6506_vm4, %v8523_v4  ;;  %v22819_v4 = vld [vmem:[#allocation3 + $0x1fa] sm:$0xff] }
 0x719   :  { %17532 = vmatprep.mubr.msk.f32.mxu1 %vm6506_vm4, %v22803_v47  ;;  %25502 = vst [vmem:[#allocation16_spill] sm:$0xff] %v22819_v4 }
 0x71c   :  { %17533 = vmatmul.mubr.msk.f32.gmra.mrb[34].mxu1 %vm6506_vm4, %v22807_v62  ;;  %v22827_v62 = vld [vmem:[#allocation3 + $0x212] sm:$0xff] }
 0x71d   :  { %17535 = vmatprep.mubr.msk.f32.mxu1 %vm6506_vm4, %v22811_v16  ;;  %25504 = vst [vmem:[#allocation18_spill] sm:$0xff] %v22827_v62  ;;  %v22831_v16 = vld [vmem:[#allocation3 + $0x21a] sm:$0xff] }
 0x71e   :  { %25505 = vst [vmem:[#allocation21_spill] sm:$0xff] %v22831_v16 }
 0x720   :  { %17536 = vmatmul.mubr.msk.f32.gmra.mrb[36].mxu1 %vm6506_vm4, %v22815_v22  ;;  %v22835_v22 = vld [vmem:[#allocation3 + $0x22a] sm:$0xff] }
 0x721   :  { %17538 = vmatprep.mubr.msk.f32.mxu1 %vm6506_vm4, %v22819_v4  ;;  %25506 = vst [vmem:[#allocation20_spill] sm:$0xff] %v22835_v22  ;;  %v22839_v4 = vld [vmem:[#allocation3 + $0x232] sm:$0xff] }
 0x722   :  { %25507 = vst [vmem:[#allocation23_spill] sm:$0xff] %v22839_v4 }
 0x724   :  { %17539 = vmatmul.mubr.msk.f32.gmra.mrb[38].mxu1 %vm6506_vm4, %v22823_v32  ;;  %v22843_v32 = vld [vmem:[#allocation3 + $0x242] sm:$0xff] }
 0x725   :  { %17541 = vmatprep.mubr.msk.f32.mxu1 %vm6506_vm4, %v22827_v62  ;;  %25508 = vst [vmem:[#allocation22_spill] sm:$0xff] %v22843_v32  ;;  %v22847_v62 = vld [vmem:[#allocation3 + $0x24a] sm:$0xff] }
 0x726   :  { %25509 = vst [vmem:[#allocation25_spill] sm:$0xff] %v22847_v62 }
 0x728   :  { %17542 = vmatmul.mubr.msk.f32.gmra.mrb[40].mxu1 %vm6506_vm4, %v22831_v16  ;;  %v22851_v16 = vld [vmem:[#allocation3 + $0x25a] sm:$0xff] }
 0x729   :  { %17544 = vmatprep.mubr.msk.f32.mxu1 %vm6506_vm4, %v22835_v22  ;;  %25510 = vst [vmem:[#allocation24_spill] sm:$0xff] %v22851_v16  ;;  %v22855_v22 = vld [vmem:[#allocation3 + $0x262] sm:$0xff] }
 0x72a   :  { %25511 = vst [vmem:[#allocation27_spill] sm:$0xff] %v22855_v22 }
 0x72c   :  { %17545 = vmatmul.mubr.msk.f32.gmra.mrb[42].mxu1 %vm6506_vm4, %v22839_v4  ;;  %v22859_v4 = vld [vmem:[#allocation3 + $0x272] sm:$0xff] }
 0x72d   :  { %17547 = vmatprep.mubr.msk.f32.mxu1 %vm6506_vm4, %v22843_v32  ;;  %25512 = vst [vmem:[#allocation26_spill] sm:$0xff] %v22859_v4  ;;  %v22863_v32 = vld [vmem:[#allocation3 + $0x27a] sm:$0xff] }
 0x72e   :  { %25513 = vst [vmem:[#allocation29_spill] sm:$0xff] %v22863_v32 }
 0x730   :  { %17548 = vmatmul.mubr.msk.f32.gmra.mrb[44].mxu1 %vm6506_vm4, %v22847_v62  ;;  %v22867_v62 = vld [vmem:[#allocation3 + $0x28a] sm:$0xff] }
 0x731   :  { %17550 = vmatprep.mubr.msk.f32.mxu1 %vm6506_vm4, %v22851_v16  ;;  %25514 = vst [vmem:[#allocation28_spill] sm:$0xff] %v22867_v62  ;;  %v22871_v16 = vld [vmem:[#allocation3 + $0x292] sm:$0xff] }
 0x732   :  { %25515 = vst [vmem:[#allocation31_spill] sm:$0xff] %v22871_v16 }
 0x734   :  { %17551 = vmatmul.mubr.msk.f32.gmra.mrb[46].mxu1 %vm6506_vm4, %v22855_v22  ;;  %v22875_v22 = vld [vmem:[#allocation3 + $0x2a2] sm:$0xff] }
 0x735   :  { %17553 = vmatprep.mubr.msk.f32.mxu1 %vm6506_vm4, %v22859_v4  ;;  %25516 = vst [vmem:[#allocation30_spill] sm:$0xff] %v22875_v22  ;;  %v22879_v4 = vld [vmem:[#allocation3 + $0x2aa] sm:$0xff] }
 0x736   :  { %25517 = vst [vmem:[#allocation32_spill] sm:$0xff] %v22879_v4 }
 0x738   :  { %17554 = vmatmul.mubr.msk.f32.gmra.mrb[48].mxu1 %vm6506_vm4, %v22863_v32  ;;  %v22883_v32 = vld [vmem:[#allocation3 + $0x2ba] sm:$0xff] }
 0x739   :  { %17556 = vmatprep.mubr.msk.f32.mxu1 %vm6506_vm4, %v22867_v62  ;;  %25518 = vst [vmem:[#allocation34_spill] sm:$0xff] %v22883_v32  ;;  %v22887_v62 = vld [vmem:[#allocation3 + $0x2c2] sm:$0xff] }
 0x73a   :  { %25519 = vst [vmem:[#allocation35_spill] sm:$0xff] %v22887_v62 }
 0x73c   :  { %17557 = vmatmul.mubr.msk.f32.gmra.mrb[50].mxu1 %vm6506_vm4, %v22871_v16  ;;  %v22891_v16 = vld [vmem:[#allocation3 + $0x2d2] sm:$0xff] }
 0x73d   :  { %17559 = vmatprep.mubr.msk.f32.mxu1 %vm6506_vm4, %v22875_v22  ;;  %25520 = vst [vmem:[#allocation36_spill] sm:$0xff] %v22891_v16  ;;  %v22895_v22 = vld [vmem:[#allocation3 + $0x2da] sm:$0xff] }
 0x73e   :  { %25521 = vst [vmem:[#allocation37_spill] sm:$0xff] %v22895_v22 }
 0x740   :  { %17560 = vmatmul.mubr.msk.f32.gmra.mrb[52].mxu1 %vm6506_vm4, %v22879_v4  ;;  %v22899_v4 = vld [vmem:[#allocation3 + $0x2ea] sm:$0xff] }
 0x741   :  { %17562 = vmatprep.mubr.msk.f32.mxu1 %vm6506_vm4, %v22883_v32  ;;  %25522 = vst [vmem:[#allocation38_spill] sm:$0xff] %v22899_v4  ;;  %v22903_v32 = vld [vmem:[#allocation3 + $0x2f2] sm:$0xff] }
 0x744   :  { %17563 = vmatmul.mubr.msk.f32.gmra.mrb[54].mxu1 %vm6506_vm4, %v22887_v62  ;;  %v22907_v62 = vld [vmem:[#allocation3 + $0x302] sm:$0xff] }
 0x745   :  { %17565 = vmatprep.mubr.msk.f32.mxu1 %vm6506_vm4, %v22891_v16  ;;  %25523 = vst [vmem:[#allocation39_spill] sm:$0xff] %v22907_v62  ;;  %v22911_v16 = vld [vmem:[#allocation3 + $0x30a] sm:$0xff] }
 0x748   :  { %17566 = vmatmul.mubr.msk.f32.gmra.mrb[56].mxu1 %vm6506_vm4, %v22895_v22  ;;  %v22915_v22 = vld [vmem:[#allocation3 + $0x31a] sm:$0xff] }
 0x749   :  { %17568 = vmatprep.mubr.msk.f32.mxu1 %vm6506_vm4, %v22899_v4  ;;  %v22919_v4 = vld [vmem:[#allocation3 + $0x322] sm:$0xff] }
 0x74c   :  { %17569 = vmatmul.mubr.msk.f32.gmra.mrb[58].mxu1 %vm6506_vm4, %v22903_v32 }
 0x74d   :  { %17571 = vmatprep.mubr.msk.f32.mxu1 %vm6506_vm4, %v22907_v62  ;;  %v22928_v62 = vld [vmem:[%s25031_s4 + $0x28] sm:$0xff] }
 0x750   :  { %17572 = vmatmul.mubr.msk.f32.gmra.mrb[60].mxu1 %vm6506_vm4, %v22911_v16 }
 0x751   :  { %17574 = vmatprep.mubr.msk.f32.mxu1 %vm6506_vm4, %v22915_v22 }
 0x754   :  { %17575 = vmatmul.mubr.msk.f32.gmra.mrb[62].mxu1 %vm6506_vm4, %v22919_v4 }
 0x755   :  { %17579 = vmatprep.mubr.msk.f32.mxu1 %vm6506_vm4, %v22428_v36  ;;  %v22990_v36 = vld [vmem:[#allocation3 + $0x180] sm:$0xff] }
 0x758   :  { %17580 = vmatmul.mubr.msk.f32.vlgmr.msra.gmra.mrb[0].mxu1 %vm6506_vm4, %v22434_v52  ;;  %v22994_v52 = vld [vmem:[#allocation3 + $0x188] sm:$0xff] }
 0x759   :  { %17676 = vmatpush3.msra.mxu1 %v22676_v59  ;;  %17582 = vmatprep.mubr.msk.f32.mxu1 %vm6506_vm4, %v22438_v39  ;;  %v25524_v39 = vld [vmem:[#allocation50_spill] sm:$0xff] }
 0x75a   :  { %17773 = vmatprep.subr.mxu1 %v22928_v62  ;;  %v23257_v59 = vld [vmem:[#allocation3 + $0x291] sm:$0xff] }
 0x75c   :  { %17583 = vmatmul.mubr.msk.f32.gmra.mrb[2].mxu1 %vm6506_vm4, %v22442_v9  ;;  %v25525_v9 = vld [vmem:[#allocation51_spill] sm:$0xff] }
 0x75d   :  { %17585 = vmatprep.mubr.msk.f32.mxu1 %vm6506_vm4, %v22446_v30  ;;  %v25526_v30 = vld [vmem:[#allocation52_spill] sm:$0xff] }
 0x760   :  { %17586 = vmatmul.mubr.msk.f32.gmra.mrb[4].mxu1 %vm6506_vm4, %v22450_v18  ;;  %v23058_v18 = vld [vmem:[#allocation3 + $0x330] sm:$0xff] }
 0x761   :  { %17588 = vmatprep.mubr.msk.f32.mxu1 %vm6506_vm4, %v22454_v61  ;;  %v23062_v61 = vld [vmem:[#allocation3 + $0x338] sm:$0xff] }
 0x764   :  { %17589 = vmatmul.mubr.msk.f32.gmra.mrb[6].mxu1 %vm6506_vm4, %v22458_v45  ;;  %v9904_v45 = vld [vmem:[#allocation3 + $0x19] sm:$0xff] }
 0x765   :  { %17591 = vmatprep.mubr.msk.f32.mxu1 %vm6506_vm4, %v22462_v12  ;;  %v9905_v12 = vld [vmem:[#allocation3 + $0x21] sm:$0xff] }
 0x768   :  { %17592 = vmatmul.mubr.msk.f32.gmra.mrb[8].mxu1 %vm6506_vm4, %v22466_v38  ;;  %v23070_v38 = vld [vmem:[%s25031_s4 + $0x30] sm:$0xff] }
 0x769   :  { %17594 = vmatprep.mubr.msk.f32.mxu1 %vm6506_vm4, %v22470_v33  ;;  %v23073_v33 = vld [vmem:[#allocation3 + $0x31] sm:$0xff] }
 0x76c   :  { %17595 = vmatmul.mubr.msk.f32.gmra.mrb[10].mxu1 %vm6506_vm4, %v22474_v44  ;;  %v23079_v44 = vld [vmem:[#allocation3 + $0x39] sm:$0xff] }
 0x76d   :  { %17597 = vmatprep.mubr.msk.f32.mxu1 %vm6506_vm4, %v22478_v42  ;;  %v23083_v42 = vld [vmem:[#allocation3 + $0x49] sm:$0xff] }
 0x770   :  { %17598 = vmatmul.mubr.msk.f32.gmra.mrb[12].mxu1 %vm6506_vm4, %v22482_v56  ;;  %v23087_v56 = vld [vmem:[#allocation3 + $0x51] sm:$0xff] }
 0x771   :  { %17600 = vmatprep.mubr.msk.f32.mxu1 %vm6506_vm4, %v22486_v53  ;;  %v23091_v53 = vld [vmem:[#allocation3 + $0x61] sm:$0xff] }
 0x774   :  { %17601 = vmatmul.mubr.msk.f32.gmra.mrb[14].mxu1 %vm6506_vm4, %v22490_v6  ;;  %v23095_v6 = vld [vmem:[#allocation3 + $0x69] sm:$0xff] }
 0x775   :  { %17603 = vmatprep.mubr.msk.f32.mxu1 %vm6506_vm4, %v22494_v3  ;;  %v23099_v3 = vld [vmem:[#allocation3 + $0x79] sm:$0xff] }
 0x778   :  { %17604 = vmatmul.mubr.msk.f32.gmra.mrb[16].mxu1 %vm6506_vm4, %v22498_v5  ;;  %v23103_v5 = vld [vmem:[#allocation3 + $0x81] sm:$0xff] }
 0x779   :  { %17606 = vmatprep.mubr.msk.f32.mxu1 %vm6506_vm4, %v22502_v13  ;;  %v23107_v13 = vld [vmem:[#allocation3 + $0x91] sm:$0xff] }
 0x77c   :  { %17607 = vmatmul.mubr.msk.f32.gmra.mrb[18].mxu1 %vm6506_vm4, %v22506_v26  ;;  %v23111_v26 = vld [vmem:[#allocation3 + $0x99] sm:$0xff] }
 0x77d   :  { %17609 = vmatprep.mubr.msk.f32.mxu1 %vm6506_vm4, %v22510_v24  ;;  %v23115_v24 = vld [vmem:[#allocation3 + $0xa9] sm:$0xff] }
 0x780   :  { %17610 = vmatmul.mubr.msk.f32.gmra.mrb[20].mxu1 %vm6506_vm4, %v22514_v40  ;;  %v23119_v40 = vld [vmem:[#allocation3 + $0xb1] sm:$0xff] }
 0x781   :  { %17612 = vmatprep.mubr.msk.f32.mxu1 %vm6506_vm4, %v22518_v1  ;;  %v23123_v1 = vld [vmem:[#allocation3 + $0xc1] sm:$0xff] }
 0x784   :  { %17613 = vmatmul.mubr.msk.f32.gmra.mrb[22].mxu1 %vm6506_vm4, %v22522_v58  ;;  %v23127_v58 = vld [vmem:[#allocation3 + $0xc9] sm:$0xff] }
 0x785   :  { %17615 = vmatprep.mubr.msk.f32.mxu1 %vm6506_vm4, %v22526_v55  ;;  %v23131_v55 = vld [vmem:[#allocation3 + $0xd9] sm:$0xff] }
 0x788   :  { %17616 = vmatmul.mubr.msk.f32.gmra.mrb[24].mxu1 %vm6506_vm4, %v22530_v11  ;;  %v23135_v11 = vld [vmem:[#allocation3 + $0xe1] sm:$0xff] }
 0x789   :  { %17618 = vmatprep.mubr.msk.f32.mxu1 %vm6506_vm4, %v22534_v0  ;;  %v23139_v0 = vld [vmem:[#allocation3 + $0xf1] sm:$0xff] }
 0x78c   :  { %17619 = vmatmul.mubr.msk.f32.gmra.mrb[26].mxu1 %vm6506_vm4, %v22538_v21  ;;  %v23143_v21 = vld [vmem:[#allocation3 + $0xf9] sm:$0xff] }
 0x78d   :  { %17621 = vmatprep.mubr.msk.f32.mxu1 %vm6506_vm4, %v22542_v19  ;;  %v23147_v19 = vld [vmem:[#allocation3 + $0x109] sm:$0xff] }
 0x790   :  { %17622 = vmatmul.mubr.msk.f32.gmra.mrb[28].mxu1 %vm6506_vm4, %v22546_v34  ;;  %v23151_v34 = vld [vmem:[#allocation3 + $0x111] sm:$0xff] }
 0x791   :  { %17624 = vmatprep.mubr.msk.f32.mxu1 %vm6506_vm4, %v22990_v36 }
 0x794   :  { %17625 = vmatmul.mubr.msk.f32.gmra.mrb[30].mxu1 %vm6506_vm4, %v22994_v52 }
 0x795   :  { %17627 = vmatprep.mubr.msk.f32.mxu1 %vm6506_vm4, %v22552_v54  ;;  %v23155_v54 = vld [vmem:[#allocation3 + $0x121] sm:$0xff] }
 0x798   :  { %17628 = vmatmul.mubr.msk.f32.gmra.mrb[32].mxu1 %vm6506_vm4, %v22556_v49  ;;  %v23159_v49 = vld [vmem:[#allocation3 + $0x129] sm:$0xff] }
 0x799   :  { %17630 = vmatprep.mubr.msk.f32.mxu1 %vm6506_vm4, %v22560_v7  ;;  %v23163_v7 = vld [vmem:[#allocation3 + $0x139] sm:$0xff] }
 0x79c   :  { %17631 = vmatmul.mubr.msk.f32.gmra.mrb[34].mxu1 %vm6506_vm4, %v22564_v28  ;;  %v23167_v28 = vld [vmem:[#allocation3 + $0x141] sm:$0xff] }
 0x79d   :  { %17633 = vmatprep.mubr.msk.f32.mxu1 %vm6506_vm4, %v22568_v25  ;;  %v23171_v25 = vld [vmem:[#allocation3 + $0x151] sm:$0xff] }
 0x7a0   :  { %17634 = vmatmul.mubr.msk.f32.gmra.mrb[36].mxu1 %vm6506_vm4, %v22572_v50  ;;  %v23175_v50 = vld [vmem:[#allocation3 + $0x159] sm:$0xff] }
 0x7a1   :  { %17636 = vmatprep.mubr.msk.f32.mxu1 %vm6506_vm4, %v22576_v46  ;;  %v23179_v46 = vld [vmem:[#allocation3 + $0x169] sm:$0xff] }
 0x7a4   :  { %17637 = vmatmul.mubr.msk.f32.gmra.mrb[38].mxu1 %vm6506_vm4, %v22580_v48  ;;  %v23183_v48 = vld [vmem:[#allocation3 + $0x171] sm:$0xff] }
 0x7a5   :  { %17639 = vmatprep.mubr.msk.f32.mxu1 %vm6506_vm4, %v22584_v2  ;;  %v23187_v2 = vld [vmem:[#allocation3 + $0x181] sm:$0xff] }
 0x7a8   :  { %17640 = vmatmul.mubr.msk.f32.gmra.mrb[40].mxu1 %vm6506_vm4, %v22588_v29  ;;  %v23191_v29 = vld [vmem:[#allocation3 + $0x189] sm:$0xff] }
 0x7a9   :  { %17642 = vmatprep.mubr.msk.f32.mxu1 %vm6506_vm4, %v22592_v23  ;;  %v9936_v23 = vld [vmem:[#allocation3 + $0x1c9] sm:$0xff] }
 0x7ac   :  { %17643 = vmatmul.mubr.msk.f32.gmra.mrb[42].mxu1 %vm6506_vm4, %v22596_v15  ;;  %v9937_v15 = vld [vmem:[#allocation3 + $0x1d1] sm:$0xff] }
 0x7ad   :  { %17645 = vmatprep.mubr.msk.f32.mxu1 %vm6506_vm4, %v22600_v57  ;;  %v23197_v57 = vld [vmem:[#allocation3 + $0x1e1] sm:$0xff] }
 0x7b0   :  { %17646 = vmatmul.mubr.msk.f32.gmra.mrb[44].mxu1 %vm6506_vm4, %v22604_v14  ;;  %v23201_v14 = vld [vmem:[#allocation3 + $0x1e9] sm:$0xff] }
 0x7b1   :  { %17648 = vmatprep.mubr.msk.f32.mxu1 %vm6506_vm4, %v22608_v43  ;;  %v23205_v43 = vld [vmem:[#allocation3 + $0x1f9] sm:$0xff] }
 0x7b4   :  { %17649 = vmatmul.mubr.msk.f32.gmra.mrb[46].mxu1 %vm6506_vm4, %v22612_v51  ;;  %v23209_v51 = vld [vmem:[#allocation3 + $0x201] sm:$0xff] }
 0x7b5   :  { %17651 = vmatprep.mubr.msk.f32.mxu1 %vm6506_vm4, %v22616_v17  ;;  %v23213_v17 = vld [vmem:[#allocation3 + $0x211] sm:$0xff] }
 0x7b8   :  { %17652 = vmatmul.mubr.msk.f32.gmra.mrb[48].mxu1 %vm6506_vm4, %v22620_v31  ;;  %v23217_v31 = vld [vmem:[#allocation3 + $0x219] sm:$0xff] }
 0x7b9   :  { %17654 = vmatprep.mubr.msk.f32.mxu1 %vm6506_vm4, %v22624_v41  ;;  %v23221_v41 = vld [vmem:[#allocation3 + $0x229] sm:$0xff] }
 0x7bc   :  { %17655 = vmatmul.mubr.msk.f32.gmra.mrb[50].mxu1 %vm6506_vm4, %v22628_v8  ;;  %v23225_v8 = vld [vmem:[#allocation3 + $0x231] sm:$0xff] }
 0x7bd   :  { %17657 = vmatprep.mubr.msk.f32.mxu1 %vm6506_vm4, %v22632_v10  ;;  %v23229_v10 = vld [vmem:[#allocation3 + $0x241] sm:$0xff] }
 0x7c0   :  { %17658 = vmatmul.mubr.msk.f32.gmra.mrb[52].mxu1 %vm6506_vm4, %v22636_v20  ;;  %v23233_v20 = vld [vmem:[#allocation3 + $0x249] sm:$0xff] }
 0x7c1   :  { %17660 = vmatprep.mubr.msk.f32.mxu1 %vm6506_vm4, %v22640_v35  ;;  %v23237_v35 = vld [vmem:[#allocation3 + $0x259] sm:$0xff] }
 0x7c4   :  { %17661 = vmatmul.mubr.msk.f32.gmra.mrb[54].mxu1 %vm6506_vm4, %v22644_v37  ;;  %v23241_v37 = vld [vmem:[#allocation3 + $0x261] sm:$0xff] }
 0x7c5   :  { %17663 = vmatprep.mubr.msk.f32.mxu1 %vm6506_vm4, %v22648_v63  ;;  %v23245_v63 = vld [vmem:[#allocation3 + $0x271] sm:$0xff] }
 0x7c8   :  { %17664 = vmatmul.mubr.msk.f32.gmra.mrb[56].mxu1 %vm6506_vm4, %v22652_v27  ;;  %v23249_v27 = vld [vmem:[#allocation3 + $0x279] sm:$0xff] }
 0x7c9   :  { %17666 = vmatprep.mubr.msk.f32.mxu1 %vm6506_vm4, %v22656_v60  ;;  %v23253_v60 = vld [vmem:[#allocation3 + $0x289] sm:$0xff] }
 0x7cc   :  { %17667 = vmatmul.mubr.msk.f32.gmra.mrb[58].mxu1 %vm6506_vm4, %v25524_v39  ;;  %v23265_v39 = vld [vmem:[#allocation3 + $0x2a9] sm:$0xff] }
 0x7cd   :  { %17669 = vmatprep.mubr.msk.f32.mxu1 %vm6506_vm4, %v25525_v9  ;;  %25528 = vst [vmem:[#allocation41_spill] sm:$0xff] %v23265_v39  ;;  %v23269_v9 = vld [vmem:[#allocation3 + $0x2b9] sm:$0xff] }
 0x7ce   :  { %25529 = vst [vmem:[#allocation42_spill] sm:$0xff] %v23269_v9 }
 0x7d0   :  { %17670 = vmatmul.mubr.msk.f32.gmra.mrb[60].mxu1 %vm6506_vm4, %v25526_v30  ;;  %v23273_v30 = vld [vmem:[#allocation3 + $0x2c1] sm:$0xff] }
 0x7d1   :  { %17672 = vmatprep.mubr.msk.f32.mxu1 %vm6506_vm4, %v23058_v18  ;;  %25530 = vst [vmem:[#allocation43_spill] sm:$0xff] %v23273_v30 }
 0x7d4   :  { %17673 = vmatmul.mubr.msk.f32.gmra.mrb[62].mxu1 %vm6506_vm4, %v23062_v61 }
 0x7d5   :  { %17677 = vmatprep.mubr.msk.f32.mxu1 %vm6506_vm4, %v9904_v45  ;;  %v23277_v45 = vld [vmem:[#allocation3 + $0x2d1] sm:$0xff] }
 0x7d6   :  { %25531 = vst [vmem:[#allocation44_spill] sm:$0xff] %v23277_v45 }
 0x7d8   :  { %17678 = vmatmul.mubr.msk.f32.vlgmr.msra.gmra.mrb[0].mxu1 %vm6506_vm4, %v9905_v12  ;;  %v23281_v12 = vld [vmem:[#allocation3 + $0x2d9] sm:$0xff] }
 0x7d9   :  { %17774 = vmatpush3.msra.mxu1 %v22928_v62  ;;  %17680 = vmatprep.mubr.msk.f32.mxu1 %vm6506_vm4, %v23073_v33  ;;  %v23261_v62 = vld [vmem:[#allocation3 + $0x2a1] sm:$0xff]  ;;  %25532 = vst [vmem:[#allocation45_spill] sm:$0xff] %v23281_v12 }
 0x7da   :  { %17871 = vmatprep.subr.mxu1 %v23070_v38  ;;  %25527 = vst [vmem:[#allocation40_spill] sm:$0xff] %v23261_v62 }
 0x7dc   :  { %17681 = vmatmul.mubr.msk.f32.gmra.mrb[2].mxu1 %vm6506_vm4, %v23079_v44 }
 0x7dd   :  { %17683 = vmatprep.mubr.msk.f32.mxu1 %vm6506_vm4, %v23083_v42 }
 0x7e0   :  { %17684 = vmatmul.mubr.msk.f32.gmra.mrb[4].mxu1 %vm6506_vm4, %v23087_v56 }
 0x7e1   :  { %17686 = vmatprep.mubr.msk.f32.mxu1 %vm6506_vm4, %v23091_v53 }
 0x7e4   :  { %17687 = vmatmul.mubr.msk.f32.gmra.mrb[6].mxu1 %vm6506_vm4, %v23095_v6 }
 0x7e5   :  { %17689 = vmatprep.mubr.msk.f32.mxu1 %vm6506_vm4, %v23099_v3 }
 0x7e8   :  { %17690 = vmatmul.mubr.msk.f32.gmra.mrb[8].mxu1 %vm6506_vm4, %v23103_v5 }
 0x7e9   :  { %17692 = vmatprep.mubr.msk.f32.mxu1 %vm6506_vm4, %v23107_v13 }
 0x7ec   :  { %17693 = vmatmul.mubr.msk.f32.gmra.mrb[10].mxu1 %vm6506_vm4, %v23111_v26 }
 0x7ed   :  { %17695 = vmatprep.mubr.msk.f32.mxu1 %vm6506_vm4, %v23115_v24 }
 0x7f0   :  { %17696 = vmatmul.mubr.msk.f32.gmra.mrb[12].mxu1 %vm6506_vm4, %v23119_v40 }
 0x7f1   :  { %17698 = vmatprep.mubr.msk.f32.mxu1 %vm6506_vm4, %v23123_v1 }
 0x7f4   :  { %17699 = vmatmul.mubr.msk.f32.gmra.mrb[14].mxu1 %vm6506_vm4, %v23127_v58 }
 0x7f5   :  { %17701 = vmatprep.mubr.msk.f32.mxu1 %vm6506_vm4, %v23131_v55 }
 0x7f8   :  { %17702 = vmatmul.mubr.msk.f32.gmra.mrb[16].mxu1 %vm6506_vm4, %v23135_v11 }
 0x7f9   :  { %17704 = vmatprep.mubr.msk.f32.mxu1 %vm6506_vm4, %v23139_v0 }
 0x7fc   :  { %17705 = vmatmul.mubr.msk.f32.gmra.mrb[18].mxu1 %vm6506_vm4, %v23143_v21 }
 0x7fd   :  { %17707 = vmatprep.mubr.msk.f32.mxu1 %vm6506_vm4, %v23147_v19 }
 0x800   :  { %17708 = vmatmul.mubr.msk.f32.gmra.mrb[20].mxu1 %vm6506_vm4, %v23151_v34 }
 0x801   :  { %17710 = vmatprep.mubr.msk.f32.mxu1 %vm6506_vm4, %v23155_v54 }
 0x804   :  { %17711 = vmatmul.mubr.msk.f32.gmra.mrb[22].mxu1 %vm6506_vm4, %v23159_v49 }
 0x805   :  { %17713 = vmatprep.mubr.msk.f32.mxu1 %vm6506_vm4, %v23163_v7 }
 0x808   :  { %17714 = vmatmul.mubr.msk.f32.gmra.mrb[24].mxu1 %vm6506_vm4, %v23167_v28 }
 0x809   :  { %17716 = vmatprep.mubr.msk.f32.mxu1 %vm6506_vm4, %v23171_v25 }
 0x80c   :  { %17717 = vmatmul.mubr.msk.f32.gmra.mrb[26].mxu1 %vm6506_vm4, %v23175_v50 }
 0x80d   :  { %17719 = vmatprep.mubr.msk.f32.mxu1 %vm6506_vm4, %v23179_v46 }
 0x810   :  { %17720 = vmatmul.mubr.msk.f32.gmra.mrb[28].mxu1 %vm6506_vm4, %v23183_v48 }
 0x811   :  { %17722 = vmatprep.mubr.msk.f32.mxu1 %vm6506_vm4, %v23187_v2 }
 0x814   :  { %17723 = vmatmul.mubr.msk.f32.gmra.mrb[30].mxu1 %vm6506_vm4, %v23191_v29 }
 0x815   :  { %17725 = vmatprep.mubr.msk.f32.mxu1 %vm6506_vm4, %v9936_v23  ;;  %v23285_v23 = vld [vmem:[#allocation3 + $0x2e9] sm:$0xff] }
 0x816   :  { %25533 = vst [vmem:[#allocation46_spill] sm:$0xff] %v23285_v23 }
 0x818   :  { %17726 = vmatmul.mubr.msk.f32.gmra.mrb[32].mxu1 %vm6506_vm4, %v9937_v15  ;;  %v23289_v15 = vld [vmem:[#allocation3 + $0x2f1] sm:$0xff] }
 0x819   :  { %17728 = vmatprep.mubr.msk.f32.mxu1 %vm6506_vm4, %v23197_v57  ;;  %25534 = vst [vmem:[#allocation47_spill] sm:$0xff] %v23289_v15 }
 0x81c   :  { %17729 = vmatmul.mubr.msk.f32.gmra.mrb[34].mxu1 %vm6506_vm4, %v23201_v14 }
 0x81d   :  { %17731 = vmatprep.mubr.msk.f32.mxu1 %vm6506_vm4, %v23205_v43 }
 0x820   :  { %17732 = vmatmul.mubr.msk.f32.gmra.mrb[36].mxu1 %vm6506_vm4, %v23209_v51 }
 0x821   :  { %17734 = vmatprep.mubr.msk.f32.mxu1 %vm6506_vm4, %v23213_v17 }
 0x824   :  { %17735 = vmatmul.mubr.msk.f32.gmra.mrb[38].mxu1 %vm6506_vm4, %v23217_v31 }
 0x825   :  { %17737 = vmatprep.mubr.msk.f32.mxu1 %vm6506_vm4, %v23221_v41 }
 0x828   :  { %17738 = vmatmul.mubr.msk.f32.gmra.mrb[40].mxu1 %vm6506_vm4, %v23225_v8 }
 0x829   :  { %17740 = vmatprep.mubr.msk.f32.mxu1 %vm6506_vm4, %v23229_v10 }
 0x82c   :  { %17741 = vmatmul.mubr.msk.f32.gmra.mrb[42].mxu1 %vm6506_vm4, %v23233_v20 }
 0x82d   :  { %17743 = vmatprep.mubr.msk.f32.mxu1 %vm6506_vm4, %v23237_v35 }
 0x830   :  { %17744 = vmatmul.mubr.msk.f32.gmra.mrb[44].mxu1 %vm6506_vm4, %v23241_v37 }
 0x831   :  { %17746 = vmatprep.mubr.msk.f32.mxu1 %vm6506_vm4, %v23245_v63 }
 0x834   :  { %17747 = vmatmul.mubr.msk.f32.gmra.mrb[46].mxu1 %vm6506_vm4, %v23249_v27 }
 0x835   :  { %17749 = vmatprep.mubr.msk.f32.mxu1 %vm6506_vm4, %v23253_v60 }
 0x838   :  { %17750 = vmatmul.mubr.msk.f32.gmra.mrb[48].mxu1 %vm6506_vm4, %v23257_v59 }
 0x839   :  { %17752 = vmatprep.mubr.msk.f32.mxu1 %vm6506_vm4, %v23261_v62  ;;  %v25551_v62 = vld [vmem:[#allocation5_spill] sm:$0xff] }
 0x83c   :  { %17753 = vmatmul.mubr.msk.f32.gmra.mrb[50].mxu1 %vm6506_vm4, %v23265_v39  ;;  %v25547_v39 = vld [vmem:[#allocation59_spill] sm:$0xff] }
 0x83d   :  { %17755 = vmatprep.mubr.msk.f32.mxu1 %vm6506_vm4, %v23269_v9  ;;  %v25542_v9 = vld [vmem:[#allocation54_spill] sm:$0xff] }
 0x840   :  { %17756 = vmatmul.mubr.msk.f32.gmra.mrb[52].mxu1 %vm6506_vm4, %v23273_v30  ;;  %v23293_v30 = vld [vmem:[#allocation3 + $0x301] sm:$0xff] }
 0x841   :  { %17758 = vmatprep.mubr.msk.f32.mxu1 %vm6506_vm4, %v23277_v45  ;;  %25535 = vst [vmem:[#allocation48_spill] sm:$0xff] %v23293_v30  ;;  %v23297_v45 = vld [vmem:[#allocation3 + $0x309] sm:$0xff] }
 0x842   :  { %25536 = vst [vmem:[#allocation49_spill] sm:$0xff] %v23297_v45 }
 0x844   :  { %17759 = vmatmul.mubr.msk.f32.gmra.mrb[54].mxu1 %vm6506_vm4, %v23281_v12  ;;  %v23301_v12 = vld [vmem:[#allocation3 + $0x319] sm:$0xff] }
 0x845   :  { %17761 = vmatprep.mubr.msk.f32.mxu1 %vm6506_vm4, %v23285_v23  ;;  %25537 = vst [vmem:[#allocation50_spill] sm:$0xff] %v23301_v12  ;;  %v23305_v23 = vld [vmem:[#allocation3 + $0x321] sm:$0xff] }
 0x846   :  { %25538 = vst [vmem:[#allocation51_spill] sm:$0xff] %v23305_v23 }
 0x848   :  { %17762 = vmatmul.mubr.msk.f32.gmra.mrb[56].mxu1 %vm6506_vm4, %v23289_v15  ;;  %v23309_v15 = vld [vmem:[#allocation3 + $0x331] sm:$0xff] }
 0x849   :  { %17764 = vmatprep.mubr.msk.f32.mxu1 %vm6506_vm4, %v23293_v30  ;;  %25539 = vst [vmem:[#allocation52_spill] sm:$0xff] %v23309_v15  ;;  %v23313_v30 = vld [vmem:[#allocation3 + $0x339] sm:$0xff] }
 0x84a   :  { %25540 = vst [vmem:[#allocation73_spill] sm:$0xff] %v23313_v30 }
 0x84c   :  { %17765 = vmatmul.mubr.msk.f32.gmra.mrb[58].mxu1 %vm6506_vm4, %v23297_v45  ;;  %v25541_v45 = vld [vmem:[#allocation53_spill] sm:$0xff] }
 0x84d   :  { %17767 = vmatprep.mubr.msk.f32.mxu1 %vm6506_vm4, %v23301_v12  ;;  %v23322_v12 = vld [vmem:[%s25031_s4 + $0x38] sm:$0xff] }
 0x850   :  { %17768 = vmatmul.mubr.msk.f32.gmra.mrb[60].mxu1 %vm6506_vm4, %v23305_v23  ;;  %v25543_v23 = vld [vmem:[#allocation55_spill] sm:$0xff] }
 0x851   :  { %17770 = vmatprep.mubr.msk.f32.mxu1 %vm6506_vm4, %v23309_v15  ;;  %v25544_v15 = vld [vmem:[#allocation56_spill] sm:$0xff] }
 0x854   :  { %17771 = vmatmul.mubr.msk.f32.gmra.mrb[62].mxu1 %vm6506_vm4, %v23313_v30  ;;  %v25545_v30 = vld [vmem:[#allocation57_spill] sm:$0xff] }
 0x855   :  { %17775 = vmatprep.mubr.msk.f32.mxu1 %vm6506_vm4, %v25541_v45  ;;  %v25546_v45 = vld [vmem:[#allocation58_spill] sm:$0xff] }
 0x858   :  { %17776 = vmatmul.mubr.msk.f32.vlgmr.msra.gmra.mrb[0].mxu1 %vm6506_vm4, %v25542_v9  ;;  %v25548_v9 = vld [vmem:[#allocation60_spill] sm:$0xff] }
 0x859   :  { %17872 = vmatpush3.msra.mxu1 %v23070_v38  ;;  %17778 = vmatprep.mubr.msk.f32.mxu1 %vm6506_vm4, %v25543_v23  ;;  %v25549_v38 = vld [vmem:[#allocation61_spill] sm:$0xff]  ;;  %v25550_v23 = vld [vmem:[#allocation4_spill] sm:$0xff] }
 0x85a   :  { %17969 = vmatprep.subr.mxu1 %v23322_v12 }
 0x85c   :  { %17779 = vmatmul.mubr.msk.f32.gmra.mrb[2].mxu1 %vm6506_vm4, %v25544_v15  ;;  %v25552_v15 = vld [vmem:[#allocation6_spill] sm:$0xff] }
 0x85d   :  { %17781 = vmatprep.mubr.msk.f32.mxu1 %vm6506_vm4, %v25545_v30  ;;  %v25553_v30 = vld [vmem:[#allocation7_spill] sm:$0xff] }
 0x860   :  { %17782 = vmatmul.mubr.msk.f32.gmra.mrb[4].mxu1 %vm6506_vm4, %v25546_v45  ;;  %v25554_v45 = vld [vmem:[#allocation62_spill] sm:$0xff] }
 0x861   :  { %17784 = vmatprep.mubr.msk.f32.mxu1 %vm6506_vm4, %v25547_v39  ;;  %v25555_v39 = vld [vmem:[#allocation63_spill] sm:$0xff] }
 0x864   :  { %17785 = vmatmul.mubr.msk.f32.gmra.mrb[6].mxu1 %vm6506_vm4, %v25548_v9  ;;  %v25556_v9 = vld [vmem:[#allocation64_spill] sm:$0xff] }
 0x865   :  { %17787 = vmatprep.mubr.msk.f32.mxu1 %vm6506_vm4, %v25549_v38  ;;  %v25557_v38 = vld [vmem:[#allocation65_spill] sm:$0xff] }
 0x868   :  { %17788 = vmatmul.mubr.msk.f32.gmra.mrb[8].mxu1 %vm6506_vm4, %v25550_v23  ;;  %v25558_v23 = vld [vmem:[#allocation66_spill] sm:$0xff] }
 0x869   :  { %17790 = vmatprep.mubr.msk.f32.mxu1 %vm6506_vm4, %v25551_v62  ;;  %v25559_v62 = vld [vmem:[#allocation67_spill] sm:$0xff] }
 0x86c   :  { %17791 = vmatmul.mubr.msk.f32.gmra.mrb[10].mxu1 %vm6506_vm4, %v25552_v15  ;;  %v25560_v15 = vld [vmem:[#allocation68_spill] sm:$0xff] }
 0x86d   :  { %17793 = vmatprep.mubr.msk.f32.mxu1 %vm6506_vm4, %v25553_v30  ;;  %v25561_v30 = vld [vmem:[#allocation69_spill] sm:$0xff] }
 0x870   :  { %17794 = vmatmul.mubr.msk.f32.gmra.mrb[12].mxu1 %vm6506_vm4, %v25554_v45  ;;  %v25562_v45 = vld [vmem:[#allocation70_spill] sm:$0xff] }
 0x871   :  { %17796 = vmatprep.mubr.msk.f32.mxu1 %vm6506_vm4, %v25555_v39  ;;  %v25563_v39 = vld [vmem:[#allocation71_spill] sm:$0xff] }
 0x874   :  { %17797 = vmatmul.mubr.msk.f32.gmra.mrb[14].mxu1 %vm6506_vm4, %v25556_v9  ;;  %v25564_v9 = vld [vmem:[#allocation72_spill] sm:$0xff] }
 0x875   :  { %17799 = vmatprep.mubr.msk.f32.mxu1 %vm6506_vm4, %v25557_v38  ;;  %v25565_v38 = vld [vmem:[#allocation8_spill] sm:$0xff] }
 0x878   :  { %17800 = vmatmul.mubr.msk.f32.gmra.mrb[16].mxu1 %vm6506_vm4, %v25558_v23  ;;  %v25566_v23 = vld [vmem:[#allocation9_spill] sm:$0xff] }
 0x879   :  { %17802 = vmatprep.mubr.msk.f32.mxu1 %vm6506_vm4, %v25559_v62  ;;  %v25567_v62 = vld [vmem:[#allocation11_spill] sm:$0xff] }
 0x87c   :  { %17803 = vmatmul.mubr.msk.f32.gmra.mrb[18].mxu1 %vm6506_vm4, %v25560_v15  ;;  %v25568_v15 = vld [vmem:[#allocation10_spill] sm:$0xff] }
 0x87d   :  { %17805 = vmatprep.mubr.msk.f32.mxu1 %vm6506_vm4, %v25561_v30  ;;  %v25569_v30 = vld [vmem:[#allocation13_spill] sm:$0xff] }
 0x880   :  { %17806 = vmatmul.mubr.msk.f32.gmra.mrb[20].mxu1 %vm6506_vm4, %v25562_v45  ;;  %v25570_v45 = vld [vmem:[#allocation12_spill] sm:$0xff] }
 0x881   :  { %17808 = vmatprep.mubr.msk.f32.mxu1 %vm6506_vm4, %v25563_v39  ;;  %v23384_v39 = vld [vmem:[#allocation3 + $0x182] sm:$0xff] }
 0x884   :  { %17809 = vmatmul.mubr.msk.f32.gmra.mrb[22].mxu1 %vm6506_vm4, %v25564_v9  ;;  %v23388_v9 = vld [vmem:[#allocation3 + $0x18a] sm:$0xff] }
 0x885   :  { %17811 = vmatprep.mubr.msk.f32.mxu1 %vm6506_vm4, %v25565_v38  ;;  %25571 = vst [vmem:[#allocation53_spill] sm:$0xff] %v23388_v9  ;;  %v25572_v38 = vld [vmem:[#allocation15_spill] sm:$0xff] }
 0x888   :  { %17812 = vmatmul.mubr.msk.f32.gmra.mrb[24].mxu1 %vm6506_vm4, %v25566_v23  ;;  %v25573_v23 = vld [vmem:[#allocation14_spill] sm:$0xff] }
 0x889   :  { %17814 = vmatprep.mubr.msk.f32.mxu1 %vm6506_vm4, %v25567_v62  ;;  %v25574_v62 = vld [vmem:[#allocation17_spill] sm:$0xff] }
 0x88c   :  { %17815 = vmatmul.mubr.msk.f32.gmra.mrb[26].mxu1 %vm6506_vm4, %v25568_v15  ;;  %v25575_v15 = vld [vmem:[#allocation16_spill] sm:$0xff] }
 0x88d   :  { %17817 = vmatprep.mubr.msk.f32.mxu1 %vm6506_vm4, %v25569_v30  ;;  %v25576_v30 = vld [vmem:[#allocation19_spill] sm:$0xff] }
 0x890   :  { %17818 = vmatmul.mubr.msk.f32.gmra.mrb[28].mxu1 %vm6506_vm4, %v25570_v45  ;;  %v25577_v45 = vld [vmem:[#allocation18_spill] sm:$0xff] }
 0x891   :  { %17820 = vmatprep.mubr.msk.f32.mxu1 %vm6506_vm4, %v23384_v39 }
 0x894   :  { %17821 = vmatmul.mubr.msk.f32.gmra.mrb[30].mxu1 %vm6506_vm4, %v23388_v9  ;;  %v25578_v9 = vld [vmem:[#allocation21_spill] sm:$0xff] }
 0x895   :  { %17823 = vmatprep.mubr.msk.f32.mxu1 %vm6506_vm4, %v22803_v47  ;;  %v25579_v47 = vld [vmem:[#allocation20_spill] sm:$0xff] }
 0x898   :  { %17824 = vmatmul.mubr.msk.f32.gmra.mrb[32].mxu1 %vm6506_vm4, %v25572_v38  ;;  %v25580_v38 = vld [vmem:[#allocation23_spill] sm:$0xff] }
 0x899   :  { %17826 = vmatprep.mubr.msk.f32.mxu1 %vm6506_vm4, %v25573_v23  ;;  %v25581_v23 = vld [vmem:[#allocation22_spill] sm:$0xff] }
 0x89c   :  { %17827 = vmatmul.mubr.msk.f32.gmra.mrb[34].mxu1 %vm6506_vm4, %v25574_v62  ;;  %v25582_v62 = vld [vmem:[#allocation25_spill] sm:$0xff] }
 0x89d   :  { %17829 = vmatprep.mubr.msk.f32.mxu1 %vm6506_vm4, %v25575_v15  ;;  %v25583_v15 = vld [vmem:[#allocation24_spill] sm:$0xff] }
 0x8a0   :  { %17830 = vmatmul.mubr.msk.f32.gmra.mrb[36].mxu1 %vm6506_vm4, %v25576_v30  ;;  %v25584_v30 = vld [vmem:[#allocation27_spill] sm:$0xff] }
 0x8a1   :  { %17832 = vmatprep.mubr.msk.f32.mxu1 %vm6506_vm4, %v25577_v45  ;;  %v25585_v45 = vld [vmem:[#allocation26_spill] sm:$0xff] }
 0x8a4   :  { %17833 = vmatmul.mubr.msk.f32.gmra.mrb[38].mxu1 %vm6506_vm4, %v25578_v9  ;;  %v25586_v9 = vld [vmem:[#allocation29_spill] sm:$0xff] }
 0x8a5   :  { %17835 = vmatprep.mubr.msk.f32.mxu1 %vm6506_vm4, %v25579_v47  ;;  %v25587_v47 = vld [vmem:[#allocation28_spill] sm:$0xff] }
 0x8a8   :  { %17836 = vmatmul.mubr.msk.f32.gmra.mrb[40].mxu1 %vm6506_vm4, %v25580_v38  ;;  %v25588_v38 = vld [vmem:[#allocation31_spill] sm:$0xff] }
 0x8a9   :  { %17838 = vmatprep.mubr.msk.f32.mxu1 %vm6506_vm4, %v25581_v23  ;;  %v25589_v23 = vld [vmem:[#allocation30_spill] sm:$0xff] }
 0x8ac   :  { %17839 = vmatmul.mubr.msk.f32.gmra.mrb[42].mxu1 %vm6506_vm4, %v25582_v62  ;;  %v25590_v62 = vld [vmem:[#allocation32_spill] sm:$0xff] }
 0x8ad   :  { %17841 = vmatprep.mubr.msk.f32.mxu1 %vm6506_vm4, %v25583_v15  ;;  %v25591_v15 = vld [vmem:[#allocation34_spill] sm:$0xff] }
 0x8b0   :  { %17842 = vmatmul.mubr.msk.f32.gmra.mrb[44].mxu1 %vm6506_vm4, %v25584_v30  ;;  %v25592_v30 = vld [vmem:[#allocation35_spill] sm:$0xff] }
 0x8b1   :  { %17844 = vmatprep.mubr.msk.f32.mxu1 %vm6506_vm4, %v25585_v45  ;;  %v25593_v45 = vld [vmem:[#allocation36_spill] sm:$0xff] }
 0x8b4   :  { %17845 = vmatmul.mubr.msk.f32.gmra.mrb[46].mxu1 %vm6506_vm4, %v25586_v9  ;;  %v25594_v9 = vld [vmem:[#allocation37_spill] sm:$0xff] }
 0x8b5   :  { %17847 = vmatprep.mubr.msk.f32.mxu1 %vm6506_vm4, %v25587_v47  ;;  %v25595_v47 = vld [vmem:[#allocation38_spill] sm:$0xff] }
 0x8b8   :  { %17848 = vmatmul.mubr.msk.f32.gmra.mrb[48].mxu1 %vm6506_vm4, %v25588_v38  ;;  %v25596_v38 = vld [vmem:[#allocation39_spill] sm:$0xff] }
 0x8b9   :  { %17850 = vmatprep.mubr.msk.f32.mxu1 %vm6506_vm4, %v25589_v23  ;;  %v23452_v23 = vld [vmem:[#allocation3 + $0x332] sm:$0xff] }
 0x8bc   :  { %17851 = vmatmul.mubr.msk.f32.gmra.mrb[50].mxu1 %vm6506_vm4, %v25590_v62  ;;  %v23456_v62 = vld [vmem:[#allocation3 + $0x33a] sm:$0xff] }
 0x8bd   :  { %17853 = vmatprep.mubr.msk.f32.mxu1 %vm6506_vm4, %v25591_v15  ;;  %v11322_v15 = vld [vmem:[#allocation3 + $0x50] sm:$0xff] }
 0x8c0   :  { %17854 = vmatmul.mubr.msk.f32.gmra.mrb[52].mxu1 %vm6506_vm4, %v25592_v30  ;;  %v11323_v30 = vld [vmem:[#allocation3 + $0x60] sm:$0xff] }
 0x8c1   :  { %17856 = vmatprep.mubr.msk.f32.mxu1 %vm6506_vm4, %v25593_v45  ;;  %v11324_v45 = vld [vmem:[#allocation3 + $0x68] sm:$0xff] }
 0x8c4   :  { %17857 = vmatmul.mubr.msk.f32.gmra.mrb[54].mxu1 %vm6506_vm4, %v25594_v9  ;;  %v11325_v9 = vld [vmem:[#allocation3 + $0x78] sm:$0xff] }
 0x8c5   :  { %17859 = vmatprep.mubr.msk.f32.mxu1 %vm6506_vm4, %v25595_v47  ;;  %v11326_v47 = vld [vmem:[#allocation3 + $0x80] sm:$0xff] }
 0x8c8   :  { %17860 = vmatmul.mubr.msk.f32.gmra.mrb[56].mxu1 %vm6506_vm4, %v22903_v32  ;;  %v11319_v32 = vld [vmem:[#allocation3 + $0x30] sm:$0xff] }
 0x8c9   :  { %17862 = vmatprep.mubr.msk.f32.mxu1 %vm6506_vm4, %v25596_v38  ;;  %v11328_v38 = vld [vmem:[#allocation3 + $0x98] sm:$0xff] }
 0x8cc   :  { %17863 = vmatmul.mubr.msk.f32.gmra.mrb[58].mxu1 %vm6506_vm4, %v22911_v16  ;;  %v11320_v16 = vld [vmem:[#allocation3 + $0x38] sm:$0xff] }
 0x8cd   :  { %17865 = vmatprep.mubr.msk.f32.mxu1 %vm6506_vm4, %v22915_v22  ;;  %v23464_v22 = vld [vmem:[%s25031_s4 + $0x40] sm:$0xff] }
 0x8d0   :  { %17866 = vmatmul.mubr.msk.f32.gmra.mrb[60].mxu1 %vm6506_vm4, %v22919_v4  ;;  %v11321_v4 = vld [vmem:[#allocation3 + $0x48] sm:$0xff] }
 0x8d1   :  { %17868 = vmatprep.mubr.msk.f32.mxu1 %vm6506_vm4, %v23452_v23 }
 0x8d4   :  { %17869 = vmatmul.mubr.msk.f32.gmra.mrb[62].mxu1 %vm6506_vm4, %v23456_v62 }
 0x8d5   :  { %17873 = vmatprep.mubr.msk.f32.mxu1 %vm6506_vm4, %v11319_v32  ;;  %v11329_v32 = vld [vmem:[#allocation3 + $0xa8] sm:$0xff] }
 0x8d8   :  { %17874 = vmatmul.mubr.msk.f32.vlgmr.msra.gmra.mrb[0].mxu1 %vm6506_vm4, %v11320_v16  ;;  %v11330_v16 = vld [vmem:[#allocation3 + $0xb0] sm:$0xff] }
 0x8d9   :  { %17970 = vmatpush3.msra.mxu1 %v23322_v12  ;;  %17876 = vmatprep.mubr.msk.f32.mxu1 %vm6506_vm4, %v11321_v4  ;;  %v11327_v12 = vld [vmem:[#allocation3 + $0x90] sm:$0xff]  ;;  %v11331_v4 = vld [vmem:[#allocation3 + $0xc0] sm:$0xff] }
 0x8da   :  { %18067 = vmatprep.subr.mxu1 %v23464_v22 }
 0x8dc   :  { %17877 = vmatmul.mubr.msk.f32.gmra.mrb[2].mxu1 %vm6506_vm4, %v11322_v15  ;;  %v11332_v15 = vld [vmem:[#allocation3 + $0xc8] sm:$0xff] }
 0x8dd   :  { %17879 = vmatprep.mubr.msk.f32.mxu1 %vm6506_vm4, %v11323_v30  ;;  %v11333_v30 = vld [vmem:[#allocation3 + $0xd8] sm:$0xff] }
 0x8e0   :  { %17880 = vmatmul.mubr.msk.f32.gmra.mrb[4].mxu1 %vm6506_vm4, %v11324_v45  ;;  %v11334_v45 = vld [vmem:[#allocation3 + $0xe0] sm:$0xff] }
 0x8e1   :  { %17882 = vmatprep.mubr.msk.f32.mxu1 %vm6506_vm4, %v11325_v9  ;;  %v11335_v9 = vld [vmem:[#allocation3 + $0xf0] sm:$0xff] }
 0x8e4   :  { %17883 = vmatmul.mubr.msk.f32.gmra.mrb[6].mxu1 %vm6506_vm4, %v11326_v47  ;;  %v11336_v47 = vld [vmem:[#allocation3 + $0xf8] sm:$0xff] }
 0x8e5   :  { %17885 = vmatprep.mubr.msk.f32.mxu1 %vm6506_vm4, %v11327_v12  ;;  %v11337_v12 = vld [vmem:[#allocation3 + $0x108] sm:$0xff] }
 0x8e8   :  { %17886 = vmatmul.mubr.msk.f32.gmra.mrb[8].mxu1 %vm6506_vm4, %v11328_v38  ;;  %v11338_v38 = vld [vmem:[#allocation3 + $0x110] sm:$0xff] }
 0x8e9   :  { %17888 = vmatprep.mubr.msk.f32.mxu1 %vm6506_vm4, %v11329_v32  ;;  %v11339_v32 = vld [vmem:[#allocation3 + $0x120] sm:$0xff] }
 0x8ec   :  { %17889 = vmatmul.mubr.msk.f32.gmra.mrb[10].mxu1 %vm6506_vm4, %v11330_v16  ;;  %v11340_v16 = vld [vmem:[#allocation3 + $0x128] sm:$0xff] }
 0x8ed   :  { %17891 = vmatprep.mubr.msk.f32.mxu1 %vm6506_vm4, %v11331_v4  ;;  %v11341_v4 = vld [vmem:[#allocation3 + $0x138] sm:$0xff] }
 0x8f0   :  { %17892 = vmatmul.mubr.msk.f32.gmra.mrb[12].mxu1 %vm6506_vm4, %v11332_v15  ;;  %v11342_v15 = vld [vmem:[#allocation3 + $0x140] sm:$0xff] }
 0x8f1   :  { %17894 = vmatprep.mubr.msk.f32.mxu1 %vm6506_vm4, %v11333_v30  ;;  %v11343_v30 = vld [vmem:[#allocation3 + $0x150] sm:$0xff] }
 0x8f4   :  { %17895 = vmatmul.mubr.msk.f32.gmra.mrb[14].mxu1 %vm6506_vm4, %v11334_v45  ;;  %v11344_v45 = vld [vmem:[#allocation3 + $0x158] sm:$0xff] }
 0x8f5   :  { %17897 = vmatprep.mubr.msk.f32.mxu1 %vm6506_vm4, %v11335_v9  ;;  %v11345_v9 = vld [vmem:[#allocation3 + $0x168] sm:$0xff] }
 0x8f8   :  { %17898 = vmatmul.mubr.msk.f32.gmra.mrb[16].mxu1 %vm6506_vm4, %v11336_v47  ;;  %v11346_v47 = vld [vmem:[#allocation3 + $0x170] sm:$0xff] }
 0x8f9   :  { %17900 = vmatprep.mubr.msk.f32.mxu1 %vm6506_vm4, %v11337_v12  ;;  %v11349_v12 = vld [vmem:[#allocation3 + $0x198] sm:$0xff] }
 0x8fc   :  { %17901 = vmatmul.mubr.msk.f32.gmra.mrb[18].mxu1 %vm6506_vm4, %v11338_v38  ;;  %v11350_v38 = vld [vmem:[#allocation3 + $0x1a0] sm:$0xff] }
 0x8fd   :  { %17903 = vmatprep.mubr.msk.f32.mxu1 %vm6506_vm4, %v11339_v32  ;;  %v11351_v32 = vld [vmem:[#allocation3 + $0x1e0] sm:$0xff] }
 0x900   :  { %17904 = vmatmul.mubr.msk.f32.gmra.mrb[20].mxu1 %vm6506_vm4, %v11340_v16  ;;  %v11352_v16 = vld [vmem:[#allocation3 + $0x1e8] sm:$0xff] }
 0x901   :  { %17906 = vmatprep.mubr.msk.f32.mxu1 %vm6506_vm4, %v11341_v4  ;;  %v11353_v4 = vld [vmem:[#allocation3 + $0x1f8] sm:$0xff] }
 0x904   :  { %17907 = vmatmul.mubr.msk.f32.gmra.mrb[22].mxu1 %vm6506_vm4, %v11342_v15  ;;  %v11354_v15 = vld [vmem:[#allocation3 + $0x200] sm:$0xff] }
 0x905   :  { %17909 = vmatprep.mubr.msk.f32.mxu1 %vm6506_vm4, %v11343_v30  ;;  %v11357_v30 = vld [vmem:[#allocation3 + $0x228] sm:$0xff] }
 0x908   :  { %17910 = vmatmul.mubr.msk.f32.gmra.mrb[24].mxu1 %vm6506_vm4, %v11344_v45  ;;  %v11358_v45 = vld [vmem:[#allocation3 + $0x230] sm:$0xff] }
 0x909   :  { %17912 = vmatprep.mubr.msk.f32.mxu1 %vm6506_vm4, %v11345_v9  ;;  %v11359_v9 = vld [vmem:[#allocation3 + $0x240] sm:$0xff] }
 0x90c   :  { %17913 = vmatmul.mubr.msk.f32.gmra.mrb[26].mxu1 %vm6506_vm4, %v11346_v47  ;;  %v11360_v47 = vld [vmem:[#allocation3 + $0x248] sm:$0xff] }
 0x90d   :  { %17915 = vmatprep.mubr.msk.f32.mxu1 %vm6506_vm4, %v22990_v36  ;;  %v11355_v36 = vld [vmem:[#allocation3 + $0x210] sm:$0xff] }
 0x910   :  { %17916 = vmatmul.mubr.msk.f32.gmra.mrb[28].mxu1 %vm6506_vm4, %v22994_v52  ;;  %v11356_v52 = vld [vmem:[#allocation3 + $0x218] sm:$0xff] }
 0x911   :  { %17918 = vmatprep.mubr.msk.f32.mxu1 %vm6506_vm4, %v11349_v12  ;;  %v11361_v12 = vld [vmem:[#allocation3 + $0x258] sm:$0xff] }
 0x914   :  { %17919 = vmatmul.mubr.msk.f32.gmra.mrb[30].mxu1 %vm6506_vm4, %v11350_v38  ;;  %v11362_v38 = vld [vmem:[#allocation3 + $0x260] sm:$0xff] }
 0x915   :  { %17921 = vmatprep.mubr.msk.f32.mxu1 %vm6506_vm4, %v11351_v32  ;;  %v11363_v32 = vld [vmem:[#allocation3 + $0x270] sm:$0xff] }
 0x918   :  { %17922 = vmatmul.mubr.msk.f32.gmra.mrb[32].mxu1 %vm6506_vm4, %v11352_v16  ;;  %v11364_v16 = vld [vmem:[#allocation3 + $0x278] sm:$0xff] }
 0x919   :  { %17924 = vmatprep.mubr.msk.f32.mxu1 %vm6506_vm4, %v11353_v4  ;;  %v11365_v4 = vld [vmem:[#allocation3 + $0x288] sm:$0xff] }
 0x91c   :  { %17925 = vmatmul.mubr.msk.f32.gmra.mrb[34].mxu1 %vm6506_vm4, %v11354_v15  ;;  %v11366_v15 = vld [vmem:[#allocation3 + $0x290] sm:$0xff] }
 0x91d   :  { %17927 = vmatprep.mubr.msk.f32.mxu1 %vm6506_vm4, %v11355_v36  ;;  %v11367_v36 = vld [vmem:[#allocation3 + $0x2a0] sm:$0xff] }
 0x920   :  { %17928 = vmatmul.mubr.msk.f32.gmra.mrb[36].mxu1 %vm6506_vm4, %v11356_v52  ;;  %v11368_v52 = vld [vmem:[#allocation3 + $0x2a8] sm:$0xff] }
 0x921   :  { %17930 = vmatprep.mubr.msk.f32.mxu1 %vm6506_vm4, %v11357_v30  ;;  %v11369_v30 = vld [vmem:[#allocation3 + $0x2b8] sm:$0xff] }
 0x924   :  { %17931 = vmatmul.mubr.msk.f32.gmra.mrb[38].mxu1 %vm6506_vm4, %v11358_v45  ;;  %v11370_v45 = vld [vmem:[#allocation3 + $0x2c0] sm:$0xff] }
 0x925   :  { %17933 = vmatprep.mubr.msk.f32.mxu1 %vm6506_vm4, %v11359_v9  ;;  %v11371_v9 = vld [vmem:[#allocation3 + $0x2d0] sm:$0xff] }
 0x928   :  { %17934 = vmatmul.mubr.msk.f32.gmra.mrb[40].mxu1 %vm6506_vm4, %v11360_v47  ;;  %v11372_v47 = vld [vmem:[#allocation3 + $0x2d8] sm:$0xff] }
 0x929   :  { %17936 = vmatprep.mubr.msk.f32.mxu1 %vm6506_vm4, %v11361_v12  ;;  %v11373_v12 = vld [vmem:[#allocation3 + $0x2e8] sm:$0xff] }
 0x92c   :  { %17937 = vmatmul.mubr.msk.f32.gmra.mrb[42].mxu1 %vm6506_vm4, %v11362_v38  ;;  %v11374_v38 = vld [vmem:[#allocation3 + $0x2f0] sm:$0xff] }
 0x92d   :  { %17939 = vmatprep.mubr.msk.f32.mxu1 %vm6506_vm4, %v11363_v32  ;;  %v11375_v32 = vld [vmem:[#allocation3 + $0x300] sm:$0xff] }
 0x930   :  { %17940 = vmatmul.mubr.msk.f32.gmra.mrb[44].mxu1 %vm6506_vm4, %v11364_v16  ;;  %v11376_v16 = vld [vmem:[#allocation3 + $0x308] sm:$0xff] }
 0x931   :  { %17942 = vmatprep.mubr.msk.f32.mxu1 %vm6506_vm4, %v11365_v4  ;;  %v11377_v4 = vld [vmem:[#allocation3 + $0x318] sm:$0xff] }
 0x934   :  { %17943 = vmatmul.mubr.msk.f32.gmra.mrb[46].mxu1 %vm6506_vm4, %v11366_v15  ;;  %v11378_v15 = vld [vmem:[#allocation3 + $0x320] sm:$0xff] }
 0x935   :  { %17945 = vmatprep.mubr.msk.f32.mxu1 %vm6506_vm4, %v11367_v36  ;;  %v11381_v36 = vld [vmem:[#allocation3 + $0x348] sm:$0xff] }
 0x938   :  { %17946 = vmatmul.mubr.msk.f32.gmra.mrb[48].mxu1 %vm6506_vm4, %v11368_v52  ;;  %v11382_v52 = vld [vmem:[#allocation3 + $0x350] sm:$0xff] }
 0x939   :  { %17948 = vmatprep.mubr.msk.f32.mxu1 %vm6506_vm4, %v11369_v30  ;;  %v12765_v30 = vld [vmem:[#allocation3 + $0x1e2] sm:$0xff] }
 0x93c   :  { %17949 = vmatmul.mubr.msk.f32.gmra.mrb[50].mxu1 %vm6506_vm4, %v11370_v45  ;;  %v12766_v45 = vld [vmem:[#allocation3 + $0x1ea] sm:$0xff] }
 0x93d   :  { %17951 = vmatprep.mubr.msk.f32.mxu1 %vm6506_vm4, %v11371_v9  ;;  %v12767_v9 = vld [vmem:[#allocation3 + $0x1fa] sm:$0xff] }
 0x940   :  { %17952 = vmatmul.mubr.msk.f32.gmra.mrb[52].mxu1 %vm6506_vm4, %v11372_v47  ;;  %v12768_v47 = vld [vmem:[#allocation3 + $0x202] sm:$0xff] }
 0x941   :  { %17954 = vmatprep.mubr.msk.f32.mxu1 %vm6506_vm4, %v11373_v12  ;;  %v12770_v12 = vld [vmem:[#allocation3 + $0x21a] sm:$0xff] }
 0x944   :  { %17955 = vmatmul.mubr.msk.f32.gmra.mrb[54].mxu1 %vm6506_vm4, %v11374_v38  ;;  %v12771_v38 = vld [vmem:[#allocation3 + $0x22a] sm:$0xff] }
 0x945   :  { %17957 = vmatprep.mubr.msk.f32.mxu1 %vm6506_vm4, %v11375_v32  ;;  %v12772_v32 = vld [vmem:[#allocation3 + $0x232] sm:$0xff] }
 0x948   :  { %17958 = vmatmul.mubr.msk.f32.gmra.mrb[56].mxu1 %vm6506_vm4, %v11376_v16  ;;  %v12773_v16 = vld [vmem:[#allocation3 + $0x242] sm:$0xff] }
 0x949   :  { %17960 = vmatprep.mubr.msk.f32.mxu1 %vm6506_vm4, %v11377_v4  ;;  %v12774_v4 = vld [vmem:[#allocation3 + $0x24a] sm:$0xff] }
 0x94c   :  { %17961 = vmatmul.mubr.msk.f32.gmra.mrb[58].mxu1 %vm6506_vm4, %v11378_v15  ;;  %v12775_v15 = vld [vmem:[#allocation3 + $0x25a] sm:$0xff] }
 0x94d   :  { %17963 = vmatprep.mubr.msk.f32.mxu1 %vm6506_vm4, %v23058_v18  ;;  %v12056_v18 = vld [vmem:[#allocation3 + $0x199] sm:$0xff] }
 0x950   :  { %17964 = vmatmul.mubr.msk.f32.gmra.mrb[60].mxu1 %vm6506_vm4, %v23062_v61  ;;  %v12057_v61 = vld [vmem:[#allocation3 + $0x1a1] sm:$0xff] }
 0x951   :  { %17966 = vmatprep.mubr.msk.f32.mxu1 %vm6506_vm4, %v11381_v36  ;;  %v12776_v36 = vld [vmem:[#allocation3 + $0x262] sm:$0xff] }
 0x954   :  { %17967 = vmatmul.mubr.msk.f32.gmra.mrb[62].mxu1 %vm6506_vm4, %v11382_v52  ;;  %v12777_v52 = vld [vmem:[#allocation3 + $0x272] sm:$0xff] }
 0x955   :  { %17971 = vmatprep.mubr.msk.f32.mxu1 %vm6506_vm4, %v23073_v33  ;;  %v25597_v33 = vld [vmem:[#allocation40_spill] sm:$0xff] }
 0x958   :  { %17972 = vmatmul.mubr.msk.f32.vlgmr.msra.gmra.mrb[0].mxu1 %vm6506_vm4, %v23079_v44  ;;  %v25598_v44 = vld [vmem:[#allocation41_spill] sm:$0xff] }
 0x959   :  { %18068 = vmatpush3.msra.mxu1 %v23464_v22  ;;  %17974 = vmatprep.mubr.msk.f32.mxu1 %vm6506_vm4, %v23083_v42  ;;  %v25599_v42 = vld [vmem:[#allocation42_spill] sm:$0xff]  ;;  %v12764_v22 = vld [vmem:[#allocation3 + $0x1a2] sm:$0xff] }
 0x95c   :  { %17975 = vmatmul.mubr.msk.f32.gmra.mrb[2].mxu1 %vm6506_vm4, %v23087_v56  ;;  %v25600_v56 = vld [vmem:[#allocation43_spill] sm:$0xff] }
 0x95d   :  { %17977 = vmatprep.mubr.msk.f32.mxu1 %vm6506_vm4, %v23091_v53  ;;  %v25601_v53 = vld [vmem:[#allocation44_spill] sm:$0xff] }
 0x960   :  { %17978 = vmatmul.mubr.msk.f32.gmra.mrb[4].mxu1 %vm6506_vm4, %v23095_v6  ;;  %v25602_v6 = vld [vmem:[#allocation45_spill] sm:$0xff] }
 0x961   :  { %17980 = vmatprep.mubr.msk.f32.mxu1 %vm6506_vm4, %v23099_v3  ;;  %v25603_v3 = vld [vmem:[#allocation46_spill] sm:$0xff] }
 0x964   :  { %17981 = vmatmul.mubr.msk.f32.gmra.mrb[6].mxu1 %vm6506_vm4, %v23103_v5  ;;  %v25604_v5 = vld [vmem:[#allocation47_spill] sm:$0xff] }
 0x965   :  { %17983 = vmatprep.mubr.msk.f32.mxu1 %vm6506_vm4, %v23107_v13  ;;  %v25605_v13 = vld [vmem:[#allocation48_spill] sm:$0xff] }
 0x968   :  { %17984 = vmatmul.mubr.msk.f32.gmra.mrb[8].mxu1 %vm6506_vm4, %v23111_v26  ;;  %v25606_v26 = vld [vmem:[#allocation49_spill] sm:$0xff] }
 0x969   :  { %17986 = vmatprep.mubr.msk.f32.mxu1 %vm6506_vm4, %v23115_v24  ;;  %v25607_v24 = vld [vmem:[#allocation50_spill] sm:$0xff] }
 0x96c   :  { %17987 = vmatmul.mubr.msk.f32.gmra.mrb[10].mxu1 %vm6506_vm4, %v23119_v40  ;;  %v25608_v40 = vld [vmem:[#allocation51_spill] sm:$0xff] }
 0x96d   :  { %17989 = vmatprep.mubr.msk.f32.mxu1 %vm6506_vm4, %v23123_v1  ;;  %v25609_v1 = vld [vmem:[#allocation52_spill] sm:$0xff] }
 0x970   :  { %17990 = vmatmul.mubr.msk.f32.gmra.mrb[12].mxu1 %vm6506_vm4, %v23127_v58  ;;  %v12088_v58 = vld [vmem:[#allocation3 + $0x349] sm:$0xff] }
 0x971   :  { %17992 = vmatprep.mubr.msk.f32.mxu1 %vm6506_vm4, %v23131_v55  ;;  %v25610_v55 = vld [vmem:[#allocation73_spill] sm:$0xff] }
 0x974   :  { %17993 = vmatmul.mubr.msk.f32.gmra.mrb[14].mxu1 %vm6506_vm4, %v23135_v11  ;;  %v12089_v11 = vld [vmem:[#allocation3 + $0x351] sm:$0xff] }
 0x975   :  { %17995 = vmatprep.mubr.msk.f32.mxu1 %vm6506_vm4, %v23139_v0  ;;  %v12733_v0 = vld [vmem:[#allocation3 + $0x32] sm:$0xff] }
 0x978   :  { %17996 = vmatmul.mubr.msk.f32.gmra.mrb[16].mxu1 %vm6506_vm4, %v23143_v21  ;;  %v12734_v21 = vld [vmem:[#allocation3 + $0x3a] sm:$0xff] }
 0x979   :  { %17998 = vmatprep.mubr.msk.f32.mxu1 %vm6506_vm4, %v23147_v19  ;;  %v12735_v19 = vld [vmem:[#allocation3 + $0x4a] sm:$0xff] }
 0x97c   :  { %17999 = vmatmul.mubr.msk.f32.gmra.mrb[18].mxu1 %vm6506_vm4, %v23151_v34  ;;  %v12736_v34 = vld [vmem:[#allocation3 + $0x52] sm:$0xff] }
 0x97d   :  { %18001 = vmatprep.mubr.msk.f32.mxu1 %vm6506_vm4, %v23155_v54  ;;  %v12737_v54 = vld [vmem:[#allocation3 + $0x62] sm:$0xff] }
 0x980   :  { %18002 = vmatmul.mubr.msk.f32.gmra.mrb[20].mxu1 %vm6506_vm4, %v23159_v49  ;;  %v12738_v49 = vld [vmem:[#allocation3 + $0x6a] sm:$0xff] }
 0x981   :  { %18004 = vmatprep.mubr.msk.f32.mxu1 %vm6506_vm4, %v23163_v7  ;;  %v12739_v7 = vld [vmem:[#allocation3 + $0x7a] sm:$0xff] }
 0x984   :  { %18005 = vmatmul.mubr.msk.f32.gmra.mrb[22].mxu1 %vm6506_vm4, %v23167_v28  ;;  %v12740_v28 = vld [vmem:[#allocation3 + $0x82] sm:$0xff] }
 0x985   :  { %18007 = vmatprep.mubr.msk.f32.mxu1 %vm6506_vm4, %v23171_v25  ;;  %v12741_v25 = vld [vmem:[#allocation3 + $0x92] sm:$0xff] }
 0x988   :  { %18008 = vmatmul.mubr.msk.f32.gmra.mrb[24].mxu1 %vm6506_vm4, %v23175_v50  ;;  %v12742_v50 = vld [vmem:[#allocation3 + $0x9a] sm:$0xff] }
 0x989   :  { %18010 = vmatprep.mubr.msk.f32.mxu1 %vm6506_vm4, %v23179_v46  ;;  %v12743_v46 = vld [vmem:[#allocation3 + $0xaa] sm:$0xff] }
 0x98c   :  { %18011 = vmatmul.mubr.msk.f32.gmra.mrb[26].mxu1 %vm6506_vm4, %v23183_v48  ;;  %v12744_v48 = vld [vmem:[#allocation3 + $0xb2] sm:$0xff] }
 0x98d   :  { %18013 = vmatprep.mubr.msk.f32.mxu1 %vm6506_vm4, %v23187_v2  ;;  %v12745_v2 = vld [vmem:[#allocation3 + $0xc2] sm:$0xff] }
 0x990   :  { %18014 = vmatmul.mubr.msk.f32.gmra.mrb[28].mxu1 %vm6506_vm4, %v23191_v29  ;;  %v12746_v29 = vld [vmem:[#allocation3 + $0xca] sm:$0xff] }
 0x991   :  { %18016 = vmatprep.mubr.msk.f32.mxu1 %vm6506_vm4, %v12056_v18  ;;  %v12778_v18 = vld [vmem:[#allocation3 + $0x27a] sm:$0xff] }
 0x994   :  { %18017 = vmatmul.mubr.msk.f32.gmra.mrb[30].mxu1 %vm6506_vm4, %v12057_v61  ;;  %v12779_v61 = vld [vmem:[#allocation3 + $0x28a] sm:$0xff] }
 0x995   :  { %18019 = vmatprep.mubr.msk.f32.mxu1 %vm6506_vm4, %v23197_v57  ;;  %v12747_v57 = vld [vmem:[#allocation3 + $0xda] sm:$0xff] }
 0x998   :  { %18020 = vmatmul.mubr.msk.f32.gmra.mrb[32].mxu1 %vm6506_vm4, %v23201_v14  ;;  %v12748_v14 = vld [vmem:[#allocation3 + $0xe2] sm:$0xff] }
 0x999   :  { %18022 = vmatprep.mubr.msk.f32.mxu1 %vm6506_vm4, %v23205_v43  ;;  %v12749_v43 = vld [vmem:[#allocation3 + $0xf2] sm:$0xff] }
 0x99c   :  { %18023 = vmatmul.mubr.msk.f32.gmra.mrb[34].mxu1 %vm6506_vm4, %v23209_v51  ;;  %v12750_v51 = vld [vmem:[#allocation3 + $0xfa] sm:$0xff] }
 0x99d   :  { %18025 = vmatprep.mubr.msk.f32.mxu1 %vm6506_vm4, %v23213_v17  ;;  %v12751_v17 = vld [vmem:[#allocation3 + $0x10a] sm:$0xff] }
 0x9a0   :  { %18026 = vmatmul.mubr.msk.f32.gmra.mrb[36].mxu1 %vm6506_vm4, %v23217_v31  ;;  %v12752_v31 = vld [vmem:[#allocation3 + $0x112] sm:$0xff] }
 0x9a1   :  { %18028 = vmatprep.mubr.msk.f32.mxu1 %vm6506_vm4, %v23221_v41  ;;  %v12753_v41 = vld [vmem:[#allocation3 + $0x122] sm:$0xff] }
 0x9a4   :  { %18029 = vmatmul.mubr.msk.f32.gmra.mrb[38].mxu1 %vm6506_vm4, %v23225_v8  ;;  %v12754_v8 = vld [vmem:[#allocation3 + $0x12a] sm:$0xff] }
 0x9a5   :  { %18031 = vmatprep.mubr.msk.f32.mxu1 %vm6506_vm4, %v23229_v10  ;;  %v12755_v10 = vld [vmem:[#allocation3 + $0x13a] sm:$0xff] }
 0x9a8   :  { %18032 = vmatmul.mubr.msk.f32.gmra.mrb[40].mxu1 %vm6506_vm4, %v23233_v20  ;;  %v12756_v20 = vld [vmem:[#allocation3 + $0x142] sm:$0xff] }
 0x9a9   :  { %18034 = vmatprep.mubr.msk.f32.mxu1 %vm6506_vm4, %v23237_v35  ;;  %v12757_v35 = vld [vmem:[#allocation3 + $0x152] sm:$0xff] }
 0x9ac   :  { %18035 = vmatmul.mubr.msk.f32.gmra.mrb[42].mxu1 %vm6506_vm4, %v23241_v37  ;;  %v12758_v37 = vld [vmem:[#allocation3 + $0x15a] sm:$0xff] }
 0x9ad   :  { %18037 = vmatprep.mubr.msk.f32.mxu1 %vm6506_vm4, %v23245_v63  ;;  %v12759_v63 = vld [vmem:[#allocation3 + $0x16a] sm:$0xff] }
 0x9b0   :  { %18038 = vmatmul.mubr.msk.f32.gmra.mrb[44].mxu1 %vm6506_vm4, %v23249_v27  ;;  %v12760_v27 = vld [vmem:[#allocation3 + $0x172] sm:$0xff] }
 0x9b1   :  { %18040 = vmatprep.mubr.msk.f32.mxu1 %vm6506_vm4, %v23253_v60  ;;  %v12763_v60 = vld [vmem:[#allocation3 + $0x19a] sm:$0xff] }
 0x9b4   :  { %18041 = vmatmul.mubr.msk.f32.gmra.mrb[46].mxu1 %vm6506_vm4, %v23257_v59  ;;  %v25611_v59 = vld [vmem:[#allocation53_spill] sm:$0xff] }
 0x9b5   :  { %18043 = vmatprep.mubr.msk.f32.mxu1 %vm6506_vm4, %v25597_v33  ;;  %v12780_v33 = vld [vmem:[#allocation3 + $0x292] sm:$0xff] }
 0x9b8   :  { %18044 = vmatmul.mubr.msk.f32.gmra.mrb[48].mxu1 %vm6506_vm4, %v25598_v44  ;;  %v12781_v44 = vld [vmem:[#allocation3 + $0x2a2] sm:$0xff] }
 0x9b9   :  { %18046 = vmatprep.mubr.msk.f32.mxu1 %vm6506_vm4, %v25599_v42  ;;  %v12782_v42 = vld [vmem:[#allocation3 + $0x2aa] sm:$0xff] }
 0x9bc   :  { %18047 = vmatmul.mubr.msk.f32.gmra.mrb[50].mxu1 %vm6506_vm4, %v25600_v56  ;;  %v12783_v56 = vld [vmem:[#allocation3 + $0x2ba] sm:$0xff] }
 0x9bd   :  { %18049 = vmatprep.mubr.msk.f32.mxu1 %vm6506_vm4, %v25601_v53  ;;  %v12784_v53 = vld [vmem:[#allocation3 + $0x2c2] sm:$0xff] }
 0x9c0   :  { %18050 = vmatmul.mubr.msk.f32.gmra.mrb[52].mxu1 %vm6506_vm4, %v25602_v6  ;;  %v12785_v6 = vld [vmem:[#allocation3 + $0x2d2] sm:$0xff] }
 0x9c1   :  { %18052 = vmatprep.mubr.msk.f32.mxu1 %vm6506_vm4, %v25603_v3  ;;  %v12786_v3 = vld [vmem:[#allocation3 + $0x2da] sm:$0xff] }
 0x9c4   :  { %18053 = vmatmul.mubr.msk.f32.gmra.mrb[54].mxu1 %vm6506_vm4, %v25604_v5  ;;  %v12787_v5 = vld [vmem:[#allocation3 + $0x2ea] sm:$0xff] }
 0x9c5   :  { %18055 = vmatprep.mubr.msk.f32.mxu1 %vm6506_vm4, %v25605_v13  ;;  %v12788_v13 = vld [vmem:[#allocation3 + $0x2f2] sm:$0xff] }
 0x9c8   :  { %18056 = vmatmul.mubr.msk.f32.gmra.mrb[56].mxu1 %vm6506_vm4, %v25606_v26  ;;  %v12789_v26 = vld [vmem:[#allocation3 + $0x302] sm:$0xff] }
 0x9c9   :  { %18058 = vmatprep.mubr.msk.f32.mxu1 %vm6506_vm4, %v25607_v24  ;;  %v12790_v24 = vld [vmem:[#allocation3 + $0x30a] sm:$0xff] }
 0x9cc   :  { %18059 = vmatmul.mubr.msk.f32.gmra.mrb[58].mxu1 %vm6506_vm4, %v25608_v40  ;;  %v12791_v40 = vld [vmem:[#allocation3 + $0x31a] sm:$0xff] }
 0x9cd   :  { %18061 = vmatprep.mubr.msk.f32.mxu1 %vm6506_vm4, %v25609_v1  ;;  %v12792_v1 = vld [vmem:[#allocation3 + $0x322] sm:$0xff] }
 0x9d0   :  { %18062 = vmatmul.mubr.msk.f32.gmra.mrb[60].mxu1 %vm6506_vm4, %v25610_v55  ;;  %v12796_v55 = vld [vmem:[#allocation3 + $0x352] sm:$0xff] }
 0x9d1   :  { %18064 = vmatprep.mubr.msk.f32.mxu1 %vm6506_vm4, %v12088_v58  ;;  %v12795_v58 = vld [vmem:[#allocation3 + $0x34a] sm:$0xff] }
 0x9d4   :  { %18065 = vmatmul.mubr.msk.f32.gmra.mrb[62].mxu1 %vm6506_vm4, %v12089_v11 }
 0x9d5   :  { %18069 = vmatprep.mubr.msk.f32.mxu1 %vm6506_vm4, %v12733_v0 }
 0x9d8   :  { %18070 = vmatmul.mubr.msk.f32.vlgmr.msra.gmra.mrb[0].mxu1 %vm6506_vm4, %v12734_v21 }
 0x9d9   :  { %18072 = vmatprep.mubr.msk.f32.mxu1 %vm6506_vm4, %v12735_v19 }
 0x9dc   :  { %18073 = vmatmul.mubr.msk.f32.gmra.mrb[2].mxu1 %vm6506_vm4, %v12736_v34 }
 0x9dd   :  { %18075 = vmatprep.mubr.msk.f32.mxu1 %vm6506_vm4, %v12737_v54 }
 0x9e0   :  { %18076 = vmatmul.mubr.msk.f32.gmra.mrb[4].mxu1 %vm6506_vm4, %v12738_v49 }
 0x9e1   :  { %18078 = vmatprep.mubr.msk.f32.mxu1 %vm6506_vm4, %v12739_v7 }
 0x9e4   :  { %18079 = vmatmul.mubr.msk.f32.gmra.mrb[6].mxu1 %vm6506_vm4, %v12740_v28 }
 0x9e5   :  { %18081 = vmatprep.mubr.msk.f32.mxu1 %vm6506_vm4, %v12741_v25 }
 0x9e8   :  { %18082 = vmatmul.mubr.msk.f32.gmra.mrb[8].mxu1 %vm6506_vm4, %v12742_v50 }
 0x9e9   :  { %18084 = vmatprep.mubr.msk.f32.mxu1 %vm6506_vm4, %v12743_v46 }
 0x9ec   :  { %18085 = vmatmul.mubr.msk.f32.gmra.mrb[10].mxu1 %vm6506_vm4, %v12744_v48 }
 0x9ed   :  { %18087 = vmatprep.mubr.msk.f32.mxu1 %vm6506_vm4, %v12745_v2 }
 0x9f0   :  { %18088 = vmatmul.mubr.msk.f32.gmra.mrb[12].mxu1 %vm6506_vm4, %v12746_v29 }
 0x9f1   :  { %18090 = vmatprep.mubr.msk.f32.mxu1 %vm6506_vm4, %v12747_v57 }
 0x9f4   :  { %18091 = vmatmul.mubr.msk.f32.gmra.mrb[14].mxu1 %vm6506_vm4, %v12748_v14 }
 0x9f5   :  { %18093 = vmatprep.mubr.msk.f32.mxu1 %vm6506_vm4, %v12749_v43 }
 0x9f8   :  { %18094 = vmatmul.mubr.msk.f32.gmra.mrb[16].mxu1 %vm6506_vm4, %v12750_v51 }
 0x9f9   :  { %18096 = vmatprep.mubr.msk.f32.mxu1 %vm6506_vm4, %v12751_v17 }
 0x9fc   :  { %18097 = vmatmul.mubr.msk.f32.gmra.mrb[18].mxu1 %vm6506_vm4, %v12752_v31 }
 0x9fd   :  { %18099 = vmatprep.mubr.msk.f32.mxu1 %vm6506_vm4, %v12753_v41 }
 0xa00   :  { %18100 = vmatmul.mubr.msk.f32.gmra.mrb[20].mxu1 %vm6506_vm4, %v12754_v8 }
 0xa01   :  { %18102 = vmatprep.mubr.msk.f32.mxu1 %vm6506_vm4, %v12755_v10 }
 0xa04   :  { %18103 = vmatmul.mubr.msk.f32.gmra.mrb[22].mxu1 %vm6506_vm4, %v12756_v20 }
 0xa05   :  { %18105 = vmatprep.mubr.msk.f32.mxu1 %vm6506_vm4, %v12757_v35 }
 0xa08   :  { %18106 = vmatmul.mubr.msk.f32.gmra.mrb[24].mxu1 %vm6506_vm4, %v12758_v37 }
 0xa09   :  { %18108 = vmatprep.mubr.msk.f32.mxu1 %vm6506_vm4, %v12759_v63 }
 0xa0c   :  { %18109 = vmatmul.mubr.msk.f32.gmra.mrb[26].mxu1 %vm6506_vm4, %v12760_v27 }
 0xa0d   :  { %18111 = vmatprep.mubr.msk.f32.mxu1 %vm6506_vm4, %v23384_v39  ;;  %v12769_v39 = vld [vmem:[#allocation3 + $0x212] sm:$0xff] }
 0xa10   :  { %18112 = vmatmul.mubr.msk.f32.gmra.mrb[28].mxu1 %vm6506_vm4, %v25611_v59 }
 0xa11   :  { %18114 = vmatprep.mubr.msk.f32.mxu1 %vm6506_vm4, %v12763_v60 }
 0xa14   :  { %18115 = vmatmul.mubr.msk.f32.gmra.mrb[30].mxu1 %vm6506_vm4, %v12764_v22 }
 0xa15   :  { %18117 = vmatprep.mubr.msk.f32.mxu1 %vm6506_vm4, %v12765_v30 }
 0xa18   :  { %18118 = vmatmul.mubr.msk.f32.gmra.mrb[32].mxu1 %vm6506_vm4, %v12766_v45 }
 0xa19   :  { %18120 = vmatprep.mubr.msk.f32.mxu1 %vm6506_vm4, %v12767_v9 }
 0xa1c   :  { %18121 = vmatmul.mubr.msk.f32.gmra.mrb[34].mxu1 %vm6506_vm4, %v12768_v47 }
 0xa1d   :  { %18123 = vmatprep.mubr.msk.f32.mxu1 %vm6506_vm4, %v12769_v39 }
 0xa20   :  { %18124 = vmatmul.mubr.msk.f32.gmra.mrb[36].mxu1 %vm6506_vm4, %v12770_v12 }
 0xa21   :  { %18126 = vmatprep.mubr.msk.f32.mxu1 %vm6506_vm4, %v12771_v38 }
 0xa24   :  { %18127 = vmatmul.mubr.msk.f32.gmra.mrb[38].mxu1 %vm6506_vm4, %v12772_v32 }
 0xa25   :  { %18129 = vmatprep.mubr.msk.f32.mxu1 %vm6506_vm4, %v12773_v16 }
 0xa28   :  { %18130 = vmatmul.mubr.msk.f32.gmra.mrb[40].mxu1 %vm6506_vm4, %v12774_v4 }
 0xa29   :  { %18132 = vmatprep.mubr.msk.f32.mxu1 %vm6506_vm4, %v12775_v15 }
 0xa2c   :  { %18133 = vmatmul.mubr.msk.f32.gmra.mrb[42].mxu1 %vm6506_vm4, %v12776_v36 }
 0xa2d   :  { %18135 = vmatprep.mubr.msk.f32.mxu1 %vm6506_vm4, %v12777_v52 }
 0xa30   :  { %18136 = vmatmul.mubr.msk.f32.gmra.mrb[44].mxu1 %vm6506_vm4, %v12778_v18 }
 0xa31   :  { %18138 = vmatprep.mubr.msk.f32.mxu1 %vm6506_vm4, %v12779_v61 }
 0xa34   :  { %18139 = vmatmul.mubr.msk.f32.gmra.mrb[46].mxu1 %vm6506_vm4, %v12780_v33 }
 0xa35   :  { %18141 = vmatprep.mubr.msk.f32.mxu1 %vm6506_vm4, %v12781_v44 }
 0xa38   :  { %18142 = vmatmul.mubr.msk.f32.gmra.mrb[48].mxu1 %vm6506_vm4, %v12782_v42 }
 0xa39   :  { %18144 = vmatprep.mubr.msk.f32.mxu1 %vm6506_vm4, %v12783_v56 }
 0xa3c   :  { %18145 = vmatmul.mubr.msk.f32.gmra.mrb[50].mxu1 %vm6506_vm4, %v12784_v53 }
 0xa3d   :  { %18147 = vmatprep.mubr.msk.f32.mxu1 %vm6506_vm4, %v12785_v6 }
 0xa40   :  { %18148 = vmatmul.mubr.msk.f32.gmra.mrb[52].mxu1 %vm6506_vm4, %v12786_v3 }
 0xa41   :  { %18150 = vmatprep.mubr.msk.f32.mxu1 %vm6506_vm4, %v12787_v5 }
 0xa44   :  { %18151 = vmatmul.mubr.msk.f32.gmra.mrb[54].mxu1 %vm6506_vm4, %v12788_v13 }
 0xa45   :  { %18153 = vmatprep.mubr.msk.f32.mxu1 %vm6506_vm4, %v12789_v26 }
 0xa48   :  { %18154 = vmatmul.mubr.msk.f32.gmra.mrb[56].mxu1 %vm6506_vm4, %v12790_v24 }
 0xa49   :  { %18156 = vmatprep.mubr.msk.f32.mxu1 %vm6506_vm4, %v12791_v40 }
 0xa4c   :  { %18157 = vmatmul.mubr.msk.f32.gmra.mrb[58].mxu1 %vm6506_vm4, %v12792_v1 }
 0xa4d   :  { %18159 = vmatprep.mubr.msk.f32.mxu1 %vm6506_vm4, %v23452_v23 }
 0xa50   :  { %18160 = vmatmul.mubr.msk.f32.gmra.mrb[60].mxu1 %vm6506_vm4, %v23456_v62 }
 0xa51   :  { %18162 = vmatprep.mubr.msk.f32.mxu1 %vm6506_vm4, %v12795_v58 }
 0xa54   :  { %18163 = vmatmul.mubr.msk.f32.gmra.mrb[62].mxu1 %vm6506_vm4, %v12796_v55 }
 0xaab   :  { %v23728_v11 = vpop.f32.mrb[0].mxu1 }
 0xaac   :  { %v13441_v0 = vsel %vm6506_vm4, %v23728_v11, 0.0  ;;  %v13574_v21 = vmul.f32 %v23728_v11, %v23728_v11  ;;  %v23734_v19 = vpop.f32.mrb[1].mxu1 }
 0xaad   :  { %v13440_v23 = vsel %vm6506_vm4, %v23734_v19, 0.0  ;;  %v13573_v62 = vmul.f32 %v23734_v19, %v23734_v19 }
 0xaae   :  { %v13638_v34 = vsel %vm6506_vm4, %v13574_v21, 0.0  ;;  %v13442_v54 = vadd.f32 %v13441_v0, %v13440_v23 }
 0xaaf   :  { %v13637_v49 = vsel %vm6506_vm4, %v13573_v62, 0.0  ;;  %v23742_v7 = vpop.f32.mrb[2].mxu1 }
 0xab0   :  { %v13639_v28 = vadd.f32 %v13638_v34, %v13637_v49  ;;  %v23744_v25 = vpop.f32.mrb[3].mxu1  ;;  %v13576_v50 = vmul.f32 %v23742_v7, %v23742_v7  ;;  %v13445_v29 = vsel %vm6506_vm4, %v23742_v7, 0.0 }
 0xab1   :  { %v13443_v46 = vsel %vm6506_vm4, %v23744_v25, 0.0  ;;  %v13575_v48 = vmul.f32 %v23744_v25, %v23744_v25 }
 0xab2   :  { %v13444_v2 = vadd.f32 %v13443_v46, %v13442_v54  ;;  %v13642_v31 = vsel %vm6506_vm4, %v13576_v50, 0.0 }
 0xab3   :  { %v13640_v57 = vsel %vm6506_vm4, %v13575_v48, 0.0  ;;  %v23755_v14 = vpop.f32.mrb[4].mxu1 }
 0xab4   :  { %v13446_v43 = vadd.f32 %v13445_v29, %v13444_v2  ;;  %v13641_v51 = vadd.f32 %v13640_v57, %v13639_v28  ;;  %v23757_v17 = vpop.f32.mrb[5].mxu1  ;;  %v13578_v41 = vmul.f32 %v23755_v14, %v23755_v14  ;;  %v13449_v37 = vsel %vm6506_vm4, %v23755_v14, 0.0 }
 0xab5   :  { %v13447_v8 = vsel %vm6506_vm4, %v23757_v17, 0.0  ;;  %v13577_v10 = vmul.f32 %v23757_v17, %v23757_v17 }
 0xab6   :  { %v13643_v20 = vadd.f32 %v13642_v31, %v13641_v51  ;;  %v13448_v35 = vadd.f32 %v13447_v8, %v13446_v43  ;;  %v13646_v30 = vsel %vm6506_vm4, %v13578_v41, 0.0 }
 0xab7   :  { %v13644_v63 = vsel %vm6506_vm4, %v13577_v10, 0.0  ;;  %v23769_v27 = vpop.f32.mrb[6].mxu1 }
 0xab8   :  { %v13645_v60 = vadd.f32 %v13644_v63, %v13643_v20  ;;  %v23771_v59 = vpop.f32.mrb[7].mxu1  ;;  %v13450_v22 = vadd.f32 %v13449_v37, %v13448_v35  ;;  %v13580_v45 = vmul.f32 %v23769_v27, %v23769_v27  ;;  %v13453_v38 = vsel %vm6506_vm4, %v23769_v27, 0.0 }
 0xab9   :  { %v13451_v9 = vsel %vm6506_vm4, %v23771_v59, 0.0  ;;  %v13579_v47 = vmul.f32 %v23771_v59, %v23771_v59 }
 0xaba   :  { %v13452_v39 = vadd.f32 %v13451_v9, %v13450_v22  ;;  %v13647_v12 = vadd.f32 %v13646_v30, %v13645_v60  ;;  %v13650_v52 = vsel %vm6506_vm4, %v13580_v45, 0.0 }
 0xabb   :  { %v13648_v32 = vsel %vm6506_vm4, %v13579_v47, 0.0  ;;  %v23783_v16 = vpop.f32.mrb[8].mxu1 }
 0xabc   :  { %v13649_v4 = vadd.f32 %v13648_v32, %v13647_v12  ;;  %v23785_v15 = vpop.f32.mrb[9].mxu1  ;;  %v13454_v36 = vadd.f32 %v13453_v38, %v13452_v39  ;;  %v13582_v18 = vmul.f32 %v23783_v16, %v23783_v16  ;;  %v13457_v56 = vsel %vm6506_vm4, %v23783_v16, 0.0 }
 0xabd   :  { %v13455_v61 = vsel %vm6506_vm4, %v23785_v15, 0.0  ;;  %v13581_v33 = vmul.f32 %v23785_v15, %v23785_v15 }
 0xabe   :  { %v13456_v44 = vadd.f32 %v13455_v61, %v13454_v36  ;;  %v13651_v42 = vadd.f32 %v13650_v52, %v13649_v4  ;;  %v13654_v26 = vsel %vm6506_vm4, %v13582_v18, 0.0 }
 0xabf   :  { %v13652_v53 = vsel %vm6506_vm4, %v13581_v33, 0.0  ;;  %v23797_v6 = vpop.f32.mrb[10].mxu1 }
 0xac0   :  { %v13653_v3 = vadd.f32 %v13652_v53, %v13651_v42  ;;  %v23799_v5 = vpop.f32.mrb[11].mxu1  ;;  %v13458_v13 = vadd.f32 %v13457_v56, %v13456_v44  ;;  %v13584_v24 = vmul.f32 %v23797_v6, %v23797_v6  ;;  %v13461_v0 = vsel %vm6506_vm4, %v23797_v6, 0.0 }
 0xac1   :  { %v13459_v40 = vsel %vm6506_vm4, %v23799_v5, 0.0  ;;  %v13583_v1 = vmul.f32 %v23799_v5, %v23799_v5 }
 0xac2   :  { %v13460_v58 = vadd.f32 %v13459_v40, %v13458_v13  ;;  %v13655_v55 = vadd.f32 %v13654_v26, %v13653_v3  ;;  %v13658_v49 = vsel %vm6506_vm4, %v13584_v24, 0.0 }
 0xac3   :  { %v13656_v21 = vsel %vm6506_vm4, %v13583_v1, 0.0  ;;  %v23811_v23 = vpop.f32.mrb[12].mxu1 }
 0xac4   :  { %v13657_v62 = vadd.f32 %v13656_v21, %v13655_v55  ;;  %v23813_v34 = vpop.f32.mrb[13].mxu1  ;;  %v13462_v54 = vadd.f32 %v13461_v0, %v13460_v58  ;;  %v13586_v28 = vmul.f32 %v23811_v23, %v23811_v23  ;;  %v13465_v29 = vsel %vm6506_vm4, %v23811_v23, 0.0 }
 0xac5   :  { %v13463_v50 = vsel %vm6506_vm4, %v23813_v34, 0.0  ;;  %v13585_v46 = vmul.f32 %v23813_v34, %v23813_v34 }
 0xac6   :  { %v13464_v48 = vadd.f32 %v13463_v50, %v13462_v54  ;;  %v13659_v2 = vadd.f32 %v13658_v49, %v13657_v62  ;;  %v13662_v8 = vsel %vm6506_vm4, %v13586_v28, 0.0 }
 0xac7   :  { %v13660_v57 = vsel %vm6506_vm4, %v13585_v46, 0.0  ;;  %v23825_v43 = vpop.f32.mrb[14].mxu1 }
 0xac8   :  { %v13661_v51 = vadd.f32 %v13660_v57, %v13659_v2  ;;  %v23827_v31 = vpop.f32.mrb[15].mxu1  ;;  %v13466_v41 = vadd.f32 %v13465_v29, %v13464_v48  ;;  %v13588_v10 = vmul.f32 %v23825_v43, %v23825_v43  ;;  %v13469_v60 = vsel %vm6506_vm4, %v23825_v43, 0.0 }
 0xac9   :  { %v13467_v20 = vsel %vm6506_vm4, %v23827_v31, 0.0  ;;  %v13587_v35 = vmul.f32 %v23827_v31, %v23827_v31 }
 0xaca   :  { %v13468_v37 = vadd.f32 %v13467_v20, %v13466_v41  ;;  %v13663_v63 = vadd.f32 %v13662_v8, %v13661_v51  ;;  %v13666_v39 = vsel %vm6506_vm4, %v13588_v10, 0.0 }
 0xacb   :  { %v13664_v22 = vsel %vm6506_vm4, %v13587_v35, 0.0  ;;  %v23839_v30 = vpop.f32.mrb[16].mxu1 }
 0xacc   :  { %v13665_v45 = vadd.f32 %v13664_v22, %v13663_v63  ;;  %v23841_v9 = vpop.f32.mrb[17].mxu1  ;;  %v13470_v47 = vadd.f32 %v13469_v60, %v13468_v37  ;;  %v13590_v12 = vmul.f32 %v23839_v30, %v23839_v30  ;;  %v13473_v52 = vsel %vm6506_vm4, %v23839_v30, 0.0 }
 0xacd   :  { %v13471_v38 = vsel %vm6506_vm4, %v23841_v9, 0.0  ;;  %v13589_v32 = vmul.f32 %v23841_v9, %v23841_v9 }
 0xace   :  { %v13472_v4 = vadd.f32 %v13471_v38, %v13470_v47  ;;  %v13667_v36 = vadd.f32 %v13666_v39, %v13665_v45  ;;  %v13670_v56 = vsel %vm6506_vm4, %v13590_v12, 0.0 }
 0xacf   :  { %v13668_v18 = vsel %vm6506_vm4, %v13589_v32, 0.0  ;;  %v23853_v61 = vpop.f32.mrb[18].mxu1 }
 0xad0   :  { %v13669_v33 = vadd.f32 %v13668_v18, %v13667_v36  ;;  %v23855_v44 = vpop.f32.mrb[19].mxu1  ;;  %v13474_v42 = vadd.f32 %v13473_v52, %v13472_v4  ;;  %v13592_v53 = vmul.f32 %v23853_v61, %v23853_v61  ;;  %v13477_v40 = vsel %vm6506_vm4, %v23853_v61, 0.0 }
 0xad1   :  { %v13475_v3 = vsel %vm6506_vm4, %v23855_v44, 0.0  ;;  %v13591_v13 = vmul.f32 %v23855_v44, %v23855_v44 }
 0xad2   :  { %v13476_v26 = vadd.f32 %v13475_v3, %v13474_v42  ;;  %v13671_v24 = vadd.f32 %v13670_v56, %v13669_v33  ;;  %v13674_v62 = vsel %vm6506_vm4, %v13592_v53, 0.0 }
 0xad3   :  { %v13672_v1 = vsel %vm6506_vm4, %v13591_v13, 0.0  ;;  %v23867_v58 = vpop.f32.mrb[20].mxu1 }
 0xad4   :  { %v13673_v55 = vadd.f32 %v13672_v1, %v13671_v24  ;;  %v23869_v0 = vpop.f32.mrb[21].mxu1  ;;  %v13478_v21 = vadd.f32 %v13477_v40, %v13476_v26  ;;  %v13594_v54 = vmul.f32 %v23867_v58, %v23867_v58  ;;  %v13481_v48 = vsel %vm6506_vm4, %v23867_v58, 0.0 }
 0xad5   :  { %v13479_v49 = vsel %vm6506_vm4, %v23869_v0, 0.0  ;;  %v13593_v28 = vmul.f32 %v23869_v0, %v23869_v0 }
 0xad6   :  { %v13480_v50 = vadd.f32 %v13479_v49, %v13478_v21  ;;  %v13675_v46 = vadd.f32 %v13674_v62, %v13673_v55  ;;  %v13678_v8 = vsel %vm6506_vm4, %v13594_v54, 0.0 }
 0xad7   :  { %v13676_v2 = vsel %vm6506_vm4, %v13593_v28, 0.0  ;;  %v23881_v29 = vpop.f32.mrb[22].mxu1 }
 0xad8   :  { %v13677_v57 = vadd.f32 %v13676_v2, %v13675_v46  ;;  %v23883_v51 = vpop.f32.mrb[23].mxu1  ;;  %v13482_v41 = vadd.f32 %v13481_v48, %v13480_v50  ;;  %v13596_v10 = vmul.f32 %v23881_v29, %v23881_v29  ;;  %v13485_v60 = vsel %vm6506_vm4, %v23881_v29, 0.0 }
 0xad9   :  { %v13483_v20 = vsel %vm6506_vm4, %v23883_v51, 0.0  ;;  %v13595_v35 = vmul.f32 %v23883_v51, %v23883_v51 }
 0xada   :  { %v13484_v37 = vadd.f32 %v13483_v20, %v13482_v41  ;;  %v13679_v63 = vadd.f32 %v13678_v8, %v13677_v57  ;;  %v13682_v38 = vsel %vm6506_vm4, %v13596_v10, 0.0 }
 0xadb   :  { %v13680_v22 = vsel %vm6506_vm4, %v13595_v35, 0.0  ;;  %v23895_v45 = vpop.f32.mrb[24].mxu1 }
 0xadc   :  { %v13681_v47 = vadd.f32 %v13680_v22, %v13679_v63  ;;  %v23897_v39 = vpop.f32.mrb[25].mxu1  ;;  %v13486_v12 = vadd.f32 %v13485_v60, %v13484_v37  ;;  %v13598_v32 = vmul.f32 %v23895_v45, %v23895_v45  ;;  %v13489_v33 = vsel %vm6506_vm4, %v23895_v45, 0.0 }
 0xadd   :  { %v13487_v4 = vsel %vm6506_vm4, %v23897_v39, 0.0  ;;  %v13597_v36 = vmul.f32 %v23897_v39, %v23897_v39 }
 0xade   :  { %v13488_v52 = vadd.f32 %v13487_v4, %v13486_v12  ;;  %v13683_v18 = vadd.f32 %v13682_v38, %v13681_v47  ;;  %v13686_v26 = vsel %vm6506_vm4, %v13598_v32, 0.0 }
 0xadf   :  { %v13684_v42 = vsel %vm6506_vm4, %v13597_v36, 0.0  ;;  %v23909_v56 = vpop.f32.mrb[26].mxu1 }
 0xae0   :  { %v13685_v53 = vadd.f32 %v13684_v42, %v13683_v18  ;;  %v23911_v3 = vpop.f32.mrb[27].mxu1  ;;  %v13490_v13 = vadd.f32 %v13489_v33, %v13488_v52  ;;  %v13600_v24 = vmul.f32 %v23909_v56, %v23909_v56  ;;  %v13493_v62 = vsel %vm6506_vm4, %v23909_v56, 0.0 }
 0xae1   :  { %v13491_v40 = vsel %vm6506_vm4, %v23911_v3, 0.0  ;;  %v13599_v1 = vmul.f32 %v23911_v3, %v23911_v3 }
 0xae2   :  { %v13492_v55 = vadd.f32 %v13491_v40, %v13490_v13  ;;  %v13687_v21 = vadd.f32 %v13686_v26, %v13685_v53  ;;  %v13690_v48 = vsel %vm6506_vm4, %v13600_v24, 0.0 }
 0xae3   :  { %v13688_v54 = vsel %vm6506_vm4, %v13599_v1, 0.0  ;;  %v23923_v49 = vpop.f32.mrb[28].mxu1 }
 0xae4   :  { %v13689_v28 = vadd.f32 %v13688_v54, %v13687_v21  ;;  %v23925_v50 = vpop.f32.mrb[29].mxu1  ;;  %v13494_v46 = vadd.f32 %v13493_v62, %v13492_v55  ;;  %v13602_v2 = vmul.f32 %v23923_v49, %v23923_v49  ;;  %v13497_v20 = vsel %vm6506_vm4, %v23923_v49, 0.0 }
 0xae5   :  { %v13495_v57 = vsel %vm6506_vm4, %v23925_v50, 0.0  ;;  %v13601_v41 = vmul.f32 %v23925_v50, %v23925_v50 }
 0xae6   :  { %v13496_v8 = vadd.f32 %v13495_v57, %v13494_v46  ;;  %v13691_v10 = vadd.f32 %v13690_v48, %v13689_v28  ;;  %v13694_v47 = vsel %vm6506_vm4, %v13602_v2, 0.0 }
 0xae7   :  { %v13692_v35 = vsel %vm6506_vm4, %v13601_v41, 0.0  ;;  %v23937_v37 = vpop.f32.mrb[30].mxu1 }
 0xae8   :  { %v13693_v63 = vadd.f32 %v13692_v35, %v13691_v10  ;;  %v23939_v60 = vpop.f32.mrb[31].mxu1  ;;  %v13498_v22 = vadd.f32 %v13497_v20, %v13496_v8  ;;  %v13604_v12 = vmul.f32 %v23937_v37, %v23937_v37  ;;  %v13501_v52 = vsel %vm6506_vm4, %v23937_v37, 0.0 }
 0xae9   :  { %v13499_v38 = vsel %vm6506_vm4, %v23939_v60, 0.0  ;;  %v13603_v32 = vmul.f32 %v23939_v60, %v23939_v60 }
 0xaea   :  { %v13500_v4 = vadd.f32 %v13499_v38, %v13498_v22  ;;  %v13695_v36 = vadd.f32 %v13694_v47, %v13693_v63  ;;  %v13698_v26 = vsel %vm6506_vm4, %v13604_v12, 0.0 }
 0xaeb   :  { %v13696_v18 = vsel %vm6506_vm4, %v13603_v32, 0.0  ;;  %v23951_v33 = vpop.f32.mrb[32].mxu1 }
 0xaec   :  { %v13697_v42 = vadd.f32 %v13696_v18, %v13695_v36  ;;  %v23953_v53 = vpop.f32.mrb[33].mxu1  ;;  %v13502_v13 = vadd.f32 %v13501_v52, %v13500_v4  ;;  %v13606_v24 = vmul.f32 %v23951_v33, %v23951_v33  ;;  %v13505_v62 = vsel %vm6506_vm4, %v23951_v33, 0.0 }
 0xaed   :  { %v13503_v40 = vsel %vm6506_vm4, %v23953_v53, 0.0  ;;  %v13605_v1 = vmul.f32 %v23953_v53, %v23953_v53 }
 0xaee   :  { %v13504_v55 = vadd.f32 %v13503_v40, %v13502_v13  ;;  %v13699_v21 = vadd.f32 %v13698_v26, %v13697_v42  ;;  %v13702_v57 = vsel %vm6506_vm4, %v13606_v24, 0.0 }
 0xaef   :  { %v13700_v54 = vsel %vm6506_vm4, %v13605_v1, 0.0  ;;  %v23965_v28 = vpop.f32.mrb[34].mxu1 }
 0xaf0   :  { %v13701_v46 = vadd.f32 %v13700_v54, %v13699_v21  ;;  %v23967_v48 = vpop.f32.mrb[35].mxu1  ;;  %v13506_v2 = vadd.f32 %v13505_v62, %v13504_v55  ;;  %v13608_v41 = vmul.f32 %v23965_v28, %v23965_v28  ;;  %v13509_v63 = vsel %vm6506_vm4, %v23965_v28, 0.0 }
 0xaf1   :  { %v13507_v8 = vsel %vm6506_vm4, %v23967_v48, 0.0  ;;  %v13607_v10 = vmul.f32 %v23967_v48, %v23967_v48 }
 0xaf2   :  { %v13508_v20 = vadd.f32 %v13507_v8, %v13506_v2  ;;  %v13703_v35 = vadd.f32 %v13702_v57, %v13701_v46  ;;  %v13706_v4 = vsel %vm6506_vm4, %v13608_v41, 0.0 }
 0xaf3   :  { %v13704_v22 = vsel %vm6506_vm4, %v13607_v10, 0.0  ;;  %v23979_v47 = vpop.f32.mrb[36].mxu1 }
 0xaf4   :  { %v13705_v12 = vadd.f32 %v13704_v22, %v13703_v35  ;;  %v23981_v38 = vpop.f32.mrb[37].mxu1  ;;  %v13510_v32 = vadd.f32 %v13509_v63, %v13508_v20  ;;  %v13610_v36 = vmul.f32 %v23979_v47, %v23979_v47  ;;  %v13513_v26 = vsel %vm6506_vm4, %v23979_v47, 0.0 }
 0xaf5   :  { %v13511_v52 = vsel %vm6506_vm4, %v23981_v38, 0.0  ;;  %v13609_v18 = vmul.f32 %v23981_v38, %v23981_v38 }
 0xaf6   :  { %v13512_v42 = vadd.f32 %v13511_v52, %v13510_v32  ;;  %v13707_v13 = vadd.f32 %v13706_v4, %v13705_v12  ;;  %v13710_v62 = vsel %vm6506_vm4, %v13610_v36, 0.0 }
 0xaf7   :  { %v13708_v24 = vsel %vm6506_vm4, %v13609_v18, 0.0  ;;  %v23993_v40 = vpop.f32.mrb[38].mxu1 }
 0xaf8   :  { %v13709_v1 = vadd.f32 %v13708_v24, %v13707_v13  ;;  %v23995_v55 = vpop.f32.mrb[39].mxu1  ;;  %v13514_v21 = vadd.f32 %v13513_v26, %v13512_v42  ;;  %v13612_v54 = vmul.f32 %v23993_v40, %v23993_v40  ;;  %v13517_v8 = vsel %vm6506_vm4, %v23993_v40, 0.0 }
 0xaf9   :  { %v13515_v46 = vsel %vm6506_vm4, %v23995_v55, 0.0  ;;  %v13611_v2 = vmul.f32 %v23995_v55, %v23995_v55 }
 0xafa   :  { %v13516_v57 = vadd.f32 %v13515_v46, %v13514_v21  ;;  %v13711_v41 = vadd.f32 %v13710_v62, %v13709_v1  ;;  %v13714_v12 = vsel %vm6506_vm4, %v13612_v54, 0.0 }
 0xafb   :  { %v13712_v10 = vsel %vm6506_vm4, %v13611_v2, 0.0  ;;  %v24007_v20 = vpop.f32.mrb[40].mxu1 }
 0xafc   :  { %25612 = vst [vmem:[#allocation54_spill] sm:$0xff] %v24007_v20  ;;  %v13713_v35 = vadd.f32 %v13712_v10, %v13711_v41  ;;  %v24009_v63 = vpop.f32.mrb[41].mxu1  ;;  %v13518_v22 = vadd.f32 %v13517_v8, %v13516_v57  ;;  %v13614_v32 = vmul.f32 %v24007_v20, %v24007_v20  ;;  %v13521_v42 = vsel %vm6506_vm4, %v24007_v20, 0.0 }
 0xafd   :  { %25613 = vst [vmem:[#allocation55_spill] sm:$0xff] %v24009_v63  ;;  %v13519_v4 = vsel %vm6506_vm4, %v24009_v63, 0.0  ;;  %v13613_v36 = vmul.f32 %v24009_v63, %v24009_v63 }
 0xafe   :  { %v13520_v52 = vadd.f32 %v13519_v4, %v13518_v22  ;;  %v13715_v18 = vadd.f32 %v13714_v12, %v13713_v35  ;;  %v13718_v62 = vsel %vm6506_vm4, %v13614_v32, 0.0 }
 0xaff   :  { %v13716_v13 = vsel %vm6506_vm4, %v13613_v36, 0.0  ;;  %v24021_v26 = vpop.f32.mrb[42].mxu1 }
 0xb00   :  { %25614 = vst [vmem:[#allocation56_spill] sm:$0xff] %v24021_v26  ;;  %v13717_v24 = vadd.f32 %v13716_v13, %v13715_v18  ;;  %v24023_v1 = vpop.f32.mrb[43].mxu1  ;;  %v13522_v21 = vadd.f32 %v13521_v42, %v13520_v52  ;;  %v13616_v54 = vmul.f32 %v24021_v26, %v24021_v26  ;;  %v13525_v8 = vsel %vm6506_vm4, %v24021_v26, 0.0 }
 0xb01   :  { %25615 = vst [vmem:[#allocation57_spill] sm:$0xff] %v24023_v1  ;;  %v13523_v46 = vsel %vm6506_vm4, %v24023_v1, 0.0  ;;  %v13615_v2 = vmul.f32 %v24023_v1, %v24023_v1 }
 0xb02   :  { %v13524_v57 = vadd.f32 %v13523_v46, %v13522_v21  ;;  %v13719_v41 = vadd.f32 %v13718_v62, %v13717_v24  ;;  %v13722_v4 = vsel %vm6506_vm4, %v13616_v54, 0.0 }
 0xb03   :  { %v13720_v10 = vsel %vm6506_vm4, %v13615_v2, 0.0  ;;  %v24035_v35 = vpop.f32.mrb[44].mxu1 }
 0xb04   :  { %25616 = vst [vmem:[#allocation58_spill] sm:$0xff] %v24035_v35  ;;  %v13721_v22 = vadd.f32 %v13720_v10, %v13719_v41  ;;  %v24037_v12 = vpop.f32.mrb[45].mxu1  ;;  %v13526_v32 = vadd.f32 %v13525_v8, %v13524_v57  ;;  %v13618_v36 = vmul.f32 %v24035_v35, %v24035_v35  ;;  %v13529_v24 = vsel %vm6506_vm4, %v24035_v35, 0.0 }
 0xb05   :  { %25617 = vst [vmem:[#allocation59_spill] sm:$0xff] %v24037_v12  ;;  %v13527_v52 = vsel %vm6506_vm4, %v24037_v12, 0.0  ;;  %v13617_v18 = vmul.f32 %v24037_v12, %v24037_v12 }
 0xb06   :  { %v13528_v42 = vadd.f32 %v13527_v52, %v13526_v32  ;;  %v13723_v13 = vadd.f32 %v13722_v4, %v13721_v22  ;;  %v13726_v57 = vsel %vm6506_vm4, %v13618_v36, 0.0 }
 0xb07   :  { %v13724_v21 = vsel %vm6506_vm4, %v13617_v18, 0.0  ;;  %v24049_v62 = vpop.f32.mrb[46].mxu1 }
 0xb08   :  { %25618 = vst [vmem:[#allocation60_spill] sm:$0xff] %v24049_v62  ;;  %v13725_v46 = vadd.f32 %v13724_v21, %v13723_v13  ;;  %v24051_v54 = vpop.f32.mrb[47].mxu1  ;;  %v13530_v2 = vadd.f32 %v13529_v24, %v13528_v42  ;;  %v13620_v41 = vmul.f32 %v24049_v62, %v24049_v62  ;;  %v13533_v4 = vsel %vm6506_vm4, %v24049_v62, 0.0 }
 0xb09   :  { %25619 = vst [vmem:[#allocation61_spill] sm:$0xff] %v24051_v54  ;;  %v13531_v8 = vsel %vm6506_vm4, %v24051_v54, 0.0  ;;  %v13619_v10 = vmul.f32 %v24051_v54, %v24051_v54 }
 0xb0a   :  { %v13532_v22 = vadd.f32 %v13531_v8, %v13530_v2  ;;  %v13727_v32 = vadd.f32 %v13726_v57, %v13725_v46  ;;  %v13730_v24 = vsel %vm6506_vm4, %v13620_v41, 0.0 }
 0xb0b   :  { %v13728_v52 = vsel %vm6506_vm4, %v13619_v10, 0.0  ;;  %v24063_v18 = vpop.f32.mrb[48].mxu1 }
 0xb0c   :  { %25620 = vst [vmem:[#allocation4_spill] sm:$0xff] %v24063_v18  ;;  %v13729_v42 = vadd.f32 %v13728_v52, %v13727_v32  ;;  %v24065_v36 = vpop.f32.mrb[49].mxu1  ;;  %v13534_v13 = vadd.f32 %v13533_v4, %v13532_v22  ;;  %v13622_v21 = vmul.f32 %v24063_v18, %v24063_v18  ;;  %v13537_v10 = vsel %vm6506_vm4, %v24063_v18, 0.0 }
 0xb0d   :  { %25621 = vst [vmem:[#allocation5_spill] sm:$0xff] %v24065_v36  ;;  %v13535_v2 = vsel %vm6506_vm4, %v24065_v36, 0.0  ;;  %v13621_v46 = vmul.f32 %v24065_v36, %v24065_v36 }
 0xb0e   :  { %v13536_v57 = vadd.f32 %v13535_v2, %v13534_v13  ;;  %v13731_v8 = vadd.f32 %v13730_v24, %v13729_v42  ;;  %v13734_v62 = vsel %vm6506_vm4, %v13622_v21, 0.0 }
 0xb0f   :  { %v13732_v32 = vsel %vm6506_vm4, %v13621_v46, 0.0  ;;  %v24077_v52 = vpop.f32.mrb[50].mxu1 }
 0xb10   :  { %25622 = vst [vmem:[#allocation6_spill] sm:$0xff] %v24077_v52  ;;  %v13733_v22 = vadd.f32 %v13732_v32, %v13731_v8  ;;  %v24079_v41 = vpop.f32.mrb[51].mxu1  ;;  %v13538_v4 = vadd.f32 %v13537_v10, %v13536_v57  ;;  %v13624_v54 = vmul.f32 %v24077_v52, %v24077_v52  ;;  %v13541_v46 = vsel %vm6506_vm4, %v24077_v52, 0.0 }
 0xb11   :  { %25623 = vst [vmem:[#allocation7_spill] sm:$0xff] %v24079_v41  ;;  %v13539_v13 = vsel %vm6506_vm4, %v24079_v41, 0.0  ;;  %v13623_v42 = vmul.f32 %v24079_v41, %v24079_v41 }
 0xb12   :  { %v13540_v24 = vadd.f32 %v13539_v13, %v13538_v4  ;;  %v13735_v2 = vadd.f32 %v13734_v62, %v13733_v22  ;;  %v13738_v18 = vsel %vm6506_vm4, %v13624_v54, 0.0 }
 0xb13   :  { %v13736_v8 = vsel %vm6506_vm4, %v13623_v42, 0.0  ;;  %v24091_v32 = vpop.f32.mrb[52].mxu1 }
 0xb14   :  { %25624 = vst [vmem:[#allocation62_spill] sm:$0xff] %v24091_v32  ;;  %v13737_v57 = vadd.f32 %v13736_v8, %v13735_v2  ;;  %v24093_v21 = vpop.f32.mrb[53].mxu1  ;;  %v13542_v10 = vadd.f32 %v13541_v46, %v13540_v24  ;;  %v13626_v36 = vmul.f32 %v24091_v32, %v24091_v32  ;;  %v13545_v42 = vsel %vm6506_vm4, %v24091_v32, 0.0 }
 0xb15   :  { %25625 = vst [vmem:[#allocation63_spill] sm:$0xff] %v24093_v21  ;;  %v13543_v4 = vsel %vm6506_vm4, %v24093_v21, 0.0  ;;  %v13625_v62 = vmul.f32 %v24093_v21, %v24093_v21 }
 0xb16   :  { %v13544_v22 = vadd.f32 %v13543_v4, %v13542_v10  ;;  %v13739_v13 = vadd.f32 %v13738_v18, %v13737_v57  ;;  %v13742_v52 = vsel %vm6506_vm4, %v13626_v36, 0.0 }
 0xb17   :  { %v13740_v2 = vsel %vm6506_vm4, %v13625_v62, 0.0  ;;  %v24105_v8 = vpop.f32.mrb[54].mxu1 }
 0xb18   :  { %25626 = vst [vmem:[#allocation64_spill] sm:$0xff] %v24105_v8  ;;  %v13741_v24 = vadd.f32 %v13740_v2, %v13739_v13  ;;  %v24107_v54 = vpop.f32.mrb[55].mxu1  ;;  %v13546_v46 = vadd.f32 %v13545_v42, %v13544_v22  ;;  %v13628_v41 = vmul.f32 %v24105_v8, %v24105_v8  ;;  %v13549_v62 = vsel %vm6506_vm4, %v24105_v8, 0.0 }
 0xb19   :  { %25627 = vst [vmem:[#allocation65_spill] sm:$0xff] %v24107_v54  ;;  %v13547_v10 = vsel %vm6506_vm4, %v24107_v54, 0.0  ;;  %v13627_v18 = vmul.f32 %v24107_v54, %v24107_v54 }
 0xb1a   :  { %v13548_v57 = vadd.f32 %v13547_v10, %v13546_v46  ;;  %v13743_v4 = vadd.f32 %v13742_v52, %v13741_v24  ;;  %v13746_v32 = vsel %vm6506_vm4, %v13628_v41, 0.0 }
 0xb1b   :  { %v13744_v13 = vsel %vm6506_vm4, %v13627_v18, 0.0  ;;  %v24119_v2 = vpop.f32.mrb[56].mxu1 }
 0xb1c   :  { %25628 = vst [vmem:[#allocation66_spill] sm:$0xff] %v24119_v2  ;;  %v13745_v22 = vadd.f32 %v13744_v13, %v13743_v4  ;;  %v24121_v36 = vpop.f32.mrb[57].mxu1  ;;  %v13550_v42 = vadd.f32 %v13549_v62, %v13548_v57  ;;  %v13630_v21 = vmul.f32 %v24119_v2, %v24119_v2  ;;  %v13553_v18 = vsel %vm6506_vm4, %v24119_v2, 0.0 }
 0xb1d   :  { %25629 = vst [vmem:[#allocation67_spill] sm:$0xff] %v24121_v36  ;;  %v13551_v46 = vsel %vm6506_vm4, %v24121_v36, 0.0  ;;  %v13629_v52 = vmul.f32 %v24121_v36, %v24121_v36 }
 0xb1e   :  { %v13552_v24 = vadd.f32 %v13551_v46, %v13550_v42  ;;  %v13747_v10 = vadd.f32 %v13746_v32, %v13745_v22  ;;  %v13750_v8 = vsel %vm6506_vm4, %v13630_v21, 0.0 }
 0xb1f   :  { %v13748_v4 = vsel %vm6506_vm4, %v13629_v52, 0.0  ;;  %v24133_v13 = vpop.f32.mrb[58].mxu1 }
 0xb20   :  { %25630 = vst [vmem:[#allocation68_spill] sm:$0xff] %v24133_v13  ;;  %v13749_v57 = vadd.f32 %v13748_v4, %v13747_v10  ;;  %v24135_v41 = vpop.f32.mrb[59].mxu1  ;;  %v13554_v62 = vadd.f32 %v13553_v18, %v13552_v24  ;;  %v13632_v54 = vmul.f32 %v24133_v13, %v24133_v13  ;;  %v13557_v52 = vsel %vm6506_vm4, %v24133_v13, 0.0 }
 0xb21   :  { %25631 = vst [vmem:[#allocation69_spill] sm:$0xff] %v24135_v41  ;;  %v13555_v42 = vsel %vm6506_vm4, %v24135_v41, 0.0  ;;  %v13631_v32 = vmul.f32 %v24135_v41, %v24135_v41 }
 0xb22   :  { %v13556_v22 = vadd.f32 %v13555_v42, %v13554_v62  ;;  %v13751_v46 = vadd.f32 %v13750_v8, %v13749_v57  ;;  %v13754_v2 = vsel %vm6506_vm4, %v13632_v54, 0.0 }
 0xb23   :  { %v13752_v10 = vsel %vm6506_vm4, %v13631_v32, 0.0  ;;  %v24147_v4 = vpop.f32.mrb[60].mxu1 }
 0xb24   :  { %25632 = vst [vmem:[#allocation70_spill] sm:$0xff] %v24147_v4  ;;  %v13753_v24 = vadd.f32 %v13752_v10, %v13751_v46  ;;  %v24149_v21 = vpop.f32.mrb[61].mxu1  ;;  %v13558_v18 = vadd.f32 %v13557_v52, %v13556_v22  ;;  %v13634_v36 = vmul.f32 %v24147_v4, %v24147_v4  ;;  %v13561_v32 = vsel %vm6506_vm4, %v24147_v4, 0.0 }
 0xb25   :  { %25633 = vst [vmem:[#allocation71_spill] sm:$0xff] %v24149_v21  ;;  %v13559_v62 = vsel %vm6506_vm4, %v24149_v21, 0.0  ;;  %v13633_v8 = vmul.f32 %v24149_v21, %v24149_v21 }
 0xb26   :  { %v13560_v57 = vadd.f32 %v13559_v62, %v13558_v18  ;;  %v13755_v42 = vadd.f32 %v13754_v2, %v13753_v24  ;;  %v13758_v13 = vsel %vm6506_vm4, %v13634_v36, 0.0 }
 0xb27   :  { %v13756_v46 = vsel %vm6506_vm4, %v13633_v8, 0.0  ;;  %v24161_v10 = vpop.f32.mrb[62].mxu1 }
 0xb28   :  { %25634 = vst [vmem:[#allocation72_spill] sm:$0xff] %v24161_v10  ;;  %v13757_v22 = vadd.f32 %v13756_v46, %v13755_v42  ;;  %v24163_v54 = vpop.f32.mrb[63].mxu1  ;;  %v13562_v52 = vadd.f32 %v13561_v32, %v13560_v57  ;;  %v13636_v41 = vmul.f32 %v24161_v10, %v24161_v10  ;;  %v13565_v8 = vsel %vm6506_vm4, %v24161_v10, 0.0 }
 0xb29   :  { %25635 = vst [vmem:[#allocation8_spill] sm:$0xff] %v24163_v54  ;;  %v13563_v18 = vsel %vm6506_vm4, %v24163_v54, 0.0  ;;  %v13635_v2 = vmul.f32 %v24163_v54, %v24163_v54 }
 0xb2a   :  { %v13564_v24 = vadd.f32 %v13563_v18, %v13562_v52  ;;  %v13759_v62 = vadd.f32 %v13758_v13, %v13757_v22  ;;  %v13762_v36 = vsel %vm6506_vm4, %v13636_v41, 0.0  ;;  %v13775_v41 = vld [vmem:[%s25034_s5] sm:$0x1] }
 0xb2b   :  { %v13760_v42 = vsel %vm6506_vm4, %v13635_v2, 0.0 }
 0xb2c   :  { %v13566_v46 = vadd.f32 %v13565_v8, %v13564_v24  ;;  %v13761_v57 = vadd.f32 %v13760_v42, %v13759_v62 }
 0xb2e   :  { %v13567_v32 = vrot.slane %v13566_v46, 4  ;;  %v13763_v4 = vadd.f32 %v13762_v36, %v13761_v57  ;;  %v25637_v57 = vld [vmem:[#allocation55_spill] sm:$0xff]  ;;  %v25638_v36 = vld [vmem:[#allocation54_spill] sm:$0xff] }
 0xb30   :  { %v13568_v21 = vadd.f32 %v13567_v32, %v13566_v46  ;;  %v13764_v35 = vrot.slane %v13763_v4, 4  ;;  %v25639_v32 = vld [vmem:[#allocation57_spill] sm:$0xff] }
 0xb32   :  { %v13569_v12 = vrot.slane %v13568_v21, 2  ;;  %v13765_v26 = vadd.f32 %v13764_v35, %v13763_v4 }
 0xb34   :  { %v13570_v1 = vadd.f32 %v13569_v12, %v13568_v21  ;;  %v13766_v20 = vrot.slane %v13765_v26, 2 }
 0xb36   :  { %v13571_v54 = vrot.slane %v13570_v1, 1  ;;  %v13767_v52 = vadd.f32 %v13766_v20, %v13765_v26  ;;  %v24182_v20 = vld [vmem:[%s25035_s6] sm:$0x1] }
 0xb38   :  { %v13572_v13 = vadd.f32 %v13571_v54, %v13570_v1  ;;  %v13768_v22 = vrot.slane %v13767_v52, 1  ;;  %v25636_v1 = vld [vmem:[#allocation33_spill] sm:$0xff] }
 0xb3a   :  { %v13769_v18 = vadd.f32 %v13768_v22, %v13767_v52  ;;  %v13770_v10 = vmul.f32 0.001953125, %v13572_v13  ;;  %v25640_v52 = vld [vmem:[#allocation56_spill] sm:$0xff]  ;;  %v25641_v13 = vld [vmem:[#allocation59_spill] sm:$0xff]  ;;  %v25642_v22 = vld [vmem:[#allocation58_spill] sm:$0xff] }
 0xb3c   :  { %v13771_v63 = vmul.f32 0.001953125, %v13769_v18  ;;  %v13772_v2 = vmul.f32 %v13770_v10, %v13770_v10 }
 0xb3e   :  { %v13773_v24 = vsub.f32 %v13771_v63, %v13772_v2  ;;  %v25643_v2 = vld [vmem:[#allocation61_spill] sm:$0xff] }
 0xb3f   :  { %v25656_v63 = vld [vmem:[#allocation65_spill] sm:$0xff] }
 0xb40   :  { %v13774_v62 = vmax.f32 %v13773_v24, 0.0 }
 0xb42   :  { %v13776_v8 = vadd.f32 1e-05, %v13774_v62  ;;  %v25644_v62 = vld [vmem:[#allocation60_spill] sm:$0xff] }
 0xb44   :  { %19192 = vrsqrt.f32 %v13776_v8 }
 0xb4e   :  { %v19193_v42 = vpop.eup %19192 }
 0xb4f   :  { %v13778_v35 = vmul.f32 %v19193_v42, %v13775_v41  ;;  %v25645_v41 = vld [vmem:[#allocation5_spill] sm:$0xff] }
 0xb51   :  { %v24184_v26 = vmul.f32 %v13778_v35, %v13770_v10  ;;  %v24187_v12 = vrot.slane %v13778_v35, %v25636_v1  ;;  %v25646_v35 = vld [vmem:[#allocation4_spill] sm:$0xff] }
 0xb53   :  { %v24193_v4 = vmul.f32 %v24187_v12, %v23734_v19  ;;  %v24197_v21 = vmul.f32 %v23728_v11, %v24187_v12  ;;  %v24201_v54 = vmul.f32 %v24187_v12, %v23744_v25  ;;  %v24205_v10 = vmul.f32 %v23742_v7, %v24187_v12 }
 0xb54   :  { %v24209_v46 = vmul.f32 %v24187_v12, %v23757_v17  ;;  %v24213_v19 = vmul.f32 %v23755_v14, %v24187_v12  ;;  %v24217_v11 = vmul.f32 %v24187_v12, %v23771_v59  ;;  %v24221_v25 = vmul.f32 %v23769_v27, %v24187_v12 }
 0xb55   :  { %v24225_v7 = vmul.f32 %v24187_v12, %v23785_v15  ;;  %v24229_v17 = vmul.f32 %v23783_v16, %v24187_v12  ;;  %v24233_v14 = vmul.f32 %v24187_v12, %v23799_v5  ;;  %v24237_v59 = vmul.f32 %v23797_v6, %v24187_v12 }
 0xb56   :  { %v24241_v27 = vmul.f32 %v24187_v12, %v23813_v34  ;;  %v24245_v15 = vmul.f32 %v23811_v23, %v24187_v12  ;;  %v24249_v16 = vmul.f32 %v24187_v12, %v23827_v31  ;;  %v24253_v5 = vmul.f32 %v23825_v43, %v24187_v12 }
 0xb57   :  { %v24257_v6 = vmul.f32 %v24187_v12, %v23841_v9  ;;  %v24261_v34 = vmul.f32 %v23839_v30, %v24187_v12  ;;  %v24265_v23 = vmul.f32 %v24187_v12, %v23855_v44  ;;  %v24269_v31 = vmul.f32 %v23853_v61, %v24187_v12 }
 0xb58   :  { %v24273_v43 = vmul.f32 %v24187_v12, %v23869_v0  ;;  %v24277_v9 = vmul.f32 %v23867_v58, %v24187_v12  ;;  %v24281_v30 = vmul.f32 %v24187_v12, %v23883_v51  ;;  %v24285_v44 = vmul.f32 %v23881_v29, %v24187_v12 }
 0xb59   :  { %v24289_v61 = vmul.f32 %v24187_v12, %v23897_v39  ;;  %v24293_v0 = vmul.f32 %v23895_v45, %v24187_v12  ;;  %v24297_v58 = vmul.f32 %v24187_v12, %v23911_v3  ;;  %v24301_v51 = vmul.f32 %v23909_v56, %v24187_v12 }
 0xb5a   :  { %v24305_v29 = vmul.f32 %v24187_v12, %v23925_v50  ;;  %v24309_v39 = vmul.f32 %v23923_v49, %v24187_v12  ;;  %v24313_v45 = vmul.f32 %v24187_v12, %v23939_v60  ;;  %v24317_v3 = vmul.f32 %v23937_v37, %v24187_v12 }
 0xb5b   :  { %v24321_v56 = vmul.f32 %v24187_v12, %v23953_v53  ;;  %v24325_v50 = vmul.f32 %v23951_v33, %v24187_v12  ;;  %v24329_v49 = vmul.f32 %v24187_v12, %v23967_v48  ;;  %v24333_v60 = vmul.f32 %v23965_v28, %v24187_v12 }
 0xb5c   :  { %v24337_v37 = vmul.f32 %v24187_v12, %v23981_v38  ;;  %v24341_v53 = vmul.f32 %v23979_v47, %v24187_v12  ;;  %v24345_v33 = vmul.f32 %v24187_v12, %v23995_v55  ;;  %v24349_v48 = vmul.f32 %v23993_v40, %v24187_v12 }
 0xb5d   :  { %v24353_v28 = vmul.f32 %v24187_v12, %v25637_v57  ;;  %v24357_v38 = vmul.f32 %v25638_v36, %v24187_v12  ;;  %v24361_v47 = vmul.f32 %v24187_v12, %v25639_v32  ;;  %v24365_v55 = vmul.f32 %v25640_v52, %v24187_v12  ;;  %v25648_v36 = vld [vmem:[#allocation7_spill] sm:$0xff]  ;;  %v25650_v52 = vld [vmem:[#allocation6_spill] sm:$0xff] }
 0xb5e   :  { %v24369_v40 = vmul.f32 %v24187_v12, %v25641_v13  ;;  %v24373_v18 = vmul.f32 %v25642_v22, %v24187_v12  ;;  %v24377_v24 = vmul.f32 %v24187_v12, %v25643_v2  ;;  %v24381_v8 = vmul.f32 %v25644_v62, %v24187_v12  ;;  %v25652_v22 = vld [vmem:[#allocation63_spill] sm:$0xff]  ;;  %v25654_v62 = vld [vmem:[#allocation62_spill] sm:$0xff] }
 0xb5f   :  { %v24385_v42 = vmul.f32 %v24187_v12, %v25645_v41  ;;  %v24389_v57 = vmul.f32 %v25646_v35, %v24187_v12  ;;  %v24393_v32 = vmul.f32 %v24187_v12, %v25648_v36  ;;  %v24397_v13 = vmul.f32 %v25650_v52, %v24187_v12 }
 0xb60   :  { %v24401_v2 = vmul.f32 %v24187_v12, %v25652_v22  ;;  %v24405_v41 = vmul.f32 %v25654_v62, %v24187_v12  ;;  %v24409_v35 = vmul.f32 %v24187_v12, %v25656_v63 }
 0xb61   :  { %25647 = vst [vmem:[#allocation9_spill] sm:$0xff] %v24389_v57  ;;  %25649 = vst [vmem:[#allocation11_spill] sm:$0xff] %v24393_v32  ;;  %v25658_v57 = vld [vmem:[#allocation64_spill] sm:$0xff]  ;;  %v25660_v32 = vld [vmem:[#allocation67_spill] sm:$0xff] }
 0xb62   :  { %25651 = vst [vmem:[#allocation10_spill] sm:$0xff] %v24397_v13  ;;  %25653 = vst [vmem:[#allocation13_spill] sm:$0xff] %v24401_v2  ;;  %v24413_v36 = vmul.f32 %v25658_v57, %v24187_v12  ;;  %v24417_v52 = vmul.f32 %v24187_v12, %v25660_v32  ;;  %v25662_v13 = vld [vmem:[#allocation66_spill] sm:$0xff]  ;;  %v25664_v2 = vld [vmem:[#allocation69_spill] sm:$0xff] }
 0xb63   :  { %25655 = vst [vmem:[#allocation12_spill] sm:$0xff] %v24405_v41  ;;  %25657 = vst [vmem:[#allocation15_spill] sm:$0xff] %v24409_v35  ;;  %v24421_v22 = vmul.f32 %v25662_v13, %v24187_v12  ;;  %v24425_v62 = vmul.f32 %v24187_v12, %v25664_v2  ;;  %v25665_v41 = vld [vmem:[#allocation68_spill] sm:$0xff]  ;;  %v25667_v35 = vld [vmem:[#allocation71_spill] sm:$0xff] }
 0xb64   :  { %25659 = vst [vmem:[#allocation14_spill] sm:$0xff] %v24413_v36  ;;  %25661 = vst [vmem:[#allocation17_spill] sm:$0xff] %v24417_v52  ;;  %v24429_v63 = vmul.f32 %v25665_v41, %v24187_v12  ;;  %v24433_v57 = vmul.f32 %v24187_v12, %v25667_v35  ;;  %v25668_v36 = vld [vmem:[#allocation70_spill] sm:$0xff]  ;;  %v25669_v52 = vld [vmem:[#allocation8_spill] sm:$0xff]  ;;  %v25671_v41 = vsub.f32 %v24182_v20, %v24184_v26 }
 0xb65   :  { %25663 = vst [vmem:[#allocation16_spill] sm:$0xff] %v24421_v22  ;;  %v24437_v32 = vmul.f32 %v25668_v36, %v24187_v12  ;;  %v24441_v13 = vmul.f32 %v24187_v12, %v25669_v52  ;;  %v25670_v22 = vld [vmem:[#allocation72_spill] sm:$0xff] }
 0xb66   :  { %25666 = vst [vmem:[#allocation19_spill] sm:$0xff] %v24429_v63  ;;  %v24445_v2 = vmul.f32 %v25670_v22, %v24187_v12  ;;  %v24451_v63 = vrot.slane %v25671_v41, %v25636_v1 }
 0xb68   :  { %v24455_v35 = vadd.f32 %v24451_v63, %v24193_v4  ;;  %v24459_v36 = vadd.f32 %v24451_v63, %v24197_v21  ;;  %v24463_v52 = vadd.f32 %v24451_v63, %v24201_v54  ;;  %v24467_v12 = vadd.f32 %v24451_v63, %v24205_v10 }
 0xb69   :  { %v24471_v20 = vadd.f32 %v24451_v63, %v24209_v46  ;;  %v24475_v26 = vadd.f32 %v24451_v63, %v24213_v19  ;;  %v24479_v1 = vadd.f32 %v24451_v63, %v24217_v11  ;;  %v24483_v4 = vadd.f32 %v24451_v63, %v24221_v25  ;;  %v25678_v22 = vld [vmem:[#allocation10_spill] sm:$0xff]  ;;  %v25680_v41 = vld [vmem:[#allocation13_spill] sm:$0xff] }
 0xb6a   :  { %v24487_v21 = vadd.f32 %v24451_v63, %v24225_v7  ;;  %v24491_v54 = vadd.f32 %v24451_v63, %v24229_v17  ;;  %v24495_v10 = vadd.f32 %v24451_v63, %v24233_v14  ;;  %v24499_v46 = vadd.f32 %v24451_v63, %v24237_v59 }
 0xb6b   :  { %v24503_v19 = vadd.f32 %v24451_v63, %v24241_v27  ;;  %v24507_v11 = vadd.f32 %v24451_v63, %v24245_v15  ;;  %v24511_v25 = vadd.f32 %v24451_v63, %v24249_v16  ;;  %v24515_v7 = vadd.f32 %v24451_v63, %v24253_v5 }
 0xb6c   :  { %v24519_v17 = vadd.f32 %v24451_v63, %v24257_v6  ;;  %v24523_v14 = vadd.f32 %v24451_v63, %v24261_v34  ;;  %v24527_v59 = vadd.f32 %v24451_v63, %v24265_v23  ;;  %v24531_v27 = vadd.f32 %v24451_v63, %v24269_v31 }
 0xb6d   :  { %v24535_v15 = vadd.f32 %v24451_v63, %v24273_v43  ;;  %v24539_v16 = vadd.f32 %v24451_v63, %v24277_v9  ;;  %v24543_v5 = vadd.f32 %v24451_v63, %v24281_v30  ;;  %v24547_v6 = vadd.f32 %v24451_v63, %v24285_v44 }
 0xb6e   :  { %v24551_v34 = vadd.f32 %v24451_v63, %v24289_v61  ;;  %v24555_v23 = vadd.f32 %v24451_v63, %v24293_v0  ;;  %v24559_v31 = vadd.f32 %v24451_v63, %v24297_v58  ;;  %v24563_v43 = vadd.f32 %v24451_v63, %v24301_v51 }
 0xb6f   :  { %v24567_v9 = vadd.f32 %v24451_v63, %v24305_v29  ;;  %v24571_v30 = vadd.f32 %v24451_v63, %v24309_v39  ;;  %v24575_v44 = vadd.f32 %v24451_v63, %v24313_v45  ;;  %v24579_v61 = vadd.f32 %v24451_v63, %v24317_v3 }
 0xb70   :  { %v24583_v0 = vadd.f32 %v24451_v63, %v24321_v56  ;;  %v24587_v58 = vadd.f32 %v24451_v63, %v24325_v50  ;;  %v24591_v51 = vadd.f32 %v24451_v63, %v24329_v49  ;;  %v24595_v29 = vadd.f32 %v24451_v63, %v24333_v60 }
 0xb71   :  { %v24599_v39 = vadd.f32 %v24451_v63, %v24337_v37  ;;  %v24603_v45 = vadd.f32 %v24451_v63, %v24341_v53  ;;  %v24607_v3 = vadd.f32 %v24451_v63, %v24345_v33  ;;  %v24611_v56 = vadd.f32 %v24451_v63, %v24349_v48 }
 0xb72   :  { %v24615_v50 = vadd.f32 %v24451_v63, %v24353_v28  ;;  %v24619_v49 = vadd.f32 %v24451_v63, %v24357_v38  ;;  %v24623_v60 = vadd.f32 %v24451_v63, %v24361_v47  ;;  %v24627_v37 = vadd.f32 %v24451_v63, %v24365_v55  ;;  %v25674_v47 = vld [vmem:[#allocation9_spill] sm:$0xff] }
 0xb73   :  { %v24631_v53 = vadd.f32 %v24451_v63, %v24369_v40  ;;  %v24635_v33 = vadd.f32 %v24451_v63, %v24373_v18  ;;  %v24639_v48 = vadd.f32 %v24451_v63, %v24377_v24  ;;  %v24643_v28 = vadd.f32 %v24451_v63, %v24381_v8  ;;  %v25676_v40 = vld [vmem:[#allocation11_spill] sm:$0xff] }
 0xb74   :  { %v24647_v38 = vadd.f32 %v24451_v63, %v24385_v42  ;;  %v24651_v55 = vadd.f32 %v24451_v63, %v25674_v47  ;;  %v24655_v18 = vadd.f32 %v24451_v63, %v25676_v40  ;;  %v24659_v24 = vadd.f32 %v24451_v63, %v25678_v22 }
 0xb75   :  { %25672 = vst [vmem:[#allocation18_spill] sm:$0xff] %v24643_v28  ;;  %v24663_v8 = vadd.f32 %v24451_v63, %v25680_v41  ;;  %v25681_v28 = vld [vmem:[#allocation12_spill] sm:$0xff] }
 0xb76   :  { %25673 = vst [vmem:[#allocation21_spill] sm:$0xff] %v24647_v38  ;;  %25675 = vst [vmem:[#allocation20_spill] sm:$0xff] %v24651_v55  ;;  %v24667_v42 = vadd.f32 %v24451_v63, %v25681_v28  ;;  %v25683_v38 = vld [vmem:[#allocation15_spill] sm:$0xff]  ;;  %v25684_v55 = vld [vmem:[#allocation14_spill] sm:$0xff]  ;;  %v24687_v28 = vadd.f32 %v24451_v63, %v24425_v62  ;;  %v24707_v62 = vadd.f32 %v24451_v63, %v24445_v2  ;;  %v13932_v2 = vmax.f32 %v24495_v10, 0.0 }
 0xb77   :  { %25677 = vst [vmem:[#allocation23_spill] sm:$0xff] %v24655_v18  ;;  %25679 = vst [vmem:[#allocation22_spill] sm:$0xff] %v24659_v24  ;;  %v24671_v47 = vadd.f32 %v24451_v63, %v25683_v38  ;;  %v24675_v40 = vadd.f32 %v24451_v63, %v25684_v55  ;;  %v25685_v18 = vld [vmem:[#allocation17_spill] sm:$0xff]  ;;  %v25686_v24 = vld [vmem:[#allocation16_spill] sm:$0xff]  ;;  %v24695_v55 = vadd.f32 %v24451_v63, %v24433_v57  ;;  %v13925_v57 = vmax.f32 %v24467_v12, 0.0 }
 0xb78   :  { %25682 = vst [vmem:[#allocation25_spill] sm:$0xff] %v24667_v42  ;;  %v24679_v22 = vadd.f32 %v24451_v63, %v25685_v18  ;;  %v24683_v41 = vadd.f32 %v24451_v63, %v25686_v24  ;;  %25687 = vst [vmem:[#allocation24_spill] sm:$0xff] %v24687_v28  ;;  %v25688_v42 = vld [vmem:[#allocation19_spill] sm:$0xff]  ;;  %v24699_v18 = vadd.f32 %v24451_v63, %v24437_v32  ;;  %v13922_v28 = vmax.f32 %v24455_v35, 0.0 }
 0xb79   :  { %v24691_v38 = vadd.f32 %v24451_v63, %v25688_v42  ;;  %25690 = vst [vmem:[#allocation26_spill] sm:$0xff] %v24695_v55  ;;  %v24703_v24 = vadd.f32 %v24451_v63, %v24441_v13  ;;  %v13923_v42 = vmax.f32 %v24459_v36, 0.0  ;;  %v13926_v55 = vmax.f32 %v24471_v20, 0.0  ;;  %13989 = vst.msk [vmem:[%s25036_s7 + $0x18] sm:$0xff] %vm6506_vm4, %v13925_v57 }
 0xb7a   :  { %25691 = vst [vmem:[#allocation29_spill] sm:$0xff] %v24699_v18  ;;  %v13927_v32 = vmax.f32 %v24475_v26, 0.0  ;;  %v13928_v18 = vmax.f32 %v24479_v1, 0.0  ;;  %v13929_v13 = vmax.f32 %v24483_v4, 0.0  ;;  %v13931_v63 = vmax.f32 %v24491_v54, 0.0  ;;  %13986 = vst.msk [vmem:[%s25036_s7] sm:$0xff] %vm6506_vm4, %v13922_v28 }
 0xb7b   :  { %25689 = vst [vmem:[#allocation27_spill] sm:$0xff] %v24691_v38  ;;  %25692 = vst [vmem:[#allocation28_spill] sm:$0xff] %v24703_v24  ;;  %v13924_v38 = vmax.f32 %v24463_v52, 0.0  ;;  %v13930_v24 = vmax.f32 %v24487_v21, 0.0  ;;  %v13933_v35 = vmax.f32 %v24499_v46, 0.0  ;;  %v13934_v36 = vmax.f32 %v24503_v19, 0.0 }
 0xb7c   :  { %13987 = vst.msk [vmem:[%s25036_s7 + $0x8] sm:$0xff] %vm6506_vm4, %v13923_v42  ;;  %v13935_v52 = vmax.f32 %v24507_v11, 0.0  ;;  %v13936_v12 = vmax.f32 %v24511_v25, 0.0  ;;  %v13937_v20 = vmax.f32 %v24515_v7, 0.0  ;;  %13990 = vst.msk [vmem:[%s25036_s7 + $0x20] sm:$0xff] %vm6506_vm4, %v13926_v55  ;;  %v13938_v26 = vmax.f32 %v24519_v17, 0.0 }
 0xb7d   :  { %13988 = vst.msk [vmem:[%s25036_s7 + $0x10] sm:$0xff] %vm6506_vm4, %v13924_v38  ;;  %13991 = vst.msk [vmem:[%s25036_s7 + $0x28] sm:$0xff] %vm6506_vm4, %v13927_v32  ;;  %v13939_v1 = vmax.f32 %v24523_v14, 0.0  ;;  %v13940_v4 = vmax.f32 %v24527_v59, 0.0  ;;  %v13941_v21 = vmax.f32 %v24531_v27, 0.0  ;;  %v13942_v54 = vmax.f32 %v24535_v15, 0.0 }
 0xb7e   :  { %13992 = vst.msk [vmem:[%s25036_s7 + $0x30] sm:$0xff] %vm6506_vm4, %v13928_v18  ;;  %13993 = vst.msk [vmem:[%s25036_s7 + $0x38] sm:$0xff] %vm6506_vm4, %v13929_v13  ;;  %v13943_v10 = vmax.f32 %v24539_v16, 0.0  ;;  %v13944_v46 = vmax.f32 %v24543_v5, 0.0  ;;  %v13945_v19 = vmax.f32 %v24547_v6, 0.0  ;;  %v13946_v11 = vmax.f32 %v24551_v34, 0.0 }
 0xb7f   :  { %13994 = vst.msk [vmem:[%s25036_s7 + $0x40] sm:$0xff] %vm6506_vm4, %v13930_v24  ;;  %13995 = vst.msk [vmem:[%s25036_s7 + $0x48] sm:$0xff] %vm6506_vm4, %v13931_v63  ;;  %v13947_v25 = vmax.f32 %v24555_v23, 0.0  ;;  %v13948_v7 = vmax.f32 %v24559_v31, 0.0  ;;  %v13949_v17 = vmax.f32 %v24563_v43, 0.0  ;;  %v13950_v14 = vmax.f32 %v24567_v9, 0.0 }
 0xb80   :  { %13996 = vst.msk [vmem:[%s25036_s7 + $0x50] sm:$0xff] %vm6506_vm4, %v13932_v2  ;;  %13997 = vst.msk [vmem:[%s25036_s7 + $0x58] sm:$0xff] %vm6506_vm4, %v13933_v35  ;;  %v13951_v59 = vmax.f32 %v24571_v30, 0.0  ;;  %v13952_v27 = vmax.f32 %v24575_v44, 0.0  ;;  %v13953_v15 = vmax.f32 %v24579_v61, 0.0  ;;  %v13954_v16 = vmax.f32 %v24583_v0, 0.0 }
 0xb81   :  { %13998 = vst.msk [vmem:[%s25036_s7 + $0x60] sm:$0xff] %vm6506_vm4, %v13934_v36  ;;  %13999 = vst.msk [vmem:[%s25036_s7 + $0x68] sm:$0xff] %vm6506_vm4, %v13935_v52  ;;  %v13955_v5 = vmax.f32 %v24587_v58, 0.0  ;;  %v13956_v6 = vmax.f32 %v24591_v51, 0.0  ;;  %v13957_v34 = vmax.f32 %v24595_v29, 0.0  ;;  %v13958_v23 = vmax.f32 %v24599_v39, 0.0 }
 0xb82   :  { %14000 = vst.msk [vmem:[%s25036_s7 + $0x70] sm:$0xff] %vm6506_vm4, %v13936_v12  ;;  %14001 = vst.msk [vmem:[%s25036_s7 + $0x78] sm:$0xff] %vm6506_vm4, %v13937_v20  ;;  %v13959_v31 = vmax.f32 %v24603_v45, 0.0  ;;  %v13960_v43 = vmax.f32 %v24607_v3, 0.0  ;;  %v13961_v9 = vmax.f32 %v24611_v56, 0.0  ;;  %v13962_v30 = vmax.f32 %v24615_v50, 0.0 }
 0xb83   :  { %14002 = vst.msk [vmem:[%s25036_s7 + $0x80] sm:$0xff] %vm6506_vm4, %v13938_v26  ;;  %14003 = vst.msk [vmem:[%s25036_s7 + $0x88] sm:$0xff] %vm6506_vm4, %v13939_v1  ;;  %v13963_v44 = vmax.f32 %v24619_v49, 0.0  ;;  %v13964_v61 = vmax.f32 %v24623_v60, 0.0  ;;  %v13965_v0 = vmax.f32 %v24627_v37, 0.0  ;;  %v13966_v58 = vmax.f32 %v24631_v53, 0.0 }
 0xb84   :  { %14004 = vst.msk [vmem:[%s25036_s7 + $0x90] sm:$0xff] %vm6506_vm4, %v13940_v4  ;;  %14005 = vst.msk [vmem:[%s25036_s7 + $0x98] sm:$0xff] %vm6506_vm4, %v13941_v21  ;;  %v13967_v51 = vmax.f32 %v24635_v33, 0.0  ;;  %v13968_v29 = vmax.f32 %v24639_v48, 0.0  ;;  %v25693_v39 = vld [vmem:[#allocation18_spill] sm:$0xff]  ;;  %v25694_v3 = vld [vmem:[#allocation21_spill] sm:$0xff] }
 0xb85   :  { %14006 = vst.msk [vmem:[%s25036_s7 + $0xa0] sm:$0xff] %vm6506_vm4, %v13942_v54  ;;  %14007 = vst.msk [vmem:[%s25036_s7 + $0xa8] sm:$0xff] %vm6506_vm4, %v13943_v10  ;;  %v13969_v45 = vmax.f32 %v25693_v39, 0.0  ;;  %v13970_v56 = vmax.f32 %v25694_v3, 0.0  ;;  %v25695_v50 = vld [vmem:[#allocation20_spill] sm:$0xff]  ;;  %v25696_v60 = vld [vmem:[#allocation23_spill] sm:$0xff] }
 0xb86   :  { %14008 = vst.msk [vmem:[%s25036_s7 + $0xb0] sm:$0xff] %vm6506_vm4, %v13944_v46  ;;  %14009 = vst.msk [vmem:[%s25036_s7 + $0xb8] sm:$0xff] %vm6506_vm4, %v13945_v19  ;;  %v13971_v49 = vmax.f32 %v25695_v50, 0.0  ;;  %v13972_v37 = vmax.f32 %v25696_v60, 0.0  ;;  %v25697_v53 = vld [vmem:[#allocation22_spill] sm:$0xff]  ;;  %v13974_v48 = vmax.f32 %v24663_v8, 0.0 }
 0xb87   :  { %14010 = vst.msk [vmem:[%s25036_s7 + $0xc0] sm:$0xff] %vm6506_vm4, %v13946_v11  ;;  %14011 = vst.msk [vmem:[%s25036_s7 + $0xc8] sm:$0xff] %vm6506_vm4, %v13947_v25  ;;  %v13973_v33 = vmax.f32 %v25697_v53, 0.0  ;;  %v25698_v28 = vld [vmem:[#allocation25_spill] sm:$0xff]  ;;  %v13976_v55 = vmax.f32 %v24671_v47, 0.0  ;;  %v13977_v18 = vmax.f32 %v24675_v40, 0.0 }
 0xb88   :  { %14012 = vst.msk [vmem:[%s25036_s7 + $0xd0] sm:$0xff] %vm6506_vm4, %v13948_v7  ;;  %14013 = vst.msk [vmem:[%s25036_s7 + $0xd8] sm:$0xff] %vm6506_vm4, %v13949_v17  ;;  %v13975_v38 = vmax.f32 %v25698_v28, 0.0  ;;  %v13978_v8 = vmax.f32 %v24679_v22, 0.0  ;;  %v13979_v47 = vmax.f32 %v24683_v41, 0.0  ;;  %v25699_v40 = vld [vmem:[#allocation24_spill] sm:$0xff] }
 0xb89   :  { %14014 = vst.msk [vmem:[%s25036_s7 + $0xe0] sm:$0xff] %vm6506_vm4, %v13950_v14  ;;  %14015 = vst.msk [vmem:[%s25036_s7 + $0xe8] sm:$0xff] %vm6506_vm4, %v13951_v59  ;;  %v13980_v24 = vmax.f32 %v25699_v40, 0.0  ;;  %v25700_v42 = vld [vmem:[#allocation27_spill] sm:$0xff]  ;;  %v25701_v22 = vld [vmem:[#allocation26_spill] sm:$0xff]  ;;  %v13985_v35 = vmax.f32 %v24707_v62, 0.0 }
 0xb8a   :  { %14016 = vst.msk [vmem:[%s25036_s7 + $0xf0] sm:$0xff] %vm6506_vm4, %v13952_v27  ;;  %14017 = vst.msk [vmem:[%s25036_s7 + $0xf8] sm:$0xff] %vm6506_vm4, %v13953_v15  ;;  %v13981_v57 = vmax.f32 %v25700_v42, 0.0  ;;  %v13982_v41 = vmax.f32 %v25701_v22, 0.0  ;;  %v25702_v32 = vld [vmem:[#allocation29_spill] sm:$0xff]  ;;  %v25703_v63 = vld [vmem:[#allocation28_spill] sm:$0xff] }
 0xb8b   :  { %14018 = vst.msk [vmem:[%s25036_s7 + $0x100] sm:$0xff] %vm6506_vm4, %v13954_v16  ;;  %14019 = vst.msk [vmem:[%s25036_s7 + $0x108] sm:$0xff] %vm6506_vm4, %v13955_v5  ;;  %v13983_v13 = vmax.f32 %v25702_v32, 0.0  ;;  %v13984_v2 = vmax.f32 %v25703_v63, 0.0 }
 0xb8c   :  { %14020 = vst.msk [vmem:[%s25036_s7 + $0x110] sm:$0xff] %vm6506_vm4, %v13956_v6  ;;  %14021 = vst.msk [vmem:[%s25036_s7 + $0x118] sm:$0xff] %vm6506_vm4, %v13957_v34 }
 0xb8d   :  { %14022 = vst.msk [vmem:[%s25036_s7 + $0x120] sm:$0xff] %vm6506_vm4, %v13958_v23  ;;  %14023 = vst.msk [vmem:[%s25036_s7 + $0x128] sm:$0xff] %vm6506_vm4, %v13959_v31 }
 0xb8e   :  { %14024 = vst.msk [vmem:[%s25036_s7 + $0x130] sm:$0xff] %vm6506_vm4, %v13960_v43  ;;  %14025 = vst.msk [vmem:[%s25036_s7 + $0x138] sm:$0xff] %vm6506_vm4, %v13961_v9 }
 0xb8f   :  { %14026 = vst.msk [vmem:[%s25036_s7 + $0x140] sm:$0xff] %vm6506_vm4, %v13962_v30  ;;  %14027 = vst.msk [vmem:[%s25036_s7 + $0x148] sm:$0xff] %vm6506_vm4, %v13963_v44 }
 0xb90   :  { %14028 = vst.msk [vmem:[%s25036_s7 + $0x150] sm:$0xff] %vm6506_vm4, %v13964_v61  ;;  %14029 = vst.msk [vmem:[%s25036_s7 + $0x158] sm:$0xff] %vm6506_vm4, %v13965_v0 }
 0xb91   :  { %14030 = vst.msk [vmem:[%s25036_s7 + $0x160] sm:$0xff] %vm6506_vm4, %v13966_v58  ;;  %14031 = vst.msk [vmem:[%s25036_s7 + $0x168] sm:$0xff] %vm6506_vm4, %v13967_v51 }
 0xb92   :  { %14032 = vst.msk [vmem:[%s25036_s7 + $0x170] sm:$0xff] %vm6506_vm4, %v13968_v29  ;;  %14033 = vst.msk [vmem:[%s25036_s7 + $0x178] sm:$0xff] %vm6506_vm4, %v13969_v45 }
 0xb93   :  { %14034 = vst.msk [vmem:[%s25036_s7 + $0x180] sm:$0xff] %vm6506_vm4, %v13970_v56  ;;  %14035 = vst.msk [vmem:[%s25036_s7 + $0x188] sm:$0xff] %vm6506_vm4, %v13971_v49 }
 0xb94   :  { %14036 = vst.msk [vmem:[%s25036_s7 + $0x190] sm:$0xff] %vm6506_vm4, %v13972_v37  ;;  %14037 = vst.msk [vmem:[%s25036_s7 + $0x198] sm:$0xff] %vm6506_vm4, %v13973_v33 }
 0xb95   :  { %14038 = vst.msk [vmem:[%s25036_s7 + $0x1a0] sm:$0xff] %vm6506_vm4, %v13974_v48  ;;  %14039 = vst.msk [vmem:[%s25036_s7 + $0x1a8] sm:$0xff] %vm6506_vm4, %v13975_v38 }
 0xb96   :  { %14040 = vst.msk [vmem:[%s25036_s7 + $0x1b0] sm:$0xff] %vm6506_vm4, %v13976_v55  ;;  %14041 = vst.msk [vmem:[%s25036_s7 + $0x1b8] sm:$0xff] %vm6506_vm4, %v13977_v18 }
 0xb97   :  { %14042 = vst.msk [vmem:[%s25036_s7 + $0x1c0] sm:$0xff] %vm6506_vm4, %v13978_v8  ;;  %14043 = vst.msk [vmem:[%s25036_s7 + $0x1c8] sm:$0xff] %vm6506_vm4, %v13979_v47 }
 0xb98   :  { %14044 = vst.msk [vmem:[%s25036_s7 + $0x1d0] sm:$0xff] %vm6506_vm4, %v13980_v24  ;;  %14045 = vst.msk [vmem:[%s25036_s7 + $0x1d8] sm:$0xff] %vm6506_vm4, %v13981_v57 }
 0xb99   :  { %14046 = vst.msk [vmem:[%s25036_s7 + $0x1e0] sm:$0xff] %vm6506_vm4, %v13982_v41  ;;  %14047 = vst.msk [vmem:[%s25036_s7 + $0x1e8] sm:$0xff] %vm6506_vm4, %v13983_v13 }
 0xb9a   :  { %14048 = vst.msk [vmem:[%s25036_s7 + $0x1f0] sm:$0xff] %vm6506_vm4, %v13984_v2  ;;  %14049 = vst.msk [vmem:[%s25036_s7 + $0x1f8] sm:$0xff] %vm6506_vm4, %v13985_v35 }

</bundles_post_ra>
